<compile_context>
chip_gen: v7x
topology: tpu7x:2x2x1
jax: 0.10.0
libtpu: 0.0.40
codegen_flags: <defaults>
</compile_context>

<pallas_src>
import functools

import numpy as np
import jax
import jax.numpy as jnp
from jax import lax
from jax.experimental import pallas as pl
from jax.experimental.pallas import tpu as pltpu


# ----------------------------------------------------------------------------
# Pallas kernel: rotate TZ output z-slices for ALL channels per grid step.
# grid = (D // TZ,); program_id(0) = z-batch index.
# ----------------------------------------------------------------------------
def _rotate_zbatch_kernel(zoff_ref, planar_ref, vol_ref, out_ref, *, C, D, H, W, TZ):
    OUT = H * W
    DC = D * C
    f32 = jnp.float32
    pid = pl.program_id(0)

    # Planar (z-independent) part of the input coordinates, precomputed on host.
    zi_p = planar_ref[0:1, :]          # (1, OUT)
    yi_p = planar_ref[1:2, :]          # (1, OUT)
    xi_p = planar_ref[2:3, :]          # (1, OUT)

    col_w = lax.broadcasted_iota(jnp.int32, (W, OUT), 0)
    col_h = lax.broadcasted_iota(jnp.int32, (H, OUT), 0)
    col_d = lax.broadcasted_iota(jnp.int32, (D, OUT), 0)

    def corner_weights(coord, col_iota, size):
        # One-hot linear-interpolation weights along one axis; out-of-range
        # corners get weight 0 (matches constant-0 boundary handling).
        c0f = jnp.floor(coord)
        frac = coord - c0f
        c0 = c0f.astype(jnp.int32)
        w0 = (1.0 - frac) * ((c0 >= 0) & (c0 < size)).astype(f32)
        w1 = frac * ((c0 + 1 >= 0) & (c0 + 1 < size)).astype(f32)
        # fused two-term build (single write pass, no accumulator)
        return jnp.where(col_iota == c0, w0, 0.0) + jnp.where(col_iota == c0 + 1, w1, 0.0)

    wx_parts, wy_parts, wz_parts = [], [], []
    for t in range(TZ):
        zglob = pid * TZ + t
        zi = zi_p + zoff_ref[zglob]            # (1, OUT)
        yi = yi_p + zoff_ref[D + zglob]
        xi = xi_p + zoff_ref[2 * D + zglob]
        wz_parts.append(corner_weights(zi, col_d, D))   # (D, OUT)
        wy_parts.append(corner_weights(yi, col_h, H))   # (H, OUT)
        wx_parts.append(corner_weights(xi, col_w, W))   # (W, OUT)

    wx_all = jnp.concatenate(wx_parts, axis=1)          # (W, TZ*OUT)
    wy_all = jnp.concatenate(wy_parts, axis=1)          # (H, TZ*OUT)
    wz_all = jnp.concatenate(wz_parts, axis=1)          # (D, TZ*OUT)

    # ---- x gather + interpolation: one MXU matmul for all channels/planes/slices.
    vol = vol_ref[...]                                          # (H*D*C, W), rows (h, d, c)
    px = jnp.dot(vol, wx_all, preferred_element_type=f32)       # (H*D*C, TZ*OUT)

    # ---- y interpolation: weighted reduction over the H row-slabs (2-D, aligned).
    pdc = px[0:DC, :] * wy_all[0:1, :]
    for h in range(1, H):
        pdc = pdc + px[h * DC:(h + 1) * DC, :] * wy_all[h:h + 1, :]   # (D*C, TZ*OUT)

    # ---- z interpolation: weighted reduction over the D row-slabs.
    pc = pdc[0:C, :] * wz_all[0:1, :]
    for d in range(1, D):
        pc = pc + pdc[d * C:(d + 1) * C, :] * wz_all[d:d + 1, :]      # (C, TZ*OUT)

    # ---- single full-tile store: rows ordered (tz, c), lanes = H*W.
    if TZ == 1:
        out_ref[...] = pc
    else:
        out_ref[...] = jnp.concatenate(
            [pc[:, t * OUT:(t + 1) * OUT] for t in range(TZ)], axis=0)  # (TZ*C, OUT)


def _choose_tz(C, D, H, W):
    """How many output z-slices to batch per grid step."""
    out = H * W
    rows = H * D * C
    cands = [t for t in range(1, D + 1) if D % t == 0 and D // t >= 2]
    good = [t for t in cands
            if (t * C) % 8 == 0                                   # whole (8,128) output tiles
            and rows * t * out * 4 <= 32 * 1024 * 1024]           # bound the stage-1 product
    if good:
        # aim for ~16 output rows per step (2 sublane tiles) to amortise overhead
        return min(good, key=lambda t: (abs(t * C - 16), t))
    return 1


def rotate_image_pallas(image_dhwc, transform):
    """image_dhwc: (D, H, W, C).  transform: host-side numpy 3x3 rotation matrix.
    Returns the rotated image, same layout, float32."""
    D, H, W, C = image_dhwc.shape
    OUT = H * W
    TZ = _choose_tz(C, D, H, W)

    # Host-side coordinate precompute (float64, exact integer divmod):
    #   input_coord = transform.T @ (output_coord - center) + center
    m = np.asarray(transform, dtype=np.float64).T
    cz, cy, cx = 0.5 * D, 0.5 * H, 0.5 * W
    o = np.arange(OUT, dtype=np.int64)
    yc = (o // W).astype(np.float64) - cy
    xc = (o % W).astype(np.float64) - cx
    planar = np.stack([m[0, 1] * yc + m[0, 2] * xc + cz,
                       m[1, 1] * yc + m[1, 2] * xc + cy,
                       m[2, 1] * yc + m[2, 2] * xc + cx]).astype(np.float32)     # (3, OUT)
    zc = np.arange(D, dtype=np.float64) - cz
    zoff = np.concatenate([m[0, 0] * zc, m[1, 0] * zc,
                           m[2, 0] * zc]).astype(np.float32)                     # (3*D,)

    # One input transpose: rows ordered (h, d, c); the gathered x axis on lanes.
    vol_rows = jnp.transpose(image_dhwc.astype(jnp.float32),
                             (1, 0, 3, 2)).reshape(H * D * C, W)

    out = pl.pallas_call(
        functools.partial(_rotate_zbatch_kernel, C=C, D=D, H=H, W=W, TZ=TZ),
        out_shape=jax.ShapeDtypeStruct((D // TZ, TZ * C, OUT), jnp.float32),
        grid=(D // TZ,),
        in_specs=[
            pl.BlockSpec(memory_space=pltpu.MemorySpace.SMEM),     # (3*D,) per-slice z offsets
            pl.BlockSpec((3, OUT), lambda z: (0, 0)),              # planar coordinate part
            pl.BlockSpec((H * D * C, W), lambda z: (0, 0)),        # resident volume
        ],
        out_specs=pl.BlockSpec((None, TZ * C, OUT), lambda z: (z, 0, 0)),
        compiler_params=pltpu.CompilerParams(
            dimension_semantics=("parallel",),      # v7x: the 2 TensorCores split z batches
            vmem_limit_bytes=48 * 1024 * 1024,      # < v7x 64 MiB physical VMEM
        ),
    )(jnp.asarray(zoff), jnp.asarray(planar), vol_rows)

    # (D//TZ, TZ*C, H*W) -> (D, C, H, W) -> ONE transpose to (D, H, W, C).
    return jnp.transpose(out.reshape(D, C, H, W), (0, 2, 3, 1))


# ----------------------------------------------------------------------------
# Module-equivalent wrapper (host-side randomisation identical to the PyTorch
# module; forward applies the rotation to every channel via the Pallas kernel).
# ----------------------------------------------------------------------------
class RandomRotationLayerPallas:
    def __init__(self):
        self._transform = None
        self.min_angle = None
        self.max_angle = None
        self.rotation_angle_x = None
        self.rotation_angle_y = None
        self.rotation_angle_z = None

    def init_uniform_angle(self, rotation_angle=(-10.0, 10.0)):
        assert rotation_angle[0] < rotation_angle[1]
        self.min_angle = float(rotation_angle[0])
        self.max_angle = float(rotation_angle[1])

    def init_non_uniform_angle(self, rx, ry, rz):
        if len(rx):
            assert rx[0] < rx[1]
        if len(ry):
            assert ry[0] < ry[1]
        if len(rz):
            assert rz[0] < rz[1]
        self.rotation_angle_x = [float(e) for e in rx]
        self.rotation_angle_y = [float(e) for e in ry]
        self.rotation_angle_z = [float(e) for e in rz]

    def randomise(self, spatial_rank=3):
        if spatial_rank == 3:
            self._randomise_transformation_3d()

    def _randomise_transformation_3d(self):
        angle_x = angle_y = angle_z = 0.0
        if self.min_angle is None and self.max_angle is None:
            if len(self.rotation_angle_x) >= 2:
                angle_x = np.random.uniform(*self.rotation_angle_x[:2]) * np.pi / 180.0
            if len(self.rotation_angle_y) >= 2:
                angle_y = np.random.uniform(*self.rotation_angle_y[:2]) * np.pi / 180.0
            if len(self.rotation_angle_z) >= 2:
                angle_z = np.random.uniform(*self.rotation_angle_z[:2]) * np.pi / 180.0
        else:
            angle_x = np.random.uniform(self.min_angle, self.max_angle) * np.pi / 180.0
            angle_y = np.random.uniform(self.min_angle, self.max_angle) * np.pi / 180.0
            angle_z = np.random.uniform(self.min_angle, self.max_angle) * np.pi / 180.0
        tx = np.array([[np.cos(angle_x), -np.sin(angle_x), 0.0],
                       [np.sin(angle_x), np.cos(angle_x), 0.0],
                       [0.0, 0.0, 1.0]])
        ty = np.array([[np.cos(angle_y), 0.0, np.sin(angle_y)],
                       [0.0, 1.0, 0.0],
                       [-np.sin(angle_y), 0.0, np.cos(angle_y)]])
        tz = np.array([[1.0, 0.0, 0.0],
                       [0.0, np.cos(angle_z), -np.sin(angle_z)],
                       [0.0, np.sin(angle_z), np.cos(angle_z)]])
        self._transform = np.dot(tz, np.dot(tx, ty))

    def _apply_4d(self, image, interp_order):
        if interp_order < 0:
            return image
        assert image.ndim == 4
        assert self._transform is not None
        assert all(d > 1 for d in image.shape[:3]), "random rotation supports 3D inputs only"
        out = rotate_image_pallas(image, self._transform)
        return out.astype(image.dtype)

    def forward(self, inputs, interp_orders):
        if inputs is None:
            return inputs
        if isinstance(inputs, dict) and isinstance(interp_orders, dict):
            outputs = {}
            for field, image in inputs.items():
                interp_order = interp_orders[field][0]
                if image.ndim == 4:
                    outputs[field] = self._apply_4d(image, interp_order)
                elif image.ndim == 5:
                    ts = [self._apply_4d(image[..., t, :], interp_order)
                          for t in range(image.shape[-2])]
                    outputs[field] = jnp.stack(ts, axis=-2)
                else:
                    raise NotImplementedError("unknown input format")
            return outputs
        raise NotImplementedError("unknown input format")

    __call__ = forward


# ----------------------------------------------------------------------------
# Pure-JAX reference (trilinear, constant-0 boundary) for validation.
# ----------------------------------------------------------------------------
def _reference_rotate(vol_cdhw, transform):
    C, D, H, W = vol_cdhw.shape
    m = np.asarray(transform).T.astype(np.float32)
    zz, yy, xx = jnp.meshgrid(jnp.arange(D, dtype=jnp.float32),
                              jnp.arange(H, dtype=jnp.float32),
                              jnp.arange(W, dtype=jnp.float32), indexing="ij")
    cz, cy, cx = 0.5 * D, 0.5 * H, 0.5 * W
    zc, yc, xc = zz - cz, yy - cy, xx - cx
    zi = m[0, 0] * zc + m[0, 1] * yc + m[0, 2] * xc + cz
    yi = m[1, 0] * zc + m[1, 1] * yc + m[1, 2] * xc + cy
    xi = m[2, 0] * zc + m[2, 1] * yc + m[2, 2] * xc + cx

    def one(vol3d):
        return jax.scipy.ndimage.map_coordinates(
            vol3d, [zi, yi, xi], order=1, mode="constant", cval=0.0)

    return jax.vmap(one)(vol_cdhw)


if __name__ == "__main__":
    np.random.seed(0)
    layer = RandomRotationLayerPallas()
    layer.init_uniform_angle((-10.0, 10.0))
    layer.randomise(spatial_rank=3)

    D = H = W = 16
    C = 4
    key = jax.random.PRNGKey(0)
    image = jax.random.normal(key, (D, H, W, C), dtype=jnp.float32)

    inputs = {"image": image}
    interp_orders = {"image": [3]}

    out = layer.forward(inputs, interp_orders)
    out_img = jax.block_until_ready(out["image"])
    assert out_img.shape == (D, H, W, C)

    # Validate against the pure-JAX trilinear reference.
    vol = jnp.transpose(image, (3, 0, 1, 2))
    ref = jnp.transpose(_reference_rotate(vol, layer._transform), (1, 2, 3, 0))
    err = float(jnp.max(jnp.abs(out_img - ref)))
    assert err < 1e-3, f"max abs err {err}"

    print("KERNEL_OK")
</pallas_src>

<mosaic_0001>
module attributes {stable_mosaic.version = 11 : i64} {
  func.func @_rotate_zbatch_kernel(%arg0: i32, %arg1: memref<48xf32, #tpu.memory_space<smem>>, %arg2: memref<3x256xf32, #tpu.memory_space<vmem>>, %arg3: memref<1024x16xf32, #tpu.memory_space<vmem>>, %arg4: memref<1x16x256xf32, #tpu.memory_space<vmem>>) attributes {dimension_semantics = [#tpu.dimension_semantics<parallel>], iteration_bounds = array<i64: 4>, scalar_prefetch = 0 : i64, scratch_operands = 0 : i64, tpu.core_type = #tpu.core_type<tc>, window_params = [{transform_indices = @transform_0, window_bounds = array<i64: 48>}, {pipeline_mode = #tpu.pipeline_mode<synchronous>, transform_indices = @transform_1, window_bounds = array<i64: 3, 256>}, {pipeline_mode = #tpu.pipeline_mode<synchronous>, transform_indices = @transform_2, window_bounds = array<i64: 1024, 16>}, {transform_indices = @transform_3, window_bounds = array<i64: 1, 16, 256>}]} {
    %c0 = arith.constant 0 : index
    %c0_0 = arith.constant 0 : index
    %0 = vector.load %arg2[%c0, %c0_0] : memref<3x256xf32, #tpu.memory_space<vmem>>, vector<1x256xf32>
    %c1 = arith.constant 1 : index
    %c0_1 = arith.constant 0 : index
    %1 = vector.load %arg2[%c1, %c0_1] : memref<3x256xf32, #tpu.memory_space<vmem>>, vector<1x256xf32>
    %c2 = arith.constant 2 : index
    %c0_2 = arith.constant 0 : index
    %2 = vector.load %arg2[%c2, %c0_2] : memref<3x256xf32, #tpu.memory_space<vmem>>, vector<1x256xf32>
    %3 = tpu.iota {dimensions = array<i32: 0>} : vector<16x256xi32>
    %4 = tpu.iota {dimensions = array<i32: 0>} : vector<16x256xi32>
    %5 = tpu.iota {dimensions = array<i32: 0>} : vector<16x256xi32>
    %c4_i32 = arith.constant 4 : i32
    %6 = arith.muli %arg0, %c4_i32 : i32
    %c0_i32 = arith.constant 0 : i32
    %7 = arith.addi %6, %c0_i32 : i32
    %8 = arith.index_cast %7 : i32 to index
    %9 = memref.load %arg1[%8] : memref<48xf32, #tpu.memory_space<smem>>
    %10 = vector.broadcast %9 : f32 to vector<1x256xf32>
    %11 = arith.addf %0, %10 : vector<1x256xf32>
    %c16_i32 = arith.constant 16 : i32
    %12 = arith.addi %c16_i32, %7 : i32
    %13 = arith.index_cast %12 : i32 to index
    %14 = memref.load %arg1[%13] : memref<48xf32, #tpu.memory_space<smem>>
    %15 = vector.broadcast %14 : f32 to vector<1x256xf32>
    %16 = arith.addf %1, %15 : vector<1x256xf32>
    %c32_i32 = arith.constant 32 : i32
    %17 = arith.addi %c32_i32, %7 : i32
    %18 = arith.index_cast %17 : i32 to index
    %19 = memref.load %arg1[%18] : memref<48xf32, #tpu.memory_space<smem>>
    %20 = vector.broadcast %19 : f32 to vector<1x256xf32>
    %21 = arith.addf %2, %20 : vector<1x256xf32>
    %22 = math.floor %11 : vector<1x256xf32>
    %23 = arith.subf %11, %22 : vector<1x256xf32>
    %24 = arith.fptosi %22 : vector<1x256xf32> to vector<1x256xi32>
    %cst = arith.constant 1.000000e+00 : f32
    %25 = vector.broadcast %cst : f32 to vector<1x256xf32>
    %26 = arith.subf %25, %23 : vector<1x256xf32>
    %c0_i32_3 = arith.constant 0 : i32
    %27 = vector.broadcast %c0_i32_3 : i32 to vector<1x256xi32>
    %28 = arith.cmpi sge, %24, %27 : vector<1x256xi32>
    %c16_i32_4 = arith.constant 16 : i32
    %29 = vector.broadcast %c16_i32_4 : i32 to vector<1x256xi32>
    %30 = arith.cmpi slt, %24, %29 : vector<1x256xi32>
    %31 = arith.andi %28, %30 : vector<1x256xi1>
    %32 = arith.extui %31 : vector<1x256xi1> to vector<1x256xi32>
    %33 = arith.sitofp %32 : vector<1x256xi32> to vector<1x256xf32>
    %34 = arith.mulf %26, %33 : vector<1x256xf32>
    %c1_i32 = arith.constant 1 : i32
    %35 = vector.broadcast %c1_i32 : i32 to vector<1x256xi32>
    %36 = arith.addi %24, %35 : vector<1x256xi32>
    %c0_i32_5 = arith.constant 0 : i32
    %37 = vector.broadcast %c0_i32_5 : i32 to vector<1x256xi32>
    %38 = arith.cmpi sge, %36, %37 : vector<1x256xi32>
    %c1_i32_6 = arith.constant 1 : i32
    %39 = vector.broadcast %c1_i32_6 : i32 to vector<1x256xi32>
    %40 = arith.addi %24, %39 : vector<1x256xi32>
    %c16_i32_7 = arith.constant 16 : i32
    %41 = vector.broadcast %c16_i32_7 : i32 to vector<1x256xi32>
    %42 = arith.cmpi slt, %40, %41 : vector<1x256xi32>
    %43 = arith.andi %38, %42 : vector<1x256xi1>
    %44 = arith.extui %43 : vector<1x256xi1> to vector<1x256xi32>
    %45 = arith.sitofp %44 : vector<1x256xi32> to vector<1x256xf32>
    %46 = arith.mulf %23, %45 : vector<1x256xf32>
    %47 = vector.broadcast %24 : vector<1x256xi32> to vector<16x256xi32>
    %48 = arith.cmpi eq, %5, %47 : vector<16x256xi32>
    %cst_8 = arith.constant 0.000000e+00 : f32
    %49 = vector.shape_cast %34 : vector<1x256xf32> to vector<1x256xf32>
    %50 = vector.broadcast %49 : vector<1x256xf32> to vector<16x256xf32>
    %51 = vector.broadcast %cst_8 : f32 to vector<16x256xf32>
    %52 = arith.select %48, %50, %51 : vector<16x256xi1>, vector<16x256xf32>
    %c1_i32_9 = arith.constant 1 : i32
    %53 = vector.broadcast %c1_i32_9 : i32 to vector<1x256xi32>
    %54 = arith.addi %24, %53 : vector<1x256xi32>
    %55 = vector.broadcast %54 : vector<1x256xi32> to vector<16x256xi32>
    %56 = arith.cmpi eq, %5, %55 : vector<16x256xi32>
    %cst_10 = arith.constant 0.000000e+00 : f32
    %57 = vector.shape_cast %46 : vector<1x256xf32> to vector<1x256xf32>
    %58 = vector.broadcast %57 : vector<1x256xf32> to vector<16x256xf32>
    %59 = vector.broadcast %cst_10 : f32 to vector<16x256xf32>
    %60 = arith.select %56, %58, %59 : vector<16x256xi1>, vector<16x256xf32>
    %61 = arith.addf %52, %60 : vector<16x256xf32>
    %62 = math.floor %16 : vector<1x256xf32>
    %63 = arith.subf %16, %62 : vector<1x256xf32>
    %64 = arith.fptosi %62 : vector<1x256xf32> to vector<1x256xi32>
    %cst_11 = arith.constant 1.000000e+00 : f32
    %65 = vector.broadcast %cst_11 : f32 to vector<1x256xf32>
    %66 = arith.subf %65, %63 : vector<1x256xf32>
    %c0_i32_12 = arith.constant 0 : i32
    %67 = vector.broadcast %c0_i32_12 : i32 to vector<1x256xi32>
    %68 = arith.cmpi sge, %64, %67 : vector<1x256xi32>
    %c16_i32_13 = arith.constant 16 : i32
    %69 = vector.broadcast %c16_i32_13 : i32 to vector<1x256xi32>
    %70 = arith.cmpi slt, %64, %69 : vector<1x256xi32>
    %71 = arith.andi %68, %70 : vector<1x256xi1>
    %72 = arith.extui %71 : vector<1x256xi1> to vector<1x256xi32>
    %73 = arith.sitofp %72 : vector<1x256xi32> to vector<1x256xf32>
    %74 = arith.mulf %66, %73 : vector<1x256xf32>
    %c1_i32_14 = arith.constant 1 : i32
    %75 = vector.broadcast %c1_i32_14 : i32 to vector<1x256xi32>
    %76 = arith.addi %64, %75 : vector<1x256xi32>
    %c0_i32_15 = arith.constant 0 : i32
    %77 = vector.broadcast %c0_i32_15 : i32 to vector<1x256xi32>
    %78 = arith.cmpi sge, %76, %77 : vector<1x256xi32>
    %c1_i32_16 = arith.constant 1 : i32
    %79 = vector.broadcast %c1_i32_16 : i32 to vector<1x256xi32>
    %80 = arith.addi %64, %79 : vector<1x256xi32>
    %c16_i32_17 = arith.constant 16 : i32
    %81 = vector.broadcast %c16_i32_17 : i32 to vector<1x256xi32>
    %82 = arith.cmpi slt, %80, %81 : vector<1x256xi32>
    %83 = arith.andi %78, %82 : vector<1x256xi1>
    %84 = arith.extui %83 : vector<1x256xi1> to vector<1x256xi32>
    %85 = arith.sitofp %84 : vector<1x256xi32> to vector<1x256xf32>
    %86 = arith.mulf %63, %85 : vector<1x256xf32>
    %87 = vector.broadcast %64 : vector<1x256xi32> to vector<16x256xi32>
    %88 = arith.cmpi eq, %4, %87 : vector<16x256xi32>
    %cst_18 = arith.constant 0.000000e+00 : f32
    %89 = vector.shape_cast %74 : vector<1x256xf32> to vector<1x256xf32>
    %90 = vector.broadcast %89 : vector<1x256xf32> to vector<16x256xf32>
    %91 = vector.broadcast %cst_18 : f32 to vector<16x256xf32>
    %92 = arith.select %88, %90, %91 : vector<16x256xi1>, vector<16x256xf32>
    %c1_i32_19 = arith.constant 1 : i32
    %93 = vector.broadcast %c1_i32_19 : i32 to vector<1x256xi32>
    %94 = arith.addi %64, %93 : vector<1x256xi32>
    %95 = vector.broadcast %94 : vector<1x256xi32> to vector<16x256xi32>
    %96 = arith.cmpi eq, %4, %95 : vector<16x256xi32>
    %cst_20 = arith.constant 0.000000e+00 : f32
    %97 = vector.shape_cast %86 : vector<1x256xf32> to vector<1x256xf32>
    %98 = vector.broadcast %97 : vector<1x256xf32> to vector<16x256xf32>
    %99 = vector.broadcast %cst_20 : f32 to vector<16x256xf32>
    %100 = arith.select %96, %98, %99 : vector<16x256xi1>, vector<16x256xf32>
    %101 = arith.addf %92, %100 : vector<16x256xf32>
    %102 = math.floor %21 : vector<1x256xf32>
    %103 = arith.subf %21, %102 : vector<1x256xf32>
    %104 = arith.fptosi %102 : vector<1x256xf32> to vector<1x256xi32>
    %cst_21 = arith.constant 1.000000e+00 : f32
    %105 = vector.broadcast %cst_21 : f32 to vector<1x256xf32>
    %106 = arith.subf %105, %103 : vector<1x256xf32>
    %c0_i32_22 = arith.constant 0 : i32
    %107 = vector.broadcast %c0_i32_22 : i32 to vector<1x256xi32>
    %108 = arith.cmpi sge, %104, %107 : vector<1x256xi32>
    %c16_i32_23 = arith.constant 16 : i32
    %109 = vector.broadcast %c16_i32_23 : i32 to vector<1x256xi32>
    %110 = arith.cmpi slt, %104, %109 : vector<1x256xi32>
    %111 = arith.andi %108, %110 : vector<1x256xi1>
    %112 = arith.extui %111 : vector<1x256xi1> to vector<1x256xi32>
    %113 = arith.sitofp %112 : vector<1x256xi32> to vector<1x256xf32>
    %114 = arith.mulf %106, %113 : vector<1x256xf32>
    %c1_i32_24 = arith.constant 1 : i32
    %115 = vector.broadcast %c1_i32_24 : i32 to vector<1x256xi32>
    %116 = arith.addi %104, %115 : vector<1x256xi32>
    %c0_i32_25 = arith.constant 0 : i32
    %117 = vector.broadcast %c0_i32_25 : i32 to vector<1x256xi32>
    %118 = arith.cmpi sge, %116, %117 : vector<1x256xi32>
    %c1_i32_26 = arith.constant 1 : i32
    %119 = vector.broadcast %c1_i32_26 : i32 to vector<1x256xi32>
    %120 = arith.addi %104, %119 : vector<1x256xi32>
    %c16_i32_27 = arith.constant 16 : i32
    %121 = vector.broadcast %c16_i32_27 : i32 to vector<1x256xi32>
    %122 = arith.cmpi slt, %120, %121 : vector<1x256xi32>
    %123 = arith.andi %118, %122 : vector<1x256xi1>
    %124 = arith.extui %123 : vector<1x256xi1> to vector<1x256xi32>
    %125 = arith.sitofp %124 : vector<1x256xi32> to vector<1x256xf32>
    %126 = arith.mulf %103, %125 : vector<1x256xf32>
    %127 = vector.broadcast %104 : vector<1x256xi32> to vector<16x256xi32>
    %128 = arith.cmpi eq, %3, %127 : vector<16x256xi32>
    %cst_28 = arith.constant 0.000000e+00 : f32
    %129 = vector.shape_cast %114 : vector<1x256xf32> to vector<1x256xf32>
    %130 = vector.broadcast %129 : vector<1x256xf32> to vector<16x256xf32>
    %131 = vector.broadcast %cst_28 : f32 to vector<16x256xf32>
    %132 = arith.select %128, %130, %131 : vector<16x256xi1>, vector<16x256xf32>
    %c1_i32_29 = arith.constant 1 : i32
    %133 = vector.broadcast %c1_i32_29 : i32 to vector<1x256xi32>
    %134 = arith.addi %104, %133 : vector<1x256xi32>
    %135 = vector.broadcast %134 : vector<1x256xi32> to vector<16x256xi32>
    %136 = arith.cmpi eq, %3, %135 : vector<16x256xi32>
    %cst_30 = arith.constant 0.000000e+00 : f32
    %137 = vector.shape_cast %126 : vector<1x256xf32> to vector<1x256xf32>
    %138 = vector.broadcast %137 : vector<1x256xf32> to vector<16x256xf32>
    %139 = vector.broadcast %cst_30 : f32 to vector<16x256xf32>
    %140 = arith.select %136, %138, %139 : vector<16x256xi1>, vector<16x256xf32>
    %141 = arith.addf %132, %140 : vector<16x256xf32>
    %c4_i32_31 = arith.constant 4 : i32
    %142 = arith.muli %arg0, %c4_i32_31 : i32
    %c1_i32_32 = arith.constant 1 : i32
    %143 = arith.addi %142, %c1_i32_32 : i32
    %144 = arith.index_cast %143 : i32 to index
    %145 = memref.load %arg1[%144] : memref<48xf32, #tpu.memory_space<smem>>
    %146 = vector.broadcast %145 : f32 to vector<1x256xf32>
    %147 = arith.addf %0, %146 : vector<1x256xf32>
    %c16_i32_33 = arith.constant 16 : i32
    %148 = arith.addi %c16_i32_33, %143 : i32
    %149 = arith.index_cast %148 : i32 to index
    %150 = memref.load %arg1[%149] : memref<48xf32, #tpu.memory_space<smem>>
    %151 = vector.broadcast %150 : f32 to vector<1x256xf32>
    %152 = arith.addf %1, %151 : vector<1x256xf32>
    %c32_i32_34 = arith.constant 32 : i32
    %153 = arith.addi %c32_i32_34, %143 : i32
    %154 = arith.index_cast %153 : i32 to index
    %155 = memref.load %arg1[%154] : memref<48xf32, #tpu.memory_space<smem>>
    %156 = vector.broadcast %155 : f32 to vector<1x256xf32>
    %157 = arith.addf %2, %156 : vector<1x256xf32>
    %158 = math.floor %147 : vector<1x256xf32>
    %159 = arith.subf %147, %158 : vector<1x256xf32>
    %160 = arith.fptosi %158 : vector<1x256xf32> to vector<1x256xi32>
    %cst_35 = arith.constant 1.000000e+00 : f32
    %161 = vector.broadcast %cst_35 : f32 to vector<1x256xf32>
    %162 = arith.subf %161, %159 : vector<1x256xf32>
    %c0_i32_36 = arith.constant 0 : i32
    %163 = vector.broadcast %c0_i32_36 : i32 to vector<1x256xi32>
    %164 = arith.cmpi sge, %160, %163 : vector<1x256xi32>
    %c16_i32_37 = arith.constant 16 : i32
    %165 = vector.broadcast %c16_i32_37 : i32 to vector<1x256xi32>
    %166 = arith.cmpi slt, %160, %165 : vector<1x256xi32>
    %167 = arith.andi %164, %166 : vector<1x256xi1>
    %168 = arith.extui %167 : vector<1x256xi1> to vector<1x256xi32>
    %169 = arith.sitofp %168 : vector<1x256xi32> to vector<1x256xf32>
    %170 = arith.mulf %162, %169 : vector<1x256xf32>
    %c1_i32_38 = arith.constant 1 : i32
    %171 = vector.broadcast %c1_i32_38 : i32 to vector<1x256xi32>
    %172 = arith.addi %160, %171 : vector<1x256xi32>
    %c0_i32_39 = arith.constant 0 : i32
    %173 = vector.broadcast %c0_i32_39 : i32 to vector<1x256xi32>
    %174 = arith.cmpi sge, %172, %173 : vector<1x256xi32>
    %c1_i32_40 = arith.constant 1 : i32
    %175 = vector.broadcast %c1_i32_40 : i32 to vector<1x256xi32>
    %176 = arith.addi %160, %175 : vector<1x256xi32>
    %c16_i32_41 = arith.constant 16 : i32
    %177 = vector.broadcast %c16_i32_41 : i32 to vector<1x256xi32>
    %178 = arith.cmpi slt, %176, %177 : vector<1x256xi32>
    %179 = arith.andi %174, %178 : vector<1x256xi1>
    %180 = arith.extui %179 : vector<1x256xi1> to vector<1x256xi32>
    %181 = arith.sitofp %180 : vector<1x256xi32> to vector<1x256xf32>
    %182 = arith.mulf %159, %181 : vector<1x256xf32>
    %183 = vector.broadcast %160 : vector<1x256xi32> to vector<16x256xi32>
    %184 = arith.cmpi eq, %5, %183 : vector<16x256xi32>
    %cst_42 = arith.constant 0.000000e+00 : f32
    %185 = vector.shape_cast %170 : vector<1x256xf32> to vector<1x256xf32>
    %186 = vector.broadcast %185 : vector<1x256xf32> to vector<16x256xf32>
    %187 = vector.broadcast %cst_42 : f32 to vector<16x256xf32>
    %188 = arith.select %184, %186, %187 : vector<16x256xi1>, vector<16x256xf32>
    %c1_i32_43 = arith.constant 1 : i32
    %189 = vector.broadcast %c1_i32_43 : i32 to vector<1x256xi32>
    %190 = arith.addi %160, %189 : vector<1x256xi32>
    %191 = vector.broadcast %190 : vector<1x256xi32> to vector<16x256xi32>
    %192 = arith.cmpi eq, %5, %191 : vector<16x256xi32>
    %cst_44 = arith.constant 0.000000e+00 : f32
    %193 = vector.shape_cast %182 : vector<1x256xf32> to vector<1x256xf32>
    %194 = vector.broadcast %193 : vector<1x256xf32> to vector<16x256xf32>
    %195 = vector.broadcast %cst_44 : f32 to vector<16x256xf32>
    %196 = arith.select %192, %194, %195 : vector<16x256xi1>, vector<16x256xf32>
    %197 = arith.addf %188, %196 : vector<16x256xf32>
    %198 = math.floor %152 : vector<1x256xf32>
    %199 = arith.subf %152, %198 : vector<1x256xf32>
    %200 = arith.fptosi %198 : vector<1x256xf32> to vector<1x256xi32>
    %cst_45 = arith.constant 1.000000e+00 : f32
    %201 = vector.broadcast %cst_45 : f32 to vector<1x256xf32>
    %202 = arith.subf %201, %199 : vector<1x256xf32>
    %c0_i32_46 = arith.constant 0 : i32
    %203 = vector.broadcast %c0_i32_46 : i32 to vector<1x256xi32>
    %204 = arith.cmpi sge, %200, %203 : vector<1x256xi32>
    %c16_i32_47 = arith.constant 16 : i32
    %205 = vector.broadcast %c16_i32_47 : i32 to vector<1x256xi32>
    %206 = arith.cmpi slt, %200, %205 : vector<1x256xi32>
    %207 = arith.andi %204, %206 : vector<1x256xi1>
    %208 = arith.extui %207 : vector<1x256xi1> to vector<1x256xi32>
    %209 = arith.sitofp %208 : vector<1x256xi32> to vector<1x256xf32>
    %210 = arith.mulf %202, %209 : vector<1x256xf32>
    %c1_i32_48 = arith.constant 1 : i32
    %211 = vector.broadcast %c1_i32_48 : i32 to vector<1x256xi32>
    %212 = arith.addi %200, %211 : vector<1x256xi32>
    %c0_i32_49 = arith.constant 0 : i32
    %213 = vector.broadcast %c0_i32_49 : i32 to vector<1x256xi32>
    %214 = arith.cmpi sge, %212, %213 : vector<1x256xi32>
    %c1_i32_50 = arith.constant 1 : i32
    %215 = vector.broadcast %c1_i32_50 : i32 to vector<1x256xi32>
    %216 = arith.addi %200, %215 : vector<1x256xi32>
    %c16_i32_51 = arith.constant 16 : i32
    %217 = vector.broadcast %c16_i32_51 : i32 to vector<1x256xi32>
    %218 = arith.cmpi slt, %216, %217 : vector<1x256xi32>
    %219 = arith.andi %214, %218 : vector<1x256xi1>
    %220 = arith.extui %219 : vector<1x256xi1> to vector<1x256xi32>
    %221 = arith.sitofp %220 : vector<1x256xi32> to vector<1x256xf32>
    %222 = arith.mulf %199, %221 : vector<1x256xf32>
    %223 = vector.broadcast %200 : vector<1x256xi32> to vector<16x256xi32>
    %224 = arith.cmpi eq, %4, %223 : vector<16x256xi32>
    %cst_52 = arith.constant 0.000000e+00 : f32
    %225 = vector.shape_cast %210 : vector<1x256xf32> to vector<1x256xf32>
    %226 = vector.broadcast %225 : vector<1x256xf32> to vector<16x256xf32>
    %227 = vector.broadcast %cst_52 : f32 to vector<16x256xf32>
    %228 = arith.select %224, %226, %227 : vector<16x256xi1>, vector<16x256xf32>
    %c1_i32_53 = arith.constant 1 : i32
    %229 = vector.broadcast %c1_i32_53 : i32 to vector<1x256xi32>
    %230 = arith.addi %200, %229 : vector<1x256xi32>
    %231 = vector.broadcast %230 : vector<1x256xi32> to vector<16x256xi32>
    %232 = arith.cmpi eq, %4, %231 : vector<16x256xi32>
    %cst_54 = arith.constant 0.000000e+00 : f32
    %233 = vector.shape_cast %222 : vector<1x256xf32> to vector<1x256xf32>
    %234 = vector.broadcast %233 : vector<1x256xf32> to vector<16x256xf32>
    %235 = vector.broadcast %cst_54 : f32 to vector<16x256xf32>
    %236 = arith.select %232, %234, %235 : vector<16x256xi1>, vector<16x256xf32>
    %237 = arith.addf %228, %236 : vector<16x256xf32>
    %238 = math.floor %157 : vector<1x256xf32>
    %239 = arith.subf %157, %238 : vector<1x256xf32>
    %240 = arith.fptosi %238 : vector<1x256xf32> to vector<1x256xi32>
    %cst_55 = arith.constant 1.000000e+00 : f32
    %241 = vector.broadcast %cst_55 : f32 to vector<1x256xf32>
    %242 = arith.subf %241, %239 : vector<1x256xf32>
    %c0_i32_56 = arith.constant 0 : i32
    %243 = vector.broadcast %c0_i32_56 : i32 to vector<1x256xi32>
    %244 = arith.cmpi sge, %240, %243 : vector<1x256xi32>
    %c16_i32_57 = arith.constant 16 : i32
    %245 = vector.broadcast %c16_i32_57 : i32 to vector<1x256xi32>
    %246 = arith.cmpi slt, %240, %245 : vector<1x256xi32>
    %247 = arith.andi %244, %246 : vector<1x256xi1>
    %248 = arith.extui %247 : vector<1x256xi1> to vector<1x256xi32>
    %249 = arith.sitofp %248 : vector<1x256xi32> to vector<1x256xf32>
    %250 = arith.mulf %242, %249 : vector<1x256xf32>
    %c1_i32_58 = arith.constant 1 : i32
    %251 = vector.broadcast %c1_i32_58 : i32 to vector<1x256xi32>
    %252 = arith.addi %240, %251 : vector<1x256xi32>
    %c0_i32_59 = arith.constant 0 : i32
    %253 = vector.broadcast %c0_i32_59 : i32 to vector<1x256xi32>
    %254 = arith.cmpi sge, %252, %253 : vector<1x256xi32>
    %c1_i32_60 = arith.constant 1 : i32
    %255 = vector.broadcast %c1_i32_60 : i32 to vector<1x256xi32>
    %256 = arith.addi %240, %255 : vector<1x256xi32>
    %c16_i32_61 = arith.constant 16 : i32
    %257 = vector.broadcast %c16_i32_61 : i32 to vector<1x256xi32>
    %258 = arith.cmpi slt, %256, %257 : vector<1x256xi32>
    %259 = arith.andi %254, %258 : vector<1x256xi1>
    %260 = arith.extui %259 : vector<1x256xi1> to vector<1x256xi32>
    %261 = arith.sitofp %260 : vector<1x256xi32> to vector<1x256xf32>
    %262 = arith.mulf %239, %261 : vector<1x256xf32>
    %263 = vector.broadcast %240 : vector<1x256xi32> to vector<16x256xi32>
    %264 = arith.cmpi eq, %3, %263 : vector<16x256xi32>
    %cst_62 = arith.constant 0.000000e+00 : f32
    %265 = vector.shape_cast %250 : vector<1x256xf32> to vector<1x256xf32>
    %266 = vector.broadcast %265 : vector<1x256xf32> to vector<16x256xf32>
    %267 = vector.broadcast %cst_62 : f32 to vector<16x256xf32>
    %268 = arith.select %264, %266, %267 : vector<16x256xi1>, vector<16x256xf32>
    %c1_i32_63 = arith.constant 1 : i32
    %269 = vector.broadcast %c1_i32_63 : i32 to vector<1x256xi32>
    %270 = arith.addi %240, %269 : vector<1x256xi32>
    %271 = vector.broadcast %270 : vector<1x256xi32> to vector<16x256xi32>
    %272 = arith.cmpi eq, %3, %271 : vector<16x256xi32>
    %cst_64 = arith.constant 0.000000e+00 : f32
    %273 = vector.shape_cast %262 : vector<1x256xf32> to vector<1x256xf32>
    %274 = vector.broadcast %273 : vector<1x256xf32> to vector<16x256xf32>
    %275 = vector.broadcast %cst_64 : f32 to vector<16x256xf32>
    %276 = arith.select %272, %274, %275 : vector<16x256xi1>, vector<16x256xf32>
    %277 = arith.addf %268, %276 : vector<16x256xf32>
    %c4_i32_65 = arith.constant 4 : i32
    %278 = arith.muli %arg0, %c4_i32_65 : i32
    %c2_i32 = arith.constant 2 : i32
    %279 = arith.addi %278, %c2_i32 : i32
    %280 = arith.index_cast %279 : i32 to index
    %281 = memref.load %arg1[%280] : memref<48xf32, #tpu.memory_space<smem>>
    %282 = vector.broadcast %281 : f32 to vector<1x256xf32>
    %283 = arith.addf %0, %282 : vector<1x256xf32>
    %c16_i32_66 = arith.constant 16 : i32
    %284 = arith.addi %c16_i32_66, %279 : i32
    %285 = arith.index_cast %284 : i32 to index
    %286 = memref.load %arg1[%285] : memref<48xf32, #tpu.memory_space<smem>>
    %287 = vector.broadcast %286 : f32 to vector<1x256xf32>
    %288 = arith.addf %1, %287 : vector<1x256xf32>
    %c32_i32_67 = arith.constant 32 : i32
    %289 = arith.addi %c32_i32_67, %279 : i32
    %290 = arith.index_cast %289 : i32 to index
    %291 = memref.load %arg1[%290] : memref<48xf32, #tpu.memory_space<smem>>
    %292 = vector.broadcast %291 : f32 to vector<1x256xf32>
    %293 = arith.addf %2, %292 : vector<1x256xf32>
    %294 = math.floor %283 : vector<1x256xf32>
    %295 = arith.subf %283, %294 : vector<1x256xf32>
    %296 = arith.fptosi %294 : vector<1x256xf32> to vector<1x256xi32>
    %cst_68 = arith.constant 1.000000e+00 : f32
    %297 = vector.broadcast %cst_68 : f32 to vector<1x256xf32>
    %298 = arith.subf %297, %295 : vector<1x256xf32>
    %c0_i32_69 = arith.constant 0 : i32
    %299 = vector.broadcast %c0_i32_69 : i32 to vector<1x256xi32>
    %300 = arith.cmpi sge, %296, %299 : vector<1x256xi32>
    %c16_i32_70 = arith.constant 16 : i32
    %301 = vector.broadcast %c16_i32_70 : i32 to vector<1x256xi32>
    %302 = arith.cmpi slt, %296, %301 : vector<1x256xi32>
    %303 = arith.andi %300, %302 : vector<1x256xi1>
    %304 = arith.extui %303 : vector<1x256xi1> to vector<1x256xi32>
    %305 = arith.sitofp %304 : vector<1x256xi32> to vector<1x256xf32>
    %306 = arith.mulf %298, %305 : vector<1x256xf32>
    %c1_i32_71 = arith.constant 1 : i32
    %307 = vector.broadcast %c1_i32_71 : i32 to vector<1x256xi32>
    %308 = arith.addi %296, %307 : vector<1x256xi32>
    %c0_i32_72 = arith.constant 0 : i32
    %309 = vector.broadcast %c0_i32_72 : i32 to vector<1x256xi32>
    %310 = arith.cmpi sge, %308, %309 : vector<1x256xi32>
    %c1_i32_73 = arith.constant 1 : i32
    %311 = vector.broadcast %c1_i32_73 : i32 to vector<1x256xi32>
    %312 = arith.addi %296, %311 : vector<1x256xi32>
    %c16_i32_74 = arith.constant 16 : i32
    %313 = vector.broadcast %c16_i32_74 : i32 to vector<1x256xi32>
    %314 = arith.cmpi slt, %312, %313 : vector<1x256xi32>
    %315 = arith.andi %310, %314 : vector<1x256xi1>
    %316 = arith.extui %315 : vector<1x256xi1> to vector<1x256xi32>
    %317 = arith.sitofp %316 : vector<1x256xi32> to vector<1x256xf32>
    %318 = arith.mulf %295, %317 : vector<1x256xf32>
    %319 = vector.broadcast %296 : vector<1x256xi32> to vector<16x256xi32>
    %320 = arith.cmpi eq, %5, %319 : vector<16x256xi32>
    %cst_75 = arith.constant 0.000000e+00 : f32
    %321 = vector.shape_cast %306 : vector<1x256xf32> to vector<1x256xf32>
    %322 = vector.broadcast %321 : vector<1x256xf32> to vector<16x256xf32>
    %323 = vector.broadcast %cst_75 : f32 to vector<16x256xf32>
    %324 = arith.select %320, %322, %323 : vector<16x256xi1>, vector<16x256xf32>
    %c1_i32_76 = arith.constant 1 : i32
    %325 = vector.broadcast %c1_i32_76 : i32 to vector<1x256xi32>
    %326 = arith.addi %296, %325 : vector<1x256xi32>
    %327 = vector.broadcast %326 : vector<1x256xi32> to vector<16x256xi32>
    %328 = arith.cmpi eq, %5, %327 : vector<16x256xi32>
    %cst_77 = arith.constant 0.000000e+00 : f32
    %329 = vector.shape_cast %318 : vector<1x256xf32> to vector<1x256xf32>
    %330 = vector.broadcast %329 : vector<1x256xf32> to vector<16x256xf32>
    %331 = vector.broadcast %cst_77 : f32 to vector<16x256xf32>
    %332 = arith.select %328, %330, %331 : vector<16x256xi1>, vector<16x256xf32>
    %333 = arith.addf %324, %332 : vector<16x256xf32>
    %334 = math.floor %288 : vector<1x256xf32>
    %335 = arith.subf %288, %334 : vector<1x256xf32>
    %336 = arith.fptosi %334 : vector<1x256xf32> to vector<1x256xi32>
    %cst_78 = arith.constant 1.000000e+00 : f32
    %337 = vector.broadcast %cst_78 : f32 to vector<1x256xf32>
    %338 = arith.subf %337, %335 : vector<1x256xf32>
    %c0_i32_79 = arith.constant 0 : i32
    %339 = vector.broadcast %c0_i32_79 : i32 to vector<1x256xi32>
    %340 = arith.cmpi sge, %336, %339 : vector<1x256xi32>
    %c16_i32_80 = arith.constant 16 : i32
    %341 = vector.broadcast %c16_i32_80 : i32 to vector<1x256xi32>
    %342 = arith.cmpi slt, %336, %341 : vector<1x256xi32>
    %343 = arith.andi %340, %342 : vector<1x256xi1>
    %344 = arith.extui %343 : vector<1x256xi1> to vector<1x256xi32>
    %345 = arith.sitofp %344 : vector<1x256xi32> to vector<1x256xf32>
    %346 = arith.mulf %338, %345 : vector<1x256xf32>
    %c1_i32_81 = arith.constant 1 : i32
    %347 = vector.broadcast %c1_i32_81 : i32 to vector<1x256xi32>
    %348 = arith.addi %336, %347 : vector<1x256xi32>
    %c0_i32_82 = arith.constant 0 : i32
    %349 = vector.broadcast %c0_i32_82 : i32 to vector<1x256xi32>
    %350 = arith.cmpi sge, %348, %349 : vector<1x256xi32>
    %c1_i32_83 = arith.constant 1 : i32
    %351 = vector.broadcast %c1_i32_83 : i32 to vector<1x256xi32>
    %352 = arith.addi %336, %351 : vector<1x256xi32>
    %c16_i32_84 = arith.constant 16 : i32
    %353 = vector.broadcast %c16_i32_84 : i32 to vector<1x256xi32>
    %354 = arith.cmpi slt, %352, %353 : vector<1x256xi32>
    %355 = arith.andi %350, %354 : vector<1x256xi1>
    %356 = arith.extui %355 : vector<1x256xi1> to vector<1x256xi32>
    %357 = arith.sitofp %356 : vector<1x256xi32> to vector<1x256xf32>
    %358 = arith.mulf %335, %357 : vector<1x256xf32>
    %359 = vector.broadcast %336 : vector<1x256xi32> to vector<16x256xi32>
    %360 = arith.cmpi eq, %4, %359 : vector<16x256xi32>
    %cst_85 = arith.constant 0.000000e+00 : f32
    %361 = vector.shape_cast %346 : vector<1x256xf32> to vector<1x256xf32>
    %362 = vector.broadcast %361 : vector<1x256xf32> to vector<16x256xf32>
    %363 = vector.broadcast %cst_85 : f32 to vector<16x256xf32>
    %364 = arith.select %360, %362, %363 : vector<16x256xi1>, vector<16x256xf32>
    %c1_i32_86 = arith.constant 1 : i32
    %365 = vector.broadcast %c1_i32_86 : i32 to vector<1x256xi32>
    %366 = arith.addi %336, %365 : vector<1x256xi32>
    %367 = vector.broadcast %366 : vector<1x256xi32> to vector<16x256xi32>
    %368 = arith.cmpi eq, %4, %367 : vector<16x256xi32>
    %cst_87 = arith.constant 0.000000e+00 : f32
    %369 = vector.shape_cast %358 : vector<1x256xf32> to vector<1x256xf32>
    %370 = vector.broadcast %369 : vector<1x256xf32> to vector<16x256xf32>
    %371 = vector.broadcast %cst_87 : f32 to vector<16x256xf32>
    %372 = arith.select %368, %370, %371 : vector<16x256xi1>, vector<16x256xf32>
    %373 = arith.addf %364, %372 : vector<16x256xf32>
    %374 = math.floor %293 : vector<1x256xf32>
    %375 = arith.subf %293, %374 : vector<1x256xf32>
    %376 = arith.fptosi %374 : vector<1x256xf32> to vector<1x256xi32>
    %cst_88 = arith.constant 1.000000e+00 : f32
    %377 = vector.broadcast %cst_88 : f32 to vector<1x256xf32>
    %378 = arith.subf %377, %375 : vector<1x256xf32>
    %c0_i32_89 = arith.constant 0 : i32
    %379 = vector.broadcast %c0_i32_89 : i32 to vector<1x256xi32>
    %380 = arith.cmpi sge, %376, %379 : vector<1x256xi32>
    %c16_i32_90 = arith.constant 16 : i32
    %381 = vector.broadcast %c16_i32_90 : i32 to vector<1x256xi32>
    %382 = arith.cmpi slt, %376, %381 : vector<1x256xi32>
    %383 = arith.andi %380, %382 : vector<1x256xi1>
    %384 = arith.extui %383 : vector<1x256xi1> to vector<1x256xi32>
    %385 = arith.sitofp %384 : vector<1x256xi32> to vector<1x256xf32>
    %386 = arith.mulf %378, %385 : vector<1x256xf32>
    %c1_i32_91 = arith.constant 1 : i32
    %387 = vector.broadcast %c1_i32_91 : i32 to vector<1x256xi32>
    %388 = arith.addi %376, %387 : vector<1x256xi32>
    %c0_i32_92 = arith.constant 0 : i32
    %389 = vector.broadcast %c0_i32_92 : i32 to vector<1x256xi32>
    %390 = arith.cmpi sge, %388, %389 : vector<1x256xi32>
    %c1_i32_93 = arith.constant 1 : i32
    %391 = vector.broadcast %c1_i32_93 : i32 to vector<1x256xi32>
    %392 = arith.addi %376, %391 : vector<1x256xi32>
    %c16_i32_94 = arith.constant 16 : i32
    %393 = vector.broadcast %c16_i32_94 : i32 to vector<1x256xi32>
    %394 = arith.cmpi slt, %392, %393 : vector<1x256xi32>
    %395 = arith.andi %390, %394 : vector<1x256xi1>
    %396 = arith.extui %395 : vector<1x256xi1> to vector<1x256xi32>
    %397 = arith.sitofp %396 : vector<1x256xi32> to vector<1x256xf32>
    %398 = arith.mulf %375, %397 : vector<1x256xf32>
    %399 = vector.broadcast %376 : vector<1x256xi32> to vector<16x256xi32>
    %400 = arith.cmpi eq, %3, %399 : vector<16x256xi32>
    %cst_95 = arith.constant 0.000000e+00 : f32
    %401 = vector.shape_cast %386 : vector<1x256xf32> to vector<1x256xf32>
    %402 = vector.broadcast %401 : vector<1x256xf32> to vector<16x256xf32>
    %403 = vector.broadcast %cst_95 : f32 to vector<16x256xf32>
    %404 = arith.select %400, %402, %403 : vector<16x256xi1>, vector<16x256xf32>
    %c1_i32_96 = arith.constant 1 : i32
    %405 = vector.broadcast %c1_i32_96 : i32 to vector<1x256xi32>
    %406 = arith.addi %376, %405 : vector<1x256xi32>
    %407 = vector.broadcast %406 : vector<1x256xi32> to vector<16x256xi32>
    %408 = arith.cmpi eq, %3, %407 : vector<16x256xi32>
    %cst_97 = arith.constant 0.000000e+00 : f32
    %409 = vector.shape_cast %398 : vector<1x256xf32> to vector<1x256xf32>
    %410 = vector.broadcast %409 : vector<1x256xf32> to vector<16x256xf32>
    %411 = vector.broadcast %cst_97 : f32 to vector<16x256xf32>
    %412 = arith.select %408, %410, %411 : vector<16x256xi1>, vector<16x256xf32>
    %413 = arith.addf %404, %412 : vector<16x256xf32>
    %c4_i32_98 = arith.constant 4 : i32
    %414 = arith.muli %arg0, %c4_i32_98 : i32
    %c3_i32 = arith.constant 3 : i32
    %415 = arith.addi %414, %c3_i32 : i32
    %416 = arith.index_cast %415 : i32 to index
    %417 = memref.load %arg1[%416] : memref<48xf32, #tpu.memory_space<smem>>
    %418 = vector.broadcast %417 : f32 to vector<1x256xf32>
    %419 = arith.addf %0, %418 : vector<1x256xf32>
    %c16_i32_99 = arith.constant 16 : i32
    %420 = arith.addi %c16_i32_99, %415 : i32
    %421 = arith.index_cast %420 : i32 to index
    %422 = memref.load %arg1[%421] : memref<48xf32, #tpu.memory_space<smem>>
    %423 = vector.broadcast %422 : f32 to vector<1x256xf32>
    %424 = arith.addf %1, %423 : vector<1x256xf32>
    %c32_i32_100 = arith.constant 32 : i32
    %425 = arith.addi %c32_i32_100, %415 : i32
    %426 = arith.index_cast %425 : i32 to index
    %427 = memref.load %arg1[%426] : memref<48xf32, #tpu.memory_space<smem>>
    %428 = vector.broadcast %427 : f32 to vector<1x256xf32>
    %429 = arith.addf %2, %428 : vector<1x256xf32>
    %430 = math.floor %419 : vector<1x256xf32>
    %431 = arith.subf %419, %430 : vector<1x256xf32>
    %432 = arith.fptosi %430 : vector<1x256xf32> to vector<1x256xi32>
    %cst_101 = arith.constant 1.000000e+00 : f32
    %433 = vector.broadcast %cst_101 : f32 to vector<1x256xf32>
    %434 = arith.subf %433, %431 : vector<1x256xf32>
    %c0_i32_102 = arith.constant 0 : i32
    %435 = vector.broadcast %c0_i32_102 : i32 to vector<1x256xi32>
    %436 = arith.cmpi sge, %432, %435 : vector<1x256xi32>
    %c16_i32_103 = arith.constant 16 : i32
    %437 = vector.broadcast %c16_i32_103 : i32 to vector<1x256xi32>
    %438 = arith.cmpi slt, %432, %437 : vector<1x256xi32>
    %439 = arith.andi %436, %438 : vector<1x256xi1>
    %440 = arith.extui %439 : vector<1x256xi1> to vector<1x256xi32>
    %441 = arith.sitofp %440 : vector<1x256xi32> to vector<1x256xf32>
    %442 = arith.mulf %434, %441 : vector<1x256xf32>
    %c1_i32_104 = arith.constant 1 : i32
    %443 = vector.broadcast %c1_i32_104 : i32 to vector<1x256xi32>
    %444 = arith.addi %432, %443 : vector<1x256xi32>
    %c0_i32_105 = arith.constant 0 : i32
    %445 = vector.broadcast %c0_i32_105 : i32 to vector<1x256xi32>
    %446 = arith.cmpi sge, %444, %445 : vector<1x256xi32>
    %c1_i32_106 = arith.constant 1 : i32
    %447 = vector.broadcast %c1_i32_106 : i32 to vector<1x256xi32>
    %448 = arith.addi %432, %447 : vector<1x256xi32>
    %c16_i32_107 = arith.constant 16 : i32
    %449 = vector.broadcast %c16_i32_107 : i32 to vector<1x256xi32>
    %450 = arith.cmpi slt, %448, %449 : vector<1x256xi32>
    %451 = arith.andi %446, %450 : vector<1x256xi1>
    %452 = arith.extui %451 : vector<1x256xi1> to vector<1x256xi32>
    %453 = arith.sitofp %452 : vector<1x256xi32> to vector<1x256xf32>
    %454 = arith.mulf %431, %453 : vector<1x256xf32>
    %455 = vector.broadcast %432 : vector<1x256xi32> to vector<16x256xi32>
    %456 = arith.cmpi eq, %5, %455 : vector<16x256xi32>
    %cst_108 = arith.constant 0.000000e+00 : f32
    %457 = vector.shape_cast %442 : vector<1x256xf32> to vector<1x256xf32>
    %458 = vector.broadcast %457 : vector<1x256xf32> to vector<16x256xf32>
    %459 = vector.broadcast %cst_108 : f32 to vector<16x256xf32>
    %460 = arith.select %456, %458, %459 : vector<16x256xi1>, vector<16x256xf32>
    %c1_i32_109 = arith.constant 1 : i32
    %461 = vector.broadcast %c1_i32_109 : i32 to vector<1x256xi32>
    %462 = arith.addi %432, %461 : vector<1x256xi32>
    %463 = vector.broadcast %462 : vector<1x256xi32> to vector<16x256xi32>
    %464 = arith.cmpi eq, %5, %463 : vector<16x256xi32>
    %cst_110 = arith.constant 0.000000e+00 : f32
    %465 = vector.shape_cast %454 : vector<1x256xf32> to vector<1x256xf32>
    %466 = vector.broadcast %465 : vector<1x256xf32> to vector<16x256xf32>
    %467 = vector.broadcast %cst_110 : f32 to vector<16x256xf32>
    %468 = arith.select %464, %466, %467 : vector<16x256xi1>, vector<16x256xf32>
    %469 = arith.addf %460, %468 : vector<16x256xf32>
    %470 = math.floor %424 : vector<1x256xf32>
    %471 = arith.subf %424, %470 : vector<1x256xf32>
    %472 = arith.fptosi %470 : vector<1x256xf32> to vector<1x256xi32>
    %cst_111 = arith.constant 1.000000e+00 : f32
    %473 = vector.broadcast %cst_111 : f32 to vector<1x256xf32>
    %474 = arith.subf %473, %471 : vector<1x256xf32>
    %c0_i32_112 = arith.constant 0 : i32
    %475 = vector.broadcast %c0_i32_112 : i32 to vector<1x256xi32>
    %476 = arith.cmpi sge, %472, %475 : vector<1x256xi32>
    %c16_i32_113 = arith.constant 16 : i32
    %477 = vector.broadcast %c16_i32_113 : i32 to vector<1x256xi32>
    %478 = arith.cmpi slt, %472, %477 : vector<1x256xi32>
    %479 = arith.andi %476, %478 : vector<1x256xi1>
    %480 = arith.extui %479 : vector<1x256xi1> to vector<1x256xi32>
    %481 = arith.sitofp %480 : vector<1x256xi32> to vector<1x256xf32>
    %482 = arith.mulf %474, %481 : vector<1x256xf32>
    %c1_i32_114 = arith.constant 1 : i32
    %483 = vector.broadcast %c1_i32_114 : i32 to vector<1x256xi32>
    %484 = arith.addi %472, %483 : vector<1x256xi32>
    %c0_i32_115 = arith.constant 0 : i32
    %485 = vector.broadcast %c0_i32_115 : i32 to vector<1x256xi32>
    %486 = arith.cmpi sge, %484, %485 : vector<1x256xi32>
    %c1_i32_116 = arith.constant 1 : i32
    %487 = vector.broadcast %c1_i32_116 : i32 to vector<1x256xi32>
    %488 = arith.addi %472, %487 : vector<1x256xi32>
    %c16_i32_117 = arith.constant 16 : i32
    %489 = vector.broadcast %c16_i32_117 : i32 to vector<1x256xi32>
    %490 = arith.cmpi slt, %488, %489 : vector<1x256xi32>
    %491 = arith.andi %486, %490 : vector<1x256xi1>
    %492 = arith.extui %491 : vector<1x256xi1> to vector<1x256xi32>
    %493 = arith.sitofp %492 : vector<1x256xi32> to vector<1x256xf32>
    %494 = arith.mulf %471, %493 : vector<1x256xf32>
    %495 = vector.broadcast %472 : vector<1x256xi32> to vector<16x256xi32>
    %496 = arith.cmpi eq, %4, %495 : vector<16x256xi32>
    %cst_118 = arith.constant 0.000000e+00 : f32
    %497 = vector.shape_cast %482 : vector<1x256xf32> to vector<1x256xf32>
    %498 = vector.broadcast %497 : vector<1x256xf32> to vector<16x256xf32>
    %499 = vector.broadcast %cst_118 : f32 to vector<16x256xf32>
    %500 = arith.select %496, %498, %499 : vector<16x256xi1>, vector<16x256xf32>
    %c1_i32_119 = arith.constant 1 : i32
    %501 = vector.broadcast %c1_i32_119 : i32 to vector<1x256xi32>
    %502 = arith.addi %472, %501 : vector<1x256xi32>
    %503 = vector.broadcast %502 : vector<1x256xi32> to vector<16x256xi32>
    %504 = arith.cmpi eq, %4, %503 : vector<16x256xi32>
    %cst_120 = arith.constant 0.000000e+00 : f32
    %505 = vector.shape_cast %494 : vector<1x256xf32> to vector<1x256xf32>
    %506 = vector.broadcast %505 : vector<1x256xf32> to vector<16x256xf32>
    %507 = vector.broadcast %cst_120 : f32 to vector<16x256xf32>
    %508 = arith.select %504, %506, %507 : vector<16x256xi1>, vector<16x256xf32>
    %509 = arith.addf %500, %508 : vector<16x256xf32>
    %510 = math.floor %429 : vector<1x256xf32>
    %511 = arith.subf %429, %510 : vector<1x256xf32>
    %512 = arith.fptosi %510 : vector<1x256xf32> to vector<1x256xi32>
    %cst_121 = arith.constant 1.000000e+00 : f32
    %513 = vector.broadcast %cst_121 : f32 to vector<1x256xf32>
    %514 = arith.subf %513, %511 : vector<1x256xf32>
    %c0_i32_122 = arith.constant 0 : i32
    %515 = vector.broadcast %c0_i32_122 : i32 to vector<1x256xi32>
    %516 = arith.cmpi sge, %512, %515 : vector<1x256xi32>
    %c16_i32_123 = arith.constant 16 : i32
    %517 = vector.broadcast %c16_i32_123 : i32 to vector<1x256xi32>
    %518 = arith.cmpi slt, %512, %517 : vector<1x256xi32>
    %519 = arith.andi %516, %518 : vector<1x256xi1>
    %520 = arith.extui %519 : vector<1x256xi1> to vector<1x256xi32>
    %521 = arith.sitofp %520 : vector<1x256xi32> to vector<1x256xf32>
    %522 = arith.mulf %514, %521 : vector<1x256xf32>
    %c1_i32_124 = arith.constant 1 : i32
    %523 = vector.broadcast %c1_i32_124 : i32 to vector<1x256xi32>
    %524 = arith.addi %512, %523 : vector<1x256xi32>
    %c0_i32_125 = arith.constant 0 : i32
    %525 = vector.broadcast %c0_i32_125 : i32 to vector<1x256xi32>
    %526 = arith.cmpi sge, %524, %525 : vector<1x256xi32>
    %c1_i32_126 = arith.constant 1 : i32
    %527 = vector.broadcast %c1_i32_126 : i32 to vector<1x256xi32>
    %528 = arith.addi %512, %527 : vector<1x256xi32>
    %c16_i32_127 = arith.constant 16 : i32
    %529 = vector.broadcast %c16_i32_127 : i32 to vector<1x256xi32>
    %530 = arith.cmpi slt, %528, %529 : vector<1x256xi32>
    %531 = arith.andi %526, %530 : vector<1x256xi1>
    %532 = arith.extui %531 : vector<1x256xi1> to vector<1x256xi32>
    %533 = arith.sitofp %532 : vector<1x256xi32> to vector<1x256xf32>
    %534 = arith.mulf %511, %533 : vector<1x256xf32>
    %535 = vector.broadcast %512 : vector<1x256xi32> to vector<16x256xi32>
    %536 = arith.cmpi eq, %3, %535 : vector<16x256xi32>
    %cst_128 = arith.constant 0.000000e+00 : f32
    %537 = vector.shape_cast %522 : vector<1x256xf32> to vector<1x256xf32>
    %538 = vector.broadcast %537 : vector<1x256xf32> to vector<16x256xf32>
    %539 = vector.broadcast %cst_128 : f32 to vector<16x256xf32>
    %540 = arith.select %536, %538, %539 : vector<16x256xi1>, vector<16x256xf32>
    %c1_i32_129 = arith.constant 1 : i32
    %541 = vector.broadcast %c1_i32_129 : i32 to vector<1x256xi32>
    %542 = arith.addi %512, %541 : vector<1x256xi32>
    %543 = vector.broadcast %542 : vector<1x256xi32> to vector<16x256xi32>
    %544 = arith.cmpi eq, %3, %543 : vector<16x256xi32>
    %cst_130 = arith.constant 0.000000e+00 : f32
    %545 = vector.shape_cast %534 : vector<1x256xf32> to vector<1x256xf32>
    %546 = vector.broadcast %545 : vector<1x256xf32> to vector<16x256xf32>
    %547 = vector.broadcast %cst_130 : f32 to vector<16x256xf32>
    %548 = arith.select %544, %546, %547 : vector<16x256xi1>, vector<16x256xf32>
    %549 = arith.addf %540, %548 : vector<16x256xf32>
    %550 = tpu.concatenate %141, %277, %413, %549 in 1 : vector<16x256xf32>, vector<16x256xf32>, vector<16x256xf32>, vector<16x256xf32> -> vector<16x1024xf32>
    %551 = tpu.concatenate %101, %237, %373, %509 in 1 : vector<16x256xf32>, vector<16x256xf32>, vector<16x256xf32>, vector<16x256xf32> -> vector<16x1024xf32>
    %552 = tpu.concatenate %61, %197, %333, %469 in 1 : vector<16x256xf32>, vector<16x256xf32>, vector<16x256xf32>, vector<16x256xf32> -> vector<16x1024xf32>
    %c0_131 = arith.constant 0 : index
    %c0_132 = arith.constant 0 : index
    %553 = vector.load %arg3[%c0_131, %c0_132] : memref<1024x16xf32, #tpu.memory_space<vmem>>, vector<1024x16xf32>
    %cst_133 = arith.constant dense<0.000000e+00> : vector<1024x1024xf32>
    %554 = tpu.matmul %553, %550, %cst_133 {dimension_numbers = #tpu.dot_dimension_numbers<[1], [0], [0], [1], [0, 0, 1, 1], [], []>} : vector<1024x16xf32>, vector<16x1024xf32>, vector<1024x1024xf32> -> vector<1024x1024xf32>
    %555 = vector.extract_strided_slice %554 {offsets = [0, 0], sizes = [64, 1024], strides = [1, 1]} : vector<1024x1024xf32> to vector<64x1024xf32>
    %556 = vector.extract_strided_slice %551 {offsets = [0, 0], sizes = [1, 1024], strides = [1, 1]} : vector<16x1024xf32> to vector<1x1024xf32>
    %557 = vector.broadcast %556 : vector<1x1024xf32> to vector<64x1024xf32>
    %558 = arith.mulf %555, %557 : vector<64x1024xf32>
    %559 = vector.extract_strided_slice %554 {offsets = [64, 0], sizes = [64, 1024], strides = [1, 1]} : vector<1024x1024xf32> to vector<64x1024xf32>
    %560 = vector.extract_strided_slice %551 {offsets = [1, 0], sizes = [1, 1024], strides = [1, 1]} : vector<16x1024xf32> to vector<1x1024xf32>
    %561 = vector.broadcast %560 : vector<1x1024xf32> to vector<64x1024xf32>
    %562 = arith.mulf %559, %561 : vector<64x1024xf32>
    %563 = arith.addf %558, %562 : vector<64x1024xf32>
    %564 = vector.extract_strided_slice %554 {offsets = [128, 0], sizes = [64, 1024], strides = [1, 1]} : vector<1024x1024xf32> to vector<64x1024xf32>
    %565 = vector.extract_strided_slice %551 {offsets = [2, 0], sizes = [1, 1024], strides = [1, 1]} : vector<16x1024xf32> to vector<1x1024xf32>
    %566 = vector.broadcast %565 : vector<1x1024xf32> to vector<64x1024xf32>
    %567 = arith.mulf %564, %566 : vector<64x1024xf32>
    %568 = arith.addf %563, %567 : vector<64x1024xf32>
    %569 = vector.extract_strided_slice %554 {offsets = [192, 0], sizes = [64, 1024], strides = [1, 1]} : vector<1024x1024xf32> to vector<64x1024xf32>
    %570 = vector.extract_strided_slice %551 {offsets = [3, 0], sizes = [1, 1024], strides = [1, 1]} : vector<16x1024xf32> to vector<1x1024xf32>
    %571 = vector.broadcast %570 : vector<1x1024xf32> to vector<64x1024xf32>
    %572 = arith.mulf %569, %571 : vector<64x1024xf32>
    %573 = arith.addf %568, %572 : vector<64x1024xf32>
    %574 = vector.extract_strided_slice %554 {offsets = [256, 0], sizes = [64, 1024], strides = [1, 1]} : vector<1024x1024xf32> to vector<64x1024xf32>
    %575 = vector.extract_strided_slice %551 {offsets = [4, 0], sizes = [1, 1024], strides = [1, 1]} : vector<16x1024xf32> to vector<1x1024xf32>
    %576 = vector.broadcast %575 : vector<1x1024xf32> to vector<64x1024xf32>
    %577 = arith.mulf %574, %576 : vector<64x1024xf32>
    %578 = arith.addf %573, %577 : vector<64x1024xf32>
    %579 = vector.extract_strided_slice %554 {offsets = [320, 0], sizes = [64, 1024], strides = [1, 1]} : vector<1024x1024xf32> to vector<64x1024xf32>
    %580 = vector.extract_strided_slice %551 {offsets = [5, 0], sizes = [1, 1024], strides = [1, 1]} : vector<16x1024xf32> to vector<1x1024xf32>
    %581 = vector.broadcast %580 : vector<1x1024xf32> to vector<64x1024xf32>
    %582 = arith.mulf %579, %581 : vector<64x1024xf32>
    %583 = arith.addf %578, %582 : vector<64x1024xf32>
    %584 = vector.extract_strided_slice %554 {offsets = [384, 0], sizes = [64, 1024], strides = [1, 1]} : vector<1024x1024xf32> to vector<64x1024xf32>
    %585 = vector.extract_strided_slice %551 {offsets = [6, 0], sizes = [1, 1024], strides = [1, 1]} : vector<16x1024xf32> to vector<1x1024xf32>
    %586 = vector.broadcast %585 : vector<1x1024xf32> to vector<64x1024xf32>
    %587 = arith.mulf %584, %586 : vector<64x1024xf32>
    %588 = arith.addf %583, %587 : vector<64x1024xf32>
    %589 = vector.extract_strided_slice %554 {offsets = [448, 0], sizes = [64, 1024], strides = [1, 1]} : vector<1024x1024xf32> to vector<64x1024xf32>
    %590 = vector.extract_strided_slice %551 {offsets = [7, 0], sizes = [1, 1024], strides = [1, 1]} : vector<16x1024xf32> to vector<1x1024xf32>
    %591 = vector.broadcast %590 : vector<1x1024xf32> to vector<64x1024xf32>
    %592 = arith.mulf %589, %591 : vector<64x1024xf32>
    %593 = arith.addf %588, %592 : vector<64x1024xf32>
    %594 = vector.extract_strided_slice %554 {offsets = [512, 0], sizes = [64, 1024], strides = [1, 1]} : vector<1024x1024xf32> to vector<64x1024xf32>
    %595 = vector.extract_strided_slice %551 {offsets = [8, 0], sizes = [1, 1024], strides = [1, 1]} : vector<16x1024xf32> to vector<1x1024xf32>
    %596 = vector.broadcast %595 : vector<1x1024xf32> to vector<64x1024xf32>
    %597 = arith.mulf %594, %596 : vector<64x1024xf32>
    %598 = arith.addf %593, %597 : vector<64x1024xf32>
    %599 = vector.extract_strided_slice %554 {offsets = [576, 0], sizes = [64, 1024], strides = [1, 1]} : vector<1024x1024xf32> to vector<64x1024xf32>
    %600 = vector.extract_strided_slice %551 {offsets = [9, 0], sizes = [1, 1024], strides = [1, 1]} : vector<16x1024xf32> to vector<1x1024xf32>
    %601 = vector.broadcast %600 : vector<1x1024xf32> to vector<64x1024xf32>
    %602 = arith.mulf %599, %601 : vector<64x1024xf32>
    %603 = arith.addf %598, %602 : vector<64x1024xf32>
    %604 = vector.extract_strided_slice %554 {offsets = [640, 0], sizes = [64, 1024], strides = [1, 1]} : vector<1024x1024xf32> to vector<64x1024xf32>
    %605 = vector.extract_strided_slice %551 {offsets = [10, 0], sizes = [1, 1024], strides = [1, 1]} : vector<16x1024xf32> to vector<1x1024xf32>
    %606 = vector.broadcast %605 : vector<1x1024xf32> to vector<64x1024xf32>
    %607 = arith.mulf %604, %606 : vector<64x1024xf32>
    %608 = arith.addf %603, %607 : vector<64x1024xf32>
    %609 = vector.extract_strided_slice %554 {offsets = [704, 0], sizes = [64, 1024], strides = [1, 1]} : vector<1024x1024xf32> to vector<64x1024xf32>
    %610 = vector.extract_strided_slice %551 {offsets = [11, 0], sizes = [1, 1024], strides = [1, 1]} : vector<16x1024xf32> to vector<1x1024xf32>
    %611 = vector.broadcast %610 : vector<1x1024xf32> to vector<64x1024xf32>
    %612 = arith.mulf %609, %611 : vector<64x1024xf32>
    %613 = arith.addf %608, %612 : vector<64x1024xf32>
    %614 = vector.extract_strided_slice %554 {offsets = [768, 0], sizes = [64, 1024], strides = [1, 1]} : vector<1024x1024xf32> to vector<64x1024xf32>
    %615 = vector.extract_strided_slice %551 {offsets = [12, 0], sizes = [1, 1024], strides = [1, 1]} : vector<16x1024xf32> to vector<1x1024xf32>
    %616 = vector.broadcast %615 : vector<1x1024xf32> to vector<64x1024xf32>
    %617 = arith.mulf %614, %616 : vector<64x1024xf32>
    %618 = arith.addf %613, %617 : vector<64x1024xf32>
    %619 = vector.extract_strided_slice %554 {offsets = [832, 0], sizes = [64, 1024], strides = [1, 1]} : vector<1024x1024xf32> to vector<64x1024xf32>
    %620 = vector.extract_strided_slice %551 {offsets = [13, 0], sizes = [1, 1024], strides = [1, 1]} : vector<16x1024xf32> to vector<1x1024xf32>
    %621 = vector.broadcast %620 : vector<1x1024xf32> to vector<64x1024xf32>
    %622 = arith.mulf %619, %621 : vector<64x1024xf32>
    %623 = arith.addf %618, %622 : vector<64x1024xf32>
    %624 = vector.extract_strided_slice %554 {offsets = [896, 0], sizes = [64, 1024], strides = [1, 1]} : vector<1024x1024xf32> to vector<64x1024xf32>
    %625 = vector.extract_strided_slice %551 {offsets = [14, 0], sizes = [1, 1024], strides = [1, 1]} : vector<16x1024xf32> to vector<1x1024xf32>
    %626 = vector.broadcast %625 : vector<1x1024xf32> to vector<64x1024xf32>
    %627 = arith.mulf %624, %626 : vector<64x1024xf32>
    %628 = arith.addf %623, %627 : vector<64x1024xf32>
    %629 = vector.extract_strided_slice %554 {offsets = [960, 0], sizes = [64, 1024], strides = [1, 1]} : vector<1024x1024xf32> to vector<64x1024xf32>
    %630 = vector.extract_strided_slice %551 {offsets = [15, 0], sizes = [1, 1024], strides = [1, 1]} : vector<16x1024xf32> to vector<1x1024xf32>
    %631 = vector.broadcast %630 : vector<1x1024xf32> to vector<64x1024xf32>
    %632 = arith.mulf %629, %631 : vector<64x1024xf32>
    %633 = arith.addf %628, %632 : vector<64x1024xf32>
    %634 = vector.extract_strided_slice %633 {offsets = [0, 0], sizes = [4, 1024], strides = [1, 1]} : vector<64x1024xf32> to vector<4x1024xf32>
    %635 = vector.extract_strided_slice %552 {offsets = [0, 0], sizes = [1, 1024], strides = [1, 1]} : vector<16x1024xf32> to vector<1x1024xf32>
    %636 = vector.broadcast %635 : vector<1x1024xf32> to vector<4x1024xf32>
    %637 = arith.mulf %634, %636 : vector<4x1024xf32>
    %638 = vector.extract_strided_slice %633 {offsets = [4, 0], sizes = [4, 1024], strides = [1, 1]} : vector<64x1024xf32> to vector<4x1024xf32>
    %639 = vector.extract_strided_slice %552 {offsets = [1, 0], sizes = [1, 1024], strides = [1, 1]} : vector<16x1024xf32> to vector<1x1024xf32>
    %640 = vector.broadcast %639 : vector<1x1024xf32> to vector<4x1024xf32>
    %641 = arith.mulf %638, %640 : vector<4x1024xf32>
    %642 = arith.addf %637, %641 : vector<4x1024xf32>
    %643 = vector.extract_strided_slice %633 {offsets = [8, 0], sizes = [4, 1024], strides = [1, 1]} : vector<64x1024xf32> to vector<4x1024xf32>
    %644 = vector.extract_strided_slice %552 {offsets = [2, 0], sizes = [1, 1024], strides = [1, 1]} : vector<16x1024xf32> to vector<1x1024xf32>
    %645 = vector.broadcast %644 : vector<1x1024xf32> to vector<4x1024xf32>
    %646 = arith.mulf %643, %645 : vector<4x1024xf32>
    %647 = arith.addf %642, %646 : vector<4x1024xf32>
    %648 = vector.extract_strided_slice %633 {offsets = [12, 0], sizes = [4, 1024], strides = [1, 1]} : vector<64x1024xf32> to vector<4x1024xf32>
    %649 = vector.extract_strided_slice %552 {offsets = [3, 0], sizes = [1, 1024], strides = [1, 1]} : vector<16x1024xf32> to vector<1x1024xf32>
    %650 = vector.broadcast %649 : vector<1x1024xf32> to vector<4x1024xf32>
    %651 = arith.mulf %648, %650 : vector<4x1024xf32>
    %652 = arith.addf %647, %651 : vector<4x1024xf32>
    %653 = vector.extract_strided_slice %633 {offsets = [16, 0], sizes = [4, 1024], strides = [1, 1]} : vector<64x1024xf32> to vector<4x1024xf32>
    %654 = vector.extract_strided_slice %552 {offsets = [4, 0], sizes = [1, 1024], strides = [1, 1]} : vector<16x1024xf32> to vector<1x1024xf32>
    %655 = vector.broadcast %654 : vector<1x1024xf32> to vector<4x1024xf32>
    %656 = arith.mulf %653, %655 : vector<4x1024xf32>
    %657 = arith.addf %652, %656 : vector<4x1024xf32>
    %658 = vector.extract_strided_slice %633 {offsets = [20, 0], sizes = [4, 1024], strides = [1, 1]} : vector<64x1024xf32> to vector<4x1024xf32>
    %659 = vector.extract_strided_slice %552 {offsets = [5, 0], sizes = [1, 1024], strides = [1, 1]} : vector<16x1024xf32> to vector<1x1024xf32>
    %660 = vector.broadcast %659 : vector<1x1024xf32> to vector<4x1024xf32>
    %661 = arith.mulf %658, %660 : vector<4x1024xf32>
    %662 = arith.addf %657, %661 : vector<4x1024xf32>
    %663 = vector.extract_strided_slice %633 {offsets = [24, 0], sizes = [4, 1024], strides = [1, 1]} : vector<64x1024xf32> to vector<4x1024xf32>
    %664 = vector.extract_strided_slice %552 {offsets = [6, 0], sizes = [1, 1024], strides = [1, 1]} : vector<16x1024xf32> to vector<1x1024xf32>
    %665 = vector.broadcast %664 : vector<1x1024xf32> to vector<4x1024xf32>
    %666 = arith.mulf %663, %665 : vector<4x1024xf32>
    %667 = arith.addf %662, %666 : vector<4x1024xf32>
    %668 = vector.extract_strided_slice %633 {offsets = [28, 0], sizes = [4, 1024], strides = [1, 1]} : vector<64x1024xf32> to vector<4x1024xf32>
    %669 = vector.extract_strided_slice %552 {offsets = [7, 0], sizes = [1, 1024], strides = [1, 1]} : vector<16x1024xf32> to vector<1x1024xf32>
    %670 = vector.broadcast %669 : vector<1x1024xf32> to vector<4x1024xf32>
    %671 = arith.mulf %668, %670 : vector<4x1024xf32>
    %672 = arith.addf %667, %671 : vector<4x1024xf32>
    %673 = vector.extract_strided_slice %633 {offsets = [32, 0], sizes = [4, 1024], strides = [1, 1]} : vector<64x1024xf32> to vector<4x1024xf32>
    %674 = vector.extract_strided_slice %552 {offsets = [8, 0], sizes = [1, 1024], strides = [1, 1]} : vector<16x1024xf32> to vector<1x1024xf32>
    %675 = vector.broadcast %674 : vector<1x1024xf32> to vector<4x1024xf32>
    %676 = arith.mulf %673, %675 : vector<4x1024xf32>
    %677 = arith.addf %672, %676 : vector<4x1024xf32>
    %678 = vector.extract_strided_slice %633 {offsets = [36, 0], sizes = [4, 1024], strides = [1, 1]} : vector<64x1024xf32> to vector<4x1024xf32>
    %679 = vector.extract_strided_slice %552 {offsets = [9, 0], sizes = [1, 1024], strides = [1, 1]} : vector<16x1024xf32> to vector<1x1024xf32>
    %680 = vector.broadcast %679 : vector<1x1024xf32> to vector<4x1024xf32>
    %681 = arith.mulf %678, %680 : vector<4x1024xf32>
    %682 = arith.addf %677, %681 : vector<4x1024xf32>
    %683 = vector.extract_strided_slice %633 {offsets = [40, 0], sizes = [4, 1024], strides = [1, 1]} : vector<64x1024xf32> to vector<4x1024xf32>
    %684 = vector.extract_strided_slice %552 {offsets = [10, 0], sizes = [1, 1024], strides = [1, 1]} : vector<16x1024xf32> to vector<1x1024xf32>
    %685 = vector.broadcast %684 : vector<1x1024xf32> to vector<4x1024xf32>
    %686 = arith.mulf %683, %685 : vector<4x1024xf32>
    %687 = arith.addf %682, %686 : vector<4x1024xf32>
    %688 = vector.extract_strided_slice %633 {offsets = [44, 0], sizes = [4, 1024], strides = [1, 1]} : vector<64x1024xf32> to vector<4x1024xf32>
    %689 = vector.extract_strided_slice %552 {offsets = [11, 0], sizes = [1, 1024], strides = [1, 1]} : vector<16x1024xf32> to vector<1x1024xf32>
    %690 = vector.broadcast %689 : vector<1x1024xf32> to vector<4x1024xf32>
    %691 = arith.mulf %688, %690 : vector<4x1024xf32>
    %692 = arith.addf %687, %691 : vector<4x1024xf32>
    %693 = vector.extract_strided_slice %633 {offsets = [48, 0], sizes = [4, 1024], strides = [1, 1]} : vector<64x1024xf32> to vector<4x1024xf32>
    %694 = vector.extract_strided_slice %552 {offsets = [12, 0], sizes = [1, 1024], strides = [1, 1]} : vector<16x1024xf32> to vector<1x1024xf32>
    %695 = vector.broadcast %694 : vector<1x1024xf32> to vector<4x1024xf32>
    %696 = arith.mulf %693, %695 : vector<4x1024xf32>
    %697 = arith.addf %692, %696 : vector<4x1024xf32>
    %698 = vector.extract_strided_slice %633 {offsets = [52, 0], sizes = [4, 1024], strides = [1, 1]} : vector<64x1024xf32> to vector<4x1024xf32>
    %699 = vector.extract_strided_slice %552 {offsets = [13, 0], sizes = [1, 1024], strides = [1, 1]} : vector<16x1024xf32> to vector<1x1024xf32>
    %700 = vector.broadcast %699 : vector<1x1024xf32> to vector<4x1024xf32>
    %701 = arith.mulf %698, %700 : vector<4x1024xf32>
    %702 = arith.addf %697, %701 : vector<4x1024xf32>
    %703 = vector.extract_strided_slice %633 {offsets = [56, 0], sizes = [4, 1024], strides = [1, 1]} : vector<64x1024xf32> to vector<4x1024xf32>
    %704 = vector.extract_strided_slice %552 {offsets = [14, 0], sizes = [1, 1024], strides = [1, 1]} : vector<16x1024xf32> to vector<1x1024xf32>
    %705 = vector.broadcast %704 : vector<1x1024xf32> to vector<4x1024xf32>
    %706 = arith.mulf %703, %705 : vector<4x1024xf32>
    %707 = arith.addf %702, %706 : vector<4x1024xf32>
    %708 = vector.extract_strided_slice %633 {offsets = [60, 0], sizes = [4, 1024], strides = [1, 1]} : vector<64x1024xf32> to vector<4x1024xf32>
    %709 = vector.extract_strided_slice %552 {offsets = [15, 0], sizes = [1, 1024], strides = [1, 1]} : vector<16x1024xf32> to vector<1x1024xf32>
    %710 = vector.broadcast %709 : vector<1x1024xf32> to vector<4x1024xf32>
    %711 = arith.mulf %708, %710 : vector<4x1024xf32>
    %712 = arith.addf %707, %711 : vector<4x1024xf32>
    %713 = vector.extract_strided_slice %712 {offsets = [0, 0], sizes = [4, 256], strides = [1, 1]} : vector<4x1024xf32> to vector<4x256xf32>
    %714 = vector.extract_strided_slice %712 {offsets = [0, 256], sizes = [4, 256], strides = [1, 1]} : vector<4x1024xf32> to vector<4x256xf32>
    %715 = vector.extract_strided_slice %712 {offsets = [0, 512], sizes = [4, 256], strides = [1, 1]} : vector<4x1024xf32> to vector<4x256xf32>
    %716 = vector.extract_strided_slice %712 {offsets = [0, 768], sizes = [4, 256], strides = [1, 1]} : vector<4x1024xf32> to vector<4x256xf32>
    %717 = tpu.concatenate %713, %714, %715, %716 in 0 : vector<4x256xf32>, vector<4x256xf32>, vector<4x256xf32>, vector<4x256xf32> -> vector<16x256xf32>
    %c0_134 = arith.constant 0 : index
    %c0_135 = arith.constant 0 : index
    %c0_136 = arith.constant 0 : index
    %718 = vector.load %arg4[%c0_134, %c0_135, %c0_136] : memref<1x16x256xf32, #tpu.memory_space<vmem>>, vector<1x16x256xf32>
    %719 = vector.shape_cast %718 : vector<1x16x256xf32> to vector<16x256xf32>
    %720 = vector.shape_cast %717 : vector<16x256xf32> to vector<1x16x256xf32>
    tpu.vector_store %arg4[%c0_134, %c0_135, %c0_136], %720 {strides = array<i32>} : memref<1x16x256xf32, #tpu.memory_space<vmem>>, vector<1x16x256xf32>,
    return
  }
  func.func @transform_0(%arg0: i32) -> i32 {
    %c0_i32 = arith.constant 0 : i32
    %c0_i32_0 = arith.constant 0 : i32
    return %c0_i32 : i32
  }
  func.func @transform_1(%arg0: i32) -> (i32, i32) {
    %c0_i32 = arith.constant 0 : i32
    %c0_i32_0 = arith.constant 0 : i32
    %c0_i32_1 = arith.constant 0 : i32
    return %c0_i32, %c0_i32_0 : i32, i32
  }
  func.func @transform_2(%arg0: i32) -> (i32, i32) {
    %c0_i32 = arith.constant 0 : i32
    %c0_i32_0 = arith.constant 0 : i32
    %c0_i32_1 = arith.constant 0 : i32
    return %c0_i32, %c0_i32_0 : i32, i32
  }
  func.func @transform_3(%arg0: i32) -> (i32, i32, i32) {
    %c0_i32 = arith.constant 0 : i32
    %c0_i32_0 = arith.constant 0 : i32
    %c0_i32_1 = arith.constant 0 : i32
    return %arg0, %c0_i32, %c0_i32_0 : i32, i32, i32
  }
}

</mosaic_0001>

<bundles_post_ra>
// kernel: tpu_custom_call.1
= control target key start
LH: loop header
LB: loop body
LE: loop exit
PB: predicated region body
PF: predicated region fallthrough
CT: control target
= control target key end

     0   :  { %8 = vsyncpa [#allocation4], 0  ;;  %s17582_s0 = inlined_call_operand.vmem [shape: f32[48], index: 0, kind: input, shape index: {}]   ;;  %s17583_s1 = inlined_call_operand.vmem [shape: f32[3,256], index: 1, kind: input, shape index: {}]   ;;  %s17584_s2 = inlined_call_operand.vmem [shape: f32[1024,16], index: 2, kind: input, shape index: {}]   ;;  %s17585_s3 = inlined_call_operand.hbm [shape: f32[4,16,256], index: 3, kind: output, shape index: {}]  }
   0x1   :  { %9 = vsyncpa [#allocation3], 0 }
   0x2   :  { %11 = vsyncpa [#allocation3 + $0x1], 0  ;;  %s9391_s12 = smov 0   ;;  %s9393_s13 = smov 0  }
   0x3   :  { %s9395_s14 = smov 0   ;;  %s9397_s15 = smov 0  }
   0x4 LB: > { %s9412_s16 = sadd.s32 4294967295, %s9364_s15   ;;  %s8509_s17 = sadd.s32 4294967294, %s9364_s15   ;;  %s9364_s15 = sphi %s9397_s15, %s18163_s15   ;;  %s9360_s14 = sphi %s9395_s14, %s18162_s14   ;;  %s9356_s13 = sphi %s9393_s13, %s18161_s13   ;;  %s9352_s12 = sphi %s9391_s12, %s18160_s12  }
   0x5   : > { %s9416_s18 = sadd.s32 1, %s9364_s15   ;;  %s87_s19 = sadd.s32 1, %s9360_s14 }
   0x6   : > { %s84_s20 = ssub.s32 %s9364_s15, %s9416_s18  ;;  %p97_p0 = scmp.ne.s32.totalorder %s9360_s14, %s9356_s13 }
   0x7   : > { %p85_p1 = scmp.eq.s32.totalorder %s84_s20, 0  ;;  %p98_p2 = scmp.eq.s32.totalorder %s9412_s16, 3 }
   0x8   : > { %p103_p3 = scmp.ne.s32.totalorder %s9356_s13, %s9352_s12  ;;  %p104_p4 = scmp.eq.s32.totalorder %s8509_s17, 3 }
   0x9   : > { %s9427_s21 = scalar_select %p85_p1, %s9360_s14, %s87_s19  }
   0xa   : > { %p9429_p5 = por %p98_p2, %p97_p0  ;;  %p9433_p6 = por %p104_p4, %p103_p3 }
   0xb   : > { %p8510_p7 = scmp.ge.s32.totalorder %s9364_s15, 1  ;;  %p111_p8 = scmp.lt.s32.totalorder %s9364_s15, 5 }
   0xc   : > { %p9114_p9 = scmp.eq.s32.totalorder %s9412_s16, 0  ;;  %s124_s27 = sshll.u32 %s17582_s0, 4  ;;  %s125_s27 = int_to_ptr.vmem [resolvable:$true] %s124_s27 }
   0xd   : > { %p9440_p10 = pnand %p8510_p7, %p111_p8  ;;  %s9283_s28 = scalar_lea.vmem %s125_s27, 16 }
   0xe   : > { %p9284_p13 = scmp.ne.s32.totalorder %s125_s27, %s9283_s28  ;;  %p9291_p3 = scmp.lt.s32.totalorder %s125_s27, %s125_s27 }
   0xf   : > { %p9106_p11 = pneg %p9440_p10  ;;  %p9292_p4 = scmp.lt.s32.totalorder %s9283_s28, %s9283_s28 }
  0x11   : > { %p9107_p12 = pnand %p9114_p9, %p9106_p11  ;;  %p9293_p7 = por %p9292_p4, %p9291_p3 }
  0x13   : > { %p9285_p0 = pneg %p9107_p12 }
  0x15   : > { %p9286_p1 = pnand %p9285_p0, %p9284_p13 }
  0x17   : > { %p9287_p2 = pneg %p9286_p1 }
  0x19   : > { %p9294_p8 = pnand %p9293_p7, %p9287_p2 }
  0x1b   : > { %9297 = shalt.err (!%p9294_p8)
}
  0x1c   : > { %s9366_s29 = smov [#allocation2]   ;;  %143 = sbr.rel (%p9440_p10) target bundleno = 1396 (0x574), region = 32 }
  0x1d   : > { %9109 = dma.vmem_to_smem (!%p9107_p12), %s125_s27, 16, %s9366_s29, [#allocation4]  }
  0x23   : > { %9343 = dma.done.wait (%p9114_p9), [#allocation4], 16  }
  0x24   : > { %9345 = vsyncadd (%p9114_p9), [#allocation4], 4294967280 }
  0x25   : > { %149 = sfence }
  0x26   : > { %s9458_s30 = sshll.u32 %s9412_s16, 2  ;;  %v17596_v0 = vmov 0.0   ;;  %v168_v1 = vlaneseq  ;;  %v8516_v2 = vld [vmem:[%s17583_s1 + $0x2] ss:$4 sm:$0x3] }
  0x27   : > { %s179_s4 = sadd.s32 32, %s9458_s30  ;;  %s416_s5 = sadd.s32 33, %s9458_s30  ;;  %1696 = vmatprep.mubr.f32.mxu0 %v17596_v0  ;;  %2529 = vmatprep.mubr.f32.mxu1 %v17596_v0 }
  0x28   : > { %s180_s6 = sld [smem:[#allocation2 + %s179_s4]]  ;;  %s890_s8 = sadd.s32 35, %s9458_s30  ;;  %v9469_v3 = vshrl.u32 %v168_v1, 7 }
  0x29   : > { %s417_s7 = sld [smem:[#allocation2 + %s416_s5]]  ;;  %s653_s9 = sadd.s32 34, %s9458_s30 }
  0x2a   : > { %s891_s10 = sld [smem:[#allocation2 + %s890_s8]]  ;;  %17716 = vst [vmem:[#allocation8_spill] sm:$0xff] %v9469_v3  ;;  %v9472_v14 = vsub.s32 1, %v9469_v3  ;;  %v9475_v19 = vadd.s32 8, %v9469_v3  ;;  %v9478_v20 = vsub.s32 0, %v9469_v3  ;;  %s412_s4 = sadd.s32 17, %s9458_s30 }
  0x2b   : > { %s654_s11 = sld [smem:[#allocation2 + %s653_s9]]  ;;  %s408_s17 = sadd.s32 1, %s9458_s30 }
  0x2c   : > { %17717 = vst [vmem:[#allocation9_spill] sm:$0xff] %v9472_v14  ;;  %17718 = vst [vmem:[#allocation10_spill] sm:$0xff] %v9475_v19  ;;  %s413_s8 = sld [smem:[#allocation2 + %s412_s4]]  ;;  %s886_s29 = sadd.s32 19, %s9458_s30 }
  0x2d   : > { %17719 = vst [vmem:[#allocation11_spill] sm:$0xff] %v9478_v20  ;;  %s12326_s24 = sld [smem:[#allocation2 + %s408_s17]]  ;;  %s160_s17 = sand.u32 1, %s9356_s13  }
  0x2e   : > { %v181_v4 = vstv %s180_s6  ;;  %s13125_s6 = sld [smem:[#allocation2 + %s886_s29]]  ;;  %s645_s28 = sadd.s32 2, %s9458_s30 }
  0x2f   : > { %v418_v5 = vstv %s417_s7  ;;  %v182_v6 = vadd.f32 %v8516_v2, %v181_v4  ;;  %s175_s7 = sadd.s32 16, %s9458_s30  ;;  %s16432_s4 = sld [smem:[#allocation2 + %s645_s28]] }
  0x30   : > { %v419_v7 = vadd.f32 %v8516_v2, %v418_v5  ;;  %v892_v8 = vstv %s891_s10  ;;  %s882_s5 = sadd.s32 3, %s9458_s30 }
  0x31   : > { %v655_v9 = vstv %s654_s11  ;;  %v333_v10 = vfloor.f32 %v182_v6  ;;  %v893_v12 = vadd.f32 %v8516_v2, %v892_v8  ;;  %s176_s11 = sld [smem:[#allocation2 + %s175_s7]] }
  0x32   : > { %v570_v11 = vfloor.f32 %v419_v7  ;;  %v656_v13 = vadd.f32 %v8516_v2, %v655_v9  ;;  %s12263_s7 = sld [smem:[#allocation2 + %s9458_s30]] }
  0x33   : > { %v334_v15 = vsub.f32 %v182_v6, %v333_v10  ;;  %v9080_v16 = vtrunc.f32 %v333_v10  ;;  %v1044_v21 = vfloor.f32 %v893_v12 }
  0x34   : > { %v571_v17 = vsub.f32 %v419_v7, %v570_v11  ;;  %v9086_v18 = vtrunc.f32 %v570_v11  ;;  %v807_v22 = vfloor.f32 %v656_v13 }
  0x35   : > { %v9081_v23 = vcvt.f32.s32 %v9080_v16  ;;  %v336_v24 = vsub.f32 1.0, %v334_v15  ;;  %v9482_v27 = vsub.f32 %v893_v12, %v1044_v21  ;;  %v9484_v28 = vtrunc.f32 %v1044_v21 }
  0x36   : > { %v9480_v25 = vcvt.f32.s32 %v9086_v18  ;;  %v573_v26 = vsub.f32 1.0, %v571_v17  ;;  %v9486_v29 = vsub.f32 %v656_v13, %v807_v22  ;;  %v9488_v30 = vtrunc.f32 %v807_v22 }
  0x37   : > { %vm337_vm0 = vcmp.ge.s32.totalorder %v9081_v23, 0  ;;  %vm338_vm1 = vcmp.lt.s32.totalorder %v9081_v23, 16  ;;  %v343_v31 = vadd.s32 1, %v9081_v23  ;;  %v357_v32 = vrot.slane %v9081_v23, %v9472_v14 }
  0x38   : > { %vm339_vm2 = vmand %vm337_vm0, %vm338_vm1  ;;  %vm574_vm3 = vcmp.ge.s32.totalorder %v9480_v25, 0  ;;  %vm575_vm4 = vcmp.lt.s32.totalorder %v9480_v25, 16  ;;  %v580_v33 = vadd.s32 1, %v9480_v25  ;;  %v594_v34 = vrot.slane %v9480_v25, %v9472_v14 }
  0x39   : > { %v8522_v35 = vsel %vm339_vm2, 1.0, %v17596_v0  ;;  %vm344_vm5 = vcmp.ge.s32.totalorder %v343_v31, 0  ;;  %vm345_vm6 = vcmp.lt.s32.totalorder %v343_v31, 16  ;;  %vm359_vm7 = vcmp.eq.s32.totalorder %v9469_v3, %v357_v32  ;;  %vm576_vm8 = vmand %vm574_vm3, %vm575_vm4 }
  0x3a   : > { %v342_v36 = vmul.f32 %v8522_v35, %v336_v24  ;;  %vm346_vm9 = vmand %vm344_vm5, %vm345_vm6  ;;  %vm361_vm10 = vcmp.eq.s32.totalorder %v9475_v19, %v357_v32  ;;  %v384_v37 = vrot.slane %v343_v31, %v9472_v14  ;;  %v8528_v38 = vsel %vm576_vm8, 1.0, %v17596_v0  ;;  %v1119_v35 = vld [vmem:[%s17584_s2] sm:$0xff] }
  0x3b   : > { %v8523_v39 = vsel %vm346_vm9, 1.0, %v17596_v0  ;;  %v579_v40 = vmul.f32 %v8528_v38, %v573_v26  ;;  %vm581_vm11 = vcmp.ge.s32.totalorder %v580_v33, 0  ;;  %vm582_vm12 = vcmp.lt.s32.totalorder %v580_v33, 16 }
  0x3c   : > { %v349_v41 = vmul.f32 %v8523_v39, %v334_v15  ;;  %v370_v42 = vrot.slane %v342_v36, %v9472_v14  ;;  %vm386_vm13 = vcmp.eq.s32.totalorder %v9469_v3, %v384_v37  ;;  %vm388_vm14 = vcmp.eq.s32.totalorder %v9475_v19, %v384_v37  ;;  %vm583_vm15 = vmand %vm581_vm11, %vm582_vm12 }
  0x3d   : > { %v8529_v43 = vsel %vm583_vm15, 1.0, %v17596_v0  ;;  %vm596_vm0 = vcmp.eq.s32.totalorder %v9469_v3, %v594_v34  ;;  %vm598_vm1 = vcmp.eq.s32.totalorder %v9475_v19, %v594_v34  ;;  %v607_v44 = vrot.slane %v579_v40, %v9472_v14 }
  0x3e   : > { %v374_v45 = vsel %vm359_vm7, %v370_v42, 0.0  ;;  %v376_v46 = vsel %vm361_vm10, %v370_v42, 0.0  ;;  %v397_v47 = vrot.slane %v349_v41, %v9472_v14  ;;  %v586_v48 = vmul.f32 %v8529_v43, %v571_v17  ;;  %v1120_v43 = vld [vmem:[%s17584_s2 + $0x8] sm:$0xff] }
  0x3f   : > { %v611_v49 = vsel %vm596_vm0, %v607_v44, 0.0  ;;  %v613_v50 = vsel %vm598_vm1, %v607_v44, 0.0  ;;  %v621_v51 = vrot.slane %v580_v33, %v9472_v14  ;;  %v353_v52 = vrot.slane %v9081_v23, %v9478_v20 }
  0x40   : > { %v401_v53 = vsel %vm386_vm13, %v397_v47, 0.0  ;;  %v403_v54 = vsel %vm388_vm14, %v397_v47, 0.0  ;;  %v634_v55 = vrot.slane %v586_v48, %v9472_v14  ;;  %v366_v56 = vrot.slane %v342_v36, %v9478_v20 }
  0x41   : > { %v405_v57 = vadd.f32 %v401_v53, %v374_v45  ;;  %v407_v58 = vadd.f32 %v403_v54, %v376_v46  ;;  %vm623_vm2 = vcmp.eq.s32.totalorder %v9469_v3, %v621_v51  ;;  %vm625_vm3 = vcmp.eq.s32.totalorder %v9475_v19, %v621_v51 }
  0x42   : > { %v638_v59 = vsel %vm623_vm2, %v634_v55, 0.0  ;;  %v640_v60 = vsel %vm625_vm3, %v634_v55, 0.0  ;;  %vm358_vm4 = vcmp.eq.s32.totalorder %v9469_v3, %v353_v52  ;;  %vm360_vm5 = vcmp.eq.s32.totalorder %v9475_v19, %v353_v52 }
  0x43   : > { %v9060_v61 = vpack.c.bf16 %v407_v58, %v405_v57  ;;  %v642_v62 = vadd.f32 %v638_v59, %v611_v49  ;;  %v644_v63 = vadd.f32 %v640_v60, %v613_v50  ;;  %v373_v1 = vsel %vm358_vm4, %v366_v56, 0.0  ;;  %v1121_v57 = vld [vmem:[%s17584_s2 + $0x10] sm:$0xff] }
  0x44   : > { %v375_v2 = vsel %vm360_vm5, %v366_v56, 0.0  ;;  %v380_v4 = vrot.slane %v343_v31, %v9478_v20  ;;  %v393_v5 = vrot.slane %v349_v41, %v9478_v20  ;;  %v590_v6 = vrot.slane %v9480_v25, %v9478_v20 }
  0x45   : > { %vm1247_vm6 = vcmask 130048   ;;  %9061 = vmatprep.subr.bf16.mxu0 %v9060_v61  ;;  %v9064_v7 = vpack.c.bf16 %v644_v63, %v642_v62  ;;  %v603_v8 = vrot.slane %v579_v40, %v9478_v20  ;;  %v617_v9 = vrot.slane %v580_v33, %v9478_v20 }
  0x46   : > { %v630_v10 = vrot.slane %v586_v48, %v9478_v20  ;;  %vm385_vm7 = vcmp.eq.s32.totalorder %v9469_v3, %v380_v4  ;;  %vm387_vm8 = vcmp.eq.s32.totalorder %v9475_v19, %v380_v4  ;;  %vm595_vm9 = vcmp.eq.s32.totalorder %v9469_v3, %v590_v6 }
  0x47   : > { %vm597_vm10 = vcmp.eq.s32.totalorder %v9475_v19, %v590_v6  ;;  %9065 = vmatprep.subr.bf16.mxu1 %v9064_v7  ;;  %v400_v11 = vsel %vm385_vm7, %v393_v5, 0.0  ;;  %v402_v12 = vsel %vm387_vm8, %v393_v5, 0.0  ;;  %v610_v13 = vsel %vm595_vm9, %v603_v8, 0.0 }
  0x48   : > { %v612_v15 = vsel %vm597_vm10, %v603_v8, 0.0  ;;  %v404_v16 = vadd.f32 %v400_v11, %v373_v1  ;;  %v406_v17 = vadd.f32 %v402_v12, %v375_v2  ;;  %vm622_vm11 = vcmp.eq.s32.totalorder %v9469_v3, %v617_v9  ;;  %v1122_v8 = vld [vmem:[%s17584_s2 + $0x18] sm:$0xff] }
  0x49   : > { %vm624_vm12 = vcmp.eq.s32.totalorder %v9475_v19, %v617_v9  ;;  %v637_v18 = vsel %vm622_vm11, %v630_v10, 0.0  ;;  %v9099_v22 = vcvt.f32.s32 %v9484_v28  ;;  %v1047_v23 = vsub.f32 1.0, %v9482_v27 }
  0x4a   : > { %v639_v21 = vsel %vm624_vm12, %v630_v10, 0.0  ;;  %v9062_v24 = vpack.c.bf16 %v406_v17, %v404_v16  ;;  %v641_v25 = vadd.f32 %v637_v18, %v610_v13  ;;  %v9538_v31 = vcvt.f32.s32 %v9488_v30  ;;  %v1123_v17 = vld [vmem:[%s17584_s2 + $0x20] sm:$0xff] }
  0x4b   : > { %v643_v26 = vadd.f32 %v639_v21, %v612_v15  ;;  %vm1048_vm13 = vcmp.ge.s32.totalorder %v9099_v22, 0  ;;  %vm1049_vm14 = vcmp.lt.s32.totalorder %v9099_v22, 16  ;;  %v1054_v32 = vadd.s32 1, %v9099_v22 }
  0x4c   : > { %v1068_v33 = vrot.slane %v9099_v22, %v9472_v14  ;;  %9063 = vmatpush1.bf16.msra.mxu0 %v9062_v24  ;;  %vm1050_vm15 = vmand %vm1048_vm13, %vm1049_vm14  ;;  %v1064_v28 = vrot.slane %v9099_v22, %v9478_v20  ;;  %v810_v36 = vsub.f32 1.0, %v9486_v29  ;;  %vm811_vm0 = vcmp.ge.s32.totalorder %v9538_v31, 0 }
  0x4d   : > { %v9066_v34 = vpack.c.bf16 %v643_v26, %v641_v25  ;;  %v8540_v30 = vsel %vm1050_vm15, 1.0, %v17596_v0  ;;  %vm1055_vm1 = vcmp.ge.s32.totalorder %v1054_v32, 0  ;;  %vm1056_vm2 = vcmp.lt.s32.totalorder %v1054_v32, 16 }
  0x4e   : > { %vm1070_vm3 = vcmp.eq.s32.totalorder %v9469_v3, %v1068_v33  ;;  %v1053_v37 = vmul.f32 %v8540_v30, %v1047_v23  ;;  %vm1057_vm4 = vmand %vm1055_vm1, %vm1056_vm2  ;;  %vm1072_vm5 = vcmp.eq.s32.totalorder %v9475_v19, %v1068_v33  ;;  %v1095_v38 = vrot.slane %v1054_v32, %v9472_v14  ;;  %v1128_v30 = vld [vmem:[%s17584_s2 + $0x48] sm:$0xff] }
  0x4f   : > { %9067 = vmatpush1.bf16.msra.mxu1 %v9066_v34  ;;  %vm1069_vm7 = vcmp.eq.s32.totalorder %v9469_v3, %v1064_v28  ;;  %8542 = vmatmul.mubr.msk.f32.vlgmr.msra.gmra.mrb[0].mxu0 %vm1247_vm6, %v1119_v35  ;;  %v8541_v39 = vsel %vm1057_vm4, 1.0, %v17596_v0  ;;  %vm1071_vm8 = vcmp.eq.s32.totalorder %v9475_v19, %v1064_v28  ;;  %v1091_v40 = vrot.slane %v1054_v32, %v9478_v20  ;;  %v1124_v34 = vld [vmem:[%s17584_s2 + $0x28] sm:$0xff]  ;;  %v1126_v28 = vld [vmem:[%s17584_s2 + $0x38] sm:$0xff] }
  0x50   : > { %vm812_vm9 = vcmp.lt.s32.totalorder %v9538_v31, 16  ;;  %v1060_v41 = vmul.f32 %v8541_v39, %v9482_v27  ;;  %v1081_v42 = vrot.slane %v1053_v37, %v9472_v14  ;;  %vm1097_vm10 = vcmp.eq.s32.totalorder %v9469_v3, %v1095_v38  ;;  %1702 = vmatprep.mubr.f32.mxu0 %v17596_v0  ;;  %v1131_v39 = vld [vmem:[%s17584_s2 + $0x60] sm:$0xff] }
  0x51   : > { %vm1099_vm11 = vcmp.eq.s32.totalorder %v9475_v19, %v1095_v38  ;;  %vm813_vm12 = vmand %vm811_vm0, %vm812_vm9  ;;  %v1077_v44 = vrot.slane %v1053_v37, %v9478_v20  ;;  %vm1096_vm13 = vcmp.eq.s32.totalorder %v9469_v3, %v1091_v40  ;;  %vm1098_vm14 = vcmp.eq.s32.totalorder %v9475_v19, %v1091_v40  ;;  %v1129_v37 = vld [vmem:[%s17584_s2 + $0x50] sm:$0xff]  ;;  %v1130_v38 = vld [vmem:[%s17584_s2 + $0x58] sm:$0xff] }
  0x52   : > { %8670 = vmatmul.mubr.msk.f32.vlgmr.msra.gmra.mrb[0].mxu1 %vm1247_vm6, %v1119_v35  ;;  %v8534_v27 = vsel %vm813_vm12, 1.0, %v17596_v0  ;;  %v1085_v45 = vsel %vm1070_vm3, %v1081_v42, 0.0  ;;  %v1087_v46 = vsel %vm1072_vm5, %v1081_v42, 0.0  ;;  %v1108_v47 = vrot.slane %v1060_v41, %v9472_v14  ;;  %v1125_v35 = vld [vmem:[%s17584_s2 + $0x30] sm:$0xff]  ;;  %v1132_v40 = vld [vmem:[%s17584_s2 + $0x68] sm:$0xff]  ;;  %v1134_v42 = vld [vmem:[%s17584_s2 + $0x78] sm:$0xff] }
  0x53   : > { %v1104_v48 = vrot.slane %v1060_v41, %v9478_v20  ;;  %2535 = vmatprep.mubr.f32.mxu1 %v17596_v0  ;;  %v1084_v49 = vsel %vm1069_vm7, %v1077_v44, 0.0  ;;  %v1086_v50 = vsel %vm1071_vm8, %v1077_v44, 0.0  ;;  %v816_v51 = vmul.f32 %v8534_v27, %v810_v36  ;;  %8543 = vmatmul.mubr.msk.f32.gmra.mrb[2].mxu0 %vm1247_vm6, %v1120_v43  ;;  %v1127_v36 = vld [vmem:[%s17584_s2 + $0x40] sm:$0xff]  ;;  %v1133_v41 = vld [vmem:[%s17584_s2 + $0x70] sm:$0xff]  ;;  %v1136_v44 = vld [vmem:[%s17584_s2 + $0x88] sm:$0xff] }
  0x54   : > { %v817_v52 = vadd.s32 1, %v9538_v31  ;;  %v1112_v53 = vsel %vm1097_vm10, %v1108_v47, 0.0  ;;  %v1114_v54 = vsel %vm1099_vm11, %v1108_v47, 0.0  ;;  %1708 = vmatprep.mubr.f32.mxu0 %v17596_v0  ;;  %v831_v62 = vrot.slane %v9538_v31, %v9472_v14  ;;  %v1137_v27 = vld [vmem:[%s17584_s2 + $0x90] sm:$0xff]  ;;  %v1140_v47 = vld [vmem:[%s17584_s2 + $0xa8] sm:$0xff] }
  0x55   : > { %v1111_v55 = vsel %vm1096_vm13, %v1104_v48, 0.0  ;;  %v1113_v56 = vsel %vm1098_vm14, %v1104_v48, 0.0  ;;  %v1116_v58 = vadd.f32 %v1112_v53, %v1085_v45  ;;  %v1118_v59 = vadd.f32 %v1114_v54, %v1087_v46  ;;  %v1138_v45 = vld [vmem:[%s17584_s2 + $0x98] sm:$0xff]  ;;  %v1139_v46 = vld [vmem:[%s17584_s2 + $0xa0] sm:$0xff]  ;;  %v1141_v48 = vld [vmem:[%s17584_s2 + $0xb0] sm:$0xff] }
  0x56   : > { %v1115_v60 = vadd.f32 %v1111_v55, %v1084_v49  ;;  %v1117_v61 = vadd.f32 %v1113_v56, %v1086_v50  ;;  %8671 = vmatmul.mubr.msk.f32.gmra.mrb[2].mxu1 %vm1247_vm6, %v1120_v43  ;;  %vm818_vm15 = vcmp.ge.s32.totalorder %v817_v52, 0  ;;  %vm819_vm0 = vcmp.lt.s32.totalorder %v817_v52, 16  ;;  %v1135_v43 = vld [vmem:[%s17584_s2 + $0x80] sm:$0xff]  ;;  %v1142_v49 = vld [vmem:[%s17584_s2 + $0xb8] sm:$0xff]  ;;  %v1148_v55 = vld [vmem:[%s17584_s2 + $0xe8] sm:$0xff] }
  0x57   : > { %v844_v63 = vrot.slane %v816_v51, %v9472_v14  ;;  %2541 = vmatprep.mubr.f32.mxu1 %v17596_v0  ;;  %v9072_v1 = vpack.c.bf16 %v1118_v59, %v1116_v58  ;;  %vm820_vm1 = vmand %vm818_vm15, %vm819_vm0  ;;  %v858_v4 = vrot.slane %v817_v52, %v9472_v14  ;;  %v827_v5 = vrot.slane %v9538_v31, %v9478_v20  ;;  %v1143_v50 = vld [vmem:[%s17584_s2 + $0xc0] sm:$0xff]  ;;  %v1146_v53 = vld [vmem:[%s17584_s2 + $0xd8] sm:$0xff] }
  0x58   : > { %v9074_v2 = vpack.c.bf16 %v1117_v61, %v1115_v60  ;;  %8544 = vmatmul.mubr.msk.f32.gmra.mrb[4].mxu0 %vm1247_vm6, %v1121_v57  ;;  %v8535_v6 = vsel %vm820_vm1, 1.0, %v17596_v0  ;;  %vm833_vm2 = vcmp.eq.s32.totalorder %v9469_v3, %v831_v62  ;;  %vm835_vm3 = vcmp.eq.s32.totalorder %v9475_v19, %v831_v62  ;;  %v1147_v54 = vld [vmem:[%s17584_s2 + $0xe0] sm:$0xff]  ;;  %v1149_v56 = vld [vmem:[%s17584_s2 + $0xf0] sm:$0xff]  ;;  %v1152_v59 = vld [vmem:[%s17584_s2 + $0x108] sm:$0xff] }
  0x59   : > { %v840_v7 = vrot.slane %v816_v51, %v9478_v20  ;;  %1714 = vmatprep.mubr.f32.mxu0 %v17596_v0  ;;  %9073 = vmatprep.subr.bf16.mxu1 %v9072_v1  ;;  %v823_v9 = vmul.f32 %v8535_v6, %v9486_v29  ;;  %v848_v10 = vsel %vm833_vm2, %v844_v63, 0.0  ;;  %v850_v11 = vsel %vm835_vm3, %v844_v63, 0.0  ;;  %v1144_v51 = vld [vmem:[%s17584_s2 + $0xc8] sm:$0xff]  ;;  %v1151_v58 = vld [vmem:[%s17584_s2 + $0x100] sm:$0xff]  ;;  %v1153_v60 = vld [vmem:[%s17584_s2 + $0x110] sm:$0xff] }
  0x5a   : > { %vm860_vm4 = vcmp.eq.s32.totalorder %v9469_v3, %v858_v4  ;;  %8672 = vmatmul.mubr.msk.f32.gmra.mrb[4].mxu1 %vm1247_vm6, %v1121_v57  ;;  %vm862_vm5 = vcmp.eq.s32.totalorder %v9475_v19, %v858_v4  ;;  %vm832_vm7 = vcmp.eq.s32.totalorder %v9469_v3, %v827_v5  ;;  %vm834_vm8 = vcmp.eq.s32.totalorder %v9475_v19, %v827_v5  ;;  %v1150_v57 = vld [vmem:[%s17584_s2 + $0xf8] sm:$0xff]  ;;  %v1155_v62 = vld [vmem:[%s17584_s2 + $0x120] sm:$0xff]  ;;  %v1156_v63 = vld [vmem:[%s17584_s2 + $0x128] sm:$0xff] }
  0x5b   : > { %9075 = vmatpush1.bf16.msra.mxu1 %v9074_v2  ;;  %v854_v12 = vrot.slane %v817_v52, %v9478_v20  ;;  %v871_v13 = vrot.slane %v823_v9, %v9472_v14  ;;  %v847_v15 = vsel %vm832_vm7, %v840_v7, 0.0  ;;  %v849_v16 = vsel %vm834_vm8, %v840_v7, 0.0  ;;  %2547 = vmatprep.mubr.f32.mxu1 %v17596_v0  ;;  %v1145_v52 = vld [vmem:[%s17584_s2 + $0xd0] sm:$0xff]  ;;  %v1154_v61 = vld [vmem:[%s17584_s2 + $0x118] sm:$0xff]  ;;  %v1159_v4 = vld [vmem:[%s17584_s2 + $0x140] sm:$0xff] }
  0x5c   : > { %v867_v29 = vrot.slane %v823_v9, %v9478_v20  ;;  %8545 = vmatmul.mubr.msk.f32.gmra.mrb[6].mxu0 %vm1247_vm6, %v1122_v8  ;;  %v1157_v1 = vld [vmem:[%s17584_s2 + $0x130] sm:$0xff]  ;;  %v1158_v2 = vld [vmem:[%s17584_s2 + $0x138] sm:$0xff]  ;;  %v1160_v5 = vld [vmem:[%s17584_s2 + $0x148] sm:$0xff] }
  0x5d   : > { %vm859_vm9 = vcmp.eq.s32.totalorder %v9469_v3, %v854_v12  ;;  %vm861_vm10 = vcmp.eq.s32.totalorder %v9475_v19, %v854_v12  ;;  %1720 = vmatprep.mubr.f32.mxu0 %v17596_v0  ;;  %v875_v18 = vsel %vm860_vm4, %v871_v13, 0.0  ;;  %v877_v21 = vsel %vm862_vm5, %v871_v13, 0.0  ;;  %v1161_v6 = vld [vmem:[%s17584_s2 + $0x150] sm:$0xff]  ;;  %v1162_v7 = vld [vmem:[%s17584_s2 + $0x158] sm:$0xff]  ;;  %v1164_v9 = vld [vmem:[%s17584_s2 + $0x168] sm:$0xff] }
  0x5e   : > { %v874_v22 = vsel %vm859_vm9, %v867_v29, 0.0  ;;  %v876_v23 = vsel %vm861_vm10, %v867_v29, 0.0  ;;  %8673 = vmatmul.mubr.msk.f32.gmra.mrb[6].mxu1 %vm1247_vm6, %v1122_v8  ;;  %v879_v24 = vadd.f32 %v875_v18, %v848_v10  ;;  %v881_v25 = vadd.f32 %v877_v21, %v850_v11  ;;  %v1163_v8 = vld [vmem:[%s17584_s2 + $0x160] sm:$0xff]  ;;  %v1165_v10 = vld [vmem:[%s17584_s2 + $0x170] sm:$0xff]  ;;  %v1166_v11 = vld [vmem:[%s17584_s2 + $0x178] sm:$0xff] }
  0x5f   : > { %v878_v26 = vadd.f32 %v874_v22, %v847_v15  ;;  %v880_v31 = vadd.f32 %v876_v23, %v849_v16  ;;  %2553 = vmatprep.mubr.f32.mxu1 %v17596_v0  ;;  %v1167_v12 = vld [vmem:[%s17584_s2 + $0x180] sm:$0xff]  ;;  %v414_v15 = vstv %s413_s8  ;;  %v1168_v16 = vld [vmem:[%s17584_s2 + $0x188] sm:$0xff]  ;;  %v177_v29 = vstv %s176_s11  ;;  %s9059_s8 = sshll.u32 %s9412_s16, 9  ;;  %s17541_s16 = scalar_lea.sflag [#allocation3], %s160_s17 }
  0x60   : > { %8546 = vmatmul.mubr.msk.f32.gmra.mrb[8].mxu0 %vm1247_vm6, %v1123_v17  ;;  %v9068_v32 = vpack.c.bf16 %v881_v25, %v879_v24  ;;  %v8515_v13 = vld [vmem:[%s17583_s1 + $0x1] ss:$4 sm:$0x3]  ;;  %v1169_v21 = vld [vmem:[%s17584_s2 + $0x190] sm:$0xff]  ;;  %v1170_v24 = vld [vmem:[%s17584_s2 + $0x198] sm:$0xff]  ;;  %s17533_s19 = scalar_lea.hbm %s17585_s3, %s9059_s8 }
  0x61   : > { %v9070_v33 = vpack.c.bf16 %v880_v31, %v878_v26  ;;  %1726 = vmatprep.mubr.f32.mxu0 %v17596_v0  ;;  %v178_v18 = vadd.f32 %v8515_v13, %v177_v29  ;;  %v1171_v31 = vld [vmem:[%s17584_s2 + $0x1a0] sm:$0xff] }
  0x62   : > { %8674 = vmatmul.mubr.msk.f32.gmra.mrb[8].mxu1 %vm1247_vm6, %v1123_v17  ;;  %9069 = vmatprep.subr.bf16.mxu0 %v9068_v32  ;;  %v415_v17 = vadd.f32 %v8515_v13, %v414_v15 }
  0x63   : > { %2559 = vmatprep.mubr.f32.mxu1 %v17596_v0  ;;  %9071 = vmatpush1.bf16.msra.mxu0 %v9070_v33  ;;  %v258_v23 = vfloor.f32 %v178_v18 }
  0x64   : > { %8547 = vmatmul.mubr.msk.f32.gmra.mrb[10].mxu0 %vm1247_vm6, %v1124_v34  ;;  %v495_v22 = vfloor.f32 %v415_v17 }
  0x65   : > { %1732 = vmatprep.mubr.f32.mxu0 %v17596_v0  ;;  %v9078_v26 = vtrunc.f32 %v258_v23 }
  0x66   : > { %8675 = vmatmul.mubr.msk.f32.gmra.mrb[10].mxu1 %vm1247_vm6, %v1124_v34  ;;  %v9084_v25 = vtrunc.f32 %v495_v22  ;;  %v1172_v34 = vld [vmem:[%s17584_s2 + $0x1a8] sm:$0xff] }
  0x67   : > { %2565 = vmatprep.mubr.f32.mxu1 %v17596_v0  ;;  %v9975_v33 = vcvt.f32.s32 %v9078_v26 }
  0x68   : > { %8548 = vmatmul.mubr.msk.f32.gmra.mrb[12].mxu0 %vm1247_vm6, %v1125_v35  ;;  %v9972_v32 = vcvt.f32.s32 %v9084_v25  ;;  %v1177_v25 = vld [vmem:[%s17584_s2 + $0x1d0] sm:$0xff] }
  0x69   : > { %1738 = vmatprep.mubr.f32.mxu0 %v17596_v0  ;;  %vm262_vm15 = vcmp.ge.s32.totalorder %v9975_v33, 0  ;;  %vm263_vm0 = vcmp.lt.s32.totalorder %v9975_v33, 16 }
  0x6a   : > { %8676 = vmatmul.mubr.msk.f32.gmra.mrb[12].mxu1 %vm1247_vm6, %v1125_v35  ;;  %v9983_v35 = vadd.s32 1, %v9972_v32  ;;  %vm499_vm11 = vcmp.ge.s32.totalorder %v9972_v32, 0  ;;  %vm500_vm12 = vcmp.lt.s32.totalorder %v9972_v32, 16  ;;  %vm264_vm5 = vmand %vm262_vm15, %vm263_vm0 }
  0x6b   : > { %2571 = vmatprep.mubr.f32.mxu1 %v17596_v0  ;;  %vm10012_vm1 = vmand %vm499_vm11, %vm500_vm12 }
  0x6c   : > { %8549 = vmatmul.mubr.msk.f32.gmra.mrb[14].mxu0 %vm1247_vm6, %v1126_v28  ;;  %vm506_vm13 = vcmp.ge.s32.totalorder %v9983_v35, 0  ;;  %vm507_vm14 = vcmp.lt.s32.totalorder %v9983_v35, 16  ;;  %v10101_v29 = vrot.slane %v9983_v35, %v9472_v14 }
  0x6d   : > { %1744 = vmatprep.mubr.f32.mxu0 %v17596_v0  ;;  %vm508_vm4 = vmand %vm506_vm13, %vm507_vm14 }
  0x6e   : > { %8677 = vmatmul.mubr.msk.f32.gmra.mrb[14].mxu1 %vm1247_vm6, %v1126_v28  ;;  %17730 = vst [vmem:[#allocation20_spill] sm:$0xff] %v10101_v29  ;;  %vm548_vm15 = vcmp.eq.s32.totalorder %v9469_v3, %v10101_v29 }
  0x6f   : > { %2577 = vmatprep.mubr.f32.mxu1 %v17596_v0 }
  0x70   : > { %8550 = vmatmul.mubr.msk.f32.gmra.mrb[16].mxu0 %vm1247_vm6, %v1127_v36 }
  0x71   : > { %1750 = vmatprep.mubr.f32.mxu0 %v17596_v0 }
  0x72   : > { %8678 = vmatmul.mubr.msk.f32.gmra.mrb[16].mxu1 %vm1247_vm6, %v1127_v36 }
  0x73   : > { %2583 = vmatprep.mubr.f32.mxu1 %v17596_v0 }
  0x74   : > { %8551 = vmatmul.mubr.msk.f32.gmra.mrb[18].mxu0 %vm1247_vm6, %v1128_v30 }
  0x75   : > { %1756 = vmatprep.mubr.f32.mxu0 %v17596_v0 }
  0x76   : > { %8679 = vmatmul.mubr.msk.f32.gmra.mrb[18].mxu1 %vm1247_vm6, %v1128_v30 }
  0x77   : > { %2589 = vmatprep.mubr.f32.mxu1 %v17596_v0 }
  0x78   : > { %8552 = vmatmul.mubr.msk.f32.gmra.mrb[20].mxu0 %vm1247_vm6, %v1129_v37 }
  0x79   : > { %1762 = vmatprep.mubr.f32.mxu0 %v17596_v0 }
  0x7a   : > { %8680 = vmatmul.mubr.msk.f32.gmra.mrb[20].mxu1 %vm1247_vm6, %v1129_v37  ;;  %v268_v37 = vadd.s32 1, %v9975_v33 }
  0x7b   : > { %2595 = vmatprep.mubr.f32.mxu1 %v17596_v0 }
  0x7c   : > { %8553 = vmatmul.mubr.msk.f32.gmra.mrb[22].mxu0 %vm1247_vm6, %v1130_v38  ;;  %vm269_vm2 = vcmp.ge.s32.totalorder %v268_v37, 0  ;;  %vm270_vm3 = vcmp.lt.s32.totalorder %v268_v37, 16 }
  0x7d   : > { %1768 = vmatprep.mubr.f32.mxu0 %v17596_v0  ;;  %vm271_vm7 = vmand %vm269_vm2, %vm270_vm3 }
  0x7e   : > { %8681 = vmatmul.mubr.msk.f32.gmra.mrb[22].mxu1 %vm1247_vm6, %v1130_v38 }
  0x7f   : > { %2601 = vmatprep.mubr.f32.mxu1 %v17596_v0 }
  0x80   : > { %8554 = vmatmul.mubr.msk.f32.gmra.mrb[24].mxu0 %vm1247_vm6, %v1131_v39 }
  0x81   : > { %1774 = vmatprep.mubr.f32.mxu0 %v17596_v0 }
  0x82   : > { %8682 = vmatmul.mubr.msk.f32.gmra.mrb[24].mxu1 %vm1247_vm6, %v1131_v39  ;;  %v1173_v39 = vld [vmem:[%s17584_s2 + $0x1b0] sm:$0xff] }
  0x83   : > { %2607 = vmatprep.mubr.f32.mxu1 %v17596_v0 }
  0x84   : > { %8555 = vmatmul.mubr.msk.f32.gmra.mrb[26].mxu0 %vm1247_vm6, %v1132_v40 }
  0x85   : > { %1780 = vmatprep.mubr.f32.mxu0 %v17596_v0 }
  0x86   : > { %8683 = vmatmul.mubr.msk.f32.gmra.mrb[26].mxu1 %vm1247_vm6, %v1132_v40 }
  0x87   : > { %2613 = vmatprep.mubr.f32.mxu1 %v17596_v0 }
  0x88   : > { %8556 = vmatmul.mubr.msk.f32.gmra.mrb[28].mxu0 %vm1247_vm6, %v1133_v41 }
  0x89   : > { %1786 = vmatprep.mubr.f32.mxu0 %v17596_v0 }
  0x8a   : > { %8684 = vmatmul.mubr.msk.f32.gmra.mrb[28].mxu1 %vm1247_vm6, %v1133_v41  ;;  %v496_v41 = vsub.f32 %v415_v17, %v495_v22 }
  0x8b   : > { %2619 = vmatprep.mubr.f32.mxu1 %v17596_v0 }
  0x8c   : > { %8557 = vmatmul.mubr.msk.f32.gmra.mrb[30].mxu0 %vm1247_vm6, %v1134_v42 }
  0x8d   : > { %1792 = vmatprep.mubr.f32.mxu0 %v17596_v0 }
  0x8e   : > { %8685 = vmatmul.mubr.msk.f32.gmra.mrb[30].mxu1 %vm1247_vm6, %v1134_v42 }
  0x8f   : > { %2625 = vmatprep.mubr.f32.mxu1 %v17596_v0 }
  0x90   : > { %8558 = vmatmul.mubr.msk.f32.gmra.mrb[32].mxu0 %vm1247_vm6, %v1135_v43 }
  0x91   : > { %1798 = vmatprep.mubr.f32.mxu0 %v17596_v0 }
  0x92   : > { %8686 = vmatmul.mubr.msk.f32.gmra.mrb[32].mxu1 %vm1247_vm6, %v1135_v43 }
  0x93   : > { %2631 = vmatprep.mubr.f32.mxu1 %v17596_v0 }
  0x94   : > { %8559 = vmatmul.mubr.msk.f32.gmra.mrb[34].mxu0 %vm1247_vm6, %v1136_v44 }
  0x95   : > { %1804 = vmatprep.mubr.f32.mxu0 %v17596_v0 }
  0x96   : > { %8687 = vmatmul.mubr.msk.f32.gmra.mrb[34].mxu1 %vm1247_vm6, %v1136_v44  ;;  %v259_v44 = vsub.f32 %v178_v18, %v258_v23 }
  0x97   : > { %2637 = vmatprep.mubr.f32.mxu1 %v17596_v0 }
  0x98   : > { %8560 = vmatmul.mubr.msk.f32.gmra.mrb[36].mxu0 %vm1247_vm6, %v1137_v27 }
  0x99   : > { %1810 = vmatprep.mubr.f32.mxu0 %v17596_v0 }
  0x9a   : > { %8688 = vmatmul.mubr.msk.f32.gmra.mrb[36].mxu1 %vm1247_vm6, %v1137_v27 }
  0x9b   : > { %2643 = vmatprep.mubr.f32.mxu1 %v17596_v0 }
  0x9c   : > { %8561 = vmatmul.mubr.msk.f32.gmra.mrb[38].mxu0 %vm1247_vm6, %v1138_v45 }
  0x9d   : > { %1816 = vmatprep.mubr.f32.mxu0 %v17596_v0 }
  0x9e   : > { %8689 = vmatmul.mubr.msk.f32.gmra.mrb[38].mxu1 %vm1247_vm6, %v1138_v45 }
  0x9f   : > { %2649 = vmatprep.mubr.f32.mxu1 %v17596_v0 }
  0xa0   : > { %8562 = vmatmul.mubr.msk.f32.gmra.mrb[40].mxu0 %vm1247_vm6, %v1139_v46 }
  0xa1   : > { %1822 = vmatprep.mubr.f32.mxu0 %v17596_v0 }
  0xa2   : > { %8690 = vmatmul.mubr.msk.f32.gmra.mrb[40].mxu1 %vm1247_vm6, %v1139_v46  ;;  %v1174_v46 = vld [vmem:[%s17584_s2 + $0x1b8] sm:$0xff] }
  0xa3   : > { %2655 = vmatprep.mubr.f32.mxu1 %v17596_v0 }
  0xa4   : > { %8563 = vmatmul.mubr.msk.f32.gmra.mrb[42].mxu0 %vm1247_vm6, %v1140_v47 }
  0xa5   : > { %1828 = vmatprep.mubr.f32.mxu0 %v17596_v0 }
  0xa6   : > { %8691 = vmatmul.mubr.msk.f32.gmra.mrb[42].mxu1 %vm1247_vm6, %v1140_v47 }
  0xa7   : > { %2661 = vmatprep.mubr.f32.mxu1 %v17596_v0 }
  0xa8   : > { %8564 = vmatmul.mubr.msk.f32.gmra.mrb[44].mxu0 %vm1247_vm6, %v1141_v48 }
  0xa9   : > { %1834 = vmatprep.mubr.f32.mxu0 %v17596_v0 }
  0xaa   : > { %8692 = vmatmul.mubr.msk.f32.gmra.mrb[44].mxu1 %vm1247_vm6, %v1141_v48  ;;  %v498_v48 = vsub.f32 1.0, %v496_v41 }
  0xab   : > { %2667 = vmatprep.mubr.f32.mxu1 %v17596_v0 }
  0xac   : > { %8565 = vmatmul.mubr.msk.f32.gmra.mrb[46].mxu0 %vm1247_vm6, %v1142_v49 }
  0xad   : > { %1840 = vmatprep.mubr.f32.mxu0 %v17596_v0 }
  0xae   : > { %8693 = vmatmul.mubr.msk.f32.gmra.mrb[46].mxu1 %vm1247_vm6, %v1142_v49 }
  0xaf   : > { %2673 = vmatprep.mubr.f32.mxu1 %v17596_v0 }
  0xb0   : > { %8566 = vmatmul.mubr.msk.f32.gmra.mrb[48].mxu0 %vm1247_vm6, %v1143_v50 }
  0xb1   : > { %1846 = vmatprep.mubr.f32.mxu0 %v17596_v0 }
  0xb2   : > { %8694 = vmatmul.mubr.msk.f32.gmra.mrb[48].mxu1 %vm1247_vm6, %v1143_v50  ;;  %v8526_v50 = vsel %vm10012_vm1, 1.0, %v17596_v0 }
  0xb3   : > { %2679 = vmatprep.mubr.f32.mxu1 %v17596_v0 }
  0xb4   : > { %8567 = vmatmul.mubr.msk.f32.gmra.mrb[50].mxu0 %vm1247_vm6, %v1144_v51 }
  0xb5   : > { %1852 = vmatprep.mubr.f32.mxu0 %v17596_v0 }
  0xb6   : > { %8695 = vmatmul.mubr.msk.f32.gmra.mrb[50].mxu1 %vm1247_vm6, %v1144_v51  ;;  %v261_v51 = vsub.f32 1.0, %v259_v44 }
  0xb7   : > { %2685 = vmatprep.mubr.f32.mxu1 %v17596_v0 }
  0xb8   : > { %8568 = vmatmul.mubr.msk.f32.gmra.mrb[52].mxu0 %vm1247_vm6, %v1145_v52 }
  0xb9   : > { %1858 = vmatprep.mubr.f32.mxu0 %v17596_v0 }
  0xba   : > { %8696 = vmatmul.mubr.msk.f32.gmra.mrb[52].mxu1 %vm1247_vm6, %v1145_v52 }
  0xbb   : > { %2691 = vmatprep.mubr.f32.mxu1 %v17596_v0 }
  0xbc   : > { %8569 = vmatmul.mubr.msk.f32.gmra.mrb[54].mxu0 %vm1247_vm6, %v1146_v53 }
  0xbd   : > { %1864 = vmatprep.mubr.f32.mxu0 %v17596_v0 }
  0xbe   : > { %8697 = vmatmul.mubr.msk.f32.gmra.mrb[54].mxu1 %vm1247_vm6, %v1146_v53  ;;  %v8527_v53 = vsel %vm508_vm4, 1.0, %v17596_v0 }
  0xbf   : > { %2697 = vmatprep.mubr.f32.mxu1 %v17596_v0 }
  0xc0   : > { %8570 = vmatmul.mubr.msk.f32.gmra.mrb[56].mxu0 %vm1247_vm6, %v1147_v54 }
  0xc1   : > { %1870 = vmatprep.mubr.f32.mxu0 %v17596_v0 }
  0xc2   : > { %8698 = vmatmul.mubr.msk.f32.gmra.mrb[56].mxu1 %vm1247_vm6, %v1147_v54  ;;  %v8520_v54 = vsel %vm264_vm5, 1.0, %v17596_v0 }
  0xc3   : > { %2703 = vmatprep.mubr.f32.mxu1 %v17596_v0 }
  0xc4   : > { %8571 = vmatmul.mubr.msk.f32.gmra.mrb[58].mxu0 %vm1247_vm6, %v1148_v55 }
  0xc5   : > { %1876 = vmatprep.mubr.f32.mxu0 %v17596_v0 }
  0xc6   : > { %8699 = vmatmul.mubr.msk.f32.gmra.mrb[58].mxu1 %vm1247_vm6, %v1148_v55 }
  0xc7   : > { %2709 = vmatprep.mubr.f32.mxu1 %v17596_v0 }
  0xc8   : > { %8572 = vmatmul.mubr.msk.f32.gmra.mrb[60].mxu0 %vm1247_vm6, %v1149_v56 }
  0xc9   : > { %1882 = vmatprep.mubr.f32.mxu0 %v17596_v0 }
  0xca   : > { %8700 = vmatmul.mubr.msk.f32.gmra.mrb[60].mxu1 %vm1247_vm6, %v1149_v56  ;;  %v1175_v56 = vld [vmem:[%s17584_s2 + $0x1c0] sm:$0xff] }
  0xcb   : > { %2715 = vmatprep.mubr.f32.mxu1 %v17596_v0 }
  0xcc   : > { %8573 = vmatmul.mubr.msk.f32.gmra.mrb[62].mxu0 %vm1247_vm6, %v1150_v57 }
  0xcd   : > { %1888 = vmatprep.mubr.f32.mxu0 %v17596_v0 }
  0xce   : > { %8701 = vmatmul.mubr.msk.f32.gmra.mrb[62].mxu1 %vm1247_vm6, %v1150_v57  ;;  %v8521_v57 = vsel %vm271_vm7, 1.0, %v17596_v0 }
  0xcf   : > { %2721 = vmatprep.mubr.f32.mxu1 %v17596_v0 }
  0xd0   : > { %8574 = vmatmul.mubr.msk.f32.gmra.mrb[64].mxu0 %vm1247_vm6, %v1151_v58 }
  0xd1   : > { %1894 = vmatprep.mubr.f32.mxu0 %v17596_v0 }
  0xd2   : > { %8702 = vmatmul.mubr.msk.f32.gmra.mrb[64].mxu1 %vm1247_vm6, %v1151_v58 }
  0xd3   : > { %2727 = vmatprep.mubr.f32.mxu1 %v17596_v0 }
  0xd4   : > { %8575 = vmatmul.mubr.msk.f32.gmra.mrb[66].mxu0 %vm1247_vm6, %v1152_v59 }
  0xd5   : > { %1900 = vmatprep.mubr.f32.mxu0 %v17596_v0 }
  0xd6   : > { %8703 = vmatmul.mubr.msk.f32.gmra.mrb[66].mxu1 %vm1247_vm6, %v1152_v59  ;;  %v504_v59 = vmul.f32 %v8526_v50, %v498_v48 }
  0xd7   : > { %2733 = vmatprep.mubr.f32.mxu1 %v17596_v0 }
  0xd8   : > { %8576 = vmatmul.mubr.msk.f32.gmra.mrb[68].mxu0 %vm1247_vm6, %v1153_v60  ;;  %v10139_v26 = vrot.slane %v504_v59, %v9472_v14 }
  0xd9   : > { %1906 = vmatprep.mubr.f32.mxu0 %v17596_v0 }
  0xda   : > { %8704 = vmatmul.mubr.msk.f32.gmra.mrb[68].mxu1 %vm1247_vm6, %v1153_v60  ;;  %17735 = vst [vmem:[#allocation25_spill] sm:$0xff] %v10139_v26 }
  0xdb   : > { %2739 = vmatprep.mubr.f32.mxu1 %v17596_v0 }
  0xdc   : > { %8577 = vmatmul.mubr.msk.f32.gmra.mrb[70].mxu0 %vm1247_vm6, %v1154_v61 }
  0xdd   : > { %1912 = vmatprep.mubr.f32.mxu0 %v17596_v0 }
  0xde   : > { %8705 = vmatmul.mubr.msk.f32.gmra.mrb[70].mxu1 %vm1247_vm6, %v1154_v61  ;;  %v511_v61 = vmul.f32 %v8527_v53, %v496_v41 }
  0xdf   : > { %2745 = vmatprep.mubr.f32.mxu1 %v17596_v0 }
  0xe0   : > { %8578 = vmatmul.mubr.msk.f32.gmra.mrb[72].mxu0 %vm1247_vm6, %v1155_v62  ;;  %v10093_v15 = vrot.slane %v511_v61, %v9478_v20 }
  0xe1   : > { %1918 = vmatprep.mubr.f32.mxu0 %v17596_v0 }
  0xe2   : > { %8706 = vmatmul.mubr.msk.f32.gmra.mrb[72].mxu1 %vm1247_vm6, %v1155_v62  ;;  %v267_v62 = vmul.f32 %v8520_v54, %v261_v51  ;;  %17728 = vst [vmem:[#allocation18_spill] sm:$0xff] %v10093_v15 }
  0xe3   : > { %2751 = vmatprep.mubr.f32.mxu1 %v17596_v0 }
  0xe4   : > { %8579 = vmatmul.mubr.msk.f32.gmra.mrb[74].mxu0 %vm1247_vm6, %v1156_v63  ;;  %v10104_v17 = vrot.slane %v267_v62, %v9478_v20  ;;  %v10113_v22 = vrot.slane %v267_v62, %v9472_v14 }
  0xe5   : > { %1924 = vmatprep.mubr.f32.mxu0 %v17596_v0 }
  0xe6   : > { %8707 = vmatmul.mubr.msk.f32.gmra.mrb[74].mxu1 %vm1247_vm6, %v1156_v63  ;;  %17731 = vst [vmem:[#allocation21_spill] sm:$0xff] %v10104_v17  ;;  %17733 = vst [vmem:[#allocation23_spill] sm:$0xff] %v10113_v22 }
  0xe7   : > { %2757 = vmatprep.mubr.f32.mxu1 %v17596_v0 }
  0xe8   : > { %8580 = vmatmul.mubr.msk.f32.gmra.mrb[76].mxu0 %vm1247_vm6, %v1157_v1 }
  0xe9   : > { %1930 = vmatprep.mubr.f32.mxu0 %v17596_v0 }
  0xea   : > { %8708 = vmatmul.mubr.msk.f32.gmra.mrb[76].mxu1 %vm1247_vm6, %v1157_v1  ;;  %v274_v1 = vmul.f32 %v8521_v57, %v259_v44  ;;  %v1178_v44 = vld [vmem:[%s17584_s2 + $0x1d8] sm:$0xff] }
  0xeb   : > { %2763 = vmatprep.mubr.f32.mxu1 %v17596_v0 }
  0xec   : > { %8581 = vmatmul.mubr.msk.f32.gmra.mrb[78].mxu0 %vm1247_vm6, %v1158_v2  ;;  %v10116_v23 = vrot.slane %v274_v1, %v9472_v14 }
  0xed   : > { %1936 = vmatprep.mubr.f32.mxu0 %v17596_v0 }
  0xee   : > { %8709 = vmatmul.mubr.msk.f32.gmra.mrb[78].mxu1 %vm1247_vm6, %v1158_v2  ;;  %17734 = vst [vmem:[#allocation24_spill] sm:$0xff] %v10116_v23 }
  0xef   : > { %2769 = vmatprep.mubr.f32.mxu1 %v17596_v0 }
  0xf0   : > { %8582 = vmatmul.mubr.msk.f32.gmra.mrb[80].mxu0 %vm1247_vm6, %v1159_v4 }
  0xf1   : > { %1942 = vmatprep.mubr.f32.mxu0 %v17596_v0 }
  0xf2   : > { %8710 = vmatmul.mubr.msk.f32.gmra.mrb[80].mxu1 %vm1247_vm6, %v1159_v4  ;;  %v1176_v4 = vld [vmem:[%s17584_s2 + $0x1c8] sm:$0xff] }
  0xf3   : > { %2775 = vmatprep.mubr.f32.mxu1 %v17596_v0 }
  0xf4   : > { %8583 = vmatmul.mubr.msk.f32.gmra.mrb[82].mxu0 %vm1247_vm6, %v1160_v5 }
  0xf5   : > { %1948 = vmatprep.mubr.f32.mxu0 %v17596_v0 }
  0xf6   : > { %8711 = vmatmul.mubr.msk.f32.gmra.mrb[82].mxu1 %vm1247_vm6, %v1160_v5  ;;  %v10064_v5 = vrot.slane %v9975_v33, %v9478_v20 }
  0xf7   : > { %2781 = vmatprep.mubr.f32.mxu1 %v17596_v0 }
  0xf8   : > { %8584 = vmatmul.mubr.msk.f32.gmra.mrb[84].mxu0 %vm1247_vm6, %v1161_v6  ;;  %vm283_vm8 = vcmp.eq.s32.totalorder %v9469_v3, %v10064_v5 }
  0xf9   : > { %1954 = vmatprep.mubr.f32.mxu0 %v17596_v0 }
  0xfa   : > { %8712 = vmatmul.mubr.msk.f32.gmra.mrb[84].mxu1 %vm1247_vm6, %v1161_v6  ;;  %v10067_v6 = vrot.slane %v268_v37, %v9478_v20 }
  0xfb   : > { %2787 = vmatprep.mubr.f32.mxu1 %v17596_v0 }
  0xfc   : > { %8585 = vmatmul.mubr.msk.f32.gmra.mrb[86].mxu0 %vm1247_vm6, %v1162_v7  ;;  %17722 = vst [vmem:[#allocation12_spill] sm:$0xff] %v10067_v6  ;;  %vm310_vm9 = vcmp.eq.s32.totalorder %v9469_v3, %v10067_v6 }
  0xfd   : > { %1960 = vmatprep.mubr.f32.mxu0 %v17596_v0 }
  0xfe   : > { %8713 = vmatmul.mubr.msk.f32.gmra.mrb[86].mxu1 %vm1247_vm6, %v1162_v7  ;;  %v10071_v7 = vrot.slane %v9975_v33, %v9472_v14 }
  0xff   : > { %2793 = vmatprep.mubr.f32.mxu1 %v17596_v0 }
 0x100   : > { %8586 = vmatmul.mubr.msk.f32.gmra.mrb[88].mxu0 %vm1247_vm6, %v1163_v8  ;;  %17723 = vst [vmem:[#allocation13_spill] sm:$0xff] %v10071_v7  ;;  %vm284_vm10 = vcmp.eq.s32.totalorder %v9469_v3, %v10071_v7 }
 0x101   : > { %1966 = vmatprep.mubr.f32.mxu0 %v17596_v0 }
 0x102   : > { %8714 = vmatmul.mubr.msk.f32.gmra.mrb[88].mxu1 %vm1247_vm6, %v1163_v8  ;;  %v10074_v8 = vrot.slane %v268_v37, %v9472_v14 }
 0x103   : > { %2799 = vmatprep.mubr.f32.mxu1 %v17596_v0 }
 0x104   : > { %8587 = vmatmul.mubr.msk.f32.gmra.mrb[90].mxu0 %vm1247_vm6, %v1164_v9  ;;  %17724 = vst [vmem:[#allocation14_spill] sm:$0xff] %v10074_v8  ;;  %vm311_vm11 = vcmp.eq.s32.totalorder %v9469_v3, %v10074_v8 }
 0x105   : > { %1972 = vmatprep.mubr.f32.mxu0 %v17596_v0  ;;  %v326_v41 = vsel %vm311_vm11, %v10116_v23, 0.0 }
 0x106   : > { %8715 = vmatmul.mubr.msk.f32.gmra.mrb[90].mxu1 %vm1247_vm6, %v1164_v9 }
 0x107   : > { %2805 = vmatprep.mubr.f32.mxu1 %v17596_v0 }
 0x108   : > { %8588 = vmatmul.mubr.msk.f32.gmra.mrb[92].mxu0 %vm1247_vm6, %v1165_v10 }
 0x109   : > { %1978 = vmatprep.mubr.f32.mxu0 %v17596_v0 }
 0x10a   : > { %8716 = vmatmul.mubr.msk.f32.gmra.mrb[92].mxu1 %vm1247_vm6, %v1165_v10  ;;  %v10081_v10 = vrot.slane %v9972_v32, %v9478_v20 }
 0x10b   : > { %2811 = vmatprep.mubr.f32.mxu1 %v17596_v0 }
 0x10c   : > { %8589 = vmatmul.mubr.msk.f32.gmra.mrb[94].mxu0 %vm1247_vm6, %v1166_v11  ;;  %17725 = vst [vmem:[#allocation15_spill] sm:$0xff] %v10081_v10  ;;  %vm520_vm12 = vcmp.eq.s32.totalorder %v9469_v3, %v10081_v10 }
 0x10d   : > { %1984 = vmatprep.mubr.f32.mxu0 %v17596_v0 }
 0x10e   : > { %8717 = vmatmul.mubr.msk.f32.gmra.mrb[94].mxu1 %vm1247_vm6, %v1166_v11  ;;  %v10084_v11 = vrot.slane %v504_v59, %v9478_v20 }
 0x10f   : > { %2817 = vmatprep.mubr.f32.mxu1 %v17596_v0 }
 0x110   : > { %8590 = vmatmul.mubr.msk.f32.gmra.mrb[96].mxu0 %vm1247_vm6, %v1167_v12  ;;  %17726 = vst [vmem:[#allocation16_spill] sm:$0xff] %v10084_v11 }
 0x111   : > { %1990 = vmatprep.mubr.f32.mxu0 %v17596_v0 }
 0x112   : > { %8718 = vmatmul.mubr.msk.f32.gmra.mrb[96].mxu1 %vm1247_vm6, %v1167_v12  ;;  %v10088_v12 = vrot.slane %v9983_v35, %v9478_v20  ;;  %v298_v35 = vsel %vm283_vm8, %v10104_v17, 0.0 }
 0x113   : > { %2823 = vmatprep.mubr.f32.mxu1 %v17596_v0 }
 0x114   : > { %8591 = vmatmul.mubr.msk.f32.gmra.mrb[98].mxu0 %vm1247_vm6, %v1168_v16  ;;  %17727 = vst [vmem:[#allocation17_spill] sm:$0xff] %v10088_v12  ;;  %vm547_vm13 = vcmp.eq.s32.totalorder %v9469_v3, %v10088_v12 }
 0x115   : > { %1996 = vmatprep.mubr.f32.mxu0 %v17596_v0  ;;  %v562_v48 = vsel %vm547_vm13, %v10093_v15, 0.0 }
 0x116   : > { %8719 = vmatmul.mubr.msk.f32.gmra.mrb[98].mxu1 %vm1247_vm6, %v1168_v16  ;;  %v10097_v16 = vrot.slane %v9972_v32, %v9472_v14 }
 0x117   : > { %2829 = vmatprep.mubr.f32.mxu1 %v17596_v0 }
 0x118   : > { %8592 = vmatmul.mubr.msk.f32.gmra.mrb[100].mxu0 %vm1247_vm6, %v1169_v21  ;;  %17729 = vst [vmem:[#allocation19_spill] sm:$0xff] %v10097_v16  ;;  %vm521_vm14 = vcmp.eq.s32.totalorder %v9469_v3, %v10097_v16 }
 0x119   : > { %2002 = vmatprep.mubr.f32.mxu0 %v17596_v0  ;;  %v536_v50 = vsel %vm521_vm14, %v10139_v26, 0.0 }
 0x11a   : > { %8720 = vmatmul.mubr.msk.f32.gmra.mrb[100].mxu1 %vm1247_vm6, %v1169_v21  ;;  %v10110_v21 = vrot.slane %v274_v1, %v9478_v20  ;;  %v1179_v1 = vld [vmem:[%s17584_s2 + $0x1e0] sm:$0xff] }
 0x11b   : > { %2835 = vmatprep.mubr.f32.mxu1 %v17596_v0 }
 0x11c   : > { %8593 = vmatmul.mubr.msk.f32.gmra.mrb[102].mxu0 %vm1247_vm6, %v1170_v24  ;;  %17732 = vst [vmem:[#allocation22_spill] sm:$0xff] %v10110_v21  ;;  %v325_v37 = vsel %vm310_vm9, %v10110_v21, 0.0 }
 0x11d   : > { %2008 = vmatprep.mubr.f32.mxu0 %v17596_v0  ;;  %v10185_v54 = vadd.f32 %v325_v37, %v298_v35 }
 0x11e   : > { %8721 = vmatmul.mubr.msk.f32.gmra.mrb[102].mxu1 %vm1247_vm6, %v1170_v24 }
 0x11f   : > { %2841 = vmatprep.mubr.f32.mxu1 %v17596_v0  ;;  %v10210_v35 = vrot.slane %v10185_v54, %v9478_v20 }
 0x120   : > { %8594 = vmatmul.mubr.msk.f32.gmra.mrb[104].mxu0 %vm1247_vm6, %v1171_v31 }
 0x121   : > { %2014 = vmatprep.mubr.f32.mxu0 %v17596_v0 }
 0x122   : > { %8722 = vmatmul.mubr.msk.f32.gmra.mrb[104].mxu1 %vm1247_vm6, %v1171_v31  ;;  %v9986_v28 = vpop.f32.mrb[0].mxu0  ;;  %v10142_v31 = vrot.slane %v511_v61, %v9472_v14 }
 0x123   : > { %2847 = vmatprep.mubr.f32.mxu1 %v17596_v0  ;;  %v9988_v36 = vpop.f32.mrb[1].mxu0 }
 0x124   : > { %8595 = vmatmul.mubr.msk.f32.gmra.mrb[106].mxu0 %vm1247_vm6, %v1172_v34  ;;  %17736 = vst [vmem:[#allocation26_spill] sm:$0xff] %v10142_v31  ;;  %v563_v51 = vsel %vm548_vm15, %v10142_v31, 0.0  ;;  %v1180_v31 = vld [vmem:[%s17584_s2 + $0x1e8] sm:$0xff] }
 0x125   : > { %v9990_v30 = vpop.f32.mrb[0].mxu1  ;;  %2020 = vmatprep.mubr.f32.mxu0 %v17596_v0 }
 0x126   : > { %v9996_v38 = vpop.f32.mrb[1].mxu1  ;;  %8723 = vmatmul.mubr.msk.f32.gmra.mrb[106].mxu1 %vm1247_vm6, %v1172_v34  ;;  %v10006_v40 = vpop.f32.mrb[2].mxu0 }
 0x127   : > { %2853 = vmatprep.mubr.f32.mxu1 %v17596_v0  ;;  %v10010_v42 = vpop.f32.mrb[3].mxu0  ;;  %v5004_v12 = vmul.f32 %v10210_v35, %v10006_v40  ;;  %v1182_v40 = vld [vmem:[%s17584_s2 + $0x1f8] sm:$0xff] }
 0x128   : > { %8596 = vmatmul.mubr.msk.f32.gmra.mrb[108].mxu0 %vm1247_vm6, %v1173_v39 }
 0x129   : > { %v10016_v27 = vpop.f32.mrb[2].mxu1  ;;  %2026 = vmatprep.mubr.f32.mxu0 %v17596_v0 }
 0x12a   : > { %v10019_v45 = vpop.f32.mrb[3].mxu1  ;;  %8724 = vmatmul.mubr.msk.f32.gmra.mrb[108].mxu1 %vm1247_vm6, %v1173_v39  ;;  %v299_v39 = vsel %vm284_vm10, %v10113_v22, 0.0  ;;  %v4996_v22 = vmul.f32 %v10210_v35, %v9986_v28  ;;  %v17737_v28 = vmov 0.0  }
 0x12b   : > { %2859 = vmatprep.mubr.f32.mxu1 %v17596_v0  ;;  %v10027_v47 = vpop.f32.mrb[4].mxu0 }
 0x12c   : > { %v10029_v49 = vpop.f32.mrb[5].mxu0  ;;  %8597 = vmatmul.mubr.msk.f32.gmra.mrb[110].mxu0 %vm1247_vm6, %v1174_v46 }
 0x12d   : > { %v10034_v52 = vpop.f32.mrb[4].mxu1  ;;  %2032 = vmatprep.mubr.f32.mxu0 %v17596_v0 }
 0x12e   : > { %v10039_v55 = vpop.f32.mrb[5].mxu1  ;;  %8725 = vmatmul.mubr.msk.f32.gmra.mrb[110].mxu1 %vm1247_vm6, %v1174_v46  ;;  %v535_v46 = vsel %vm520_vm12, %v10084_v11, 0.0 }
 0x12f   : > { %2865 = vmatprep.mubr.f32.mxu1 %v17596_v0  ;;  %v10048_v58 = vpop.f32.mrb[6].mxu0  ;;  %v10194_v61 = vadd.f32 %v562_v48, %v535_v46 }
 0x130   : > { %v10050_v60 = vpop.f32.mrb[7].mxu0  ;;  %8598 = vmatmul.mubr.msk.f32.gmra.mrb[112].mxu0 %vm1247_vm6, %v1175_v56 }
 0x131   : > { %v10052_v63 = vpop.f32.mrb[6].mxu1  ;;  %2038 = vmatprep.mubr.f32.mxu0 %v17596_v0  ;;  %v10227_v46 = vrot.slane %v10194_v61, %v9478_v20 }
 0x132   : > { %v10055_v2 = vpop.f32.mrb[7].mxu1  ;;  %8726 = vmatmul.mubr.msk.f32.gmra.mrb[112].mxu1 %vm1247_vm6, %v1175_v56  ;;  %v10187_v56 = vadd.f32 %v326_v41, %v299_v39 }
 0x133   : > { %2871 = vmatprep.mubr.f32.mxu1 %v17596_v0  ;;  %v10077_v9 = vpop.f32.mrb[8].mxu0 }
 0x134   : > { %v10090_v13 = vpop.f32.mrb[9].mxu0  ;;  %8599 = vmatmul.mubr.msk.f32.gmra.mrb[114].mxu0 %vm1247_vm6, %v1176_v4  ;;  %v10214_v37 = vrot.slane %v10187_v56, %v9478_v20 }
 0x135   : > { %v10106_v18 = vpop.f32.mrb[8].mxu1  ;;  %2044 = vmatprep.mubr.f32.mxu0 %v17596_v0 }
 0x136   : > { %v10118_v24 = vpop.f32.mrb[9].mxu1  ;;  %8727 = vmatmul.mubr.msk.f32.gmra.mrb[114].mxu1 %vm1247_vm6, %v1176_v4  ;;  %v10203_v4 = vadd.f32 %v563_v51, %v536_v50  ;;  %v10235_v50 = vrot.slane %v10194_v61, %v9472_v14  ;;  %v10239_v51 = vrot.slane %v10187_v56, %v9472_v14  ;;  %v4997_v15 = vmul.f32 %v10214_v37, %v9988_v36  ;;  %v1181_v36 = vld [vmem:[%s17584_s2 + $0x1f0] sm:$0xff] }
 0x137   : > { %2877 = vmatprep.mubr.f32.mxu1 %v17596_v0  ;;  %v10144_v32 = vpop.f32.mrb[10].mxu0  ;;  %v5005_v10 = vmul.f32 %v10214_v37, %v10010_v42 }
 0x138   : > { %8600 = vmatmul.mubr.msk.f32.gmra.mrb[116].mxu0 %vm1247_vm6, %v1177_v25  ;;  %v10153_v34 = vpop.f32.mrb[11].mxu0  ;;  %v10246_v26 = vrot.slane %v10203_v4, %v9478_v20 }
 0x139   : > { %v10150_v33 = vpop.f32.mrb[10].mxu1  ;;  %2050 = vmatprep.mubr.f32.mxu0 %v17596_v0 }
 0x13a   : > { %v10159_v43 = vpop.f32.mrb[11].mxu1  ;;  %8728 = vmatmul.mubr.msk.f32.gmra.mrb[116].mxu1 %vm1247_vm6, %v1177_v25  ;;  %v5007_v42 = vmul.f32 %v10246_v26, %v10019_v45 }
 0x13b   : > { %2883 = vmatprep.mubr.f32.mxu1 %v17596_v0  ;;  %v10183_v53 = vpop.f32.mrb[12].mxu0 }
 0x13c   : > { %8601 = vmatmul.mubr.msk.f32.gmra.mrb[118].mxu0 %vm1247_vm6, %v1178_v44  ;;  %v10192_v59 = vpop.f32.mrb[13].mxu0 }
 0x13d   : > { %v10189_v57 = vpop.f32.mrb[12].mxu1  ;;  %2056 = vmatprep.mubr.f32.mxu0 %v17596_v0 }
 0x13e   : > { %v10196_v62 = vpop.f32.mrb[13].mxu1  ;;  %8729 = vmatmul.mubr.msk.f32.gmra.mrb[118].mxu1 %vm1247_vm6, %v1178_v44  ;;  %v10223_v44 = vrot.slane %v10185_v54, %v9472_v14 }
 0x13f   : > { %2889 = vmatprep.mubr.f32.mxu1 %v17596_v0  ;;  %v10206_v25 = vpop.f32.mrb[14].mxu0 }
 0x140   : > { %8602 = vmatmul.mubr.msk.f32.gmra.mrb[120].mxu0 %vm1247_vm6, %v1179_v1  ;;  %v10219_v41 = vpop.f32.mrb[15].mxu0 }
 0x141   : > { %v10216_v39 = vpop.f32.mrb[14].mxu1  ;;  %2062 = vmatprep.mubr.f32.mxu0 %v17596_v0 }
 0x142   : > { %v10229_v48 = vpop.f32.mrb[15].mxu1  ;;  %8730 = vmatmul.mubr.msk.f32.gmra.mrb[120].mxu1 %vm1247_vm6, %v1179_v1  ;;  %v10251_v1 = vrot.slane %v10203_v4, %v9472_v14 }
 0x143   : > { %2895 = vmatprep.mubr.f32.mxu1 %v17596_v0  ;;  %v1746_v23 = vpop.f32.mrb[16].mxu0  ;;  %v4998_v0 = vmul.f32 %v10227_v46, %v9990_v30 }
 0x144   : > { %v5092_v11 = vmul.f32 %v10223_v44, %v1746_v23  ;;  %v1748_v16 = vpop.f32.mrb[17].mxu0  ;;  %8603 = vmatmul.mubr.msk.f32.gmra.mrb[122].mxu0 %vm1247_vm6, %v1180_v31  ;;  %v4999_v23 = vmul.f32 %v10246_v26, %v9996_v38 }
 0x145   : > { %v2579_v29 = vpop.f32.mrb[16].mxu1  ;;  %v5093_v14 = vmul.f32 %v10239_v51, %v1748_v16  ;;  %2068 = vmatprep.mubr.f32.mxu0 %v17737_v28 }
 0x146   : > { %v5094_v20 = vmul.f32 %v10235_v50, %v2579_v29  ;;  %v2581_v8 = vpop.f32.mrb[17].mxu1  ;;  %8731 = vmatmul.mubr.msk.f32.gmra.mrb[122].mxu1 %vm1247_vm6, %v1180_v31  ;;  %v10270_v7 = vadd.f32 %v5092_v11, %v4996_v22 }
 0x147   : > { %v5095_v30 = vmul.f32 %v10251_v1, %v2581_v8  ;;  %2901 = vmatprep.mubr.f32.mxu1 %v17737_v28  ;;  %v10276_v16 = vadd.f32 %v5093_v14, %v4997_v15  ;;  %v1752_v31 = vpop.f32.mrb[18].mxu0 }
 0x148   : > { %v10274_v29 = vadd.f32 %v5094_v20, %v4998_v0  ;;  %v5100_v38 = vmul.f32 %v10223_v44, %v1752_v31  ;;  %v1754_v22 = vpop.f32.mrb[19].mxu0  ;;  %8604 = vmatmul.mubr.msk.f32.gmra.mrb[124].mxu0 %vm1247_vm6, %v1181_v36  ;;  %v5006_v0 = vmul.f32 %v10227_v46, %v10016_v27  ;;  %v5012_v31 = vmul.f32 %v10210_v35, %v10027_v47  ;;  %v1183_v47 = vld [vmem:[%s17584_s2 + $0x200] sm:$0xff] }
 0x149   : > { %v10282_v21 = vadd.f32 %v5095_v30, %v4999_v23  ;;  %v2585_v11 = vpop.f32.mrb[18].mxu1  ;;  %v5101_v20 = vmul.f32 %v10239_v51, %v1754_v22  ;;  %2074 = vmatprep.mubr.f32.mxu0 %v17737_v28 }
 0x14a   : > { %v5102_v14 = vmul.f32 %v10235_v50, %v2585_v11  ;;  %v2587_v8 = vpop.f32.mrb[19].mxu1  ;;  %8732 = vmatmul.mubr.msk.f32.gmra.mrb[124].mxu1 %vm1247_vm6, %v1181_v36  ;;  %v10297_v15 = vadd.f32 %v5100_v38, %v5004_v12  ;;  %v5013_v11 = vmul.f32 %v10214_v37, %v10029_v49  ;;  %v5015_v49 = vmul.f32 %v10246_v26, %v10039_v55 }
 0x14b   : > { %v5103_v27 = vmul.f32 %v10251_v1, %v2587_v8  ;;  %2907 = vmatprep.mubr.f32.mxu1 %v17737_v28  ;;  %v10303_v30 = vadd.f32 %v5101_v20, %v5005_v10  ;;  %v1758_v36 = vpop.f32.mrb[20].mxu0 }
 0x14c   : > { %v10301_v23 = vadd.f32 %v5102_v14, %v5006_v0  ;;  %v5108_v45 = vmul.f32 %v10223_v44, %v1758_v36  ;;  %v1760_v38 = vpop.f32.mrb[21].mxu0  ;;  %8605 = vmatmul.mubr.msk.f32.gmra.mrb[126].mxu0 %vm1247_vm6, %v1182_v40  ;;  %v5014_v0 = vmul.f32 %v10227_v46, %v10034_v52  ;;  %v5020_v36 = vmul.f32 %v10210_v35, %v10048_v58  ;;  %v1184_v58 = vld [vmem:[%s17584_s2 + $0x208] sm:$0xff] }
 0x14d   : > { %v10309_v22 = vadd.f32 %v5103_v27, %v5007_v42  ;;  %v2591_v12 = vpop.f32.mrb[20].mxu1  ;;  %v5109_v14 = vmul.f32 %v10239_v51, %v1760_v38  ;;  %2080 = vmatprep.mubr.f32.mxu0 %v17737_v28 }
 0x14e   : > { %v5110_v10 = vmul.f32 %v10235_v50, %v2591_v12  ;;  %v2593_v20 = vpop.f32.mrb[21].mxu1  ;;  %8733 = vmatmul.mubr.msk.f32.gmra.mrb[126].mxu1 %vm1247_vm6, %v1182_v40  ;;  %v10324_v8 = vadd.f32 %v5108_v45, %v5012_v31  ;;  %v5021_v12 = vmul.f32 %v10214_v37, %v10050_v60  ;;  %v5023_v60 = vmul.f32 %v10246_v26, %v10055_v2 }
 0x14f   : > { %v5111_v52 = vmul.f32 %v10251_v1, %v2593_v20  ;;  %2913 = vmatprep.mubr.f32.mxu1 %v17737_v28  ;;  %v10330_v27 = vadd.f32 %v5109_v14, %v5013_v11  ;;  %v1764_v40 = vpop.f32.mrb[22].mxu0 }
 0x150   : > { %v10328_v42 = vadd.f32 %v5110_v10, %v5014_v0  ;;  %v5116_v55 = vmul.f32 %v10223_v44, %v1764_v40  ;;  %v1766_v45 = vpop.f32.mrb[23].mxu0  ;;  %8606 = vmatmul.mubr.msk.f32.gmra.mrb[128].mxu0 %vm1247_vm6, %v1183_v47  ;;  %v5022_v0 = vmul.f32 %v10227_v46, %v10052_v63  ;;  %v5028_v40 = vmul.f32 %v10210_v35, %v10077_v9  ;;  %v1185_v9 = vld [vmem:[%s17584_s2 + $0x210] sm:$0xff] }
 0x151   : > { %v10336_v38 = vadd.f32 %v5111_v52, %v5015_v49  ;;  %v2597_v31 = vpop.f32.mrb[22].mxu1  ;;  %v5117_v10 = vmul.f32 %v10239_v51, %v1766_v45  ;;  %2086 = vmatprep.mubr.f32.mxu0 %v17737_v28 }
 0x152   : > { %v5118_v11 = vmul.f32 %v10235_v50, %v2597_v31  ;;  %v2599_v14 = vpop.f32.mrb[23].mxu1  ;;  %8734 = vmatmul.mubr.msk.f32.gmra.mrb[128].mxu1 %vm1247_vm6, %v1183_v47  ;;  %v10351_v20 = vadd.f32 %v5116_v55, %v5020_v36  ;;  %v5029_v31 = vmul.f32 %v10214_v37, %v10090_v13  ;;  %v5031_v13 = vmul.f32 %v10246_v26, %v10118_v24 }
 0x153   : > { %v5119_v63 = vmul.f32 %v10251_v1, %v2599_v14  ;;  %2919 = vmatprep.mubr.f32.mxu1 %v17737_v28  ;;  %v10357_v52 = vadd.f32 %v5117_v10, %v5021_v12  ;;  %v1770_v47 = vpop.f32.mrb[24].mxu0 }
 0x154   : > { %v10355_v49 = vadd.f32 %v5118_v11, %v5022_v0  ;;  %v5124_v2 = vmul.f32 %v10223_v44, %v1770_v47  ;;  %v1772_v55 = vpop.f32.mrb[25].mxu0  ;;  %8607 = vmatmul.mubr.msk.f32.gmra.mrb[130].mxu0 %vm1247_vm6, %v1184_v58  ;;  %v5030_v0 = vmul.f32 %v10227_v46, %v10106_v18  ;;  %v5038_v47 = vmul.f32 %v10227_v46, %v10150_v33 }
 0x155   : > { %v10363_v45 = vadd.f32 %v5119_v63, %v5023_v60  ;;  %v2603_v36 = vpop.f32.mrb[24].mxu1  ;;  %v5125_v11 = vmul.f32 %v10239_v51, %v1772_v55  ;;  %2092 = vmatprep.mubr.f32.mxu0 %v17737_v28  ;;  %v5039_v33 = vmul.f32 %v10246_v26, %v10159_v43  ;;  %v5044_v43 = vmul.f32 %v10210_v35, %v10183_v53  ;;  %v1187_v53 = vld [vmem:[%s17584_s2 + $0x220] sm:$0xff] }
 0x156   : > { %v5126_v12 = vmul.f32 %v10235_v50, %v2603_v36  ;;  %v2605_v10 = vpop.f32.mrb[25].mxu1  ;;  %8735 = vmatmul.mubr.msk.f32.gmra.mrb[130].mxu1 %vm1247_vm6, %v1184_v58  ;;  %v10378_v14 = vadd.f32 %v5124_v2, %v5028_v40  ;;  %v5036_v36 = vmul.f32 %v10210_v35, %v10144_v32  ;;  %v1186_v32 = vld [vmem:[%s17584_s2 + $0x218] sm:$0xff] }
 0x157   : > { %v5127_v18 = vmul.f32 %v10251_v1, %v2605_v10  ;;  %2925 = vmatprep.mubr.f32.mxu1 %v17737_v28  ;;  %v10384_v63 = vadd.f32 %v5125_v11, %v5029_v31  ;;  %v1776_v58 = vpop.f32.mrb[26].mxu0 }
 0x158   : > { %v10382_v60 = vadd.f32 %v5126_v12, %v5030_v0  ;;  %v5132_v24 = vmul.f32 %v10223_v44, %v1776_v58  ;;  %v1778_v2 = vpop.f32.mrb[27].mxu0  ;;  %8608 = vmatmul.mubr.msk.f32.gmra.mrb[132].mxu0 %vm1247_vm6, %v1185_v9  ;;  %v5037_v0 = vmul.f32 %v10214_v37, %v10153_v34 }
 0x159   : > { %v10390_v55 = vadd.f32 %v5127_v18, %v5031_v13  ;;  %v2609_v40 = vpop.f32.mrb[26].mxu1  ;;  %v5133_v12 = vmul.f32 %v10239_v51, %v1778_v2  ;;  %2098 = vmatprep.mubr.f32.mxu0 %v17737_v28  ;;  %v10410_v13 = vsub.s32 2, %v9469_v3 }
 0x15a   : > { %v5134_v31 = vmul.f32 %v10235_v50, %v2609_v40  ;;  %v2611_v11 = vpop.f32.mrb[27].mxu1  ;;  %8736 = vmatmul.mubr.msk.f32.gmra.mrb[132].mxu1 %vm1247_vm6, %v1185_v9  ;;  %v10405_v10 = vadd.f32 %v5132_v24, %v5036_v36  ;;  %v5046_v40 = vmul.f32 %v10227_v46, %v10189_v57  ;;  %v5047_v57 = vmul.f32 %v10246_v26, %v10196_v62 }
 0x15b   : > { %v5135_v34 = vmul.f32 %v10251_v1, %v2611_v11  ;;  %2931 = vmatprep.mubr.f32.mxu1 %v17737_v28  ;;  %17738 = vst [vmem:[#allocation27_spill] sm:$0xff] %v10410_v13  ;;  %v10414_v9 = vadd.f32 %v5133_v12, %v5037_v0  ;;  %v1782_v58 = vpop.f32.mrb[28].mxu0  ;;  %v10453_v62 = vrot.slane %v10187_v56, %v10410_v13 }
 0x15c   : > { %v10412_v18 = vadd.f32 %v5134_v31, %v5038_v47  ;;  %v5140_v24 = vmul.f32 %v10223_v44, %v1782_v58  ;;  %v1784_v11 = vpop.f32.mrb[29].mxu0  ;;  %8609 = vmatmul.mubr.msk.f32.gmra.mrb[134].mxu0 %vm1247_vm6, %v1186_v32  ;;  %v5045_v47 = vmul.f32 %v10214_v37, %v10192_v59 }
 0x15d   : > { %v10420_v36 = vadd.f32 %v5135_v34, %v5039_v33  ;;  %v2615_v2 = vpop.f32.mrb[28].mxu1  ;;  %v5141_v31 = vmul.f32 %v10239_v51, %v1784_v11  ;;  %2104 = vmatprep.mubr.f32.mxu0 %v17737_v28  ;;  %v10441_v34 = vrot.slane %v10185_v54, %v10410_v13  ;;  %v10449_v11 = vrot.slane %v10194_v61, %v10410_v13 }
 0x15e   : > { %v5142_v0 = vmul.f32 %v10235_v50, %v2615_v2  ;;  %v2617_v12 = vpop.f32.mrb[29].mxu1  ;;  %8737 = vmatmul.mubr.msk.f32.gmra.mrb[134].mxu1 %vm1247_vm6, %v1186_v32  ;;  %v10435_v33 = vadd.f32 %v5140_v24, %v5044_v43  ;;  %v5054_v43 = vmul.f32 %v10227_v46, %v10216_v39  ;;  %v5052_v24 = vmul.f32 %v10210_v35, %v10206_v25  ;;  %v1188_v25 = vld [vmem:[%s17584_s2 + $0x228] sm:$0xff] }
 0x15f   : > { %v5143_v59 = vmul.f32 %v10251_v1, %v2617_v12  ;;  %2937 = vmatprep.mubr.f32.mxu1 %v17737_v28  ;;  %v10445_v58 = vadd.f32 %v5141_v31, %v5045_v47  ;;  %v1788_v2 = vpop.f32.mrb[30].mxu0  ;;  %v5053_v31 = vmul.f32 %v10214_v37, %v10219_v41  ;;  %v5055_v35 = vmul.f32 %v10246_v26, %v10229_v48 }
 0x160   : > { %v10443_v32 = vadd.f32 %v5142_v0, %v5046_v40  ;;  %v5148_v40 = vmul.f32 %v10223_v44, %v1788_v2  ;;  %v1790_v0 = vpop.f32.mrb[31].mxu0  ;;  %8610 = vmatmul.mubr.msk.f32.gmra.mrb[136].mxu0 %vm1247_vm6, %v1187_v53  ;;  %v10480_v41 = vrot.slane %v10203_v4, %v10410_v13 }
 0x161   : > { %v10459_v12 = vadd.f32 %v5143_v59, %v5047_v57  ;;  %v2621_v47 = vpop.f32.mrb[30].mxu1  ;;  %v5149_v6 = vmul.f32 %v10239_v51, %v1790_v0  ;;  %2110 = vmatprep.mubr.f32.mxu0 %v17737_v28 }
 0x162   : > { %v5150_v17 = vmul.f32 %v10235_v50, %v2621_v47  ;;  %v2623_v19 = vpop.f32.mrb[31].mxu1  ;;  %8738 = vmatmul.mubr.msk.f32.gmra.mrb[136].mxu1 %vm1247_vm6, %v1187_v53  ;;  %v10474_v39 = vadd.f32 %v5148_v40, %v5052_v24 }
 0x163   : > { %v5151_v37 = vmul.f32 %v10251_v1, %v2623_v19  ;;  %2943 = vmatprep.mubr.f32.mxu1 %v17737_v28  ;;  %v10484_v46 = vadd.f32 %v5149_v6, %v5053_v31  ;;  %v1794_v50 = vpop.f32.mrb[32].mxu0  ;;  %v1189_v6 = vld [vmem:[%s17584_s2 + $0x230] sm:$0xff] }
 0x164   : > { %v10482_v44 = vadd.f32 %v5150_v17, %v5054_v43  ;;  %v5252_v53 = vmul.f32 %v10441_v34, %v1794_v50  ;;  %v1796_v48 = vpop.f32.mrb[33].mxu0  ;;  %8611 = vmatmul.mubr.msk.f32.gmra.mrb[138].mxu0 %vm1247_vm6, %v1188_v25 }
 0x165   : > { %v10486_v51 = vadd.f32 %v5151_v37, %v5055_v35  ;;  %v2627_v26 = vpop.f32.mrb[32].mxu1  ;;  %v5253_v1 = vmul.f32 %v10453_v62, %v1796_v48  ;;  %2116 = vmatprep.mubr.f32.mxu0 %v17737_v28 }
 0x166   : > { %v5254_v19 = vmul.f32 %v10449_v11, %v2627_v26  ;;  %v2629_v57 = vpop.f32.mrb[33].mxu1  ;;  %8739 = vmatmul.mubr.msk.f32.gmra.mrb[138].mxu1 %vm1247_vm6, %v1188_v25  ;;  %v10498_v17 = vadd.f32 %v5252_v53, %v10270_v7 }
 0x167   : > { %v5255_v59 = vmul.f32 %v10480_v41, %v2629_v57  ;;  %2949 = vmatprep.mubr.f32.mxu1 %v17737_v28  ;;  %v10506_v43 = vadd.f32 %v5253_v1, %v10276_v16  ;;  %v1800_v24 = vpop.f32.mrb[34].mxu0 }
 0x168   : > { %v10503_v2 = vadd.f32 %v5254_v19, %v10274_v29  ;;  %v5260_v47 = vmul.f32 %v10441_v34, %v1800_v24  ;;  %v1802_v31 = vpop.f32.mrb[35].mxu0  ;;  %8612 = vmatmul.mubr.msk.f32.gmra.mrb[140].mxu0 %vm1247_vm6, %v1189_v6 }
 0x169   : > { %v10509_v40 = vadd.f32 %v5255_v59, %v10282_v21  ;;  %v2633_v0 = vpop.f32.mrb[34].mxu1  ;;  %v5261_v25 = vmul.f32 %v10453_v62, %v1802_v31  ;;  %2122 = vmatprep.mubr.f32.mxu0 %v17737_v28  ;;  %v1190_v21 = vld [vmem:[%s17584_s2 + $0x238] sm:$0xff] }
 0x16a   : > { %v5262_v7 = vmul.f32 %v10449_v11, %v2633_v0  ;;  %v2635_v35 = vpop.f32.mrb[35].mxu1  ;;  %8740 = vmatmul.mubr.msk.f32.gmra.mrb[140].mxu1 %vm1247_vm6, %v1189_v6  ;;  %v10521_v29 = vadd.f32 %v5260_v47, %v10297_v15 }
 0x16b   : > { %v5263_v16 = vmul.f32 %v10480_v41, %v2635_v35  ;;  %2955 = vmatprep.mubr.f32.mxu1 %v17737_v28  ;;  %v10529_v50 = vadd.f32 %v5261_v25, %v10303_v30  ;;  %v1806_v53 = vpop.f32.mrb[36].mxu0 }
 0x16c   : > { %v10526_v37 = vadd.f32 %v5262_v7, %v10301_v23  ;;  %v5268_v48 = vmul.f32 %v10441_v34, %v1806_v53  ;;  %v1808_v1 = vpop.f32.mrb[37].mxu0  ;;  %8613 = vmatmul.mubr.msk.f32.gmra.mrb[142].mxu0 %vm1247_vm6, %v1190_v21  ;;  %v1191_v23 = vld [vmem:[%s17584_s2 + $0x240] sm:$0xff] }
 0x16d   : > { %v10532_v26 = vadd.f32 %v5263_v16, %v10309_v22  ;;  %v2639_v19 = vpop.f32.mrb[36].mxu1  ;;  %v5269_v57 = vmul.f32 %v10453_v62, %v1808_v1  ;;  %2128 = vmatprep.mubr.f32.mxu0 %v17737_v28 }
 0x16e   : > { %v5270_v15 = vmul.f32 %v10449_v11, %v2639_v19  ;;  %v2641_v6 = vpop.f32.mrb[37].mxu1  ;;  %8741 = vmatmul.mubr.msk.f32.gmra.mrb[142].mxu1 %vm1247_vm6, %v1190_v21  ;;  %v10544_v30 = vadd.f32 %v5268_v48, %v10324_v8 }
 0x16f   : > { %v5271_v22 = vmul.f32 %v10480_v41, %v2641_v6  ;;  %2961 = vmatprep.mubr.f32.mxu1 %v17737_v28  ;;  %v10552_v24 = vadd.f32 %v5269_v57, %v10330_v27  ;;  %v1812_v47 = vpop.f32.mrb[38].mxu0 }
 0x170   : > { %v10549_v59 = vadd.f32 %v5270_v15, %v10328_v42  ;;  %v5276_v31 = vmul.f32 %v10441_v34, %v1812_v47  ;;  %v1814_v25 = vpop.f32.mrb[39].mxu0  ;;  %8614 = vmatmul.mubr.msk.f32.gmra.mrb[144].mxu0 %vm1247_vm6, %v1191_v23  ;;  %v1192_v42 = vld [vmem:[%s17584_s2 + $0x248] sm:$0xff] }
 0x171   : > { %v10555_v0 = vadd.f32 %v5271_v22, %v10336_v38  ;;  %v2645_v7 = vpop.f32.mrb[38].mxu1  ;;  %v5277_v35 = vmul.f32 %v10453_v62, %v1814_v25  ;;  %2134 = vmatprep.mubr.f32.mxu0 %v17737_v28 }
 0x172   : > { %v5278_v8 = vmul.f32 %v10449_v11, %v2645_v7  ;;  %v2647_v21 = vpop.f32.mrb[39].mxu1  ;;  %8742 = vmatmul.mubr.msk.f32.gmra.mrb[144].mxu1 %vm1247_vm6, %v1191_v23  ;;  %v10567_v27 = vadd.f32 %v5276_v31, %v10351_v20 }
 0x173   : > { %v5279_v38 = vmul.f32 %v10480_v41, %v2647_v21  ;;  %2967 = vmatprep.mubr.f32.mxu1 %v17737_v28  ;;  %v10575_v53 = vadd.f32 %v5277_v35, %v10357_v52  ;;  %v1818_v48 = vpop.f32.mrb[40].mxu0 }
 0x174   : > { %v10572_v16 = vadd.f32 %v5278_v8, %v10355_v49  ;;  %v5284_v1 = vmul.f32 %v10441_v34, %v1818_v48  ;;  %v1820_v57 = vpop.f32.mrb[41].mxu0  ;;  %8615 = vmatmul.mubr.msk.f32.gmra.mrb[146].mxu0 %vm1247_vm6, %v1192_v42  ;;  %v1193_v49 = vld [vmem:[%s17584_s2 + $0x250] sm:$0xff] }
 0x175   : > { %v10578_v19 = vadd.f32 %v5279_v38, %v10363_v45  ;;  %v2651_v15 = vpop.f32.mrb[40].mxu1  ;;  %v5285_v6 = vmul.f32 %v10453_v62, %v1820_v57  ;;  %2140 = vmatprep.mubr.f32.mxu0 %v17737_v28 }
 0x176   : > { %v5286_v20 = vmul.f32 %v10449_v11, %v2651_v15  ;;  %v2653_v23 = vpop.f32.mrb[41].mxu1  ;;  %8743 = vmatmul.mubr.msk.f32.gmra.mrb[146].mxu1 %vm1247_vm6, %v1192_v42  ;;  %v10590_v52 = vadd.f32 %v5284_v1, %v10378_v14 }
 0x177   : > { %v5287_v45 = vmul.f32 %v10480_v41, %v2653_v23  ;;  %2973 = vmatprep.mubr.f32.mxu1 %v17737_v28  ;;  %v10598_v47 = vadd.f32 %v5285_v6, %v10384_v63  ;;  %v1824_v31 = vpop.f32.mrb[42].mxu0 }
 0x178   : > { %v10595_v22 = vadd.f32 %v5286_v20, %v10382_v60  ;;  %v5292_v25 = vmul.f32 %v10441_v34, %v1824_v31  ;;  %v1826_v35 = vpop.f32.mrb[43].mxu0  ;;  %8616 = vmatmul.mubr.msk.f32.gmra.mrb[148].mxu0 %vm1247_vm6, %v1193_v49  ;;  %v1194_v60 = vld [vmem:[%s17584_s2 + $0x258] sm:$0xff] }
 0x179   : > { %v10601_v7 = vadd.f32 %v5287_v45, %v10390_v55  ;;  %v2657_v8 = vpop.f32.mrb[42].mxu1  ;;  %v5293_v21 = vmul.f32 %v10453_v62, %v1826_v35  ;;  %2146 = vmatprep.mubr.f32.mxu0 %v17737_v28 }
 0x17a   : > { %v5294_v14 = vmul.f32 %v10449_v11, %v2657_v8  ;;  %v2659_v42 = vpop.f32.mrb[43].mxu1  ;;  %8744 = vmatmul.mubr.msk.f32.gmra.mrb[148].mxu1 %vm1247_vm6, %v1193_v49  ;;  %v10613_v63 = vadd.f32 %v5292_v25, %v10405_v10  ;;  %v10629_v10 = vsub.s32 3, %v9469_v3 }
 0x17b   : > { %v5295_v55 = vmul.f32 %v10480_v41, %v2659_v42  ;;  %2979 = vmatprep.mubr.f32.mxu1 %v17737_v28  ;;  %v10621_v48 = vadd.f32 %v5293_v21, %v10414_v9  ;;  %v1830_v1 = vpop.f32.mrb[44].mxu0  ;;  %v1195_v9 = vld [vmem:[%s17584_s2 + $0x260] sm:$0xff] }
 0x17c   : > { %v10618_v38 = vadd.f32 %v5294_v14, %v10412_v18  ;;  %v5300_v57 = vmul.f32 %v10441_v34, %v1830_v1  ;;  %v1832_v6 = vpop.f32.mrb[45].mxu0  ;;  %8617 = vmatmul.mubr.msk.f32.gmra.mrb[150].mxu0 %vm1247_vm6, %v1194_v60  ;;  %17739 = vst [vmem:[#allocation28_spill] sm:$0xff] %v10629_v10 }
 0x17d   : > { %v10624_v15 = vadd.f32 %v5295_v55, %v10420_v36  ;;  %v2663_v20 = vpop.f32.mrb[44].mxu1  ;;  %v5301_v18 = vmul.f32 %v10453_v62, %v1832_v6  ;;  %2152 = vmatprep.mubr.f32.mxu0 %v17737_v28  ;;  %v1196_v55 = vld [vmem:[%s17584_s2 + $0x268] sm:$0xff] }
 0x17e   : > { %v5302_v23 = vmul.f32 %v10449_v11, %v2663_v20  ;;  %v2665_v49 = vpop.f32.mrb[45].mxu1  ;;  %8745 = vmatmul.mubr.msk.f32.gmra.mrb[150].mxu1 %vm1247_vm6, %v1194_v60  ;;  %v10639_v36 = vadd.f32 %v5300_v57, %v10435_v33  ;;  %v10656_v33 = vrot.slane %v10185_v54, %v10629_v10 }
 0x17f   : > { %v5303_v45 = vmul.f32 %v10480_v41, %v2665_v49  ;;  %2985 = vmatprep.mubr.f32.mxu1 %v17737_v28  ;;  %v10647_v25 = vadd.f32 %v5301_v18, %v10445_v58  ;;  %v1836_v8 = vpop.f32.mrb[46].mxu0 }
 0x180   : > { %v10644_v31 = vadd.f32 %v5302_v23, %v10443_v32  ;;  %v5308_v14 = vmul.f32 %v10441_v34, %v1836_v8  ;;  %v1838_v42 = vpop.f32.mrb[47].mxu0  ;;  %8618 = vmatmul.mubr.msk.f32.gmra.mrb[152].mxu0 %vm1247_vm6, %v1195_v9  ;;  %v10660_v32 = vrot.slane %v10194_v61, %v10629_v10  ;;  %v10668_v34 = vrot.slane %v10187_v56, %v10629_v10 }
 0x181   : > { %v10650_v35 = vadd.f32 %v5303_v45, %v10459_v12  ;;  %v2669_v21 = vpop.f32.mrb[46].mxu1  ;;  %v5309_v60 = vmul.f32 %v10453_v62, %v1838_v42  ;;  %2158 = vmatprep.mubr.f32.mxu0 %v17737_v28  ;;  %v10680_v62 = vrot.slane %v10203_v4, %v10629_v10 }
 0x182   : > { %v5310_v58 = vmul.f32 %v10449_v11, %v2669_v21  ;;  %v2671_v12 = vpop.f32.mrb[47].mxu1  ;;  %8746 = vmatmul.mubr.msk.f32.gmra.mrb[152].mxu1 %vm1247_vm6, %v1195_v9  ;;  %v10674_v1 = vadd.f32 %v5308_v14, %v10474_v39 }
 0x183   : > { %v5311_v11 = vmul.f32 %v10480_v41, %v2671_v12  ;;  %2991 = vmatprep.mubr.f32.mxu1 %v17737_v28  ;;  %v10686_v20 = vadd.f32 %v5309_v60, %v10484_v46  ;;  %v1842_v6 = vpop.f32.mrb[48].mxu0 }
 0x184   : > { %v10683_v57 = vadd.f32 %v5310_v58, %v10482_v44  ;;  %v5412_v39 = vmul.f32 %v10656_v33, %v1842_v6  ;;  %v1844_v41 = vpop.f32.mrb[49].mxu0  ;;  %8619 = vmatmul.mubr.msk.f32.gmra.mrb[154].mxu0 %vm1247_vm6, %v1196_v55  ;;  %v1197_v44 = vld [vmem:[%s17584_s2 + $0x270] sm:$0xff] }
 0x185   : > { %v10689_v23 = vadd.f32 %v5311_v11, %v10486_v51  ;;  %v2675_v18 = vpop.f32.mrb[48].mxu1  ;;  %v5413_v9 = vmul.f32 %v10668_v34, %v1844_v41  ;;  %2164 = vmatprep.mubr.f32.mxu0 %v17737_v28 }
 0x186   : > { %v5414_v49 = vmul.f32 %v10660_v32, %v2675_v18  ;;  %v2677_v45 = vpop.f32.mrb[49].mxu1  ;;  %8747 = vmatmul.mubr.msk.f32.gmra.mrb[154].mxu1 %vm1247_vm6, %v1196_v55  ;;  %v10701_v46 = vadd.f32 %v5412_v39, %v10498_v17 }
 0x187   : > { %v5415_v51 = vmul.f32 %v10680_v62, %v2677_v45  ;;  %2997 = vmatprep.mubr.f32.mxu1 %v17737_v28  ;;  %v10709_v14 = vadd.f32 %v5413_v9, %v10506_v43  ;;  %v1848_v21 = vpop.f32.mrb[50].mxu0 }
 0x188   : > { %v10706_v8 = vadd.f32 %v5414_v49, %v10503_v2  ;;  %v5420_v58 = vmul.f32 %v10656_v33, %v1848_v21  ;;  %v1850_v12 = vpop.f32.mrb[51].mxu0  ;;  %8620 = vmatmul.mubr.msk.f32.gmra.mrb[156].mxu0 %vm1247_vm6, %v1197_v44  ;;  %v1198_v2 = vld [vmem:[%s17584_s2 + $0x278] sm:$0xff] }
 0x189   : > { %v10712_v42 = vadd.f32 %v5415_v51, %v10509_v40  ;;  %v2681_v60 = vpop.f32.mrb[50].mxu1  ;;  %v5421_v55 = vmul.f32 %v10668_v34, %v1850_v12  ;;  %2170 = vmatprep.mubr.f32.mxu0 %v17737_v28 }
 0x18a   : > { %v5422_v17 = vmul.f32 %v10660_v32, %v2681_v60  ;;  %v2683_v11 = vpop.f32.mrb[51].mxu1  ;;  %8748 = vmatmul.mubr.msk.f32.gmra.mrb[156].mxu1 %vm1247_vm6, %v1197_v44  ;;  %v10724_v43 = vadd.f32 %v5420_v58, %v10521_v29 }
 0x18b   : > { %v5423_v40 = vmul.f32 %v10680_v62, %v2683_v11  ;;  %3003 = vmatprep.mubr.f32.mxu1 %v17737_v28  ;;  %v10732_v39 = vadd.f32 %v5421_v55, %v10529_v50  ;;  %v1854_v18 = vpop.f32.mrb[52].mxu0 }
 0x18c   : > { %v10729_v6 = vadd.f32 %v5422_v17, %v10526_v37  ;;  %v5428_v49 = vmul.f32 %v10656_v33, %v1854_v18  ;;  %v1856_v45 = vpop.f32.mrb[53].mxu0  ;;  %8621 = vmatmul.mubr.msk.f32.gmra.mrb[158].mxu0 %vm1247_vm6, %v1198_v2  ;;  %v1199_v37 = vld [vmem:[%s17584_s2 + $0x280] sm:$0xff] }
 0x18d   : > { %v10735_v41 = vadd.f32 %v5423_v40, %v10532_v26  ;;  %v2687_v9 = vpop.f32.mrb[52].mxu1  ;;  %v5429_v44 = vmul.f32 %v10668_v34, %v1856_v45  ;;  %2176 = vmatprep.mubr.f32.mxu0 %v17737_v28 }
 0x18e   : > { %v5430_v29 = vmul.f32 %v10660_v32, %v2687_v9  ;;  %v2689_v51 = vpop.f32.mrb[53].mxu1  ;;  %8749 = vmatmul.mubr.msk.f32.gmra.mrb[158].mxu1 %vm1247_vm6, %v1198_v2  ;;  %v10747_v50 = vadd.f32 %v5428_v49, %v10544_v30 }
 0x18f   : > { %v5431_v26 = vmul.f32 %v10680_v62, %v2689_v51  ;;  %3009 = vmatprep.mubr.f32.mxu1 %v17737_v28  ;;  %v10755_v58 = vadd.f32 %v5429_v44, %v10552_v24  ;;  %v1860_v60 = vpop.f32.mrb[54].mxu0 }
 0x190   : > { %v10752_v21 = vadd.f32 %v5430_v29, %v10549_v59  ;;  %v5436_v17 = vmul.f32 %v10656_v33, %v1860_v60  ;;  %v1862_v11 = vpop.f32.mrb[55].mxu0  ;;  %8622 = vmatmul.mubr.msk.f32.gmra.mrb[160].mxu0 %vm1247_vm6, %v1199_v37  ;;  %v1200_v59 = vld [vmem:[%s17584_s2 + $0x288] sm:$0xff] }
 0x191   : > { %v10758_v12 = vadd.f32 %v5431_v26, %v10555_v0  ;;  %v2693_v55 = vpop.f32.mrb[54].mxu1  ;;  %v5437_v2 = vmul.f32 %v10668_v34, %v1862_v11  ;;  %2182 = vmatprep.mubr.f32.mxu0 %v17737_v28 }
 0x192   : > { %v5438_v30 = vmul.f32 %v10660_v32, %v2693_v55  ;;  %v2695_v40 = vpop.f32.mrb[55].mxu1  ;;  %8750 = vmatmul.mubr.msk.f32.gmra.mrb[160].mxu1 %vm1247_vm6, %v1199_v37  ;;  %v10770_v24 = vadd.f32 %v5436_v17, %v10567_v27 }
 0x193   : > { %v5439_v0 = vmul.f32 %v10680_v62, %v2695_v40  ;;  %3015 = vmatprep.mubr.f32.mxu1 %v17737_v28  ;;  %v10778_v49 = vadd.f32 %v5437_v2, %v10575_v53  ;;  %v1866_v9 = vpop.f32.mrb[56].mxu0 }
 0x194   : > { %v10775_v18 = vadd.f32 %v5438_v30, %v10572_v16  ;;  %v5444_v29 = vmul.f32 %v10656_v33, %v1866_v9  ;;  %v1868_v51 = vpop.f32.mrb[57].mxu0  ;;  %8623 = vmatmul.mubr.msk.f32.gmra.mrb[162].mxu0 %vm1247_vm6, %v1200_v59  ;;  %v1201_v16 = vld [vmem:[%s17584_s2 + $0x290] sm:$0xff] }
 0x195   : > { %v10781_v45 = vadd.f32 %v5439_v0, %v10578_v19  ;;  %v2699_v44 = vpop.f32.mrb[56].mxu1  ;;  %v5445_v37 = vmul.f32 %v10668_v34, %v1868_v51  ;;  %2188 = vmatprep.mubr.f32.mxu0 %v17737_v28 }
 0x196   : > { %v5446_v27 = vmul.f32 %v10660_v32, %v2699_v44  ;;  %v2701_v26 = vpop.f32.mrb[57].mxu1  ;;  %8751 = vmatmul.mubr.msk.f32.gmra.mrb[162].mxu1 %vm1247_vm6, %v1200_v59  ;;  %v10793_v53 = vadd.f32 %v5444_v29, %v10590_v52 }
 0x197   : > { %v5447_v19 = vmul.f32 %v10680_v62, %v2701_v26  ;;  %3021 = vmatprep.mubr.f32.mxu1 %v17737_v28  ;;  %v10801_v17 = vadd.f32 %v5445_v37, %v10598_v47  ;;  %v1872_v55 = vpop.f32.mrb[58].mxu0 }
 0x198   : > { %v10798_v60 = vadd.f32 %v5446_v27, %v10595_v22  ;;  %v5452_v30 = vmul.f32 %v10656_v33, %v1872_v55  ;;  %v1874_v40 = vpop.f32.mrb[59].mxu0  ;;  %8624 = vmatmul.mubr.msk.f32.gmra.mrb[164].mxu0 %vm1247_vm6, %v1201_v16  ;;  %v1202_v22 = vld [vmem:[%s17584_s2 + $0x298] sm:$0xff] }
 0x199   : > { %v10804_v11 = vadd.f32 %v5447_v19, %v10601_v7  ;;  %v2705_v2 = vpop.f32.mrb[58].mxu1  ;;  %v5453_v59 = vmul.f32 %v10668_v34, %v1874_v40  ;;  %2194 = vmatprep.mubr.f32.mxu0 %v17737_v28 }
 0x19a   : > { %v5454_v52 = vmul.f32 %v10660_v32, %v2705_v2  ;;  %v2707_v0 = vpop.f32.mrb[59].mxu1  ;;  %8752 = vmatmul.mubr.msk.f32.gmra.mrb[164].mxu1 %vm1247_vm6, %v1201_v16  ;;  %v10816_v47 = vadd.f32 %v5452_v30, %v10613_v63  ;;  %v10832_v63 = vsub.s32 4, %v9469_v3 }
 0x19b   : > { %v5455_v7 = vmul.f32 %v10680_v62, %v2707_v0  ;;  %3027 = vmatprep.mubr.f32.mxu1 %v17737_v28  ;;  %v10824_v29 = vadd.f32 %v5453_v59, %v10621_v48  ;;  %v1878_v44 = vpop.f32.mrb[60].mxu0  ;;  %v1203_v48 = vld [vmem:[%s17584_s2 + $0x2a0] sm:$0xff] }
 0x19c   : > { %v10821_v9 = vadd.f32 %v5454_v52, %v10618_v38  ;;  %v5460_v27 = vmul.f32 %v10656_v33, %v1878_v44  ;;  %v1880_v26 = vpop.f32.mrb[61].mxu0  ;;  %8625 = vmatmul.mubr.msk.f32.gmra.mrb[166].mxu0 %vm1247_vm6, %v1202_v22  ;;  %17740 = vst [vmem:[#allocation29_spill] sm:$0xff] %v10832_v63  ;;  %v1204_v44 = vld [vmem:[%s17584_s2 + $0x2a8] sm:$0xff] }
 0x19d   : > { %v10827_v51 = vadd.f32 %v5455_v7, %v10624_v15  ;;  %v2711_v37 = vpop.f32.mrb[60].mxu1  ;;  %v5461_v38 = vmul.f32 %v10668_v34, %v1880_v26  ;;  %2200 = vmatprep.mubr.f32.mxu0 %v17737_v28 }
 0x19e   : > { %v5462_v16 = vmul.f32 %v10660_v32, %v2711_v37  ;;  %v2713_v19 = vpop.f32.mrb[61].mxu1  ;;  %8753 = vmatmul.mubr.msk.f32.gmra.mrb[166].mxu1 %vm1247_vm6, %v1202_v22  ;;  %v10842_v15 = vadd.f32 %v5460_v27, %v10639_v36  ;;  %v10859_v36 = vrot.slane %v10185_v54, %v10832_v63 }
 0x19f   : > { %v5463_v55 = vmul.f32 %v10680_v62, %v2713_v19  ;;  %3033 = vmatprep.mubr.f32.mxu1 %v17737_v28  ;;  %v10850_v2 = vadd.f32 %v5461_v38, %v10647_v25  ;;  %v1884_v40 = vpop.f32.mrb[62].mxu0 }
 0x1a0   : > { %v10847_v30 = vadd.f32 %v5462_v16, %v10644_v31  ;;  %v5468_v59 = vmul.f32 %v10656_v33, %v1884_v40  ;;  %v1886_v22 = vpop.f32.mrb[63].mxu0  ;;  %8626 = vmatmul.mubr.msk.f32.gmra.mrb[168].mxu0 %vm1247_vm6, %v1203_v48  ;;  %v10863_v31 = vrot.slane %v10194_v61, %v10832_v63  ;;  %v10871_v33 = vrot.slane %v10187_v56, %v10832_v63 }
 0x1a1   : > { %v10853_v52 = vadd.f32 %v5463_v55, %v10650_v35  ;;  %v2717_v0 = vpop.f32.mrb[62].mxu1  ;;  %v5469_v7 = vmul.f32 %v10668_v34, %v1886_v22  ;;  %2206 = vmatprep.mubr.f32.mxu0 %v17737_v28  ;;  %v10883_v34 = vrot.slane %v10203_v4, %v10832_v63 }
 0x1a2   : > { %v5470_v25 = vmul.f32 %v10660_v32, %v2717_v0  ;;  %v2719_v35 = vpop.f32.mrb[63].mxu1  ;;  %8754 = vmatmul.mubr.msk.f32.gmra.mrb[168].mxu1 %vm1247_vm6, %v1203_v48  ;;  %v10877_v27 = vadd.f32 %v5468_v59, %v10674_v1 }
 0x1a3   : > { %v5471_v32 = vmul.f32 %v10680_v62, %v2719_v35  ;;  %3039 = vmatprep.mubr.f32.mxu1 %v17737_v28  ;;  %v10889_v26 = vadd.f32 %v5469_v7, %v10686_v20  ;;  %v1890_v16 = vpop.f32.mrb[64].mxu0 }
 0x1a4   : > { %v10886_v37 = vadd.f32 %v5470_v25, %v10683_v57  ;;  %v5572_v1 = vmul.f32 %v10859_v36, %v1890_v16  ;;  %v1892_v62 = vpop.f32.mrb[65].mxu0  ;;  %8627 = vmatmul.mubr.msk.f32.gmra.mrb[170].mxu0 %vm1247_vm6, %v1204_v44  ;;  %v1205_v57 = vld [vmem:[%s17584_s2 + $0x2b0] sm:$0xff] }
 0x1a5   : > { %v10892_v38 = vadd.f32 %v5471_v32, %v10689_v23  ;;  %v2723_v19 = vpop.f32.mrb[64].mxu1  ;;  %v5573_v55 = vmul.f32 %v10871_v33, %v1892_v62  ;;  %2212 = vmatprep.mubr.f32.mxu0 %v17737_v28 }
 0x1a6   : > { %v5574_v48 = vmul.f32 %v10863_v31, %v2723_v19  ;;  %v2725_v40 = vpop.f32.mrb[65].mxu1  ;;  %8755 = vmatmul.mubr.msk.f32.gmra.mrb[170].mxu1 %vm1247_vm6, %v1204_v44  ;;  %v10904_v20 = vadd.f32 %v5572_v1, %v10701_v46 }
 0x1a7   : > { %v5575_v23 = vmul.f32 %v10883_v34, %v2725_v40  ;;  %3045 = vmatprep.mubr.f32.mxu1 %v17737_v28  ;;  %v10912_v0 = vadd.f32 %v5573_v55, %v10709_v14  ;;  %v1896_v22 = vpop.f32.mrb[66].mxu0 }
 0x1a8   : > { %v10909_v59 = vadd.f32 %v5574_v48, %v10706_v8  ;;  %v5580_v7 = vmul.f32 %v10859_v36, %v1896_v22  ;;  %v1898_v44 = vpop.f32.mrb[67].mxu0  ;;  %8628 = vmatmul.mubr.msk.f32.gmra.mrb[172].mxu0 %vm1247_vm6, %v1205_v57  ;;  %v1206_v8 = vld [vmem:[%s17584_s2 + $0x2b8] sm:$0xff] }
 0x1a9   : > { %v10915_v25 = vadd.f32 %v5575_v23, %v10712_v42  ;;  %v2729_v35 = vpop.f32.mrb[66].mxu1  ;;  %v5581_v32 = vmul.f32 %v10871_v33, %v1898_v44  ;;  %2218 = vmatprep.mubr.f32.mxu0 %v17737_v28 }
 0x1aa   : > { %v5582_v46 = vmul.f32 %v10863_v31, %v2729_v35  ;;  %v2731_v16 = vpop.f32.mrb[67].mxu1  ;;  %8756 = vmatmul.mubr.msk.f32.gmra.mrb[172].mxu1 %vm1247_vm6, %v1205_v57  ;;  %v10927_v14 = vadd.f32 %v5580_v7, %v10724_v43 }
 0x1ab   : > { %v5583_v42 = vmul.f32 %v10883_v34, %v2731_v16  ;;  %3051 = vmatprep.mubr.f32.mxu1 %v17737_v28  ;;  %v10935_v19 = vadd.f32 %v5581_v32, %v10732_v39  ;;  %v1902_v62 = vpop.f32.mrb[68].mxu0 }
 0x1ac   : > { %v10932_v1 = vadd.f32 %v5582_v46, %v10729_v6  ;;  %v5588_v55 = vmul.f32 %v10859_v36, %v1902_v62  ;;  %v1904_v57 = vpop.f32.mrb[69].mxu0  ;;  %8629 = vmatmul.mubr.msk.f32.gmra.mrb[174].mxu0 %vm1247_vm6, %v1206_v8  ;;  %v1207_v6 = vld [vmem:[%s17584_s2 + $0x2c0] sm:$0xff] }
 0x1ad   : > { %v10938_v48 = vadd.f32 %v5583_v42, %v10735_v41  ;;  %v2735_v40 = vpop.f32.mrb[68].mxu1  ;;  %v5589_v23 = vmul.f32 %v10871_v33, %v1904_v57  ;;  %2224 = vmatprep.mubr.f32.mxu0 %v17737_v28 }
 0x1ae   : > { %v5590_v43 = vmul.f32 %v10863_v31, %v2735_v40  ;;  %v2737_v22 = vpop.f32.mrb[69].mxu1  ;;  %8757 = vmatmul.mubr.msk.f32.gmra.mrb[174].mxu1 %vm1247_vm6, %v1206_v8  ;;  %v10950_v39 = vadd.f32 %v5588_v55, %v10747_v50 }
 0x1af   : > { %v5591_v41 = vmul.f32 %v10883_v34, %v2737_v22  ;;  %3057 = vmatprep.mubr.f32.mxu1 %v17737_v28  ;;  %v10958_v35 = vadd.f32 %v5589_v23, %v10755_v58  ;;  %v1908_v44 = vpop.f32.mrb[70].mxu0 }
 0x1b0   : > { %v10955_v7 = vadd.f32 %v5590_v43, %v10752_v21  ;;  %v5596_v32 = vmul.f32 %v10859_v36, %v1908_v44  ;;  %v1910_v8 = vpop.f32.mrb[71].mxu0  ;;  %8630 = vmatmul.mubr.msk.f32.gmra.mrb[176].mxu0 %vm1247_vm6, %v1207_v6  ;;  %v1208_v21 = vld [vmem:[%s17584_s2 + $0x2c8] sm:$0xff] }
 0x1b1   : > { %v10961_v46 = vadd.f32 %v5591_v41, %v10758_v12  ;;  %v2741_v16 = vpop.f32.mrb[70].mxu1  ;;  %v5597_v42 = vmul.f32 %v10871_v33, %v1910_v8  ;;  %2230 = vmatprep.mubr.f32.mxu0 %v17737_v28 }
 0x1b2   : > { %v5598_v50 = vmul.f32 %v10863_v31, %v2741_v16  ;;  %v2743_v62 = vpop.f32.mrb[71].mxu1  ;;  %8758 = vmatmul.mubr.msk.f32.gmra.mrb[176].mxu1 %vm1247_vm6, %v1207_v6  ;;  %v10973_v58 = vadd.f32 %v5596_v32, %v10770_v24 }
 0x1b3   : > { %v5599_v12 = vmul.f32 %v10883_v34, %v2743_v62  ;;  %3063 = vmatprep.mubr.f32.mxu1 %v17737_v28  ;;  %v10981_v40 = vadd.f32 %v5597_v42, %v10778_v49  ;;  %v1914_v57 = vpop.f32.mrb[72].mxu0 }
 0x1b4   : > { %v10978_v55 = vadd.f32 %v5598_v50, %v10775_v18  ;;  %v5604_v23 = vmul.f32 %v10859_v36, %v1914_v57  ;;  %v1916_v6 = vpop.f32.mrb[73].mxu0  ;;  %8631 = vmatmul.mubr.msk.f32.gmra.mrb[178].mxu0 %vm1247_vm6, %v1208_v21  ;;  %v1209_v18 = vld [vmem:[%s17584_s2 + $0x2d0] sm:$0xff] }
 0x1b5   : > { %v10984_v43 = vadd.f32 %v5599_v12, %v10781_v45  ;;  %v2747_v22 = vpop.f32.mrb[72].mxu1  ;;  %v5605_v41 = vmul.f32 %v10871_v33, %v1916_v6  ;;  %2236 = vmatprep.mubr.f32.mxu0 %v17737_v28 }
 0x1b6   : > { %v5606_v24 = vmul.f32 %v10863_v31, %v2747_v22  ;;  %v2749_v44 = vpop.f32.mrb[73].mxu1  ;;  %8759 = vmatmul.mubr.msk.f32.gmra.mrb[178].mxu1 %vm1247_vm6, %v1208_v21  ;;  %v10996_v49 = vadd.f32 %v5604_v23, %v10793_v53 }
 0x1b7   : > { %v5607_v45 = vmul.f32 %v10883_v34, %v2749_v44  ;;  %3069 = vmatprep.mubr.f32.mxu1 %v17737_v28  ;;  %v11004_v16 = vadd.f32 %v5605_v41, %v10801_v17  ;;  %v1920_v8 = vpop.f32.mrb[74].mxu0 }
 0x1b8   : > { %v11001_v32 = vadd.f32 %v5606_v24, %v10798_v60  ;;  %v5612_v42 = vmul.f32 %v10859_v36, %v1920_v8  ;;  %v1922_v21 = vpop.f32.mrb[75].mxu0  ;;  %8632 = vmatmul.mubr.msk.f32.gmra.mrb[180].mxu0 %vm1247_vm6, %v1209_v18  ;;  %v1210_v60 = vld [vmem:[%s17584_s2 + $0x2d8] sm:$0xff] }
 0x1b9   : > { %v11007_v50 = vadd.f32 %v5607_v45, %v10804_v11  ;;  %v2753_v62 = vpop.f32.mrb[74].mxu1  ;;  %v5613_v12 = vmul.f32 %v10871_v33, %v1922_v21  ;;  %2242 = vmatprep.mubr.f32.mxu0 %v17737_v28 }
 0x1ba   : > { %v5614_v53 = vmul.f32 %v10863_v31, %v2753_v62  ;;  %v2755_v57 = vpop.f32.mrb[75].mxu1  ;;  %8760 = vmatmul.mubr.msk.f32.gmra.mrb[180].mxu1 %vm1247_vm6, %v1209_v18  ;;  %v11019_v17 = vadd.f32 %v5612_v42, %v10816_v47  ;;  %v11035_v47 = vsub.s32 5, %v9469_v3 }
 0x1bb   : > { %v5615_v11 = vmul.f32 %v10883_v34, %v2755_v57  ;;  %3075 = vmatprep.mubr.f32.mxu1 %v17737_v28  ;;  %v11027_v22 = vadd.f32 %v5613_v12, %v10824_v29  ;;  %v1926_v6 = vpop.f32.mrb[76].mxu0  ;;  %v1211_v29 = vld [vmem:[%s17584_s2 + $0x2e0] sm:$0xff] }
 0x1bc   : > { %v11024_v23 = vadd.f32 %v5614_v53, %v10821_v9  ;;  %v5620_v41 = vmul.f32 %v10859_v36, %v1926_v6  ;;  %v1928_v18 = vpop.f32.mrb[77].mxu0  ;;  %8633 = vmatmul.mubr.msk.f32.gmra.mrb[182].mxu0 %vm1247_vm6, %v1210_v60  ;;  %17741 = vst [vmem:[#allocation30_spill] sm:$0xff] %v11035_v47 }
 0x1bd   : > { %v11030_v24 = vadd.f32 %v5615_v11, %v10827_v51  ;;  %v2759_v44 = vpop.f32.mrb[76].mxu1  ;;  %v5621_v9 = vmul.f32 %v10871_v33, %v1928_v18  ;;  %2248 = vmatprep.mubr.f32.mxu0 %v17737_v28 }
 0x1be   : > { %v5622_v45 = vmul.f32 %v10863_v31, %v2759_v44  ;;  %v2761_v8 = vpop.f32.mrb[77].mxu1  ;;  %8761 = vmatmul.mubr.msk.f32.gmra.mrb[182].mxu1 %vm1247_vm6, %v1210_v60  ;;  %v11045_v51 = vadd.f32 %v5620_v41, %v10842_v15  ;;  %v11062_v15 = vrot.slane %v10185_v54, %v11035_v47  ;;  %v1212_v41 = vld [vmem:[%s17584_s2 + $0x2e8] sm:$0xff] }
 0x1bf   : > { %v5623_v42 = vmul.f32 %v10883_v34, %v2761_v8  ;;  %3081 = vmatprep.mubr.f32.mxu1 %v17737_v28  ;;  %v11053_v21 = vadd.f32 %v5621_v9, %v10850_v2  ;;  %v1932_v53 = vpop.f32.mrb[78].mxu0 }
 0x1c0   : > { %v11050_v62 = vadd.f32 %v5622_v45, %v10847_v30  ;;  %v5628_v57 = vmul.f32 %v10859_v36, %v1932_v53  ;;  %v1934_v11 = vpop.f32.mrb[79].mxu0  ;;  %8634 = vmatmul.mubr.msk.f32.gmra.mrb[184].mxu0 %vm1247_vm6, %v1211_v29  ;;  %v11066_v30 = vrot.slane %v10194_v61, %v11035_v47  ;;  %v11074_v36 = vrot.slane %v10187_v56, %v11035_v47 }
 0x1c1   : > { %v11056_v12 = vadd.f32 %v5623_v42, %v10853_v52  ;;  %v2765_v60 = vpop.f32.mrb[78].mxu1  ;;  %v5629_v6 = vmul.f32 %v10871_v33, %v1934_v11  ;;  %2254 = vmatprep.mubr.f32.mxu0 %v17737_v28  ;;  %v11086_v33 = vrot.slane %v10203_v4, %v11035_v47 }
 0x1c2   : > { %v5630_v2 = vmul.f32 %v10863_v31, %v2765_v60  ;;  %v2767_v52 = vpop.f32.mrb[79].mxu1  ;;  %8762 = vmatmul.mubr.msk.f32.gmra.mrb[184].mxu1 %vm1247_vm6, %v1211_v29  ;;  %v11080_v44 = vadd.f32 %v5628_v57, %v10877_v27 }
 0x1c3   : > { %v5631_v31 = vmul.f32 %v10883_v34, %v2767_v52  ;;  %3087 = vmatprep.mubr.f32.mxu1 %v17737_v28  ;;  %v11092_v45 = vadd.f32 %v5629_v6, %v10889_v26  ;;  %v1938_v9 = vpop.f32.mrb[80].mxu0 }
 0x1c4   : > { %v11089_v18 = vadd.f32 %v5630_v2, %v10886_v37  ;;  %v5732_v27 = vmul.f32 %v11062_v15, %v1938_v9  ;;  %v1940_v34 = vpop.f32.mrb[81].mxu0  ;;  %8635 = vmatmul.mubr.msk.f32.gmra.mrb[186].mxu0 %vm1247_vm6, %v1212_v41  ;;  %v1213_v37 = vld [vmem:[%s17584_s2 + $0x2f0] sm:$0xff] }
 0x1c5   : > { %v11095_v8 = vadd.f32 %v5631_v31, %v10892_v38  ;;  %v2771_v29 = vpop.f32.mrb[80].mxu1  ;;  %v5733_v53 = vmul.f32 %v11074_v36, %v1940_v34  ;;  %2260 = vmatprep.mubr.f32.mxu0 %v17737_v28 }
 0x1c6   : > { %v5734_v42 = vmul.f32 %v11066_v30, %v2771_v29  ;;  %v2773_v57 = vpop.f32.mrb[81].mxu1  ;;  %8763 = vmatmul.mubr.msk.f32.gmra.mrb[186].mxu1 %vm1247_vm6, %v1212_v41  ;;  %v11107_v26 = vadd.f32 %v5732_v27, %v10904_v20 }
 0x1c7   : > { %v5735_v38 = vmul.f32 %v11086_v33, %v2773_v57  ;;  %3093 = vmatprep.mubr.f32.mxu1 %v17737_v28  ;;  %v11115_v11 = vadd.f32 %v5733_v53, %v10912_v0  ;;  %v1944_v2 = vpop.f32.mrb[82].mxu0 }
 0x1c8   : > { %v11112_v60 = vadd.f32 %v5734_v42, %v10909_v59  ;;  %v5740_v52 = vmul.f32 %v11062_v15, %v1944_v2  ;;  %v1946_v31 = vpop.f32.mrb[83].mxu0  ;;  %8636 = vmatmul.mubr.msk.f32.gmra.mrb[188].mxu0 %vm1247_vm6, %v1213_v37  ;;  %v1214_v59 = vld [vmem:[%s17584_s2 + $0x2f8] sm:$0xff] }
 0x1c9   : > { %v11118_v6 = vadd.f32 %v5735_v38, %v10915_v25  ;;  %v2777_v41 = vpop.f32.mrb[82].mxu1  ;;  %v5741_v9 = vmul.f32 %v11074_v36, %v1946_v31  ;;  %2266 = vmatprep.mubr.f32.mxu0 %v17737_v28 }
 0x1ca   : > { %v5742_v20 = vmul.f32 %v11066_v30, %v2777_v41  ;;  %v2779_v27 = vpop.f32.mrb[83].mxu1  ;;  %8764 = vmatmul.mubr.msk.f32.gmra.mrb[188].mxu1 %vm1247_vm6, %v1213_v37  ;;  %v11130_v0 = vadd.f32 %v5740_v52, %v10927_v14 }
 0x1cb   : > { %v5743_v25 = vmul.f32 %v11086_v33, %v2779_v27  ;;  %3099 = vmatprep.mubr.f32.mxu1 %v17737_v28  ;;  %v11138_v34 = vadd.f32 %v5741_v9, %v10935_v19  ;;  %v1950_v42 = vpop.f32.mrb[84].mxu0 }
 0x1cc   : > { %v11135_v29 = vadd.f32 %v5742_v20, %v10932_v1  ;;  %v5748_v57 = vmul.f32 %v11062_v15, %v1950_v42  ;;  %v1952_v38 = vpop.f32.mrb[85].mxu0  ;;  %8637 = vmatmul.mubr.msk.f32.gmra.mrb[190].mxu0 %vm1247_vm6, %v1214_v59  ;;  %v1215_v1 = vld [vmem:[%s17584_s2 + $0x300] sm:$0xff] }
 0x1cd   : > { %v11141_v53 = vadd.f32 %v5743_v25, %v10938_v48  ;;  %v2783_v37 = vpop.f32.mrb[84].mxu1  ;;  %v5749_v2 = vmul.f32 %v11074_v36, %v1952_v38  ;;  %2272 = vmatprep.mubr.f32.mxu0 %v17737_v28 }
 0x1ce   : > { %v5750_v14 = vmul.f32 %v11066_v30, %v2783_v37  ;;  %v2785_v52 = vpop.f32.mrb[85].mxu1  ;;  %8765 = vmatmul.mubr.msk.f32.gmra.mrb[190].mxu1 %vm1247_vm6, %v1214_v59  ;;  %v11153_v19 = vadd.f32 %v5748_v57, %v10950_v39 }
 0x1cf   : > { %v5751_v48 = vmul.f32 %v11086_v33, %v2785_v52  ;;  %3105 = vmatprep.mubr.f32.mxu1 %v17737_v28  ;;  %v11161_v31 = vadd.f32 %v5749_v2, %v10958_v35  ;;  %v1956_v20 = vpop.f32.mrb[86].mxu0 }
 0x1d0   : > { %v11158_v41 = vadd.f32 %v5750_v14, %v10955_v7  ;;  %v5756_v27 = vmul.f32 %v11062_v15, %v1956_v20  ;;  %v1958_v25 = vpop.f32.mrb[87].mxu0  ;;  %8638 = vmatmul.mubr.msk.f32.gmra.mrb[192].mxu0 %vm1247_vm6, %v1215_v1  ;;  %v1216_v7 = vld [vmem:[%s17584_s2 + $0x308] sm:$0xff] }
 0x1d1   : > { %v11164_v9 = vadd.f32 %v5751_v48, %v10961_v46  ;;  %v2789_v59 = vpop.f32.mrb[86].mxu1  ;;  %v5757_v42 = vmul.f32 %v11074_v36, %v1958_v25  ;;  %2278 = vmatprep.mubr.f32.mxu0 %v17737_v28 }
 0x1d2   : > { %v5758_v39 = vmul.f32 %v11066_v30, %v2789_v59  ;;  %v2791_v57 = vpop.f32.mrb[87].mxu1  ;;  %8766 = vmatmul.mubr.msk.f32.gmra.mrb[192].mxu1 %vm1247_vm6, %v1215_v1  ;;  %v11176_v35 = vadd.f32 %v5756_v27, %v10973_v58 }
 0x1d3   : > { %v5759_v46 = vmul.f32 %v11086_v33, %v2791_v57  ;;  %3111 = vmatprep.mubr.f32.mxu1 %v17737_v28  ;;  %v11184_v38 = vadd.f32 %v5757_v42, %v10981_v40  ;;  %v1962_v14 = vpop.f32.mrb[88].mxu0 }
 0x1d4   : > { %v11181_v37 = vadd.f32 %v5758_v39, %v10978_v55  ;;  %v5764_v52 = vmul.f32 %v11062_v15, %v1962_v14  ;;  %v1964_v48 = vpop.f32.mrb[89].mxu0  ;;  %8639 = vmatmul.mubr.msk.f32.gmra.mrb[194].mxu0 %vm1247_vm6, %v1216_v7  ;;  %v1217_v55 = vld [vmem:[%s17584_s2 + $0x310] sm:$0xff] }
 0x1d5   : > { %v11187_v2 = vadd.f32 %v5759_v46, %v10984_v43  ;;  %v2795_v1 = vpop.f32.mrb[88].mxu1  ;;  %v5765_v20 = vmul.f32 %v11074_v36, %v1964_v48  ;;  %2284 = vmatprep.mubr.f32.mxu0 %v17737_v28 }
 0x1d6   : > { %v5766_v58 = vmul.f32 %v11066_v30, %v2795_v1  ;;  %v2797_v27 = vpop.f32.mrb[89].mxu1  ;;  %8767 = vmatmul.mubr.msk.f32.gmra.mrb[194].mxu1 %vm1247_vm6, %v1216_v7  ;;  %v11199_v40 = vadd.f32 %v5764_v52, %v10996_v49 }
 0x1d7   : > { %v5767_v43 = vmul.f32 %v11086_v33, %v2797_v27  ;;  %3117 = vmatprep.mubr.f32.mxu1 %v17737_v28  ;;  %v11207_v25 = vadd.f32 %v5765_v20, %v11004_v16  ;;  %v1968_v39 = vpop.f32.mrb[90].mxu0 }
 0x1d8   : > { %v11204_v59 = vadd.f32 %v5766_v58, %v11001_v32  ;;  %v5772_v57 = vmul.f32 %v11062_v15, %v1968_v39  ;;  %v1970_v46 = vpop.f32.mrb[91].mxu0  ;;  %8640 = vmatmul.mubr.msk.f32.gmra.mrb[196].mxu0 %vm1247_vm6, %v1217_v55  ;;  %v1218_v32 = vld [vmem:[%s17584_s2 + $0x318] sm:$0xff] }
 0x1d9   : > { %v11210_v42 = vadd.f32 %v5767_v43, %v11007_v50  ;;  %v2801_v7 = vpop.f32.mrb[90].mxu1  ;;  %v5773_v14 = vmul.f32 %v11074_v36, %v1970_v46  ;;  %2290 = vmatprep.mubr.f32.mxu0 %v17737_v28 }
 0x1da   : > { %v5774_v49 = vmul.f32 %v11066_v30, %v2801_v7  ;;  %v2803_v52 = vpop.f32.mrb[91].mxu1  ;;  %8768 = vmatmul.mubr.msk.f32.gmra.mrb[196].mxu1 %vm1247_vm6, %v1217_v55  ;;  %v11222_v16 = vadd.f32 %v5772_v57, %v11019_v17  ;;  %v11238_v17 = vsub.s32 6, %v9469_v3 }
 0x1db   : > { %v5775_v50 = vmul.f32 %v11086_v33, %v2803_v52  ;;  %3123 = vmatprep.mubr.f32.mxu1 %v17737_v28  ;;  %v11230_v48 = vadd.f32 %v5773_v14, %v11027_v22  ;;  %v1974_v58 = vpop.f32.mrb[92].mxu0  ;;  %v1219_v22 = vld [vmem:[%s17584_s2 + $0x320] sm:$0xff] }
 0x1dc   : > { %v11227_v1 = vadd.f32 %v5774_v49, %v11024_v23  ;;  %v5780_v27 = vmul.f32 %v11062_v15, %v1974_v58  ;;  %v1976_v43 = vpop.f32.mrb[93].mxu0  ;;  %8641 = vmatmul.mubr.msk.f32.gmra.mrb[198].mxu0 %vm1247_vm6, %v1218_v32  ;;  %17742 = vst [vmem:[#allocation31_spill] sm:$0xff] %v11238_v17 }
 0x1dd   : > { %v11233_v20 = vadd.f32 %v5775_v50, %v11030_v24  ;;  %v2807_v55 = vpop.f32.mrb[92].mxu1  ;;  %v5781_v23 = vmul.f32 %v11074_v36, %v1976_v43  ;;  %2296 = vmatprep.mubr.f32.mxu0 %v17737_v28 }
 0x1de   : > { %v5782_v39 = vmul.f32 %v11066_v30, %v2807_v55  ;;  %v2809_v57 = vpop.f32.mrb[93].mxu1  ;;  %8769 = vmatmul.mubr.msk.f32.gmra.mrb[198].mxu1 %vm1247_vm6, %v1218_v32  ;;  %v11248_v24 = vadd.f32 %v5780_v27, %v11045_v51  ;;  %v11265_v51 = vrot.slane %v10185_v54, %v11238_v17  ;;  %v1220_v55 = vld [vmem:[%s17584_s2 + $0x328] sm:$0xff] }
 0x1df   : > { %v5783_v7 = vmul.f32 %v11086_v33, %v2809_v57  ;;  %3129 = vmatprep.mubr.f32.mxu1 %v17737_v28  ;;  %v11256_v49 = vadd.f32 %v5781_v23, %v11053_v21  ;;  %v1980_v14 = vpop.f32.mrb[94].mxu0 }
 0x1e0   : > { %v11253_v46 = vadd.f32 %v5782_v39, %v11050_v62  ;;  %v5788_v32 = vmul.f32 %v11062_v15, %v1980_v14  ;;  %v1982_v58 = vpop.f32.mrb[95].mxu0  ;;  %8642 = vmatmul.mubr.msk.f32.gmra.mrb[200].mxu0 %vm1247_vm6, %v1219_v22  ;;  %v11269_v62 = vrot.slane %v10194_v61, %v11238_v17  ;;  %v11277_v15 = vrot.slane %v10187_v56, %v11238_v17 }
 0x1e1   : > { %v11259_v52 = vadd.f32 %v5783_v7, %v11056_v12  ;;  %v2813_v50 = vpop.f32.mrb[94].mxu1  ;;  %v5789_v27 = vmul.f32 %v11074_v36, %v1982_v58  ;;  %2302 = vmatprep.mubr.f32.mxu0 %v17737_v28  ;;  %v11289_v36 = vrot.slane %v10203_v4, %v11238_v17 }
 0x1e2   : > { %v5790_v21 = vmul.f32 %v11066_v30, %v2813_v50  ;;  %v2815_v12 = vpop.f32.mrb[95].mxu1  ;;  %8770 = vmatmul.mubr.msk.f32.gmra.mrb[200].mxu1 %vm1247_vm6, %v1219_v22  ;;  %v11283_v43 = vadd.f32 %v5788_v32, %v11080_v44 }
 0x1e3   : > { %v5791_v30 = vmul.f32 %v11086_v33, %v2815_v12  ;;  %3135 = vmatprep.mubr.f32.mxu1 %v17737_v28  ;;  %v11295_v23 = vadd.f32 %v5789_v27, %v11092_v45  ;;  %v1986_v57 = vpop.f32.mrb[96].mxu0 }
 0x1e4   : > { %v11292_v39 = vadd.f32 %v5790_v21, %v11089_v18  ;;  %v5892_v44 = vmul.f32 %v11265_v51, %v1986_v57  ;;  %v1988_v33 = vpop.f32.mrb[97].mxu0  ;;  %8643 = vmatmul.mubr.msk.f32.gmra.mrb[202].mxu0 %vm1247_vm6, %v1220_v55  ;;  %v1221_v18 = vld [vmem:[%s17584_s2 + $0x330] sm:$0xff] }
 0x1e5   : > { %v11298_v22 = vadd.f32 %v5791_v30, %v11095_v8  ;;  %v2819_v7 = vpop.f32.mrb[96].mxu1  ;;  %v5893_v32 = vmul.f32 %v11277_v15, %v1988_v33  ;;  %2308 = vmatprep.mubr.f32.mxu0 %v17737_v28 }
 0x1e6   : > { %v5894_v14 = vmul.f32 %v11269_v62, %v2819_v7  ;;  %v2821_v50 = vpop.f32.mrb[97].mxu1  ;;  %8771 = vmatmul.mubr.msk.f32.gmra.mrb[202].mxu1 %vm1247_vm6, %v1220_v55  ;;  %v11310_v45 = vadd.f32 %v5892_v44, %v11107_v26 }
 0x1e7   : > { %v5895_v8 = vmul.f32 %v11289_v36, %v2821_v50  ;;  %3141 = vmatprep.mubr.f32.mxu1 %v17737_v28  ;;  %v11318_v21 = vadd.f32 %v5893_v32, %v11115_v11  ;;  %v1992_v27 = vpop.f32.mrb[98].mxu0 }
 0x1e8   : > { %v11315_v58 = vadd.f32 %v5894_v14, %v11112_v60  ;;  %v5900_v55 = vmul.f32 %v11265_v51, %v1992_v27  ;;  %v1994_v57 = vpop.f32.mrb[99].mxu0  ;;  %8644 = vmatmul.mubr.msk.f32.gmra.mrb[204].mxu0 %vm1247_vm6, %v1221_v18  ;;  %v1222_v60 = vld [vmem:[%s17584_s2 + $0x338] sm:$0xff] }
 0x1e9   : > { %v11321_v12 = vadd.f32 %v5895_v8, %v11118_v6  ;;  %v2825_v30 = vpop.f32.mrb[98].mxu1  ;;  %v5901_v44 = vmul.f32 %v11277_v15, %v1994_v57  ;;  %2314 = vmatprep.mubr.f32.mxu0 %v17737_v28 }
 0x1ea   : > { %v5902_v26 = vmul.f32 %v11269_v62, %v2825_v30  ;;  %v2827_v7 = vpop.f32.mrb[99].mxu1  ;;  %8772 = vmatmul.mubr.msk.f32.gmra.mrb[204].mxu1 %vm1247_vm6, %v1221_v18  ;;  %v11333_v11 = vadd.f32 %v5900_v55, %v11130_v0 }
 0x1eb   : > { %v5903_v6 = vmul.f32 %v11289_v36, %v2827_v7  ;;  %3147 = vmatprep.mubr.f32.mxu1 %v17737_v28  ;;  %v11341_v14 = vadd.f32 %v5901_v44, %v11138_v34  ;;  %v1998_v32 = vpop.f32.mrb[100].mxu0 }
 0x1ec   : > { %v11338_v33 = vadd.f32 %v5902_v26, %v11135_v29  ;;  %v5908_v18 = vmul.f32 %v11265_v51, %v1998_v32  ;;  %v2000_v27 = vpop.f32.mrb[101].mxu0  ;;  %8645 = vmatmul.mubr.msk.f32.gmra.mrb[206].mxu0 %vm1247_vm6, %v1222_v60  ;;  %v1223_v29 = vld [vmem:[%s17584_s2 + $0x340] sm:$0xff] }
 0x1ed   : > { %v11344_v50 = vadd.f32 %v5903_v6, %v11141_v53  ;;  %v2831_v8 = vpop.f32.mrb[100].mxu1  ;;  %v5909_v55 = vmul.f32 %v11277_v15, %v2000_v27  ;;  %2320 = vmatprep.mubr.f32.mxu0 %v17737_v28 }
 0x1ee   : > { %v5910_v0 = vmul.f32 %v11269_v62, %v2831_v8  ;;  %v2833_v30 = vpop.f32.mrb[101].mxu1  ;;  %8773 = vmatmul.mubr.msk.f32.gmra.mrb[206].mxu1 %vm1247_vm6, %v1222_v60  ;;  %v11356_v34 = vadd.f32 %v5908_v18, %v11153_v19 }
 0x1ef   : > { %v5911_v53 = vmul.f32 %v11289_v36, %v2833_v30  ;;  %3153 = vmatprep.mubr.f32.mxu1 %v17737_v28  ;;  %v11364_v26 = vadd.f32 %v5909_v55, %v11161_v31  ;;  %v2004_v44 = vpop.f32.mrb[102].mxu0 }
 0x1f0   : > { %v11361_v57 = vadd.f32 %v5910_v0, %v11158_v41  ;;  %v5916_v60 = vmul.f32 %v11265_v51, %v2004_v44  ;;  %v2006_v32 = vpop.f32.mrb[103].mxu0  ;;  %8646 = vmatmul.mubr.msk.f32.gmra.mrb[208].mxu0 %vm1247_vm6, %v1223_v29  ;;  %v1224_v41 = vld [vmem:[%s17584_s2 + $0x348] sm:$0xff] }
 0x1f1   : > { %v11367_v7 = vadd.f32 %v5911_v53, %v11164_v9  ;;  %v2837_v6 = vpop.f32.mrb[102].mxu1  ;;  %v5917_v18 = vmul.f32 %v11277_v15, %v2006_v32  ;;  %2326 = vmatprep.mubr.f32.mxu0 %v17737_v28 }
 0x1f2   : > { %v5918_v19 = vmul.f32 %v11269_v62, %v2837_v6  ;;  %v2839_v8 = vpop.f32.mrb[103].mxu1  ;;  %8774 = vmatmul.mubr.msk.f32.gmra.mrb[208].mxu1 %vm1247_vm6, %v1223_v29  ;;  %v11379_v31 = vadd.f32 %v5916_v60, %v11176_v35 }
 0x1f3   : > { %v5919_v9 = vmul.f32 %v11289_v36, %v2839_v8  ;;  %3159 = vmatprep.mubr.f32.mxu1 %v17737_v28  ;;  %v11387_v0 = vadd.f32 %v5917_v18, %v11184_v38  ;;  %v2010_v55 = vpop.f32.mrb[104].mxu0 }
 0x1f4   : > { %v11384_v27 = vadd.f32 %v5918_v19, %v11181_v37  ;;  %v5924_v29 = vmul.f32 %v11265_v51, %v2010_v55  ;;  %v2012_v44 = vpop.f32.mrb[105].mxu0  ;;  %8647 = vmatmul.mubr.msk.f32.gmra.mrb[210].mxu0 %vm1247_vm6, %v1224_v41  ;;  %v1225_v37 = vld [vmem:[%s17584_s2 + $0x350] sm:$0xff] }
 0x1f5   : > { %v11390_v30 = vadd.f32 %v5919_v9, %v11187_v2  ;;  %v2843_v53 = vpop.f32.mrb[104].mxu1  ;;  %v5925_v60 = vmul.f32 %v11277_v15, %v2012_v44  ;;  %2332 = vmatprep.mubr.f32.mxu0 %v17737_v28 }
 0x1f6   : > { %v5926_v35 = vmul.f32 %v11269_v62, %v2843_v53  ;;  %v2845_v6 = vpop.f32.mrb[105].mxu1  ;;  %8775 = vmatmul.mubr.msk.f32.gmra.mrb[210].mxu1 %vm1247_vm6, %v1224_v41  ;;  %v11402_v38 = vadd.f32 %v5924_v29, %v11199_v40 }
 0x1f7   : > { %v5927_v2 = vmul.f32 %v11289_v36, %v2845_v6  ;;  %3165 = vmatprep.mubr.f32.mxu1 %v17737_v28  ;;  %v11410_v19 = vadd.f32 %v5925_v60, %v11207_v25  ;;  %v2016_v18 = vpop.f32.mrb[106].mxu0 }
 0x1f8   : > { %v11407_v32 = vadd.f32 %v5926_v35, %v11204_v59  ;;  %v5932_v41 = vmul.f32 %v11265_v51, %v2016_v18  ;;  %v2018_v55 = vpop.f32.mrb[107].mxu0  ;;  %8648 = vmatmul.mubr.msk.f32.gmra.mrb[212].mxu0 %vm1247_vm6, %v1225_v37  ;;  %v1226_v59 = vld [vmem:[%s17584_s2 + $0x358] sm:$0xff] }
 0x1f9   : > { %v11413_v8 = vadd.f32 %v5927_v2, %v11210_v42  ;;  %v2849_v9 = vpop.f32.mrb[106].mxu1  ;;  %v5933_v29 = vmul.f32 %v11277_v15, %v2018_v55  ;;  %2338 = vmatprep.mubr.f32.mxu0 %v17737_v28 }
 0x1fa   : > { %v5934_v40 = vmul.f32 %v11269_v62, %v2849_v9  ;;  %v2851_v53 = vpop.f32.mrb[107].mxu1  ;;  %8776 = vmatmul.mubr.msk.f32.gmra.mrb[212].mxu1 %vm1247_vm6, %v1225_v37  ;;  %v11425_v25 = vadd.f32 %v5932_v41, %v11222_v16  ;;  %v11441_v16 = vsub.s32 7, %v9469_v3  ;;  %v17757_v3 = vld [vmem:[#allocation24_spill] sm:$0xff] }
 0x1fb   : > { %v5935_v42 = vmul.f32 %v11289_v36, %v2851_v53  ;;  %3171 = vmatprep.mubr.f32.mxu1 %v17737_v28  ;;  %v11433_v35 = vadd.f32 %v5933_v29, %v11230_v48  ;;  %v2022_v60 = vpop.f32.mrb[108].mxu0  ;;  %v1227_v48 = vld [vmem:[%s17584_s2 + $0x360] sm:$0xff] }
 0x1fc   : > { %v11430_v44 = vadd.f32 %v5934_v40, %v11227_v1  ;;  %v5940_v37 = vmul.f32 %v11265_v51, %v2022_v60  ;;  %v2024_v18 = vpop.f32.mrb[109].mxu0  ;;  %8649 = vmatmul.mubr.msk.f32.gmra.mrb[214].mxu0 %vm1247_vm6, %v1226_v59  ;;  %17743 = vst [vmem:[#allocation32_spill] sm:$0xff] %v11441_v16 }
 0x1fd   : > { %v11436_v6 = vadd.f32 %v5935_v42, %v11233_v20  ;;  %v2855_v2 = vpop.f32.mrb[108].mxu1  ;;  %v5941_v1 = vmul.f32 %v11277_v15, %v2024_v18  ;;  %2344 = vmatprep.mubr.f32.mxu0 %v17737_v28 }
 0x1fe   : > { %v5942_v41 = vmul.f32 %v11269_v62, %v2855_v2  ;;  %v2857_v9 = vpop.f32.mrb[109].mxu1  ;;  %8777 = vmatmul.mubr.msk.f32.gmra.mrb[214].mxu1 %vm1247_vm6, %v1226_v59  ;;  %v11451_v20 = vadd.f32 %v5940_v37, %v11248_v24  ;;  %v11468_v24 = vrot.slane %v10185_v54, %v11441_v16  ;;  %v1228_v54 = vld [vmem:[%s17584_s2 + $0x368] sm:$0xff] }
 0x1ff   : > { %v5943_v55 = vmul.f32 %v11289_v36, %v2857_v9  ;;  %3177 = vmatprep.mubr.f32.mxu1 %v17737_v28  ;;  %v11459_v29 = vadd.f32 %v5941_v1, %v11256_v49  ;;  %v2028_v53 = vpop.f32.mrb[110].mxu0 }
 0x200   : > { %v11456_v40 = vadd.f32 %v5942_v41, %v11253_v46  ;;  %v5948_v42 = vmul.f32 %v11265_v51, %v2028_v53  ;;  %v2030_v2 = vpop.f32.mrb[111].mxu0  ;;  %8650 = vmatmul.mubr.msk.f32.gmra.mrb[216].mxu0 %vm1247_vm6, %v1227_v48  ;;  %v11472_v46 = vrot.slane %v10194_v61, %v11441_v16  ;;  %v11480_v51 = vrot.slane %v10187_v56, %v11441_v16 }
 0x201   : > { %v11462_v59 = vadd.f32 %v5943_v55, %v11259_v52  ;;  %v2861_v60 = vpop.f32.mrb[110].mxu1  ;;  %v5949_v37 = vmul.f32 %v11277_v15, %v2030_v2  ;;  %2350 = vmatprep.mubr.f32.mxu0 %v17737_v28  ;;  %v11492_v15 = vrot.slane %v10203_v4, %v11441_v16  ;;  %v17756_v16 = vld [vmem:[#allocation23_spill] sm:$0xff] }
 0x202   : > { %v5950_v49 = vmul.f32 %v11269_v62, %v2861_v60  ;;  %v2863_v52 = vpop.f32.mrb[111].mxu1  ;;  %8778 = vmatmul.mubr.msk.f32.gmra.mrb[216].mxu1 %vm1247_vm6, %v1227_v48  ;;  %v11486_v61 = vadd.f32 %v5948_v42, %v11283_v43 }
 0x203   : > { %v5951_v62 = vmul.f32 %v11289_v36, %v2863_v52  ;;  %3183 = vmatprep.mubr.f32.mxu1 %v17737_v28  ;;  %v11498_v56 = vadd.f32 %v5949_v37, %v11295_v23  ;;  %v2034_v41 = vpop.f32.mrb[112].mxu0 }
 0x204   : > { %v11495_v18 = vadd.f32 %v5950_v49, %v11292_v39  ;;  %v6052_v43 = vmul.f32 %v11468_v24, %v2034_v41  ;;  %v2036_v36 = vpop.f32.mrb[113].mxu0  ;;  %8651 = vmatmul.mubr.msk.f32.gmra.mrb[218].mxu0 %vm1247_vm6, %v1228_v54  ;;  %v1229_v39 = vld [vmem:[%s17584_s2 + $0x370] sm:$0xff] }
 0x205   : > { %v11501_v1 = vadd.f32 %v5951_v62, %v11298_v22  ;;  %v2867_v9 = vpop.f32.mrb[112].mxu1  ;;  %v6053_v4 = vmul.f32 %v11480_v51, %v2036_v36  ;;  %2356 = vmatprep.mubr.f32.mxu0 %v17737_v28 }
 0x206   : > { %v6054_v48 = vmul.f32 %v11472_v46, %v2867_v9  ;;  %v2869_v55 = vpop.f32.mrb[113].mxu1  ;;  %8779 = vmatmul.mubr.msk.f32.gmra.mrb[218].mxu1 %vm1247_vm6, %v1228_v54  ;;  %v11513_v23 = vadd.f32 %v6052_v43, %v11310_v45 }
 0x207   : > { %v6055_v22 = vmul.f32 %v11492_v15, %v2869_v55  ;;  %3189 = vmatprep.mubr.f32.mxu1 %v17737_v28  ;;  %v11521_v42 = vadd.f32 %v6053_v4, %v11318_v21  ;;  %v2040_v60 = vpop.f32.mrb[114].mxu0 }
 0x208   : > { %v11518_v53 = vadd.f32 %v6054_v48, %v11315_v58  ;;  %v6060_v49 = vmul.f32 %v11468_v24, %v2040_v60  ;;  %v2042_v52 = vpop.f32.mrb[115].mxu0  ;;  %8652 = vmatmul.mubr.msk.f32.gmra.mrb[220].mxu0 %vm1247_vm6, %v1229_v39  ;;  %v1230_v58 = vld [vmem:[%s17584_s2 + $0x378] sm:$0xff] }
 0x209   : > { %v11524_v2 = vadd.f32 %v6055_v22, %v11321_v12  ;;  %v2873_v37 = vpop.f32.mrb[114].mxu1  ;;  %v6061_v54 = vmul.f32 %v11480_v51, %v2042_v52  ;;  %2362 = vmatprep.mubr.f32.mxu0 %v17737_v28 }
 0x20a   : > { %v6062_v45 = vmul.f32 %v11472_v46, %v2873_v37  ;;  %v2875_v62 = vpop.f32.mrb[115].mxu1  ;;  %8780 = vmatmul.mubr.msk.f32.gmra.mrb[220].mxu1 %vm1247_vm6, %v1229_v39  ;;  %v11536_v21 = vadd.f32 %v6060_v49, %v11333_v11 }
 0x20b   : > { %v6063_v12 = vmul.f32 %v11492_v15, %v2875_v62  ;;  %3195 = vmatprep.mubr.f32.mxu1 %v17737_v28  ;;  %v11544_v43 = vadd.f32 %v6061_v54, %v11341_v14  ;;  %v2046_v9 = vpop.f32.mrb[116].mxu0 }
 0x20c   : > { %v11541_v41 = vadd.f32 %v6062_v45, %v11338_v33  ;;  %v6068_v48 = vmul.f32 %v11468_v24, %v2046_v9  ;;  %v2048_v55 = vpop.f32.mrb[117].mxu0  ;;  %8653 = vmatmul.mubr.msk.f32.gmra.mrb[222].mxu0 %vm1247_vm6, %v1230_v58  ;;  %v1231_v33 = vld [vmem:[%s17584_s2 + $0x380] sm:$0xff]  ;;  %v17744_v9 = vld [vmem:[#allocation10_spill] sm:$0xff] }
 0x20d   : > { %v11547_v36 = vadd.f32 %v6063_v12, %v11344_v50  ;;  %v2879_v4 = vpop.f32.mrb[116].mxu1  ;;  %v6069_v39 = vmul.f32 %v11480_v51, %v2048_v55  ;;  %2368 = vmatprep.mubr.f32.mxu0 %v17737_v28  ;;  %vm285_vm0 = vcmp.eq.s32.totalorder %v17744_v9, %v10064_v5 }
 0x20e   : > { %v6070_v11 = vmul.f32 %v11472_v46, %v2879_v4  ;;  %v2881_v22 = vpop.f32.mrb[117].mxu1  ;;  %8781 = vmatmul.mubr.msk.f32.gmra.mrb[222].mxu1 %vm1247_vm6, %v1230_v58  ;;  %v11559_v14 = vadd.f32 %v6068_v48, %v11356_v34  ;;  %v17745_v48 = vld [vmem:[#allocation12_spill] sm:$0xff] }
 0x20f   : > { %v6071_v50 = vmul.f32 %v11492_v15, %v2881_v22  ;;  %3201 = vmatprep.mubr.f32.mxu1 %v17737_v28  ;;  %v11567_v49 = vadd.f32 %v6069_v39, %v11364_v26  ;;  %v2052_v37 = vpop.f32.mrb[118].mxu0  ;;  %vm312_vm1 = vcmp.eq.s32.totalorder %v17744_v9, %v17745_v48 }
 0x210   : > { %v11564_v60 = vadd.f32 %v6070_v11, %v11361_v57  ;;  %v6076_v45 = vmul.f32 %v11468_v24, %v2052_v37  ;;  %v2054_v62 = vpop.f32.mrb[119].mxu0  ;;  %8654 = vmatmul.mubr.msk.f32.gmra.mrb[224].mxu0 %vm1247_vm6, %v1231_v33  ;;  %v1232_v57 = vld [vmem:[%s17584_s2 + $0x388] sm:$0xff] }
 0x211   : > { %v11570_v52 = vadd.f32 %v6071_v50, %v11367_v7  ;;  %v2885_v54 = vpop.f32.mrb[118].mxu1  ;;  %v6077_v58 = vmul.f32 %v11480_v51, %v2054_v62  ;;  %2374 = vmatprep.mubr.f32.mxu0 %v17737_v28 }
 0x212   : > { %v6078_v34 = vmul.f32 %v11472_v46, %v2885_v54  ;;  %v2887_v12 = vpop.f32.mrb[119].mxu1  ;;  %8782 = vmatmul.mubr.msk.f32.gmra.mrb[224].mxu1 %vm1247_vm6, %v1231_v33  ;;  %v11582_v26 = vadd.f32 %v6076_v45, %v11379_v31  ;;  %v17747_v54 = vld [vmem:[#allocation22_spill] sm:$0xff] }
 0x213   : > { %v6079_v7 = vmul.f32 %v11492_v15, %v2887_v12  ;;  %3207 = vmatprep.mubr.f32.mxu1 %v17737_v28  ;;  %v11594_v55 = vadd.f32 %v6077_v58, %v11387_v0  ;;  %v2058_v11 = vpop.f32.mrb[120].mxu0  ;;  %v17746_v0 = vld [vmem:[#allocation21_spill] sm:$0xff]  ;;  %v327_v62 = vsel %vm312_vm1, %v17747_v54, 0.0  ;;  %v17748_v12 = vld [vmem:[#allocation15_spill] sm:$0xff]  ;;  %v17754_v54 = vld [vmem:[#allocation16_spill] sm:$0xff] }
 0x214   : > { %v11591_v4 = vadd.f32 %v6078_v34, %v11384_v27  ;;  %v6084_v39 = vmul.f32 %v11468_v24, %v2058_v11  ;;  %v2060_v33 = vpop.f32.mrb[121].mxu0  ;;  %8655 = vmatmul.mubr.msk.f32.gmra.mrb[226].mxu0 %vm1247_vm6, %v1232_v57  ;;  %v1233_v27 = vld [vmem:[%s17584_s2 + $0x390] sm:$0xff]  ;;  %vm522_vm2 = vcmp.eq.s32.totalorder %v17744_v9, %v17748_v12  ;;  %v17750_v11 = vld [vmem:[#allocation13_spill] sm:$0xff] }
 0x215   : > { %v11597_v31 = vadd.f32 %v6079_v7, %v11390_v30  ;;  %v2891_v22 = vpop.f32.mrb[120].mxu1  ;;  %v6085_v37 = vmul.f32 %v11480_v51, %v2060_v33  ;;  %2380 = vmatprep.mubr.f32.mxu0 %v17737_v28  ;;  %v300_v30 = vsel %vm285_vm0, %v17746_v0, 0.0  ;;  %vm286_vm4 = vcmp.eq.s32.totalorder %v17744_v9, %v17750_v11 }
 0x216   : > { %v6086_v50 = vmul.f32 %v11472_v46, %v2891_v22  ;;  %v2893_v45 = vpop.f32.mrb[121].mxu1  ;;  %8783 = vmatmul.mubr.msk.f32.gmra.mrb[226].mxu1 %vm1247_vm6, %v1232_v57  ;;  %v11617_v34 = vadd.f32 %v6084_v39, %v11402_v38  ;;  %v17749_v57 = vld [vmem:[#allocation17_spill] sm:$0xff]  ;;  %v17751_v38 = vld [vmem:[#allocation14_spill] sm:$0xff]  ;;  %v301_v17 = vsel %vm286_vm4, %v17756_v16, 0.0 }
 0x217   : > { %v6087_v58 = vmul.f32 %v11492_v15, %v2893_v45  ;;  %3213 = vmatprep.mubr.f32.mxu1 %v17737_v28  ;;  %vm549_vm3 = vcmp.eq.s32.totalorder %v17744_v9, %v17749_v57  ;;  %v11629_v7 = vadd.f32 %v6085_v37, %v11410_v19  ;;  %v2064_v48 = vpop.f32.mrb[122].mxu0  ;;  %vm313_vm5 = vcmp.eq.s32.totalorder %v17744_v9, %v17751_v38  ;;  %v17753_v19 = vld [vmem:[#allocation20_spill] sm:$0xff] }
 0x218   : > { %v11626_v5 = vadd.f32 %v6086_v50, %v11407_v32  ;;  %v6092_v22 = vmul.f32 %v11468_v24, %v2064_v48  ;;  %v2066_v45 = vpop.f32.mrb[123].mxu0  ;;  %8656 = vmatmul.mubr.msk.f32.gmra.mrb[228].mxu0 %vm1247_vm6, %v1233_v27  ;;  %v17752_v32 = vld [vmem:[#allocation19_spill] sm:$0xff]  ;;  %vm550_vm8 = vcmp.eq.s32.totalorder %v17744_v9, %v17753_v19  ;;  %v17755_v48 = vld [vmem:[#allocation18_spill] sm:$0xff]  ;;  %v328_v12 = vsel %vm313_vm5, %v17757_v3, 0.0 }
 0x219   : > { %v11636_v39 = vadd.f32 %v6087_v58, %v11413_v8  ;;  %v2897_v33 = vpop.f32.mrb[122].mxu1  ;;  %vm523_vm7 = vcmp.eq.s32.totalorder %v17744_v9, %v17752_v32  ;;  %v6093_v37 = vmul.f32 %v11480_v51, %v2066_v45  ;;  %2386 = vmatprep.mubr.f32.mxu0 %v17737_v28  ;;  %v1234_v8 = vld [vmem:[%s17584_s2 + $0x398] sm:$0xff]  ;;  %v537_v58 = vsel %vm522_vm2, %v17754_v54, 0.0 }
 0x21a   : > { %v6094_v50 = vmul.f32 %v11472_v46, %v2897_v33  ;;  %v2899_v0 = vpop.f32.mrb[123].mxu1  ;;  %8784 = vmatmul.mubr.msk.f32.gmra.mrb[228].mxu1 %vm1247_vm6, %v1233_v27  ;;  %v564_v33 = vsel %vm549_vm3, %v17755_v48, 0.0  ;;  %v11660_v45 = vadd.f32 %v6092_v22, %v11425_v25  ;;  %v17759_v48 = vld [vmem:[#allocation26_spill] sm:$0xff]  ;;  %v11702_v19 = vadd.f32 %v328_v12, %v301_v17 }
 0x21b   : > { %v6095_v27 = vmul.f32 %v11492_v15, %v2899_v0  ;;  %3219 = vmatprep.mubr.f32.mxu1 %v17737_v28  ;;  %v11676_v25 = vadd.f32 %v6093_v37, %v11433_v35  ;;  %v2070_v22 = vpop.f32.mrb[124].mxu0  ;;  %v17758_v0 = vld [vmem:[#allocation25_spill] sm:$0xff]  ;;  %v565_v16 = vsel %vm550_vm8, %v17759_v48, 0.0  ;;  %v11691_v35 = vadd.f32 %v327_v62, %v300_v30  ;;  %v17760_v48 = vld [vmem:[#allocation11_spill] sm:$0xff] }
 0x21c   : > { %v11673_v57 = vadd.f32 %v6094_v50, %v11430_v44  ;;  %v538_v54 = vsel %vm523_vm7, %v17758_v0, 0.0  ;;  %v6100_v3 = vmul.f32 %v11468_v24, %v2070_v22  ;;  %v2072_v38 = vpop.f32.mrb[125].mxu0  ;;  %8657 = vmatmul.mubr.msk.f32.gmra.mrb[230].mxu0 %vm1247_vm6, %v1234_v8  ;;  %v11693_v50 = vadd.f32 %v564_v33, %v537_v58 }
 0x21d   : > { %v11687_v11 = vadd.f32 %v6095_v27, %v11436_v6  ;;  %v2903_v44 = vpop.f32.mrb[124].mxu1  ;;  %v6101_v37 = vmul.f32 %v11480_v51, %v2072_v38  ;;  %2392 = vmatprep.mubr.f32.mxu0 %v17737_v28  ;;  %v1235_v6 = vld [vmem:[%s17584_s2 + $0x3a0] sm:$0xff]  ;;  %v11709_v58 = vadd.f32 %v565_v16, %v538_v54  ;;  %v11724_v54 = vrot.slane %v11691_v35, %v17760_v48 }
 0x21e   : > { %v6102_v32 = vmul.f32 %v11472_v46, %v2903_v44  ;;  %v2905_v0 = vpop.f32.mrb[125].mxu1  ;;  %8785 = vmatmul.mubr.msk.f32.gmra.mrb[230].mxu1 %vm1247_vm6, %v1234_v8  ;;  %v11705_v30 = vadd.f32 %v6100_v3, %v11451_v20  ;;  %v1236_v3 = vld [vmem:[%s17584_s2 + $0x3a8] sm:$0xff] }
 0x21f   : > { %v6103_v62 = vmul.f32 %v11492_v15, %v2905_v0  ;;  %3225 = vmatprep.mubr.f32.mxu1 %v17737_v28  ;;  %v11715_v8 = vadd.f32 %v6101_v37, %v11459_v29  ;;  %v2076_v27 = vpop.f32.mrb[126].mxu0 }
 0x220   : > { %v11712_v33 = vadd.f32 %v6102_v32, %v11456_v40  ;;  %v6108_v17 = vmul.f32 %v11468_v24, %v2076_v27  ;;  %v2078_v12 = vpop.f32.mrb[127].mxu0  ;;  %8658 = vmatmul.mubr.msk.f32.gmra.mrb[232].mxu0 %vm1247_vm6, %v1235_v6  ;;  %v11728_v40 = vrot.slane %v11693_v50, %v17760_v48  ;;  %v11736_v24 = vrot.slane %v11702_v19, %v17760_v48 }
 0x221   : > { %v11718_v22 = vadd.f32 %v6103_v62, %v11462_v59  ;;  %v2909_v20 = vpop.f32.mrb[126].mxu1  ;;  %v6109_v16 = vmul.f32 %v11480_v51, %v2078_v12  ;;  %2398 = vmatprep.mubr.f32.mxu0 %v17737_v28  ;;  %v11748_v51 = vrot.slane %v11709_v58, %v17760_v48 }
 0x222   : > { %v6110_v29 = vmul.f32 %v11472_v46, %v2909_v20  ;;  %v2911_v59 = vpop.f32.mrb[127].mxu1  ;;  %8786 = vmatmul.mubr.msk.f32.gmra.mrb[232].mxu1 %vm1247_vm6, %v1235_v6  ;;  %v11742_v44 = vadd.f32 %v6108_v17, %v11486_v61 }
 0x223   : > { %v6111_v46 = vmul.f32 %v11492_v15, %v2911_v59  ;;  %3231 = vmatprep.mubr.f32.mxu1 %v17737_v28  ;;  %v11754_v32 = vadd.f32 %v6109_v16, %v11498_v56  ;;  %v2082_v37 = vpop.f32.mrb[128].mxu0 }
 0x224   : > { %v11751_v38 = vadd.f32 %v6110_v29, %v11495_v18  ;;  %v6212_v61 = vmul.f32 %v11724_v54, %v2082_v37  ;;  %v2084_v15 = vpop.f32.mrb[129].mxu0  ;;  %8659 = vmatmul.mubr.msk.f32.gmra.mrb[234].mxu0 %vm1247_vm6, %v1236_v3  ;;  %v1237_v18 = vld [vmem:[%s17584_s2 + $0x3b0] sm:$0xff] }
 0x225   : > { %v11757_v0 = vadd.f32 %v6111_v46, %v11501_v1  ;;  %v2915_v6 = vpop.f32.mrb[128].mxu1  ;;  %v6213_v27 = vmul.f32 %v11736_v24, %v2084_v15  ;;  %2404 = vmatprep.mubr.f32.mxu0 %v17737_v28 }
 0x226   : > { %v6214_v62 = vmul.f32 %v11728_v40, %v2915_v6  ;;  %v2917_v17 = vpop.f32.mrb[129].mxu1  ;;  %8787 = vmatmul.mubr.msk.f32.gmra.mrb[234].mxu1 %vm1247_vm6, %v1236_v3  ;;  %v11769_v56 = vadd.f32 %v6212_v61, %v11513_v23 }
 0x227   : > { %v6215_v1 = vmul.f32 %v11748_v51, %v2917_v17  ;;  %3237 = vmatprep.mubr.f32.mxu1 %v17737_v28  ;;  %v11777_v12 = vadd.f32 %v6213_v27, %v11521_v42  ;;  %v2088_v29 = vpop.f32.mrb[130].mxu0 }
 0x228   : > { %v11774_v20 = vadd.f32 %v6214_v62, %v11518_v53  ;;  %v6220_v59 = vmul.f32 %v11724_v54, %v2088_v29  ;;  %v2090_v46 = vpop.f32.mrb[131].mxu0  ;;  %8660 = vmatmul.mubr.msk.f32.gmra.mrb[236].mxu0 %vm1247_vm6, %v1237_v18  ;;  %v1238_v53 = vld [vmem:[%s17584_s2 + $0x3b8] sm:$0xff] }
 0x229   : > { %v11780_v16 = vadd.f32 %v6215_v1, %v11524_v2  ;;  %v2921_v3 = vpop.f32.mrb[130].mxu1  ;;  %v6221_v37 = vmul.f32 %v11736_v24, %v2090_v46  ;;  %2410 = vmatprep.mubr.f32.mxu0 %v17737_v28 }
 0x22a   : > { %v6222_v23 = vmul.f32 %v11728_v40, %v2921_v3  ;;  %v2923_v61 = vpop.f32.mrb[131].mxu1  ;;  %8788 = vmatmul.mubr.msk.f32.gmra.mrb[236].mxu1 %vm1247_vm6, %v1237_v18  ;;  %v11792_v42 = vadd.f32 %v6220_v59, %v11536_v21 }
 0x22b   : > { %v6223_v2 = vmul.f32 %v11748_v51, %v2923_v61  ;;  %3243 = vmatprep.mubr.f32.mxu1 %v17737_v28  ;;  %v11800_v15 = vadd.f32 %v6221_v37, %v11544_v43  ;;  %v2094_v62 = vpop.f32.mrb[132].mxu0 }
 0x22c   : > { %v11797_v6 = vadd.f32 %v6222_v23, %v11541_v41  ;;  %v6228_v17 = vmul.f32 %v11724_v54, %v2094_v62  ;;  %v2096_v1 = vpop.f32.mrb[133].mxu0  ;;  %8661 = vmatmul.mubr.msk.f32.gmra.mrb[238].mxu0 %vm1247_vm6, %v1238_v53  ;;  %v1239_v41 = vld [vmem:[%s17584_s2 + $0x3c0] sm:$0xff] }
 0x22d   : > { %v11803_v27 = vadd.f32 %v6223_v2, %v11547_v36  ;;  %v2927_v18 = vpop.f32.mrb[132].mxu1  ;;  %v6229_v29 = vmul.f32 %v11736_v24, %v2096_v1  ;;  %2416 = vmatprep.mubr.f32.mxu0 %v17737_v28 }
 0x22e   : > { %v6230_v21 = vmul.f32 %v11728_v40, %v2927_v18  ;;  %v2929_v59 = vpop.f32.mrb[133].mxu1  ;;  %8789 = vmatmul.mubr.msk.f32.gmra.mrb[238].mxu1 %vm1247_vm6, %v1238_v53  ;;  %v11815_v43 = vadd.f32 %v6228_v17, %v11559_v14 }
 0x22f   : > { %v6231_v36 = vmul.f32 %v11748_v51, %v2929_v59  ;;  %3249 = vmatprep.mubr.f32.mxu1 %v17737_v28  ;;  %v11823_v46 = vadd.f32 %v6229_v29, %v11567_v49  ;;  %v2100_v23 = vpop.f32.mrb[134].mxu0 }
 0x230   : > { %v11820_v3 = vadd.f32 %v6230_v21, %v11564_v60  ;;  %v6236_v61 = vmul.f32 %v11724_v54, %v2100_v23  ;;  %v2102_v2 = vpop.f32.mrb[135].mxu0  ;;  %8662 = vmatmul.mubr.msk.f32.gmra.mrb[240].mxu0 %vm1247_vm6, %v1239_v41  ;;  %v1240_v60 = vld [vmem:[%s17584_s2 + $0x3c8] sm:$0xff] }
 0x231   : > { %v11826_v37 = vadd.f32 %v6231_v36, %v11570_v52  ;;  %v2933_v53 = vpop.f32.mrb[134].mxu1  ;;  %v6237_v62 = vmul.f32 %v11736_v24, %v2102_v2  ;;  %2422 = vmatprep.mubr.f32.mxu0 %v17737_v28 }
 0x232   : > { %v6238_v14 = vmul.f32 %v11728_v40, %v2933_v53  ;;  %v2935_v17 = vpop.f32.mrb[135].mxu1  ;;  %8790 = vmatmul.mubr.msk.f32.gmra.mrb[240].mxu1 %vm1247_vm6, %v1239_v41  ;;  %v11838_v49 = vadd.f32 %v6236_v61, %v11582_v26 }
 0x233   : > { %v6239_v52 = vmul.f32 %v11748_v51, %v2935_v17  ;;  %3255 = vmatprep.mubr.f32.mxu1 %v17737_v28  ;;  %v11846_v1 = vadd.f32 %v6237_v62, %v11594_v55  ;;  %v2106_v21 = vpop.f32.mrb[136].mxu0 }
 0x234   : > { %v11843_v18 = vadd.f32 %v6238_v14, %v11591_v4  ;;  %v6244_v59 = vmul.f32 %v11724_v54, %v2106_v21  ;;  %v2108_v36 = vpop.f32.mrb[137].mxu0  ;;  %8663 = vmatmul.mubr.msk.f32.gmra.mrb[242].mxu0 %vm1247_vm6, %v1240_v60  ;;  %v1241_v4 = vld [vmem:[%s17584_s2 + $0x3d0] sm:$0xff] }
 0x235   : > { %v11849_v29 = vadd.f32 %v6239_v52, %v11597_v31  ;;  %v2939_v41 = vpop.f32.mrb[136].mxu1  ;;  %v6245_v23 = vmul.f32 %v11736_v24, %v2108_v36  ;;  %2428 = vmatprep.mubr.f32.mxu0 %v17737_v28 }
 0x236   : > { %v6246_v26 = vmul.f32 %v11728_v40, %v2939_v41  ;;  %v2941_v61 = vpop.f32.mrb[137].mxu1  ;;  %8791 = vmatmul.mubr.msk.f32.gmra.mrb[242].mxu1 %vm1247_vm6, %v1240_v60  ;;  %v11861_v55 = vadd.f32 %v6244_v59, %v11617_v34 }
 0x237   : > { %v6247_v31 = vmul.f32 %v11748_v51, %v2941_v61  ;;  %3261 = vmatprep.mubr.f32.mxu1 %v17737_v28  ;;  %v11869_v2 = vadd.f32 %v6245_v23, %v11629_v7  ;;  %v2112_v14 = vpop.f32.mrb[138].mxu0 }
 0x238   : > { %v11866_v53 = vadd.f32 %v6246_v26, %v11626_v5  ;;  %v6252_v17 = vmul.f32 %v11724_v54, %v2112_v14  ;;  %v2114_v52 = vpop.f32.mrb[139].mxu0  ;;  %8664 = vmatmul.mubr.msk.f32.gmra.mrb[244].mxu0 %vm1247_vm6, %v1241_v4  ;;  %v1242_v5 = vld [vmem:[%s17584_s2 + $0x3d8] sm:$0xff] }
 0x239   : > { %v11872_v62 = vadd.f32 %v6247_v31, %v11636_v39  ;;  %v2945_v60 = vpop.f32.mrb[138].mxu1  ;;  %v6253_v21 = vmul.f32 %v11736_v24, %v2114_v52  ;;  %2434 = vmatprep.mubr.f32.mxu0 %v17737_v28 }
 0x23a   : > { %v6254_v34 = vmul.f32 %v11728_v40, %v2945_v60  ;;  %v2947_v59 = vpop.f32.mrb[139].mxu1  ;;  %8792 = vmatmul.mubr.msk.f32.gmra.mrb[244].mxu1 %vm1247_vm6, %v1241_v4  ;;  %v11884_v7 = vadd.f32 %v6252_v17, %v11660_v45 }
 0x23b   : > { %v6255_v39 = vmul.f32 %v11748_v51, %v2947_v59  ;;  %3267 = vmatprep.mubr.f32.mxu1 %v17737_v28  ;;  %v11892_v36 = vadd.f32 %v6253_v21, %v11676_v25  ;;  %v2118_v26 = vpop.f32.mrb[140].mxu0 }
 0x23c   : > { %v11889_v41 = vadd.f32 %v6254_v34, %v11673_v57  ;;  %v6260_v61 = vmul.f32 %v11724_v54, %v2118_v26  ;;  %v2120_v31 = vpop.f32.mrb[141].mxu0  ;;  %8665 = vmatmul.mubr.msk.f32.gmra.mrb[246].mxu0 %vm1247_vm6, %v1242_v5  ;;  %v1243_v57 = vld [vmem:[%s17584_s2 + $0x3e0] sm:$0xff] }
 0x23d   : > { %v11895_v23 = vadd.f32 %v6255_v39, %v11687_v11  ;;  %v2951_v4 = vpop.f32.mrb[140].mxu1  ;;  %v6261_v14 = vmul.f32 %v11736_v24, %v2120_v31  ;;  %2440 = vmatprep.mubr.f32.mxu0 %v17737_v28 }
 0x23e   : > { %v6262_v45 = vmul.f32 %v11728_v40, %v2951_v4  ;;  %v2953_v17 = vpop.f32.mrb[141].mxu1  ;;  %8793 = vmatmul.mubr.msk.f32.gmra.mrb[246].mxu1 %vm1247_vm6, %v1242_v5  ;;  %v11907_v25 = vadd.f32 %v6260_v61, %v11705_v30  ;;  %v17761_v30 = vld [vmem:[#allocation9_spill] sm:$0xff] }
 0x23f   : > { %v6263_v11 = vmul.f32 %v11748_v51, %v2953_v17  ;;  %3273 = vmatprep.mubr.f32.mxu1 %v17737_v28  ;;  %v11915_v52 = vadd.f32 %v6261_v14, %v11715_v8  ;;  %v2124_v34 = vpop.f32.mrb[142].mxu0  ;;  %v11924_v26 = vrot.slane %v11691_v35, %v17761_v30  ;;  %v1244_v4 = vld [vmem:[%s17584_s2 + $0x3e8] sm:$0xff] }
 0x240   : > { %v11912_v60 = vadd.f32 %v6262_v45, %v11712_v33  ;;  %v6268_v59 = vmul.f32 %v11724_v54, %v2124_v34  ;;  %v2126_v39 = vpop.f32.mrb[143].mxu0  ;;  %8666 = vmatmul.mubr.msk.f32.gmra.mrb[248].mxu0 %vm1247_vm6, %v1243_v57  ;;  %v11928_v33 = vrot.slane %v11693_v50, %v17761_v30  ;;  %v11936_v54 = vrot.slane %v11702_v19, %v17761_v30 }
 0x241   : > { %v11918_v21 = vadd.f32 %v6263_v11, %v11718_v22  ;;  %v2957_v5 = vpop.f32.mrb[142].mxu1  ;;  %v6269_v61 = vmul.f32 %v11736_v24, %v2126_v39  ;;  %2446 = vmatprep.mubr.f32.mxu0 %v17737_v28  ;;  %v11948_v24 = vrot.slane %v11709_v58, %v17761_v30 }
 0x242   : > { %v6270_v8 = vmul.f32 %v11728_v40, %v2957_v5  ;;  %v2959_v22 = vpop.f32.mrb[143].mxu1  ;;  %8794 = vmatmul.mubr.msk.f32.gmra.mrb[248].mxu1 %vm1247_vm6, %v1243_v57  ;;  %v11942_v31 = vadd.f32 %v6268_v59, %v11742_v44 }
 0x243   : > { %v6271_v40 = vmul.f32 %v11748_v51, %v2959_v22  ;;  %3279 = vmatprep.mubr.f32.mxu1 %v17737_v28  ;;  %v11954_v14 = vadd.f32 %v6269_v61, %v11754_v32  ;;  %v2130_v17 = vpop.f32.mrb[144].mxu0 }
 0x244   : > { %v11951_v45 = vadd.f32 %v6270_v8, %v11751_v38  ;;  %v6372_v44 = vmul.f32 %v11924_v26, %v2130_v17  ;;  %v2132_v51 = vpop.f32.mrb[145].mxu0  ;;  %8667 = vmatmul.mubr.msk.f32.gmra.mrb[250].mxu0 %vm1247_vm6, %v1244_v4  ;;  %v1245_v38 = vld [vmem:[%s17584_s2 + $0x3f0] sm:$0xff] }
 0x245   : > { %v11957_v57 = vadd.f32 %v6271_v40, %v11757_v0  ;;  %v2963_v11 = vpop.f32.mrb[144].mxu1  ;;  %v6373_v59 = vmul.f32 %v11936_v54, %v2132_v51  ;;  %2452 = vmatprep.mubr.f32.mxu0 %v17737_v28 }
 0x246   : > { %v6374_v34 = vmul.f32 %v11928_v33, %v2963_v11  ;;  %v2965_v5 = vpop.f32.mrb[145].mxu1  ;;  %8795 = vmatmul.mubr.msk.f32.gmra.mrb[250].mxu1 %vm1247_vm6, %v1244_v4  ;;  %v11969_v32 = vadd.f32 %v6372_v44, %v11769_v56 }
 0x247   : > { %v6375_v0 = vmul.f32 %v11948_v24, %v2965_v5  ;;  %3285 = vmatprep.mubr.f32.mxu1 %v17737_v28  ;;  %v11977_v8 = vadd.f32 %v6373_v59, %v11777_v12  ;;  %v2136_v61 = vpop.f32.mrb[146].mxu0 }
 0x248   : > { %v11974_v39 = vadd.f32 %v6374_v34, %v11774_v20  ;;  %v6380_v4 = vmul.f32 %v11924_v26, %v2136_v61  ;;  %v2138_v17 = vpop.f32.mrb[147].mxu0  ;;  %8668 = vmatmul.mubr.msk.f32.gmra.mrb[252].mxu0 %vm1247_vm6, %v1245_v38  ;;  %v1246_v20 = vld [vmem:[%s17584_s2 + $0x3f8] sm:$0xff] }
 0x249   : > { %v11980_v22 = vadd.f32 %v6375_v0, %v11780_v16  ;;  %v2969_v40 = vpop.f32.mrb[146].mxu1  ;;  %v6381_v44 = vmul.f32 %v11936_v54, %v2138_v17  ;;  %2458 = vmatprep.mubr.f32.mxu0 %v17737_v28 }
 0x24a   : > { %v6382_v56 = vmul.f32 %v11928_v33, %v2969_v40  ;;  %v2971_v11 = vpop.f32.mrb[147].mxu1  ;;  %8796 = vmatmul.mubr.msk.f32.gmra.mrb[252].mxu1 %vm1247_vm6, %v1245_v38  ;;  %v11992_v12 = vadd.f32 %v6380_v4, %v11792_v42 }
 0x24b   : > { %v6383_v16 = vmul.f32 %v11948_v24, %v2971_v11  ;;  %3291 = vmatprep.mubr.f32.mxu1 %v17737_v28  ;;  %v12000_v34 = vadd.f32 %v6381_v44, %v11800_v15  ;;  %v2142_v59 = vpop.f32.mrb[148].mxu0 }
 0x24c   : > { %v11997_v51 = vadd.f32 %v6382_v56, %v11797_v6  ;;  %v6388_v38 = vmul.f32 %v11924_v26, %v2142_v59  ;;  %v2144_v61 = vpop.f32.mrb[149].mxu0  ;;  %8669 = vmatmul.mubr.msk.f32.gmra.mrb[254].mxu0 %vm1247_vm6, %v1246_v20 }
 0x24d   : > { %v12003_v5 = vadd.f32 %v6383_v16, %v11803_v27  ;;  %v2975_v0 = vpop.f32.mrb[148].mxu1  ;;  %v6389_v4 = vmul.f32 %v11936_v54, %v2144_v61  ;;  %3362 = vmatprep.mubr.f32.mxu0 %v17737_v28 }
 0x24e   : > { %v6390_v42 = vmul.f32 %v11928_v33, %v2975_v0  ;;  %v2977_v40 = vpop.f32.mrb[149].mxu1  ;;  %8797 = vmatmul.mubr.msk.f32.gmra.mrb[254].mxu1 %vm1247_vm6, %v1246_v20  ;;  %v12012_v6 = vadd.f32 %v6388_v38, %v11815_v43  ;;  %v9153_v43 = vld [vmem:[%s17584_s2] sm:$0xff] }
 0x24f   : > { %v6391_v15 = vmul.f32 %v11948_v24, %v2977_v40  ;;  %4195 = vmatprep.mubr.f32.mxu1 %v17737_v28  ;;  %v12020_v17 = vadd.f32 %v6389_v4, %v11823_v46  ;;  %v2148_v56 = vpop.f32.mrb[150].mxu0 }
 0x250   : > { %v12017_v27 = vadd.f32 %v6390_v42, %v11820_v3  ;;  %v6396_v11 = vmul.f32 %v11924_v26, %v2148_v56  ;;  %v2150_v16 = vpop.f32.mrb[151].mxu0  ;;  %8798 = vmatmul.mubr.msk.f32.vlgmr.msra.gmra.mrb[0].mxu0 %vm1247_vm6, %v9153_v43 }
 0x251   : > { %v12023_v44 = vadd.f32 %v6391_v15, %v11826_v37  ;;  %v2981_v20 = vpop.f32.mrb[150].mxu1  ;;  %v6397_v59 = vmul.f32 %v11936_v54, %v2150_v16  ;;  %3368 = vmatprep.mubr.f32.mxu0 %v17737_v28 }
 0x252   : > { %v6398_v3 = vmul.f32 %v11928_v33, %v2981_v20  ;;  %v2983_v46 = vpop.f32.mrb[151].mxu1  ;;  %8926 = vmatmul.mubr.msk.f32.vlgmr.msra.gmra.mrb[0].mxu1 %vm1247_vm6, %v9153_v43  ;;  %v12035_v37 = vadd.f32 %v6396_v11, %v11838_v49  ;;  %v9154_v49 = vld [vmem:[%s17584_s2 + $0x8] sm:$0xff] }
 0x253   : > { %v6399_v38 = vmul.f32 %v11948_v24, %v2983_v46  ;;  %4201 = vmatprep.mubr.f32.mxu1 %v17737_v28  ;;  %v12043_v61 = vadd.f32 %v6397_v59, %v11846_v1  ;;  %v2154_v42 = vpop.f32.mrb[152].mxu0 }
 0x254   : > { %v12040_v0 = vadd.f32 %v6398_v3, %v11843_v18  ;;  %v6404_v40 = vmul.f32 %v11924_v26, %v2154_v42  ;;  %v2156_v56 = vpop.f32.mrb[153].mxu0  ;;  %8799 = vmatmul.mubr.msk.f32.gmra.mrb[2].mxu0 %vm1247_vm6, %v9154_v49 }
 0x255   : > { %v12046_v4 = vadd.f32 %v6399_v38, %v11849_v29  ;;  %v2987_v15 = vpop.f32.mrb[152].mxu1  ;;  %v6405_v11 = vmul.f32 %v11936_v54, %v2156_v56  ;;  %3374 = vmatprep.mubr.f32.mxu0 %v17737_v28 }
 0x256   : > { %v6406_v18 = vmul.f32 %v11928_v33, %v2987_v15  ;;  %v2989_v1 = vpop.f32.mrb[153].mxu1  ;;  %8927 = vmatmul.mubr.msk.f32.gmra.mrb[2].mxu1 %vm1247_vm6, %v9154_v49  ;;  %v12058_v29 = vadd.f32 %v6404_v40, %v11861_v55  ;;  %v9155_v55 = vld [vmem:[%s17584_s2 + $0x10] sm:$0xff] }
 0x257   : > { %v6407_v20 = vmul.f32 %v11948_v24, %v2989_v1  ;;  %4207 = vmatprep.mubr.f32.mxu1 %v17737_v28  ;;  %v12066_v43 = vadd.f32 %v6405_v11, %v11869_v2  ;;  %v2160_v3 = vpop.f32.mrb[154].mxu0 }
 0x258   : > { %v12063_v16 = vadd.f32 %v6406_v18, %v11866_v53  ;;  %v6412_v46 = vmul.f32 %v11924_v26, %v2160_v3  ;;  %v2162_v42 = vpop.f32.mrb[155].mxu0  ;;  %8800 = vmatmul.mubr.msk.f32.gmra.mrb[4].mxu0 %vm1247_vm6, %v9155_v55 }
 0x259   : > { %v12069_v59 = vadd.f32 %v6407_v20, %v11872_v62  ;;  %v2993_v38 = vpop.f32.mrb[154].mxu1  ;;  %v6413_v40 = vmul.f32 %v11936_v54, %v2162_v42  ;;  %3380 = vmatprep.mubr.f32.mxu0 %v17737_v28 }
 0x25a   : > { %v6414_v53 = vmul.f32 %v11928_v33, %v2993_v38  ;;  %v2995_v2 = vpop.f32.mrb[155].mxu1  ;;  %8928 = vmatmul.mubr.msk.f32.gmra.mrb[4].mxu1 %vm1247_vm6, %v9155_v55  ;;  %v12081_v62 = vadd.f32 %v6412_v46, %v11884_v7  ;;  %v9156_v7 = vld [vmem:[%s17584_s2 + $0x18] sm:$0xff] }
 0x25b   : > { %v6415_v15 = vmul.f32 %v11948_v24, %v2995_v2  ;;  %4213 = vmatprep.mubr.f32.mxu1 %v17737_v28  ;;  %v12089_v49 = vadd.f32 %v6413_v40, %v11892_v36  ;;  %v2166_v18 = vpop.f32.mrb[156].mxu0 }
 0x25c   : > { %v12086_v56 = vadd.f32 %v6414_v53, %v11889_v41  ;;  %v6420_v1 = vmul.f32 %v11924_v26, %v2166_v18  ;;  %v2168_v3 = vpop.f32.mrb[157].mxu0  ;;  %8801 = vmatmul.mubr.msk.f32.gmra.mrb[6].mxu0 %vm1247_vm6, %v9156_v7 }
 0x25d   : > { %v12092_v11 = vadd.f32 %v6415_v15, %v11895_v23  ;;  %v2999_v20 = vpop.f32.mrb[156].mxu1  ;;  %v6421_v46 = vmul.f32 %v11936_v54, %v2168_v3  ;;  %3386 = vmatprep.mubr.f32.mxu0 %v17737_v28 }
 0x25e   : > { %v6422_v41 = vmul.f32 %v11928_v33, %v2999_v20  ;;  %v3001_v36 = vpop.f32.mrb[157].mxu1  ;;  %8929 = vmatmul.mubr.msk.f32.gmra.mrb[6].mxu1 %vm1247_vm6, %v9156_v7  ;;  %v12104_v23 = vadd.f32 %v6420_v1, %v11907_v25  ;;  %v9157_v25 = vld [vmem:[%s17584_s2 + $0x20] sm:$0xff]  ;;  %v12136_v20 = vrot.slane %v11702_v19, %v10410_v13 }
 0x25f   : > { %v6423_v38 = vmul.f32 %v11948_v24, %v3001_v36  ;;  %4219 = vmatprep.mubr.f32.mxu1 %v17737_v28  ;;  %v12112_v55 = vadd.f32 %v6421_v46, %v11915_v52  ;;  %v2172_v53 = vpop.f32.mrb[158].mxu0  ;;  %v12128_v52 = vrot.slane %v11693_v50, %v10410_v13 }
 0x260   : > { %v12109_v42 = vadd.f32 %v6422_v41, %v11912_v60  ;;  %v6428_v2 = vmul.f32 %v11924_v26, %v2172_v53  ;;  %v2174_v18 = vpop.f32.mrb[159].mxu0  ;;  %8802 = vmatmul.mubr.msk.f32.gmra.mrb[8].mxu0 %vm1247_vm6, %v9157_v25  ;;  %v12124_v60 = vrot.slane %v11691_v35, %v10410_v13  ;;  %v9158_v53 = vld [vmem:[%s17584_s2 + $0x28] sm:$0xff] }
 0x261   : > { %v12115_v40 = vadd.f32 %v6423_v38, %v11918_v21  ;;  %v3005_v15 = vpop.f32.mrb[158].mxu1  ;;  %v6429_v26 = vmul.f32 %v11936_v54, %v2174_v18  ;;  %3392 = vmatprep.mubr.f32.mxu0 %v17737_v28 }
 0x262   : > { %v6430_v21 = vmul.f32 %v11928_v33, %v3005_v15  ;;  %v3007_v1 = vpop.f32.mrb[159].mxu1  ;;  %8930 = vmatmul.mubr.msk.f32.gmra.mrb[8].mxu1 %vm1247_vm6, %v9157_v25  ;;  %v12139_v3 = vadd.f32 %v6428_v2, %v11942_v31  ;;  %v12145_v33 = vrot.slane %v11709_v58, %v10410_v13 }
 0x263   : > { %v6431_v7 = vmul.f32 %v11948_v24, %v3007_v1  ;;  %4225 = vmatprep.mubr.f32.mxu1 %v17737_v28  ;;  %v12151_v41 = vadd.f32 %v6429_v26, %v11954_v14  ;;  %v2178_v46 = vpop.f32.mrb[160].mxu0 }
 0x264   : > { %v12148_v54 = vadd.f32 %v6430_v21, %v11951_v45  ;;  %v6532_v31 = vmul.f32 %v12124_v60, %v2178_v46  ;;  %v2180_v24 = vpop.f32.mrb[161].mxu0  ;;  %8803 = vmatmul.mubr.msk.f32.gmra.mrb[10].mxu0 %vm1247_vm6, %v9158_v53 }
 0x265   : > { %v12154_v36 = vadd.f32 %v6431_v7, %v11957_v57  ;;  %v3011_v38 = vpop.f32.mrb[160].mxu1  ;;  %v6533_v2 = vmul.f32 %v12136_v20, %v2180_v24  ;;  %3398 = vmatprep.mubr.f32.mxu0 %v17737_v28 }
 0x266   : > { %v6534_v45 = vmul.f32 %v12128_v52, %v3011_v38  ;;  %v3013_v14 = vpop.f32.mrb[161].mxu1  ;;  %8931 = vmatmul.mubr.msk.f32.gmra.mrb[10].mxu1 %vm1247_vm6, %v9158_v53  ;;  %v12166_v57 = vadd.f32 %v6532_v31, %v11969_v32  ;;  %v9159_v32 = vld [vmem:[%s17584_s2 + $0x30] sm:$0xff] }
 0x267   : > { %v6535_v15 = vmul.f32 %v12145_v33, %v3013_v14  ;;  %4231 = vmatprep.mubr.f32.mxu1 %v17737_v28  ;;  %v12174_v25 = vadd.f32 %v6533_v2, %v11977_v8  ;;  %v2184_v21 = vpop.f32.mrb[162].mxu0 }
 0x268   : > { %v12171_v18 = vadd.f32 %v6534_v45, %v11974_v39  ;;  %v6540_v1 = vmul.f32 %v12124_v60, %v2184_v21  ;;  %v2186_v46 = vpop.f32.mrb[163].mxu0  ;;  %8804 = vmatmul.mubr.msk.f32.gmra.mrb[12].mxu0 %vm1247_vm6, %v9159_v32 }
 0x269   : > { %v12177_v26 = vadd.f32 %v6535_v15, %v11980_v22  ;;  %v3017_v7 = vpop.f32.mrb[162].mxu1  ;;  %v6541_v31 = vmul.f32 %v12136_v20, %v2186_v46  ;;  %3404 = vmatprep.mubr.f32.mxu0 %v17737_v28 }
 0x26a   : > { %v6542_v39 = vmul.f32 %v12128_v52, %v3017_v7  ;;  %v3019_v8 = vpop.f32.mrb[163].mxu1  ;;  %8932 = vmatmul.mubr.msk.f32.gmra.mrb[12].mxu1 %vm1247_vm6, %v9159_v32  ;;  %v12189_v22 = vadd.f32 %v6540_v1, %v11992_v12  ;;  %v9160_v12 = vld [vmem:[%s17584_s2 + $0x38] sm:$0xff] }
 0x26b   : > { %v6543_v38 = vmul.f32 %v12145_v33, %v3019_v8  ;;  %4237 = vmatprep.mubr.f32.mxu1 %v17737_v28  ;;  %v12197_v53 = vadd.f32 %v6541_v31, %v12000_v34  ;;  %v2190_v45 = vpop.f32.mrb[164].mxu0 }
 0x26c   : > { %v12194_v24 = vadd.f32 %v6542_v39, %v11997_v51  ;;  %v6548_v14 = vmul.f32 %v12124_v60, %v2190_v45  ;;  %v2192_v21 = vpop.f32.mrb[165].mxu0  ;;  %8805 = vmatmul.mubr.msk.f32.gmra.mrb[14].mxu0 %vm1247_vm6, %v9160_v12 }
 0x26d   : > { %v12200_v2 = vadd.f32 %v6543_v38, %v12003_v5  ;;  %v3023_v15 = vpop.f32.mrb[164].mxu1  ;;  %v6549_v1 = vmul.f32 %v12136_v20, %v2192_v21  ;;  %3410 = vmatprep.mubr.f32.mxu0 %v17737_v28 }
 0x26e   : > { %v6550_v51 = vmul.f32 %v12128_v52, %v3023_v15  ;;  %v3025_v34 = vpop.f32.mrb[165].mxu1  ;;  %8933 = vmatmul.mubr.msk.f32.gmra.mrb[14].mxu1 %vm1247_vm6, %v9160_v12  ;;  %v12212_v5 = vadd.f32 %v6548_v14, %v12012_v6  ;;  %v9161_v6 = vld [vmem:[%s17584_s2 + $0x40] sm:$0xff] }
 0x26f   : > { %v6551_v7 = vmul.f32 %v12145_v33, %v3025_v34  ;;  %4243 = vmatprep.mubr.f32.mxu1 %v17737_v28  ;;  %v12220_v32 = vadd.f32 %v6549_v1, %v12020_v17  ;;  %v2196_v39 = vpop.f32.mrb[166].mxu0 }
 0x270   : > { %v12217_v46 = vadd.f32 %v6550_v51, %v12017_v27  ;;  %v6556_v8 = vmul.f32 %v12124_v60, %v2196_v39  ;;  %v2198_v45 = vpop.f32.mrb[167].mxu0  ;;  %8806 = vmatmul.mubr.msk.f32.gmra.mrb[16].mxu0 %vm1247_vm6, %v9161_v6  ;;  %v9162_v39 = vld [vmem:[%s17584_s2 + $0x48] sm:$0xff] }
 0x271   : > { %v12223_v31 = vadd.f32 %v6551_v7, %v12023_v44  ;;  %v3029_v38 = vpop.f32.mrb[166].mxu1  ;;  %v6557_v14 = vmul.f32 %v12136_v20, %v2198_v45  ;;  %3416 = vmatprep.mubr.f32.mxu0 %v17737_v28 }
 0x272   : > { %v6558_v27 = vmul.f32 %v12128_v52, %v3029_v38  ;;  %v3031_v17 = vpop.f32.mrb[167].mxu1  ;;  %8934 = vmatmul.mubr.msk.f32.gmra.mrb[16].mxu1 %vm1247_vm6, %v9161_v6  ;;  %v12235_v44 = vadd.f32 %v6556_v8, %v12035_v37 }
 0x273   : > { %v6559_v15 = vmul.f32 %v12145_v33, %v3031_v17  ;;  %4249 = vmatprep.mubr.f32.mxu1 %v17737_v28  ;;  %v12243_v12 = vadd.f32 %v6557_v14, %v12043_v61  ;;  %v2202_v51 = vpop.f32.mrb[168].mxu0 }
 0x274   : > { %v12240_v21 = vadd.f32 %v6558_v27, %v12040_v0  ;;  %v6564_v34 = vmul.f32 %v12124_v60, %v2202_v51  ;;  %v2204_v37 = vpop.f32.mrb[169].mxu0  ;;  %8807 = vmatmul.mubr.msk.f32.gmra.mrb[18].mxu0 %vm1247_vm6, %v9162_v39  ;;  %v9163_v51 = vld [vmem:[%s17584_s2 + $0x50] sm:$0xff] }
 0x275   : > { %v12246_v1 = vadd.f32 %v6559_v15, %v12046_v4  ;;  %v3035_v7 = vpop.f32.mrb[168].mxu1  ;;  %v6565_v61 = vmul.f32 %v12136_v20, %v2204_v37  ;;  %3422 = vmatprep.mubr.f32.mxu0 %v17737_v28 }
 0x276   : > { %v6566_v0 = vmul.f32 %v12128_v52, %v3035_v7  ;;  %v3037_v8 = vpop.f32.mrb[169].mxu1  ;;  %8935 = vmatmul.mubr.msk.f32.gmra.mrb[18].mxu1 %vm1247_vm6, %v9162_v39  ;;  %v12258_v4 = vadd.f32 %v6564_v34, %v12058_v29 }
 0x277   : > { %v6567_v38 = vmul.f32 %v12145_v33, %v3037_v8  ;;  %4255 = vmatprep.mubr.f32.mxu1 %v17737_v28  ;;  %v12269_v6 = vadd.f32 %v6565_v61, %v12066_v43  ;;  %v2208_v27 = vpop.f32.mrb[170].mxu0 }
 0x278   : > { %v12266_v45 = vadd.f32 %v6566_v0, %v12063_v16  ;;  %v6572_v17 = vmul.f32 %v12124_v60, %v2208_v27  ;;  %v2210_v15 = vpop.f32.mrb[171].mxu0  ;;  %8808 = vmatmul.mubr.msk.f32.gmra.mrb[20].mxu0 %vm1247_vm6, %v9163_v51  ;;  %v9164_v27 = vld [vmem:[%s17584_s2 + $0x58] sm:$0xff] }
 0x279   : > { %v12272_v14 = vadd.f32 %v6567_v38, %v12069_v59  ;;  %v3041_v29 = vpop.f32.mrb[170].mxu1  ;;  %v6573_v34 = vmul.f32 %v12136_v20, %v2210_v15  ;;  %3428 = vmatprep.mubr.f32.mxu0 %v17737_v28  ;;  %v163_v15 = vld [vmem:[%s17583_s1] ss:$4 sm:$0x3] }
 0x27a   : > { %v6574_v16 = vmul.f32 %v12128_v52, %v3041_v29  ;;  %v3043_v43 = vpop.f32.mrb[171].mxu1  ;;  %8936 = vmatmul.mubr.msk.f32.gmra.mrb[20].mxu1 %vm1247_vm6, %v9163_v51  ;;  %v12284_v59 = vadd.f32 %v6572_v17, %v12081_v62  ;;  %v173_v51 = vstv %s12263_s7  ;;  %s649_s7 = sadd.s32 18, %s9458_s30  ;;  %s16455_s30 = sld [smem:[#allocation2 + %s882_s5]] }
 0x27b   : > { %v6575_v7 = vmul.f32 %v12145_v33, %v3043_v43  ;;  %4261 = vmatprep.mubr.f32.mxu1 %v17737_v28  ;;  %v12292_v39 = vadd.f32 %v6573_v34, %v12089_v49  ;;  %v2214_v0 = vpop.f32.mrb[172].mxu0  ;;  %s13169_s10 = sld [smem:[#allocation2 + %s649_s7]] }
 0x27c   : > { %v12289_v37 = vadd.f32 %v6574_v16, %v12086_v56  ;;  %v6580_v8 = vmul.f32 %v12124_v60, %v2214_v0  ;;  %v2216_v62 = vpop.f32.mrb[173].mxu0  ;;  %8809 = vmatmul.mubr.msk.f32.gmra.mrb[22].mxu0 %vm1247_vm6, %v9164_v27 }
 0x27d   : > { %v12295_v61 = vadd.f32 %v6575_v7, %v12092_v11  ;;  %v3047_v38 = vpop.f32.mrb[172].mxu1  ;;  %v6581_v49 = vmul.f32 %v12136_v20, %v2216_v62  ;;  %3434 = vmatprep.mubr.f32.mxu0 %v17737_v28  ;;  %v12342_v62 = vrot.slane %v11702_v19, %v10629_v10 }
 0x27e   : > { %v6582_v56 = vmul.f32 %v12128_v52, %v3047_v38  ;;  %v3049_v17 = vpop.f32.mrb[173].mxu1  ;;  %8937 = vmatmul.mubr.msk.f32.gmra.mrb[22].mxu1 %vm1247_vm6, %v9164_v27  ;;  %v12308_v11 = vadd.f32 %v6580_v8, %v12104_v23  ;;  %v12324_v23 = vrot.slane %v11691_v35, %v10629_v10 }
 0x27f   : > { %v6583_v29 = vmul.f32 %v12145_v33, %v3049_v17  ;;  %4267 = vmatprep.mubr.f32.mxu1 %v17737_v28  ;;  %v12320_v34 = vadd.f32 %v6581_v49, %v12112_v55  ;;  %v2220_v43 = vpop.f32.mrb[174].mxu0  ;;  %v12338_v55 = vrot.slane %v11693_v50, %v10629_v10 }
 0x280   : > { %v12317_v16 = vadd.f32 %v6582_v56, %v12109_v42  ;;  %v6588_v0 = vmul.f32 %v12124_v60, %v2220_v43  ;;  %v2222_v38 = vpop.f32.mrb[175].mxu0  ;;  %v9165_v42 = vld [vmem:[%s17584_s2 + $0x60] sm:$0xff]  ;;  %v12348_v56 = vadd.f32 %v173_v51, %v163_v15 }
 0x281   : > { %v12329_v7 = vadd.f32 %v6583_v29, %v12115_v40  ;;  %v3053_v8 = vpop.f32.mrb[174].mxu1  ;;  %8810 = vmatmul.mubr.msk.f32.gmra.mrb[24].mxu0 %vm1247_vm6, %v9165_v42  ;;  %v6589_v60 = vmul.f32 %v12136_v20, %v2222_v38  ;;  %v12357_v29 = vrot.slane %v11709_v58, %v10629_v10 }
 0x282   : > { %v6590_v40 = vmul.f32 %v12128_v52, %v3053_v8  ;;  %v3055_v27 = vpop.f32.mrb[175].mxu1  ;;  %8938 = vmatmul.mubr.msk.f32.gmra.mrb[24].mxu1 %vm1247_vm6, %v9165_v42  ;;  %3440 = vmatprep.mubr.f32.mxu0 %v17737_v28  ;;  %v12351_v49 = vadd.f32 %v6588_v0, %v12139_v3  ;;  %v9166_v8 = vld [vmem:[%s17584_s2 + $0x68] sm:$0xff] }
 0x283   : > { %v6591_v17 = vmul.f32 %v12145_v33, %v3055_v27  ;;  %4273 = vmatprep.mubr.f32.mxu1 %v17737_v28  ;;  %v12363_v20 = vadd.f32 %v6589_v60, %v12151_v41  ;;  %v2226_v43 = vpop.f32.mrb[176].mxu0 }
 0x284   : > { %v12360_v52 = vadd.f32 %v6590_v40, %v12148_v54  ;;  %v6692_v3 = vmul.f32 %v12324_v23, %v2226_v43  ;;  %v2228_v33 = vpop.f32.mrb[177].mxu0  ;;  %v410_v43 = vstv %s12326_s24  ;;  %s14217_s24 = sshll.u32 %s160_s17, 5 }
 0x285   : > { %v12366_v51 = vadd.f32 %v6591_v17, %v12154_v36  ;;  %v3059_v0 = vpop.f32.mrb[176].mxu1  ;;  %8811 = vmatmul.mubr.msk.f32.gmra.mrb[26].mxu0 %vm1247_vm6, %v9166_v8  ;;  %v6693_v41 = vmul.f32 %v12342_v62, %v2228_v33  ;;  %v17622_v36 = vfloor.f32 %v12348_v56  ;;  %s14267_s29 = scalar_lea.vmem [#allocation5], %s14217_s24  ;;  %s9368_s24 = smov [#allocation5]  }
 0x286   : > { %v6694_v54 = vmul.f32 %v12338_v55, %v3059_v0  ;;  %v3061_v38 = vpop.f32.mrb[177].mxu1  ;;  %8939 = vmatmul.mubr.msk.f32.gmra.mrb[26].mxu1 %vm1247_vm6, %v9166_v8  ;;  %3446 = vmatprep.mubr.f32.mxu0 %v17737_v28  ;;  %v12379_v42 = vadd.f32 %v6692_v3, %v12166_v57  ;;  %v9167_v3 = vld [vmem:[%s17584_s2 + $0x70] sm:$0xff]  ;;  %s8447_s9 = sshll.u32 %s14267_s29, 4  ;;  %s9302_s25 = sshll.u32 %s9368_s24, 4  ;;  %s17535_s9 = int_to_ptr.vmem [resolvable:$true] %s8447_s9  ;;  %s9303_s25 = int_to_ptr.vmem [resolvable:$false] %s9302_s25 }
 0x287   : > { %v6695_v40 = vmul.f32 %v12357_v29, %v3061_v38  ;;  %4279 = vmatprep.mubr.f32.mxu1 %v17737_v28  ;;  %v12387_v27 = vadd.f32 %v6693_v41, %v12174_v25  ;;  %v2232_v17 = vpop.f32.mrb[178].mxu0  ;;  %s9298_s20 = scalar_lea.vmem %s17535_s9, 512  ;;  %s9304_s26 = scalar_lea.vmem %s9303_s25, 1024 }
 0x288   : > { %v12384_v60 = vadd.f32 %v6694_v54, %v12171_v18  ;;  %v6700_v33 = vmul.f32 %v12324_v23, %v2232_v17  ;;  %v2234_v57 = vpop.f32.mrb[179].mxu0  ;;  %p9299_p9 = scmp.ne.s32.totalorder %s17535_s9, %s9298_s20  ;;  %p9305_p12 = scmp.lt.s32.totalorder %s17535_s9, %s9303_s25 }
 0x289   : > { %v12391_v0 = vadd.f32 %v6695_v40, %v12177_v26  ;;  %v3065_v8 = vpop.f32.mrb[178].mxu1  ;;  %8812 = vmatmul.mubr.msk.f32.gmra.mrb[28].mxu0 %vm1247_vm6, %v9167_v3  ;;  %v6701_v25 = vmul.f32 %v12342_v62, %v2234_v57  ;;  %v9076_v26 = vtrunc.f32 %v17622_v36  ;;  %v12409_v40 = vadd.f32 %v410_v43, %v163_v15  ;;  %p9306_p13 = scmp.lt.s32.totalorder %s9304_s26, %s9298_s20 }
 0x28a   : > { %v6702_v18 = vmul.f32 %v12338_v55, %v3065_v8  ;;  %v3067_v54 = vpop.f32.mrb[179].mxu1  ;;  %8940 = vmatmul.mubr.msk.f32.gmra.mrb[28].mxu1 %vm1247_vm6, %v9167_v3  ;;  %3452 = vmatprep.mubr.f32.mxu0 %v17737_v28  ;;  %v12405_v41 = vadd.f32 %v6700_v33, %v12189_v22  ;;  %p9300_p10 = pnand %p9299_p9, %p9429_p5 }
 0x28b   : > { %v6703_v38 = vmul.f32 %v12357_v29, %v3067_v54  ;;  %4285 = vmatprep.mubr.f32.mxu1 %v17737_v28  ;;  %v12415_v8 = vadd.f32 %v6701_v25, %v12197_v53  ;;  %v2238_v57 = vpop.f32.mrb[180].mxu0  ;;  %v9168_v54 = vld [vmem:[%s17584_s2 + $0x78] sm:$0xff]  ;;  %v17623_v25 = vfloor.f32 %v12409_v40  ;;  %p9307_p0 = por %p9306_p13, %p9305_p12 }
 0x28c   : > { %v12412_v17 = vadd.f32 %v6702_v18, %v12194_v24  ;;  %v6708_v36 = vmul.f32 %v12324_v23, %v2238_v57  ;;  %v2240_v33 = vpop.f32.mrb[181].mxu0  ;;  %p9301_p11 = pneg %p9300_p10 }
 0x28d   : > { %v12418_v3 = vadd.f32 %v6703_v38, %v12200_v2  ;;  %v3071_v22 = vpop.f32.mrb[180].mxu1  ;;  %8813 = vmatmul.mubr.msk.f32.gmra.mrb[30].mxu0 %vm1247_vm6, %v9168_v54  ;;  %v6709_v15 = vmul.f32 %v12342_v62, %v2240_v33  ;;  %v12429_v2 = vcvt.f32.s32 %v9076_v26 }
 0x28e   : > { %v6710_v24 = vmul.f32 %v12338_v55, %v3071_v22  ;;  %v3073_v53 = vpop.f32.mrb[181].mxu1  ;;  %8941 = vmatmul.mubr.msk.f32.gmra.mrb[30].mxu1 %vm1247_vm6, %v9168_v54  ;;  %3458 = vmatprep.mubr.f32.mxu0 %v17737_v28  ;;  %v12432_v43 = vadd.f32 %v6708_v36, %v12212_v5  ;;  %v9169_v54 = vld [vmem:[%s17584_s2 + $0x80] sm:$0xff]  ;;  %p9308_p1 = pnand %p9307_p0, %p9301_p11 }
 0x28f   : > { %v6711_v18 = vmul.f32 %v12357_v29, %v3073_v53  ;;  %4291 = vmatprep.mubr.f32.mxu1 %v17737_v28  ;;  %v12441_v57 = vadd.f32 %v6709_v15, %v12220_v32  ;;  %v2244_v22 = vpop.f32.mrb[182].mxu0  ;;  %vm187_vm9 = vcmp.ge.s32.totalorder %v12429_v2, 0  ;;  %vm188_vm10 = vcmp.lt.s32.totalorder %v12429_v2, 16 }
 0x290   : > { %v12438_v38 = vadd.f32 %v6710_v24, %v12217_v46  ;;  %v6716_v26 = vmul.f32 %v12324_v23, %v2244_v22  ;;  %v2246_v36 = vpop.f32.mrb[183].mxu0  ;;  %vm12499_vm13 = vmand %vm187_vm9, %vm188_vm10 }
 0x291   : > { %v12444_v33 = vadd.f32 %v6711_v18, %v12223_v31  ;;  %v3077_v5 = vpop.f32.mrb[182].mxu1  ;;  %8814 = vmatmul.mubr.msk.f32.gmra.mrb[32].mxu0 %vm1247_vm6, %v9169_v54  ;;  %v6717_v24 = vmul.f32 %v12342_v62, %v2246_v36  ;;  %v12456_v31 = vadd.s32 1, %v12429_v2  ;;  %v9082_v18 = vtrunc.f32 %v17623_v25 }
 0x292   : > { %v6718_v46 = vmul.f32 %v12338_v55, %v3077_v5  ;;  %v3079_v32 = vpop.f32.mrb[183].mxu1  ;;  %8942 = vmatmul.mubr.msk.f32.gmra.mrb[32].mxu1 %vm1247_vm6, %v9169_v54  ;;  %3464 = vmatprep.mubr.f32.mxu0 %v17737_v28  ;;  %v12459_v15 = vadd.f32 %v6716_v26, %v12235_v44  ;;  %v8518_v13 = vsel %vm12499_vm13, 1.0, %v17737_v28 }
 0x293   : > { %v6719_v53 = vmul.f32 %v12357_v29, %v3079_v32  ;;  %4297 = vmatprep.mubr.f32.mxu1 %v17737_v28  ;;  %v12469_v5 = vadd.f32 %v6717_v24, %v12243_v12  ;;  %v2250_v36 = vpop.f32.mrb[184].mxu0  ;;  %v17762_v12 = vfloor.f32 %v12348_v56  ;;  %vm194_vm11 = vcmp.ge.s32.totalorder %v12456_v31, 0 }
 0x294   : > { %v12466_v22 = vadd.f32 %v6718_v46, %v12240_v21  ;;  %v6724_v26 = vmul.f32 %v12324_v23, %v2250_v36  ;;  %v2252_v32 = vpop.f32.mrb[185].mxu0  ;;  %v9170_v21 = vld [vmem:[%s17584_s2 + $0x88] sm:$0xff]  ;;  %vm195_vm12 = vcmp.lt.s32.totalorder %v12456_v31, 16 }
 0x295   : > { %v12474_v44 = vadd.f32 %v6719_v53, %v12246_v1  ;;  %v3083_v54 = vpop.f32.mrb[184].mxu1  ;;  %8815 = vmatmul.mubr.msk.f32.gmra.mrb[34].mxu0 %vm1247_vm6, %v9170_v21  ;;  %v184_v46 = vsub.f32 %v12348_v56, %v17762_v12  ;;  %v6725_v25 = vmul.f32 %v12342_v62, %v2252_v32  ;;  %vm12531_vm14 = vmand %vm194_vm11, %vm195_vm12 }
 0x296   : > { %v6726_v24 = vmul.f32 %v12338_v55, %v3083_v54  ;;  %v3085_v1 = vpop.f32.mrb[185].mxu1  ;;  %8943 = vmatmul.mubr.msk.f32.gmra.mrb[34].mxu1 %vm1247_vm6, %v9170_v21  ;;  %3470 = vmatprep.mubr.f32.mxu0 %v17737_v28  ;;  %v12491_v53 = vadd.f32 %v6724_v26, %v12258_v4  ;;  %v12511_v26 = vrot.slane %v11691_v35, %v10832_v63  ;;  %v12513_v21 = vcvt.f32.s32 %v9082_v18 }
 0x297   : > { %v6727_v36 = vmul.f32 %v12357_v29, %v3085_v1  ;;  %4303 = vmatprep.mubr.f32.mxu1 %v17737_v28  ;;  %v12507_v32 = vadd.f32 %v6725_v25, %v12269_v6  ;;  %v2256_v4 = vpop.f32.mrb[186].mxu0  ;;  %v12525_v6 = vrot.slane %v11693_v50, %v10832_v63  ;;  %v186_v25 = vsub.f32 1.0, %v184_v46 }
 0x298   : > { %v12504_v54 = vadd.f32 %v6726_v24, %v12266_v45  ;;  %v6732_v1 = vmul.f32 %v12324_v23, %v2256_v4  ;;  %v2258_v10 = vpop.f32.mrb[187].mxu0  ;;  %v9171_v45 = vld [vmem:[%s17584_s2 + $0x90] sm:$0xff]  ;;  %v12541_v4 = vrot.slane %v11702_v19, %v10832_v63  ;;  %vm424_vm15 = vcmp.ge.s32.totalorder %v12513_v21, 0 }
 0x299   : > { %17766 = vst [vmem:[#allocation21_spill] sm:$0xff] %v12507_v32  ;;  %v12516_v12 = vadd.f32 %v6727_v36, %v12272_v14  ;;  %v3089_v9 = vpop.f32.mrb[186].mxu1  ;;  %8816 = vmatmul.mubr.msk.f32.gmra.mrb[36].mxu0 %vm1247_vm6, %v9171_v45  ;;  %v6733_v24 = vmul.f32 %v12342_v62, %v2258_v10  ;;  %v12553_v10 = vrot.slane %v11709_v58, %v10832_v63  ;;  %v17772_v14 = vfloor.f32 %v12409_v40 }
 0x29a   : > { %17765 = vst [vmem:[#allocation12_spill] sm:$0xff] %v12504_v54  ;;  %v6734_v18 = vmul.f32 %v12338_v55, %v3089_v9  ;;  %v3091_v36 = vpop.f32.mrb[187].mxu1  ;;  %8944 = vmatmul.mubr.msk.f32.gmra.mrb[36].mxu1 %vm1247_vm6, %v9171_v45  ;;  %3476 = vmatprep.mubr.f32.mxu0 %v17737_v28  ;;  %v12557_v45 = vrot.slane %v11691_v35, %v11035_v47  ;;  %vm425_vm0 = vcmp.lt.s32.totalorder %v12513_v21, 16 }
 0x29b   : > { %17767 = vst [vmem:[#allocation22_spill] sm:$0xff] %v12516_v12  ;;  %v12547_v12 = vadd.f32 %v6732_v1, %v12284_v59  ;;  %v6735_v9 = vmul.f32 %v12357_v29, %v3091_v36  ;;  %4309 = vmatprep.mubr.f32.mxu1 %v17737_v28  ;;  %v12563_v56 = vadd.f32 %v6733_v24, %v12292_v39  ;;  %v2262_v59 = vpop.f32.mrb[188].mxu0  ;;  %v8519_v1 = vsel %vm12531_vm14, 1.0, %v17737_v28  ;;  %vm12645_vm3 = vmand %vm424_vm15, %vm425_vm0 }
 0x29c   : > { %17771 = vst [vmem:[#allocation17_spill] sm:$0xff] %v12557_v45  ;;  %v12560_v32 = vadd.f32 %v6734_v18, %v12289_v37  ;;  %v12569_v36 = vadd.s32 1, %v12513_v21  ;;  %v2264_v54 = vpop.f32.mrb[189].mxu0  ;;  %v9172_v37 = vld [vmem:[%s17584_s2 + $0x98] sm:$0xff]  ;;  %v12579_v39 = vmul.f32 %v8518_v13, %v186_v25  ;;  %v12584_v18 = vsub.f32 %v12409_v40, %v17772_v14 }
 0x29d   : > { %17770 = vst [vmem:[#allocation15_spill] sm:$0xff] %v12547_v12  ;;  %v12572_v63 = vadd.f32 %v6735_v9, %v12295_v61  ;;  %v6740_v12 = vmul.f32 %v12324_v23, %v2262_v59  ;;  %v3095_v45 = vpop.f32.mrb[188].mxu1  ;;  %8817 = vmatmul.mubr.msk.f32.gmra.mrb[38].mxu0 %vm1247_vm6, %v9172_v37  ;;  %v6741_v24 = vmul.f32 %v12342_v62, %v2264_v54 }
 0x29e   : > { %v6742_v61 = vmul.f32 %v12338_v55, %v3095_v45  ;;  %v3097_v9 = vpop.f32.mrb[189].mxu1  ;;  %8945 = vmatmul.mubr.msk.f32.gmra.mrb[38].mxu1 %vm1247_vm6, %v9172_v37  ;;  %3482 = vmatprep.mubr.f32.mxu0 %v17737_v28  ;;  %v12592_v59 = vrot.slane %v12429_v2, %v17760_v48  ;;  %v12599_v40 = vmul.f32 %v8519_v1, %v184_v46  ;;  %vm431_vm1 = vcmp.ge.s32.totalorder %v12569_v36, 0 }
 0x29f   : > { %v12595_v13 = vadd.f32 %v6740_v12, %v12308_v11  ;;  %v6743_v25 = vmul.f32 %v12357_v29, %v3097_v9  ;;  %4315 = vmatprep.mubr.f32.mxu1 %v17737_v28  ;;  %v12603_v54 = vrot.slane %v12456_v31, %v17760_v48  ;;  %v12609_v37 = vadd.f32 %v6741_v24, %v12320_v34  ;;  %v2268_v14 = vpop.f32.mrb[190].mxu0 }
 0x2a0   : > { %17773 = vst [vmem:[#allocation13_spill] sm:$0xff] %v12592_v59  ;;  %v12606_v45 = vadd.f32 %v6742_v61, %v12317_v16  ;;  %v6748_v46 = vmul.f32 %v12324_v23, %v2268_v14  ;;  %v2270_v1 = vpop.f32.mrb[191].mxu0  ;;  %v9173_v16 = vld [vmem:[%s17584_s2 + $0xa0] sm:$0xff]  ;;  %vm432_vm2 = vcmp.lt.s32.totalorder %v12569_v36, 16  ;;  %v12629_v23 = vrot.slane %v11693_v50, %v11035_v47 }
 0x2a1   : > { %17774 = vst [vmem:[#allocation14_spill] sm:$0xff] %v12603_v54  ;;  %v12614_v11 = vadd.f32 %v6743_v25, %v12329_v7  ;;  %v3101_v12 = vpop.f32.mrb[190].mxu1  ;;  %8818 = vmatmul.mubr.msk.f32.gmra.mrb[40].mxu0 %vm1247_vm6, %v9173_v16  ;;  %v6749_v61 = vmul.f32 %v12342_v62, %v2270_v1  ;;  %v423_v62 = vsub.f32 1.0, %v12584_v18  ;;  %vm12667_vm4 = vmand %vm431_vm1, %vm432_vm2 }
 0x2a2   : > { %v6750_v34 = vmul.f32 %v12338_v55, %v3101_v12  ;;  %v3103_v7 = vpop.f32.mrb[191].mxu1  ;;  %8946 = vmatmul.mubr.msk.f32.gmra.mrb[40].mxu1 %vm1247_vm6, %v9173_v16  ;;  %3488 = vmatprep.mubr.f32.mxu0 %v17737_v28  ;;  %17775 = vst [vmem:[#allocation19_spill] sm:$0xff] %v12629_v23  ;;  %v12632_v24 = vadd.f32 %v6748_v46, %v12351_v49  ;;  %v8524_v23 = vsel %vm12645_vm3, 1.0, %v17737_v28 }
 0x2a3   : > { %v6751_v9 = vmul.f32 %v12357_v29, %v3103_v7  ;;  %4321 = vmatprep.mubr.f32.mxu1 %v17737_v28  ;;  %v12638_v55 = vrot.slane %v11702_v19, %v11035_v47  ;;  %v12653_v29 = vadd.f32 %v6749_v61, %v12363_v20  ;;  %v2274_v14 = vpop.f32.mrb[192].mxu0  ;;  %v12657_v46 = vrot.slane %v12579_v39, %v17760_v48  ;;  %v9174_v61 = vld [vmem:[%s17584_s2 + $0xa8] sm:$0xff]  ;;  %v17784_v7 = vld [vmem:[#allocation8_spill] sm:$0xff] }
 0x2a4   : > { %v12650_v49 = vadd.f32 %v6750_v34, %v12360_v52  ;;  %v12661_v12 = vrot.slane %v12599_v40, %v17760_v48  ;;  %v6852_v20 = vmul.f32 %v12511_v26, %v2274_v14  ;;  %v2276_v34 = vpop.f32.mrb[193].mxu0  ;;  %vm208_vm5 = vcmp.eq.s32.totalorder %v17784_v7, %v12592_v59 }
 0x2a5   : > { %17776 = vst [vmem:[#allocation20_spill] sm:$0xff] %v12638_v55  ;;  %17779 = vst [vmem:[#allocation16_spill] sm:$0xff] %v12657_v46  ;;  %v12672_v52 = vadd.f32 %v6751_v9, %v12366_v51  ;;  %v3107_v16 = vpop.f32.mrb[192].mxu1  ;;  %8819 = vmatmul.mubr.msk.f32.gmra.mrb[42].mxu0 %vm1247_vm6, %v9174_v61  ;;  %vm235_vm7 = vcmp.eq.s32.totalorder %v17784_v7, %v12603_v54  ;;  %v6853_v51 = vmul.f32 %v12541_v4, %v2276_v34  ;;  %v17786_v34 = vld [vmem:[#allocation31_spill] sm:$0xff] }
 0x2a6   : > { %17780 = vst [vmem:[#allocation18_spill] sm:$0xff] %v12661_v12  ;;  %v6854_v55 = vmul.f32 %v12525_v6, %v3107_v16  ;;  %v3109_v9 = vpop.f32.mrb[193].mxu1  ;;  %8947 = vmatmul.mubr.msk.f32.gmra.mrb[42].mxu1 %vm1247_vm6, %v9174_v61  ;;  %3494 = vmatprep.mubr.f32.mxu0 %v17737_v28  ;;  %v12689_v14 = vrot.slane %v11709_v58, %v11035_v47  ;;  %v8525_v47 = vsel %vm12667_vm4, 1.0, %v17737_v28 }
 0x2a7   : > { %17783 = vst [vmem:[#allocation23_spill] sm:$0xff] %v12672_v52  ;;  %v12695_v52 = vadd.f32 %v6852_v20, %v12379_v42  ;;  %v6855_v16 = vmul.f32 %v12553_v10, %v3109_v9  ;;  %4327 = vmatprep.mubr.f32.mxu1 %v17737_v28  ;;  %v12701_v61 = vrot.slane %v11691_v35, %v17786_v34  ;;  %v2280_v42 = vpop.f32.mrb[194].mxu0  ;;  %v223_v20 = vsel %vm208_vm5, %v12657_v46, 0.0 }
 0x2a8   : > { %17785 = vst [vmem:[#allocation24_spill] sm:$0xff] %v12689_v14  ;;  %v12707_v14 = vadd.f32 %v6854_v55, %v12384_v60  ;;  %v12710_v25 = vadd.f32 %v6853_v51, %v12387_v27  ;;  %v250_v9 = vsel %vm235_vm7, %v12661_v12, 0.0  ;;  %v6860_v60 = vmul.f32 %v12511_v26, %v2280_v42  ;;  %v9175_v27 = vld [vmem:[%s17584_s2 + $0xb0] sm:$0xff] }
 0x2a9   : > { %17787 = vst [vmem:[#allocation25_spill] sm:$0xff] %v12701_v61  ;;  %v12721_v1 = vadd.f32 %v6855_v16, %v12391_v0  ;;  %v3113_v55 = vpop.f32.mrb[194].mxu1  ;;  %v2282_v61 = vpop.f32.mrb[195].mxu0  ;;  %8820 = vmatmul.mubr.msk.f32.gmra.mrb[44].mxu0 %vm1247_vm6, %v9175_v27  ;;  %v12728_v51 = vmul.f32 %v8524_v23, %v423_v62  ;;  %v12732_v46 = vrot.slane %v12513_v21, %v17760_v48 }
 0x2aa   : > { %v6862_v12 = vmul.f32 %v12525_v6, %v3113_v55  ;;  %v6861_v0 = vmul.f32 %v12541_v4, %v2282_v61  ;;  %v3115_v16 = vpop.f32.mrb[195].mxu1  ;;  %8948 = vmatmul.mubr.msk.f32.gmra.mrb[44].mxu1 %vm1247_vm6, %v9175_v27  ;;  %3500 = vmatprep.mubr.f32.mxu0 %v17737_v28  ;;  %v12739_v42 = vmul.f32 %v8525_v47, %v12584_v18 }
 0x2ab   : > { %v12742_v54 = vadd.f32 %v6860_v60, %v12405_v41  ;;  %v6863_v23 = vmul.f32 %v12553_v10, %v3115_v16  ;;  %4333 = vmatprep.mubr.f32.mxu1 %v17737_v28  ;;  %v12748_v62 = vrot.slane %v11693_v50, %v17786_v34  ;;  %v12752_v61 = vrot.slane %v12569_v36, %v17760_v48  ;;  %v2286_v41 = vpop.f32.mrb[196].mxu0 }
 0x2ac   : > { %v12755_v55 = vadd.f32 %v6862_v12, %v12412_v17  ;;  %v12758_v47 = vadd.f32 %v6861_v0, %v12415_v8  ;;  %v12762_v18 = vrot.slane %v11702_v19, %v17786_v34  ;;  %v12764_v60 = vadd.f32 %v250_v9, %v223_v20  ;;  %v2288_v59 = vpop.f32.mrb[197].mxu0  ;;  %v9176_v17 = vld [vmem:[%s17584_s2 + $0xb8] sm:$0xff] }
 0x2ad   : > { %17788 = vst [vmem:[#allocation26_spill] sm:$0xff] %v12748_v62  ;;  %v12767_v27 = vadd.f32 %v6863_v23, %v12418_v3  ;;  %v6868_v16 = vmul.f32 %v12511_v26, %v2286_v41  ;;  %v3119_v62 = vpop.f32.mrb[196].mxu1  ;;  %8821 = vmatmul.mubr.msk.f32.gmra.mrb[46].mxu0 %vm1247_vm6, %v9176_v17  ;;  %vm445_vm8 = vcmp.eq.s32.totalorder %v17784_v7, %v12732_v46 }
 0x2ae   : > { %17789 = vst [vmem:[#allocation33_spill] sm:$0xff] %v12762_v18  ;;  %17790 = vst [vmem:[#allocation34_spill] sm:$0xff] %v12764_v60  ;;  %v12778_v8 = vrot.slane %v12728_v51, %v17760_v48  ;;  %v6870_v3 = vmul.f32 %v12525_v6, %v3119_v62  ;;  %v6869_v12 = vmul.f32 %v12541_v4, %v2288_v59  ;;  %v3121_v20 = vpop.f32.mrb[197].mxu1  ;;  %8949 = vmatmul.mubr.msk.f32.gmra.mrb[46].mxu1 %vm1247_vm6, %v9176_v17 }
 0x2af   : > { %3506 = vmatprep.mubr.f32.mxu0 %v17737_v28  ;;  %v12786_v9 = vrot.slane %v12739_v42, %v17760_v48  ;;  %v12789_v0 = vadd.f32 %v6868_v16, %v12432_v43  ;;  %v6871_v23 = vmul.f32 %v12553_v10, %v3121_v20  ;;  %4339 = vmatprep.mubr.f32.mxu1 %v17737_v28  ;;  %v2292_v17 = vpop.f32.mrb[198].mxu0 }
 0x2b0   : > { %17791 = vst [vmem:[#allocation35_spill] sm:$0xff] %v12778_v8  ;;  %vm472_vm9 = vcmp.eq.s32.totalorder %v17784_v7, %v12752_v61  ;;  %v12797_v59 = vrot.slane %v12429_v2, %v17761_v30  ;;  %v12800_v62 = vadd.f32 %v6870_v3, %v12438_v38  ;;  %v12803_v41 = vadd.f32 %v6869_v12, %v12441_v57  ;;  %v2294_v38 = vpop.f32.mrb[199].mxu0  ;;  %v9177_v57 = vld [vmem:[%s17584_s2 + $0xc0] sm:$0xff] }
 0x2b1   : > { %17792 = vst [vmem:[#allocation36_spill] sm:$0xff] %v12786_v9  ;;  %v12807_v43 = vrot.slane %v11709_v58, %v17786_v34  ;;  %v12811_v16 = vrot.slane %v12456_v31, %v17761_v30  ;;  %v12814_v20 = vadd.f32 %v6871_v23, %v12444_v33  ;;  %v6876_v2 = vmul.f32 %v12511_v26, %v2292_v17  ;;  %v3125_v18 = vpop.f32.mrb[198].mxu1  ;;  %v17794_v3 = vld [vmem:[#allocation32_spill] sm:$0xff] }
 0x2b2   : > { %8822 = vmatmul.mubr.msk.f32.gmra.mrb[48].mxu0 %vm1247_vm6, %v9177_v57  ;;  %v12823_v12 = vrot.slane %v11691_v35, %v17794_v3  ;;  %v6878_v33 = vmul.f32 %v12525_v6, %v3125_v18  ;;  %v6877_v23 = vmul.f32 %v12541_v4, %v2294_v38  ;;  %v3127_v17 = vpop.f32.mrb[199].mxu1  ;;  %8950 = vmatmul.mubr.msk.f32.gmra.mrb[48].mxu1 %vm1247_vm6, %v9177_v57  ;;  %v487_v35 = vsel %vm472_vm9, %v12786_v9, 0.0 }
 0x2b3   : > { %17793 = vst [vmem:[#allocation37_spill] sm:$0xff] %v12807_v43  ;;  %3512 = vmatprep.mubr.f32.mxu0 %v17737_v28  ;;  %v460_v43 = vsel %vm445_vm8, %v12778_v8, 0.0  ;;  %v12840_v31 = vadd.f32 %v6876_v2, %v12459_v15  ;;  %v6879_v18 = vmul.f32 %v12553_v10, %v3127_v17  ;;  %4345 = vmatprep.mubr.f32.mxu1 %v17737_v28  ;;  %v2298_v9 = vpop.f32.mrb[200].mxu0 }
 0x2b4   : > { %17795 = vst [vmem:[#allocation38_spill] sm:$0xff] %v12823_v12  ;;  %vm209_vm10 = vcmp.eq.s32.totalorder %v17784_v7, %v12797_v59  ;;  %v12848_v38 = vrot.slane %v12579_v39, %v17761_v30  ;;  %v12851_v57 = vadd.f32 %v6878_v33, %v12466_v22  ;;  %v12854_v12 = vadd.f32 %v6877_v23, %v12469_v5  ;;  %v2300_v8 = vpop.f32.mrb[201].mxu0  ;;  %v9178_v22 = vld [vmem:[%s17584_s2 + $0xc8] sm:$0xff] }
 0x2b5   : > { %vm236_vm11 = vcmp.eq.s32.totalorder %v17784_v7, %v12811_v16  ;;  %v12860_v15 = vrot.slane %v12599_v40, %v17761_v30  ;;  %v12863_v2 = vadd.f32 %v6879_v18, %v12474_v44  ;;  %v6884_v39 = vmul.f32 %v12511_v26, %v2298_v9  ;;  %v3131_v17 = vpop.f32.mrb[200].mxu1 }
 0x2b6   : > { %8823 = vmatmul.mubr.msk.f32.gmra.mrb[50].mxu0 %vm1247_vm6, %v9178_v22  ;;  %v12872_v5 = vrot.slane %v12513_v21, %v17761_v30  ;;  %v12876_v40 = vrot.slane %v12569_v36, %v17761_v30  ;;  %v6886_v44 = vmul.f32 %v12525_v6, %v3131_v17  ;;  %v6885_v9 = vmul.f32 %v12541_v4, %v2300_v8  ;;  %v3133_v33 = vpop.f32.mrb[201].mxu1  ;;  %v17799_v17 = vld [vmem:[#allocation12_spill] sm:$0xff] }
 0x2b7   : > { %17796 = vst [vmem:[#allocation39_spill] sm:$0xff] %v12863_v2  ;;  %8951 = vmatmul.mubr.msk.f32.gmra.mrb[50].mxu1 %vm1247_vm6, %v9178_v22  ;;  %3518 = vmatprep.mubr.f32.mxu0 %v17737_v28  ;;  %v12882_v23 = vadd.f32 %v487_v35, %v460_v43  ;;  %v12885_v18 = vadd.f32 %v6884_v39, %v12491_v53  ;;  %v224_v36 = vsel %vm209_vm10, %v12848_v38, 0.0  ;;  %v17801_v43 = vld [vmem:[#allocation21_spill] sm:$0xff]  ;;  %v2304_v53 = vpop.f32.mrb[202].mxu0  ;;  %v251_v39 = vsel %vm236_vm11, %v12860_v15, 0.0 }
 0x2b8   : > { %v6887_v21 = vmul.f32 %v12553_v10, %v3133_v33  ;;  %4351 = vmatprep.mubr.f32.mxu1 %v17737_v28  ;;  %v12895_v8 = vrot.slane %v12728_v51, %v17761_v30  ;;  %v12898_v22 = vadd.f32 %v6886_v44, %v17799_v17  ;;  %v12901_v35 = vadd.f32 %v6885_v9, %v17801_v43  ;;  %v2306_v17 = vpop.f32.mrb[203].mxu0  ;;  %v9179_v9 = vld [vmem:[%s17584_s2 + $0xd0] sm:$0xff] }
 0x2b9   : > { %17797 = vst [vmem:[#allocation40_spill] sm:$0xff] %v12882_v23  ;;  %17798 = vst [vmem:[#allocation41_spill] sm:$0xff] %v12885_v18  ;;  %v12909_v33 = vrot.slane %v12739_v42, %v17761_v30  ;;  %v17803_v18 = vld [vmem:[#allocation22_spill] sm:$0xff]  ;;  %v6892_v51 = vmul.f32 %v12511_v26, %v2304_v53  ;;  %v3137_v44 = vpop.f32.mrb[202].mxu1  ;;  %vm446_vm12 = vcmp.eq.s32.totalorder %v17784_v7, %v12872_v5  ;;  %v17805_v53 = vld [vmem:[#allocation15_spill] sm:$0xff] }
 0x2ba   : > { %17800 = vst [vmem:[#allocation12_spill] sm:$0xff] %v12898_v22  ;;  %17802 = vst [vmem:[#allocation21_spill] sm:$0xff] %v12901_v35  ;;  %v12912_v2 = vadd.f32 %v6887_v21, %v17803_v18  ;;  %8824 = vmatmul.mubr.msk.f32.gmra.mrb[52].mxu0 %vm1247_vm6, %v9179_v9  ;;  %vm473_vm13 = vcmp.eq.s32.totalorder %v17784_v7, %v12876_v40  ;;  %v6894_v42 = vmul.f32 %v12525_v6, %v3137_v44  ;;  %v3139_v21 = vpop.f32.mrb[203].mxu1  ;;  %v17826_v23 = vld [vmem:[#allocation35_spill] sm:$0xff] }
 0x2bb   : > { %v6893_v18 = vmul.f32 %v12541_v4, %v2306_v17  ;;  %8952 = vmatmul.mubr.msk.f32.gmra.mrb[52].mxu1 %vm1247_vm6, %v9179_v9  ;;  %3524 = vmatprep.mubr.f32.mxu0 %v17737_v28  ;;  %v6895_v35 = vmul.f32 %v12553_v10, %v3139_v21  ;;  %v12936_v44 = vrot.slane %v11693_v50, %v17794_v3  ;;  %v2310_v43 = vpop.f32.mrb[204].mxu0  ;;  %v488_v50 = vsel %vm473_vm13, %v12909_v33, 0.0 }
 0x2bc   : > { %17804 = vst [vmem:[#allocation22_spill] sm:$0xff] %v12912_v2  ;;  %v12930_v2 = vadd.f32 %v6892_v51, %v17805_v53  ;;  %4357 = vmatprep.mubr.f32.mxu1 %v17737_v28  ;;  %v12938_v17 = vadd.f32 %v251_v39, %v224_v36  ;;  %v12941_v9 = vadd.f32 %v6894_v42, %v12560_v32  ;;  %v461_v51 = vsel %vm446_vm12, %v12895_v8, 0.0  ;;  %v2312_v42 = vpop.f32.mrb[205].mxu0 }
 0x2bd   : > { %17806 = vst [vmem:[#allocation15_spill] sm:$0xff] %v12936_v44  ;;  %v12944_v22 = vadd.f32 %v6893_v18, %v12563_v56  ;;  %v12955_v36 = vadd.f32 %v6895_v35, %v12572_v63  ;;  %v6900_v32 = vmul.f32 %v12511_v26, %v2310_v43  ;;  %v3143_v39 = vpop.f32.mrb[204].mxu1  ;;  %v9180_v56 = vld [vmem:[%s17584_s2 + $0xd8] sm:$0xff]  ;;  %v6901_v63 = vmul.f32 %v12541_v4, %v2312_v42 }
 0x2be   : > { %17807 = vst [vmem:[#allocation42_spill] sm:$0xff] %v12938_v17  ;;  %8825 = vmatmul.mubr.msk.f32.gmra.mrb[54].mxu0 %vm1247_vm6, %v9180_v56  ;;  %v6902_v53 = vmul.f32 %v12525_v6, %v3143_v39  ;;  %v3145_v35 = vpop.f32.mrb[205].mxu1  ;;  %v12972_v43 = vrot.slane %v11702_v19, %v17794_v3  ;;  %v12981_v42 = vadd.f32 %v488_v50, %v461_v51 }
 0x2bf   : > { %8953 = vmatmul.mubr.msk.f32.gmra.mrb[54].mxu1 %vm1247_vm6, %v9180_v56  ;;  %3530 = vmatprep.mubr.f32.mxu0 %v17737_v28  ;;  %v12975_v44 = vadd.f32 %v6900_v32, %v12595_v13  ;;  %v6903_v18 = vmul.f32 %v12553_v10, %v3145_v35  ;;  %v12987_v21 = vadd.f32 %v6901_v63, %v12609_v37  ;;  %v2316_v19 = vpop.f32.mrb[206].mxu0  ;;  %v17810_v37 = vld [vmem:[#allocation27_spill] sm:$0xff]  ;;  %v17811_v63 = vld [vmem:[#allocation28_spill] sm:$0xff] }
 0x2c0   : > { %17808 = vst [vmem:[#allocation43_spill] sm:$0xff] %v12972_v43  ;;  %4363 = vmatprep.mubr.f32.mxu1 %v17737_v28  ;;  %v12984_v56 = vadd.f32 %v6902_v53, %v12606_v45  ;;  %v12993_v32 = vrot.slane %v11709_v58, %v17794_v3  ;;  %v6908_v51 = vmul.f32 %v12511_v26, %v2316_v19  ;;  %v2318_v39 = vpop.f32.mrb[207].mxu0  ;;  %v9181_v45 = vld [vmem:[%s17584_s2 + $0xe0] sm:$0xff]  ;;  %v17814_v26 = vld [vmem:[#allocation17_spill] sm:$0xff] }
 0x2c1   : > { %v12996_v35 = vadd.f32 %v6903_v18, %v12614_v11  ;;  %v3149_v50 = vpop.f32.mrb[206].mxu1  ;;  %v6909_v11 = vmul.f32 %v12541_v4, %v2318_v39  ;;  %v17818_v43 = vld [vmem:[#allocation24_spill] sm:$0xff] }
 0x2c2   : > { %17809 = vst [vmem:[#allocation44_spill] sm:$0xff] %v12993_v32  ;;  %8826 = vmatmul.mubr.msk.f32.gmra.mrb[56].mxu0 %vm1247_vm6, %v9181_v45  ;;  %v6910_v13 = vmul.f32 %v12525_v6, %v3149_v50  ;;  %v3151_v18 = vpop.f32.mrb[207].mxu1  ;;  %v13014_v19 = vadd.f32 %v6908_v51, %v12632_v24  ;;  %v17812_v51 = vld [vmem:[#allocation23_spill] sm:$0xff] }
 0x2c3   : > { %8954 = vmatmul.mubr.msk.f32.gmra.mrb[56].mxu1 %vm1247_vm6, %v9181_v45  ;;  %3536 = vmatprep.mubr.f32.mxu0 %v17737_v28  ;;  %v6911_v53 = vmul.f32 %v12553_v10, %v3151_v18  ;;  %v13026_v50 = vadd.f32 %v6909_v11, %v12653_v29  ;;  %v2322_v45 = vpop.f32.mrb[208].mxu0  ;;  %v17815_v11 = vld [vmem:[#allocation19_spill] sm:$0xff] }
 0x2c4   : > { %4369 = vmatprep.mubr.f32.mxu1 %v17737_v28  ;;  %v13023_v39 = vadd.f32 %v6910_v13, %v12650_v49  ;;  %v7012_v58 = vmul.f32 %v17814_v26, %v2322_v45  ;;  %v2324_v4 = vpop.f32.mrb[209].mxu0  ;;  %v9182_v49 = vld [vmem:[%s17584_s2 + $0xe8] sm:$0xff] }
 0x2c5   : > { %v13033_v18 = vadd.f32 %v6911_v53, %v17812_v51  ;;  %v3155_v6 = vpop.f32.mrb[208].mxu1  ;;  %v17816_v53 = vld [vmem:[#allocation20_spill] sm:$0xff]  ;;  %v17819_v13 = vld [vmem:[#allocation29_spill] sm:$0xff] }
 0x2c6   : > { %8827 = vmatmul.mubr.msk.f32.gmra.mrb[58].mxu0 %vm1247_vm6, %v9182_v49  ;;  %v7014_v10 = vmul.f32 %v17815_v11, %v3155_v6  ;;  %v7013_v51 = vmul.f32 %v17816_v53, %v2324_v4  ;;  %v3157_v24 = vpop.f32.mrb[209].mxu1  ;;  %v13051_v32 = vadd.f32 %v7012_v58, %v12695_v52 }
 0x2c7   : > { %17813 = vst [vmem:[#allocation23_spill] sm:$0xff] %v13033_v18  ;;  %8955 = vmatmul.mubr.msk.f32.gmra.mrb[58].mxu1 %vm1247_vm6, %v9182_v49  ;;  %3542 = vmatprep.mubr.f32.mxu0 %v17737_v28  ;;  %v7015_v29 = vmul.f32 %v17818_v43, %v3157_v24  ;;  %v2328_v45 = vpop.f32.mrb[210].mxu0 }
 0x2c8   : > { %17817 = vst [vmem:[#allocation17_spill] sm:$0xff] %v13051_v32  ;;  %4375 = vmatprep.mubr.f32.mxu1 %v17737_v28  ;;  %v13060_v49 = vadd.f32 %v7014_v10, %v12707_v14  ;;  %v13063_v18 = vadd.f32 %v7013_v51, %v12710_v25  ;;  %v7020_v6 = vmul.f32 %v17814_v26, %v2328_v45  ;;  %v2330_v4 = vpop.f32.mrb[211].mxu0  ;;  %v9183_v14 = vld [vmem:[%s17584_s2 + $0xf0] sm:$0xff] }
 0x2c9   : > { %v13070_v24 = vadd.f32 %v7015_v29, %v12721_v1  ;;  %v3161_v32 = vpop.f32.mrb[210].mxu1  ;;  %v7021_v29 = vmul.f32 %v17816_v53, %v2330_v4 }
 0x2ca   : > { %8828 = vmatmul.mubr.msk.f32.gmra.mrb[60].mxu0 %vm1247_vm6, %v9183_v14  ;;  %v7022_v1 = vmul.f32 %v17815_v11, %v3161_v32  ;;  %v3163_v51 = vpop.f32.mrb[211].mxu1  ;;  %v13088_v58 = vadd.f32 %v7020_v6, %v12742_v54 }
 0x2cb   : > { %8956 = vmatmul.mubr.msk.f32.gmra.mrb[60].mxu1 %vm1247_vm6, %v9183_v14  ;;  %3548 = vmatprep.mubr.f32.mxu0 %v17737_v28  ;;  %v7023_v25 = vmul.f32 %v17818_v43, %v3163_v51  ;;  %v13101_v10 = vadd.f32 %v7021_v29, %v12758_v47  ;;  %v2334_v45 = vpop.f32.mrb[212].mxu0 }
 0x2cc   : > { %4381 = vmatprep.mubr.f32.mxu1 %v17737_v28  ;;  %v13098_v14 = vadd.f32 %v7022_v1, %v12755_v55  ;;  %v7028_v32 = vmul.f32 %v17814_v26, %v2334_v45  ;;  %v2336_v52 = vpop.f32.mrb[213].mxu0  ;;  %v9184_v55 = vld [vmem:[%s17584_s2 + $0xf8] sm:$0xff]  ;;  %v17822_v1 = vld [vmem:[#allocation10_spill] sm:$0xff] }
 0x2cd   : > { %v13108_v51 = vadd.f32 %v7023_v25, %v12767_v27  ;;  %v3167_v4 = vpop.f32.mrb[212].mxu1  ;;  %v7029_v25 = vmul.f32 %v17816_v53, %v2336_v52  ;;  %vm447_vm0 = vcmp.eq.s32.totalorder %v17822_v1, %v12732_v46  ;;  %vm474_vm1 = vcmp.eq.s32.totalorder %v17822_v1, %v12752_v61  ;;  %v17830_v46 = vld [vmem:[#allocation39_spill] sm:$0xff] }
 0x2ce   : > { %8829 = vmatmul.mubr.msk.f32.gmra.mrb[62].mxu0 %vm1247_vm6, %v9184_v55  ;;  %v7030_v27 = vmul.f32 %v17815_v11, %v3167_v4  ;;  %v3169_v29 = vpop.f32.mrb[213].mxu1  ;;  %v13128_v6 = vadd.f32 %v7028_v32, %v12789_v0  ;;  %v17821_v4 = vld [vmem:[#allocation13_spill] sm:$0xff]  ;;  %v17823_v0 = vld [vmem:[#allocation14_spill] sm:$0xff]  ;;  %vm211_vm2 = vcmp.eq.s32.totalorder %v17822_v1, %v12797_v59  ;;  %vm238_vm3 = vcmp.eq.s32.totalorder %v17822_v1, %v12811_v16 }
 0x2cf   : > { %8957 = vmatmul.mubr.msk.f32.gmra.mrb[62].mxu1 %vm1247_vm6, %v9184_v55  ;;  %3554 = vmatprep.mubr.f32.mxu0 %v17737_v28  ;;  %v7031_v47 = vmul.f32 %v17818_v43, %v3169_v29  ;;  %vm210_vm14 = vcmp.eq.s32.totalorder %v17822_v1, %v17821_v4  ;;  %v13141_v45 = vadd.f32 %v7029_v25, %v12803_v41  ;;  %v2340_v54 = vpop.f32.mrb[214].mxu0  ;;  %v462_v4 = vsel %vm447_vm0, %v17826_v23, 0.0 }
 0x2d0   : > { %4387 = vmatprep.mubr.f32.mxu1 %v17737_v28  ;;  %v13138_v55 = vadd.f32 %v7030_v27, %v12800_v62  ;;  %vm237_vm15 = vcmp.eq.s32.totalorder %v17822_v1, %v17823_v0  ;;  %v7036_v29 = vmul.f32 %v17814_v26, %v2340_v54  ;;  %v2342_v17 = vpop.f32.mrb[215].mxu0  ;;  %v9185_v62 = vld [vmem:[%s17584_s2 + $0x100] sm:$0xff]  ;;  %v226_v0 = vsel %vm211_vm2, %v12848_v38, 0.0 }
 0x2d1   : > { %v13148_v32 = vadd.f32 %v7031_v47, %v12814_v20  ;;  %v3173_v52 = vpop.f32.mrb[214].mxu1  ;;  %v7037_v20 = vmul.f32 %v17816_v53, %v2342_v17  ;;  %v17824_v54 = vld [vmem:[#allocation16_spill] sm:$0xff]  ;;  %v253_v61 = vsel %vm238_vm3, %v12860_v15, 0.0  ;;  %vm448_vm4 = vcmp.eq.s32.totalorder %v17822_v1, %v12872_v5 }
 0x2d2   : > { %8830 = vmatmul.mubr.msk.f32.gmra.mrb[64].mxu0 %vm1247_vm6, %v9185_v62  ;;  %v7038_v41 = vmul.f32 %v17815_v11, %v3173_v52  ;;  %v3175_v47 = vpop.f32.mrb[215].mxu1  ;;  %v225_v27 = vsel %vm210_vm14, %v17824_v54, 0.0  ;;  %v13172_v25 = vadd.f32 %v7036_v29, %v12840_v31  ;;  %v17825_v52 = vld [vmem:[#allocation18_spill] sm:$0xff]  ;;  %vm475_vm5 = vcmp.eq.s32.totalorder %v17822_v1, %v12876_v40 }
 0x2d3   : > { %8958 = vmatmul.mubr.msk.f32.gmra.mrb[64].mxu1 %vm1247_vm6, %v9185_v62  ;;  %3560 = vmatprep.mubr.f32.mxu0 %v17737_v28  ;;  %v7039_v17 = vmul.f32 %v17818_v43, %v3175_v47  ;;  %v252_v62 = vsel %vm237_vm15, %v17825_v52, 0.0  ;;  %v13188_v31 = vadd.f32 %v7037_v20, %v12854_v12  ;;  %v2346_v29 = vpop.f32.mrb[216].mxu0  ;;  %v17829_v47 = vld [vmem:[#allocation36_spill] sm:$0xff]  ;;  %v9186_v20 = vld [vmem:[%s17584_s2 + $0x108] sm:$0xff]  ;;  %v888_v52 = vstv %s13125_s6 }
 0x2d4   : > { %4393 = vmatprep.mubr.f32.mxu1 %v17737_v28  ;;  %v13185_v54 = vadd.f32 %v7038_v41, %v12851_v57  ;;  %v489_v60 = vsel %vm474_vm1, %v17829_v47, 0.0  ;;  %v7044_v57 = vmul.f32 %v17814_v26, %v2346_v29  ;;  %v2348_v12 = vpop.f32.mrb[217].mxu0  ;;  %v17832_v29 = vld [vmem:[#allocation41_spill] sm:$0xff] }
 0x2d5   : > { %17828 = vst [vmem:[#allocation20_spill] sm:$0xff] %v13188_v31  ;;  %v13199_v23 = vadd.f32 %v7039_v17, %v17830_v46  ;;  %v3179_v41 = vpop.f32.mrb[216].mxu1  ;;  %v7045_v38 = vmul.f32 %v17816_v53, %v2348_v12  ;;  %v13226_v46 = vadd.f32 %v252_v62, %v225_v27  ;;  %v9187_v62 = vld [vmem:[%s17584_s2 + $0x110] sm:$0xff] }
 0x2d6   : > { %17827 = vst [vmem:[#allocation19_spill] sm:$0xff] %v13185_v54  ;;  %8831 = vmatmul.mubr.msk.f32.gmra.mrb[66].mxu0 %vm1247_vm6, %v9186_v20  ;;  %v7046_v59 = vmul.f32 %v17815_v11, %v3179_v41  ;;  %v3181_v17 = vpop.f32.mrb[217].mxu1  ;;  %v13220_v47 = vadd.f32 %v7044_v57, %v17832_v29  ;;  %v17835_v41 = vld [vmem:[#allocation12_spill] sm:$0xff]  ;;  %v13234_v54 = vadd.f32 %v489_v60, %v462_v4  ;;  %v17839_v29 = vld [vmem:[#allocation22_spill] sm:$0xff]  ;;  %v463_v60 = vsel %vm448_vm4, %v12895_v8, 0.0 }
 0x2d7   : > { %17831 = vst [vmem:[#allocation24_spill] sm:$0xff] %v13199_v23  ;;  %8959 = vmatmul.mubr.msk.f32.gmra.mrb[66].mxu1 %vm1247_vm6, %v9186_v20  ;;  %3566 = vmatprep.mubr.f32.mxu0 %v17737_v28  ;;  %v7047_v16 = vmul.f32 %v17818_v43, %v3181_v17  ;;  %17834 = vst [vmem:[#allocation14_spill] sm:$0xff] %v13226_v46  ;;  %v17836_v20 = vld [vmem:[#allocation21_spill] sm:$0xff]  ;;  %v2352_v31 = vpop.f32.mrb[218].mxu0  ;;  %v13236_v57 = vadd.f32 %v253_v61, %v226_v0  ;;  %v490_v4 = vsel %vm475_vm5, %v12909_v33, 0.0 }
 0x2d8   : > { %17833 = vst [vmem:[#allocation13_spill] sm:$0xff] %v13220_v47  ;;  %4399 = vmatprep.mubr.f32.mxu1 %v17737_v28  ;;  %v13229_v12 = vadd.f32 %v7046_v59, %v17835_v41  ;;  %v13232_v23 = vadd.f32 %v7045_v38, %v17836_v20  ;;  %17837 = vst [vmem:[#allocation16_spill] sm:$0xff] %v13234_v54  ;;  %v7052_v47 = vmul.f32 %v17814_v26, %v2352_v31  ;;  %v2354_v27 = vpop.f32.mrb[219].mxu0  ;;  %v9188_v59 = vld [vmem:[%s17583_s1 + $0x1] ss:$4 sm:$0x3] }
 0x2d9   : > { %17838 = vst [vmem:[#allocation18_spill] sm:$0xff] %v13236_v57  ;;  %v13239_v17 = vadd.f32 %v7047_v16, %v17839_v29  ;;  %v3185_v15 = vpop.f32.mrb[218].mxu1  ;;  %v7053_v0 = vmul.f32 %v17816_v53, %v2354_v27  ;;  %v13261_v5 = vadd.f32 %v9188_v59, %v888_v52  ;;  %v651_v8 = vstv %s13169_s10 }
 0x2da   : > { %8832 = vmatmul.mubr.msk.f32.gmra.mrb[68].mxu0 %vm1247_vm6, %v9187_v62  ;;  %v7054_v31 = vmul.f32 %v17815_v11, %v3185_v15  ;;  %v3187_v61 = vpop.f32.mrb[219].mxu1  ;;  %v13265_v38 = vadd.f32 %v7052_v47, %v12930_v2  ;;  %v13281_v47 = vadd.f32 %v490_v4, %v463_v60 }
 0x2db   : > { %8960 = vmatmul.mubr.msk.f32.gmra.mrb[68].mxu1 %vm1247_vm6, %v9187_v62  ;;  %3572 = vmatprep.mubr.f32.mxu0 %v17737_v28  ;;  %v7055_v40 = vmul.f32 %v17818_v43, %v3187_v61  ;;  %v13277_v52 = vadd.f32 %v7053_v0, %v12944_v22  ;;  %v2358_v41 = vpop.f32.mrb[220].mxu0  ;;  %v969_v61 = vfloor.f32 %v13261_v5 }
 0x2dc   : > { %4405 = vmatprep.mubr.f32.mxu1 %v17737_v28  ;;  %v13274_v15 = vadd.f32 %v7054_v31, %v12941_v9  ;;  %17840 = vst [vmem:[#allocation35_spill] sm:$0xff] %v13281_v47  ;;  %v7060_v29 = vmul.f32 %v17814_v26, %v2358_v41  ;;  %v2360_v62 = vpop.f32.mrb[221].mxu0  ;;  %v9189_v9 = vld [vmem:[%s17584_s2 + $0x118] sm:$0xff]  ;;  %v17858_v57 = vld [vmem:[#allocation20_spill] sm:$0xff] }
 0x2dd   : > { %v13284_v20 = vadd.f32 %v7055_v40, %v12955_v36  ;;  %v3191_v27 = vpop.f32.mrb[220].mxu1  ;;  %v7061_v36 = vmul.f32 %v17816_v53, %v2360_v62 }
 0x2de   : > { %8833 = vmatmul.mubr.msk.f32.gmra.mrb[70].mxu0 %vm1247_vm6, %v9189_v9  ;;  %v7062_v4 = vmul.f32 %v17815_v11, %v3191_v27  ;;  %v3193_v31 = vpop.f32.mrb[221].mxu1  ;;  %v13303_v40 = vadd.f32 %v7060_v29, %v12975_v44  ;;  %v17845_v44 = vld [vmem:[#allocation17_spill] sm:$0xff] }
 0x2df   : > { %8961 = vmatmul.mubr.msk.f32.gmra.mrb[70].mxu1 %vm1247_vm6, %v9189_v9  ;;  %3578 = vmatprep.mubr.f32.mxu0 %v17737_v28  ;;  %v7063_v41 = vmul.f32 %v17818_v43, %v3193_v31  ;;  %v13315_v0 = vadd.f32 %v7061_v36, %v12987_v21  ;;  %v2364_v60 = vpop.f32.mrb[222].mxu0 }
 0x2e0   : > { %4411 = vmatprep.mubr.f32.mxu1 %v17737_v28  ;;  %v13312_v9 = vadd.f32 %v7062_v4, %v12984_v56  ;;  %v7068_v27 = vmul.f32 %v17814_v26, %v2364_v60  ;;  %v2366_v62 = vpop.f32.mrb[223].mxu0  ;;  %v9190_v56 = vld [vmem:[%s17584_s2 + $0x120] sm:$0xff]  ;;  %v13331_v4 = vadd.f32 %v9188_v59, %v651_v8  ;;  %v9096_v60 = vtrunc.f32 %v969_v61 }
 0x2e1   : > { %v13322_v31 = vadd.f32 %v7063_v41, %v12996_v35  ;;  %v3197_v22 = vpop.f32.mrb[222].mxu1  ;;  %v7069_v35 = vmul.f32 %v17816_v53, %v2366_v62 }
 0x2e2   : > { %8834 = vmatmul.mubr.msk.f32.gmra.mrb[72].mxu0 %vm1247_vm6, %v9190_v56  ;;  %v7070_v36 = vmul.f32 %v17815_v11, %v3197_v22  ;;  %v3199_v41 = vpop.f32.mrb[223].mxu1  ;;  %v13342_v29 = vadd.f32 %v7068_v27, %v13014_v19  ;;  %v17841_v27 = vld [vmem:[#allocation23_spill] sm:$0xff]  ;;  %v17844_v19 = vld [vmem:[#allocation33_spill] sm:$0xff]  ;;  %v13377_v21 = vcvt.f32.s32 %v9096_v60 }
 0x2e3   : > { %8962 = vmatmul.mubr.msk.f32.gmra.mrb[72].mxu1 %vm1247_vm6, %v9190_v56  ;;  %3584 = vmatprep.mubr.f32.mxu0 %v17737_v28  ;;  %v7071_v59 = vmul.f32 %v17818_v43, %v3199_v41  ;;  %v13354_v22 = vadd.f32 %v7069_v35, %v13026_v50  ;;  %v2370_v62 = vpop.f32.mrb[224].mxu0  ;;  %v17842_v41 = vld [vmem:[#allocation25_spill] sm:$0xff]  ;;  %v17843_v35 = vld [vmem:[#allocation26_spill] sm:$0xff] }
 0x2e4   : > { %4417 = vmatprep.mubr.f32.mxu1 %v17737_v28  ;;  %v13351_v8 = vadd.f32 %v7070_v36, %v13023_v39  ;;  %v7172_v11 = vmul.f32 %v17842_v41, %v2370_v62  ;;  %v2372_v53 = vpop.f32.mrb[225].mxu0  ;;  %v9191_v39 = vld [vmem:[%s17584_s2 + $0x128] sm:$0xff]  ;;  %v17660_v36 = vfloor.f32 %v13331_v4  ;;  %vm973_vm7 = vcmp.ge.s32.totalorder %v13377_v21, 0 }
 0x2e5   : > { %v13361_v56 = vadd.f32 %v7071_v59, %v17841_v27  ;;  %v3203_v26 = vpop.f32.mrb[224].mxu1  ;;  %v7173_v59 = vmul.f32 %v17844_v19, %v2372_v53  ;;  %v17846_v50 = vld [vmem:[#allocation37_spill] sm:$0xff]  ;;  %vm974_vm8 = vcmp.lt.s32.totalorder %v13377_v21, 16 }
 0x2e6   : > { %8835 = vmatmul.mubr.msk.f32.gmra.mrb[74].mxu0 %vm1247_vm6, %v9191_v39  ;;  %v7174_v43 = vmul.f32 %v17843_v35, %v3203_v26  ;;  %v3205_v27 = vpop.f32.mrb[225].mxu1  ;;  %v13380_v2 = vadd.f32 %v7172_v11, %v17845_v44  ;;  %v13417_v11 = vadd.s32 1, %v13377_v21  ;;  %vm13459_vm9 = vmand %vm973_vm7, %vm974_vm8 }
 0x2e7   : > { %8963 = vmatmul.mubr.msk.f32.gmra.mrb[74].mxu1 %vm1247_vm6, %v9191_v39  ;;  %3590 = vmatprep.mubr.f32.mxu0 %v17737_v28  ;;  %v7175_v16 = vmul.f32 %v17846_v50, %v3205_v27  ;;  %v13392_v62 = vadd.f32 %v7173_v59, %v13063_v18  ;;  %v2376_v60 = vpop.f32.mrb[226].mxu0 }
 0x2e8   : > { %4423 = vmatprep.mubr.f32.mxu1 %v17737_v28  ;;  %v13389_v39 = vadd.f32 %v7174_v43, %v13060_v49  ;;  %v7180_v26 = vmul.f32 %v17842_v41, %v2376_v60  ;;  %v2378_v53 = vpop.f32.mrb[227].mxu0  ;;  %v9192_v49 = vld [vmem:[%s17584_s2 + $0x130] sm:$0xff]  ;;  %v9090_v43 = vtrunc.f32 %v17660_v36  ;;  %vm980_vm10 = vcmp.ge.s32.totalorder %v13417_v11, 0 }
 0x2e9   : > { %v13399_v27 = vadd.f32 %v7175_v16, %v13070_v24  ;;  %v3209_v33 = vpop.f32.mrb[226].mxu1  ;;  %v7181_v24 = vmul.f32 %v17844_v19, %v2378_v53  ;;  %vm981_vm11 = vcmp.lt.s32.totalorder %v13417_v11, 16 }
 0x2ea   : > { %8836 = vmatmul.mubr.msk.f32.gmra.mrb[76].mxu0 %vm1247_vm6, %v9192_v49  ;;  %v7182_v59 = vmul.f32 %v17843_v35, %v3209_v33  ;;  %v3211_v16 = vpop.f32.mrb[227].mxu1  ;;  %v13420_v18 = vadd.f32 %v7180_v26, %v13088_v58  ;;  %v13437_v58 = vsub.f32 %v13261_v5, %v969_v61  ;;  %vm13500_vm12 = vmand %vm980_vm10, %vm981_vm11 }
 0x2eb   : > { %8964 = vmatmul.mubr.msk.f32.gmra.mrb[76].mxu1 %vm1247_vm6, %v9192_v49  ;;  %3596 = vmatprep.mubr.f32.mxu0 %v17737_v28  ;;  %v7183_v44 = vmul.f32 %v17846_v50, %v3211_v16  ;;  %v13430_v53 = vadd.f32 %v7181_v24, %v13101_v10  ;;  %v2382_v49 = vpop.f32.mrb[228].mxu0  ;;  %v9193_v10 = vld [vmem:[%s17584_s2 + $0x138] sm:$0xff]  ;;  %v13449_v24 = vcvt.f32.s32 %v9090_v43 }
 0x2ec   : > { %4429 = vmatprep.mubr.f32.mxu1 %v17737_v28  ;;  %v13427_v33 = vadd.f32 %v7182_v59, %v13098_v14  ;;  %v7188_v16 = vmul.f32 %v17842_v41, %v2382_v49  ;;  %v2384_v14 = vpop.f32.mrb[229].mxu0 }
 0x2ed   : > { %v13440_v26 = vadd.f32 %v7183_v44, %v13108_v51  ;;  %v3215_v36 = vpop.f32.mrb[228].mxu1  ;;  %v7189_v51 = vmul.f32 %v17844_v19, %v2384_v14  ;;  %v17853_v44 = vfloor.f32 %v13331_v4  ;;  %vm736_vm13 = vcmp.ge.s32.totalorder %v13449_v24, 0 }
 0x2ee   : > { %8837 = vmatmul.mubr.msk.f32.gmra.mrb[78].mxu0 %vm1247_vm6, %v9193_v10  ;;  %v7190_v5 = vmul.f32 %v17843_v35, %v3215_v36  ;;  %v3217_v61 = vpop.f32.mrb[229].mxu1  ;;  %v13466_v36 = vadd.f32 %v7188_v16, %v13128_v6  ;;  %v972_v16 = vsub.f32 1.0, %v13437_v58  ;;  %v13514_v6 = vadd.s32 1, %v13449_v24 }
 0x2ef   : > { %8965 = vmatmul.mubr.msk.f32.gmra.mrb[78].mxu1 %vm1247_vm6, %v9193_v10  ;;  %3602 = vmatprep.mubr.f32.mxu0 %v17737_v28  ;;  %v7191_v43 = vmul.f32 %v17846_v50, %v3217_v61  ;;  %v13478_v59 = vadd.f32 %v7189_v51, %v13141_v45  ;;  %v2388_v60 = vpop.f32.mrb[230].mxu0  ;;  %v13511_v45 = vsub.f32 %v13331_v4, %v17853_v44  ;;  %v17857_v4 = vld [vmem:[#allocation19_spill] sm:$0xff]  ;;  %vm737_vm14 = vcmp.lt.s32.totalorder %v13449_v24, 16 }
 0x2f0   : > { %4435 = vmatprep.mubr.f32.mxu1 %v17737_v28  ;;  %v13475_v10 = vadd.f32 %v7190_v5, %v13138_v55  ;;  %v7196_v49 = vmul.f32 %v17842_v41, %v2388_v60  ;;  %v2390_v46 = vpop.f32.mrb[231].mxu0  ;;  %v9194_v55 = vld [vmem:[%s17584_s2 + $0x140] sm:$0xff]  ;;  %v8538_v5 = vsel %vm13459_vm9, 1.0, %v17737_v28  ;;  %vm743_vm15 = vcmp.ge.s32.totalorder %v13514_v6, 0  ;;  %vm13579_vm2 = vmand %vm736_vm13, %vm737_vm14 }
 0x2f1   : > { %17849 = vst [vmem:[#allocation36_spill] sm:$0xff] %v13478_v59  ;;  %v13484_v61 = vadd.f32 %v7191_v43, %v13148_v32  ;;  %v3221_v1 = vpop.f32.mrb[230].mxu1  ;;  %v7197_v51 = vmul.f32 %v17844_v19, %v2390_v46  ;;  %v13523_v46 = vrot.slane %v13377_v21, %v17760_v48  ;;  %vm744_vm0 = vcmp.lt.s32.totalorder %v13514_v6, 16 }
 0x2f2   : > { %8838 = vmatmul.mubr.msk.f32.gmra.mrb[80].mxu0 %vm1247_vm6, %v9194_v55  ;;  %v7198_v60 = vmul.f32 %v17843_v35, %v3221_v1  ;;  %v3223_v43 = vpop.f32.mrb[231].mxu1  ;;  %v13517_v14 = vadd.f32 %v7196_v49, %v13172_v25  ;;  %v978_v49 = vmul.f32 %v8538_v5, %v972_v16  ;;  %v17860_v5 = vld [vmem:[#allocation13_spill] sm:$0xff]  ;;  %vm13599_vm3 = vmand %vm743_vm15, %vm744_vm0 }
 0x2f3   : > { %17850 = vst [vmem:[#allocation39_spill] sm:$0xff] %v13484_v61  ;;  %8966 = vmatmul.mubr.msk.f32.gmra.mrb[80].mxu1 %vm1247_vm6, %v9194_v55  ;;  %3608 = vmatprep.mubr.f32.mxu0 %v17737_v28  ;;  %v7199_v1 = vmul.f32 %v17846_v50, %v3223_v43  ;;  %17855 = vst [vmem:[#allocation12_spill] sm:$0xff] %v13523_v46  ;;  %v13527_v55 = vrot.slane %v13377_v21, %v17761_v30  ;;  %v2394_v25 = vpop.f32.mrb[232].mxu0  ;;  %v8539_v43 = vsel %vm13500_vm12, 1.0, %v17737_v28  ;;  %vm8424_vm12 = vcmask 1043456  }
 0x2f4   : > { %17854 = vst [vmem:[#allocation41_spill] sm:$0xff] %v13517_v14  ;;  %4441 = vmatprep.mubr.f32.mxu1 %v17737_v28  ;;  %v13530_v44 = vadd.f32 %v7198_v60, %v17857_v4  ;;  %v13533_v54 = vadd.f32 %v7197_v51, %v17858_v57  ;;  %v17859_v14 = vld [vmem:[#allocation24_spill] sm:$0xff]  ;;  %v7204_v59 = vmul.f32 %v17842_v41, %v2394_v25  ;;  %v2396_v21 = vpop.f32.mrb[233].mxu0  ;;  %v9195_v60 = vld [vmem:[%s17584_s2 + $0x148] sm:$0xff] }
 0x2f5   : > { %17856 = vst [vmem:[#allocation21_spill] sm:$0xff] %v13527_v55  ;;  %v13539_v61 = vadd.f32 %v7199_v1, %v17859_v14  ;;  %v3227_v7 = vpop.f32.mrb[232].mxu1  ;;  %v7205_v16 = vmul.f32 %v17844_v19, %v2396_v21  ;;  %v13563_v1 = vrot.slane %v13417_v11, %v17760_v48 }
 0x2f6   : > { %8839 = vmatmul.mubr.msk.f32.gmra.mrb[82].mxu0 %vm1247_vm6, %v9195_v60  ;;  %v7206_v57 = vmul.f32 %v17843_v35, %v3227_v7  ;;  %v3229_v14 = vpop.f32.mrb[233].mxu1  ;;  %v13555_v32 = vadd.f32 %v7204_v59, %v17860_v5  ;;  %v9196_v5 = vld [vmem:[%s17584_s2 + $0x150] sm:$0xff]  ;;  %v985_v59 = vmul.f32 %v8539_v43, %v13437_v58  ;;  %v13593_v7 = vrot.slane %v978_v49, %v17760_v48 }
 0x2f7   : > { %8967 = vmatmul.mubr.msk.f32.gmra.mrb[82].mxu1 %vm1247_vm6, %v9195_v60  ;;  %3614 = vmatprep.mubr.f32.mxu0 %v17737_v28  ;;  %v7207_v51 = vmul.f32 %v17846_v50, %v3229_v14  ;;  %17861 = vst [vmem:[#allocation22_spill] sm:$0xff] %v13563_v1  ;;  %v13569_v25 = vadd.f32 %v7205_v16, %v13232_v23  ;;  %v2400_v21 = vpop.f32.mrb[234].mxu0  ;;  %v17864_v60 = vld [vmem:[#allocation8_spill] sm:$0xff]  ;;  %v735_v58 = vsub.f32 1.0, %v13511_v45 }
 0x2f8   : > { %4447 = vmatprep.mubr.f32.mxu1 %v17737_v28  ;;  %v13566_v4 = vadd.f32 %v7206_v57, %v13229_v12  ;;  %vm994_vm1 = vcmp.eq.s32.totalorder %v17864_v60, %v13523_v46  ;;  %v7212_v23 = vmul.f32 %v17842_v41, %v2400_v21  ;;  %v2402_v16 = vpop.f32.mrb[235].mxu0  ;;  %17868 = vst [vmem:[#allocation33_spill] sm:$0xff] %v13593_v7 }
 0x2f9   : > { %17863 = vst [vmem:[#allocation25_spill] sm:$0xff] %v13569_v25  ;;  %v13584_v12 = vadd.f32 %v7207_v51, %v13239_v17  ;;  %v3233_v57 = vpop.f32.mrb[234].mxu1  ;;  %v7213_v21 = vmul.f32 %v17844_v19, %v2402_v16  ;;  %vm995_vm4 = vcmp.eq.s32.totalorder %v17864_v60, %v13527_v55  ;;  %vm1021_vm5 = vcmp.eq.s32.totalorder %v17864_v60, %v13563_v1 }
 0x2fa   : > { %17862 = vst [vmem:[#allocation23_spill] sm:$0xff] %v13566_v4  ;;  %8840 = vmatmul.mubr.msk.f32.gmra.mrb[84].mxu0 %vm1247_vm6, %v9196_v5  ;;  %v7214_v51 = vmul.f32 %v17843_v35, %v3233_v57  ;;  %v3235_v47 = vpop.f32.mrb[235].mxu1  ;;  %v13611_v43 = vadd.f32 %v7212_v23, %v13265_v38  ;;  %v8532_v57 = vsel %vm13579_vm2, 1.0, %v17737_v28  ;;  %v13627_v38 = vrot.slane %v978_v49, %v17761_v30 }
 0x2fb   : > { %17867 = vst [vmem:[#allocation26_spill] sm:$0xff] %v13584_v12  ;;  %8968 = vmatmul.mubr.msk.f32.gmra.mrb[84].mxu1 %vm1247_vm6, %v9196_v5  ;;  %3620 = vmatprep.mubr.f32.mxu0 %v17737_v28  ;;  %v7215_v12 = vmul.f32 %v17846_v50, %v3235_v47  ;;  %v13624_v5 = vadd.f32 %v7213_v21, %v13277_v52  ;;  %v2406_v25 = vpop.f32.mrb[236].mxu0  ;;  %v8533_v47 = vsel %vm13599_vm3, 1.0, %v17737_v28  ;;  %v13655_v17 = vsel %vm994_vm1, %v13593_v7, 0.0 }
 0x2fc   : > { %17871 = vst [vmem:[#allocation17_spill] sm:$0xff] %v13611_v43  ;;  %4453 = vmatprep.mubr.f32.mxu1 %v17737_v28  ;;  %v13621_v16 = vadd.f32 %v7214_v51, %v13274_v15  ;;  %17872 = vst [vmem:[#allocation37_spill] sm:$0xff] %v13627_v38  ;;  %v7220_v14 = vmul.f32 %v17842_v41, %v2406_v25  ;;  %v2408_v4 = vpop.f32.mrb[237].mxu0  ;;  %v9197_v15 = vld [vmem:[%s17584_s2 + $0x158] sm:$0xff]  ;;  %v13641_v52 = vrot.slane %v985_v59, %v17760_v48 }
 0x2fd   : > { %v13633_v23 = vadd.f32 %v7215_v12, %v13284_v20  ;;  %v3239_v43 = vpop.f32.mrb[236].mxu1  ;;  %v13645_v49 = vrot.slane %v13417_v11, %v17761_v30  ;;  %v7221_v12 = vmul.f32 %v17844_v19, %v2408_v4  ;;  %17875 = vst [vmem:[#allocation24_spill] sm:$0xff] %v13655_v17  ;;  %v741_v51 = vmul.f32 %v8532_v57, %v735_v58 }
 0x2fe   : > { %8841 = vmatmul.mubr.msk.f32.gmra.mrb[86].mxu0 %vm1247_vm6, %v9197_v15  ;;  %17873 = vst [vmem:[#allocation19_spill] sm:$0xff] %v13641_v52  ;;  %v7222_v20 = vmul.f32 %v17843_v35, %v3239_v43  ;;  %v3241_v25 = vpop.f32.mrb[237].mxu1  ;;  %v13658_v21 = vadd.f32 %v7220_v14, %v13303_v40  ;;  %v748_v4 = vmul.f32 %v8533_v47, %v13511_v45 }
 0x2ff   : > { %17874 = vst [vmem:[#allocation20_spill] sm:$0xff] %v13645_v49  ;;  %8969 = vmatmul.mubr.msk.f32.gmra.mrb[86].mxu1 %vm1247_vm6, %v9197_v15  ;;  %3626 = vmatprep.mubr.f32.mxu0 %v17737_v28  ;;  %v7223_v11 = vmul.f32 %v17846_v50, %v3241_v25  ;;  %v13665_v43 = vrot.slane %v13449_v24, %v17760_v48  ;;  %v2412_v58 = vpop.f32.mrb[238].mxu0 }
 0x300   : > { %4459 = vmatprep.mubr.f32.mxu1 %v17737_v28  ;;  %v13668_v15 = vadd.f32 %v7222_v20, %v13312_v9  ;;  %v13671_v7 = vadd.f32 %v7221_v12, %v13315_v0  ;;  %v13674_v40 = vrot.slane %v985_v59, %v17761_v30  ;;  %v13678_v57 = vrot.slane %v13514_v6, %v17760_v48  ;;  %v2414_v25 = vpop.f32.mrb[239].mxu0  ;;  %v9198_v0 = vld [vmem:[%s17584_s2 + $0x160] sm:$0xff] }
 0x301   : > { %17876 = vst [vmem:[#allocation13_spill] sm:$0xff] %v13665_v43  ;;  %v13681_v45 = vadd.f32 %v7223_v11, %v13322_v31  ;;  %v7228_v47 = vmul.f32 %v17842_v41, %v2412_v58  ;;  %v3245_v14 = vpop.f32.mrb[238].mxu1  ;;  %vm1022_vm7 = vcmp.eq.s32.totalorder %v17864_v60, %v13645_v49  ;;  %v13692_v9 = vrot.slane %v13449_v24, %v17761_v30 }
 0x302   : > { %17877 = vst [vmem:[#allocation45_spill] sm:$0xff] %v13674_v40  ;;  %17878 = vst [vmem:[#allocation46_spill] sm:$0xff] %v13678_v57  ;;  %8842 = vmatmul.mubr.msk.f32.gmra.mrb[88].mxu0 %vm1247_vm6, %v9198_v0  ;;  %v7230_v31 = vmul.f32 %v17843_v35, %v3245_v14  ;;  %v7229_v59 = vmul.f32 %v17844_v19, %v2414_v25  ;;  %v3247_v41 = vpop.f32.mrb[239].mxu1  ;;  %v13702_v20 = vsel %vm995_vm4, %v13627_v38, 0.0 }
 0x303   : > { %17879 = vst [vmem:[#allocation47_spill] sm:$0xff] %v13692_v9  ;;  %8970 = vmatmul.mubr.msk.f32.gmra.mrb[88].mxu1 %vm1247_vm6, %v9198_v0  ;;  %3632 = vmatprep.mubr.f32.mxu0 %v17737_v28  ;;  %17880 = vst [vmem:[#allocation48_spill] sm:$0xff] %v13702_v20  ;;  %v13705_v12 = vrot.slane %v741_v51, %v17760_v48  ;;  %v13708_v24 = vadd.f32 %v7228_v47, %v13342_v29  ;;  %v2418_v14 = vpop.f32.mrb[240].mxu0  ;;  %v17886_v47 = vld [vmem:[#allocation38_spill] sm:$0xff] }
 0x304   : > { %v7231_v35 = vmul.f32 %v17846_v50, %v3247_v41  ;;  %4465 = vmatprep.mubr.f32.mxu1 %v17737_v28  ;;  %vm757_vm8 = vcmp.eq.s32.totalorder %v17864_v60, %v13665_v43  ;;  %v13715_v19 = vrot.slane %v748_v4, %v17760_v48  ;;  %v13718_v11 = vadd.f32 %v7230_v31, %v13351_v8  ;;  %v2420_v41 = vpop.f32.mrb[241].mxu0  ;;  %v9199_v8 = vld [vmem:[%s17584_s2 + $0x168] sm:$0xff]  ;;  %v17889_v31 = vld [vmem:[#allocation43_spill] sm:$0xff] }
 0x305   : > { %17881 = vst [vmem:[#allocation49_spill] sm:$0xff] %v13705_v12  ;;  %v13721_v58 = vadd.f32 %v7229_v59, %v13354_v22  ;;  %vm784_vm9 = vcmp.eq.s32.totalorder %v17864_v60, %v13678_v57  ;;  %v13726_v29 = vrot.slane %v741_v51, %v17761_v30  ;;  %v7332_v25 = vmul.f32 %v17886_v47, %v2418_v14  ;;  %v3251_v0 = vpop.f32.mrb[240].mxu1 }
 0x306   : > { %17882 = vst [vmem:[#allocation50_spill] sm:$0xff] %v13715_v19  ;;  %v13729_v50 = vadd.f32 %v7231_v35, %v13361_v56  ;;  %8843 = vmatmul.mubr.msk.f32.gmra.mrb[90].mxu0 %vm1247_vm6, %v9199_v8  ;;  %v13740_v22 = vsel %vm1021_vm5, %v13641_v52, 0.0  ;;  %vm758_vm10 = vcmp.eq.s32.totalorder %v17864_v60, %v13692_v9  ;;  %v17888_v56 = vld [vmem:[#allocation15_spill] sm:$0xff]  ;;  %v7333_v59 = vmul.f32 %v17889_v31, %v2420_v41  ;;  %v3253_v35 = vpop.f32.mrb[241].mxu1  ;;  %v17892_v41 = vld [vmem:[#allocation44_spill] sm:$0xff] }
 0x307   : > { %17883 = vst [vmem:[#allocation51_spill] sm:$0xff] %v13721_v58  ;;  %17884 = vst [vmem:[#allocation52_spill] sm:$0xff] %v13726_v29  ;;  %v7334_v51 = vmul.f32 %v17888_v56, %v3251_v0  ;;  %8971 = vmatmul.mubr.msk.f32.gmra.mrb[90].mxu1 %vm1247_vm6, %v9199_v8  ;;  %3638 = vmatprep.mubr.f32.mxu0 %v17737_v28  ;;  %v13752_v14 = vsel %vm1022_vm7, %v13674_v40, 0.0  ;;  %v13758_v38 = vsel %vm757_vm8, %v13705_v12, 0.0  ;;  %v13767_v8 = vsel %vm784_vm9, %v13715_v19, 0.0  ;;  %v2424_v1 = vpop.f32.mrb[242].mxu0 }
 0x308   : > { %17885 = vst [vmem:[#allocation53_spill] sm:$0xff] %v13729_v50  ;;  %17887 = vst [vmem:[#allocation38_spill] sm:$0xff] %v13740_v22  ;;  %v7396_v0 = vadd.f32 %v7332_v25, %v13380_v2  ;;  %v7335_v52 = vmul.f32 %v17892_v41, %v3253_v35  ;;  %4471 = vmatprep.mubr.f32.mxu1 %v17737_v28  ;;  %v13771_v40 = vrot.slane %v13514_v6, %v17761_v30  ;;  %v17897_v35 = vld [vmem:[#allocation34_spill] sm:$0xff]  ;;  %v2426_v12 = vpop.f32.mrb[243].mxu0 }
 0x309   : > { %17890 = vst [vmem:[#allocation15_spill] sm:$0xff] %v13752_v14  ;;  %17891 = vst [vmem:[#allocation43_spill] sm:$0xff] %v13758_v38  ;;  %v7398_v49 = vadd.f32 %v7334_v51, %v13389_v39  ;;  %v7397_v55 = vadd.f32 %v7333_v59, %v13392_v62  ;;  %v13779_v2 = vsel %vm758_vm10, %v13726_v29, 0.0  ;;  %v13782_v25 = vrot.slane %v748_v4, %v17761_v30  ;;  %v3257_v59 = vpop.f32.mrb[242].mxu1  ;;  %v9200_v29 = vld [vmem:[%s17584_s2 + $0x170] sm:$0xff]  ;;  %v17900_v4 = vld [vmem:[#allocation40_spill] sm:$0xff] }
 0x30a   : > { %17893 = vst [vmem:[#allocation44_spill] sm:$0xff] %v13767_v8  ;;  %17894 = vst [vmem:[#allocation54_spill] sm:$0xff] %v13771_v40  ;;  %v17898_v46 = vrot.slane %v17897_v35, %v17760_v48  ;;  %v17899_v6 = vrot.slane %v17897_v35, %v17761_v30  ;;  %v7399_v62 = vadd.f32 %v7335_v52, %v13399_v27  ;;  %8844 = vmatmul.mubr.msk.f32.gmra.mrb[92].mxu0 %vm1247_vm6, %v9200_v29 }
 0x30b   : > { %17895 = vst [vmem:[#allocation55_spill] sm:$0xff] %v13779_v2  ;;  %17896 = vst [vmem:[#allocation56_spill] sm:$0xff] %v13782_v25  ;;  %v7340_v51 = vmul.f32 %v17886_v47, %v2424_v1  ;;  %v17901_v9 = vrot.slane %v17900_v4, %v17760_v48  ;;  %v17902_v57 = vrot.slane %v17900_v4, %v17761_v30  ;;  %v3259_v2 = vpop.f32.mrb[243].mxu1  ;;  %8972 = vmatmul.mubr.msk.f32.gmra.mrb[92].mxu1 %vm1247_vm6, %v9200_v29 }
 0x30c   : > { %v7492_v19 = vmul.f32 %v17898_v46, %v7396_v0  ;;  %v7532_v39 = vmul.f32 %v17899_v6, %v7396_v0  ;;  %v17903_v6 = vld [vmem:[#allocation42_spill] sm:$0xff]  ;;  %v17906_v38 = vrot.slane %v12981_v42, %v17760_v48  ;;  %v17907_v14 = vrot.slane %v12981_v42, %v17761_v30  ;;  %3644 = vmatprep.mubr.f32.mxu0 %v17737_v28 }
 0x30d   : > { %v7494_v46 = vmul.f32 %v17901_v9, %v7398_v49  ;;  %v7534_v0 = vmul.f32 %v17902_v57, %v7398_v49  ;;  %v17904_v27 = vrot.slane %v17903_v6, %v17760_v48  ;;  %v17905_v52 = vrot.slane %v17903_v6, %v17761_v30  ;;  %4477 = vmatprep.mubr.f32.mxu1 %v17737_v28 }
 0x30e   : > { %v7548_v8 = vrot.slane %v7532_v39, 4  ;;  %v7495_v9 = vmul.f32 %v17906_v38, %v7399_v62  ;;  %v7535_v49 = vmul.f32 %v17907_v14, %v7399_v62  ;;  %v7404_v57 = vadd.f32 %v7340_v51, %v13420_v18  ;;  %v2430_v39 = vpop.f32.mrb[244].mxu0  ;;  %v3263_v62 = vpop.f32.mrb[244].mxu1 }
 0x30f   : > { %v7493_v1 = vmul.f32 %v17904_v27, %v7397_v55  ;;  %v7533_v43 = vmul.f32 %v17905_v52, %v7397_v55  ;;  %v7550_v27 = vrot.slane %v7534_v0, 4  ;;  %v7342_v52 = vmul.f32 %v17888_v56, %v3257_v59  ;;  %v2432_v51 = vpop.f32.mrb[245].mxu0  ;;  %v3265_v0 = vpop.f32.mrb[245].mxu1 }
 0x310   : > { %v7341_v29 = vmul.f32 %v17889_v31, %v2426_v12  ;;  %v7564_v20 = vadd.f32 %v7548_v8, %v7492_v19  ;;  %v7551_v22 = vrot.slane %v7535_v49, 4  ;;  %v17908_v38 = vrot.slane %v17897_v35, %v17810_v37 }
 0x311   : > { %v7549_v55 = vrot.slane %v7533_v43, 4  ;;  %v17909_v18 = vrot.slane %v17897_v35, %v17811_v63  ;;  %v9201_v43 = vld [vmem:[%s17584_s2 + $0x178] sm:$0xff]  ;;  %v7566_v12 = vadd.f32 %v7550_v27, %v7494_v46  ;;  %v7406_v19 = vadd.f32 %v7342_v52, %v13427_v33 }
 0x312   : > { %v7604_v17 = vmul.f32 %v17908_v38, %v7404_v57  ;;  %8845 = vmatmul.mubr.msk.f32.gmra.mrb[94].mxu0 %vm1247_vm6, %v9201_v43  ;;  %v7405_v8 = vadd.f32 %v7341_v29, %v13430_v53  ;;  %8973 = vmatmul.mubr.msk.f32.gmra.mrb[94].mxu1 %vm1247_vm6, %v9201_v43  ;;  %v7567_v49 = vadd.f32 %v7551_v22, %v7495_v9 }
 0x313   : > { %v7652_v14 = vmul.f32 %v17909_v18, %v7404_v57  ;;  %v7565_v59 = vadd.f32 %v7549_v55, %v7493_v1  ;;  %v7343_v18 = vmul.f32 %v17892_v41, %v3259_v2  ;;  %3650 = vmatprep.mubr.f32.mxu0 %v17737_v28  ;;  %4483 = vmatprep.mubr.f32.mxu1 %v17737_v28  ;;  %v2436_v2 = vpop.f32.mrb[246].mxu0 }
 0x314   : > { %v7612_v38 = vadd.f32 %v7604_v17, %v7564_v20  ;;  %v17910_v46 = vrot.slane %v17900_v4, %v17810_v37  ;;  %v17911_v33 = vrot.slane %v17900_v4, %v17811_v63  ;;  %v17912_v27 = vrot.slane %v17903_v6, %v17810_v37  ;;  %v13851_v43 = vpop.f32.mrb[247].mxu0 }
 0x315   : > { %v7668_v57 = vrot.slane %v7652_v14, 4  ;;  %v17913_v17 = vrot.slane %v17903_v6, %v17811_v63  ;;  %v7407_v55 = vadd.f32 %v7343_v18, %v13440_v26  ;;  %v7348_v52 = vmul.f32 %v17886_v47, %v2430_v39  ;;  %v3269_v14 = vpop.f32.mrb[246].mxu1 }
 0x316   : > { %v7606_v1 = vmul.f32 %v17910_v46, %v7406_v19  ;;  %v7654_v53 = vmul.f32 %v17911_v33, %v7406_v19  ;;  %v7605_v22 = vmul.f32 %v17912_v27, %v7405_v8  ;;  %v7350_v29 = vmul.f32 %v17888_v56, %v3263_v62  ;;  %v9202_v19 = vld [vmem:[%s17584_s2 + $0x180] sm:$0xff] }
 0x317   : > { %v7653_v20 = vmul.f32 %v17913_v17, %v7405_v8  ;;  %v7684_v9 = vadd.f32 %v7668_v57, %v7612_v38  ;;  %8846 = vmatmul.mubr.msk.f32.gmra.mrb[96].mxu0 %vm1247_vm6, %v9202_v19  ;;  %v3271_v38 = vpop.f32.mrb[247].mxu1  ;;  %8974 = vmatmul.mubr.msk.f32.gmra.mrb[96].mxu1 %vm1247_vm6, %v9202_v19  ;;  %v17914_v26 = vrot.slane %v12981_v42, %v17810_v37  ;;  %v2442_v17 = vpop.f32.mrb[248].mxu0 }
 0x318   : > { %v7614_v46 = vadd.f32 %v7606_v1, %v7566_v12  ;;  %v7670_v33 = vrot.slane %v7654_v53, 4  ;;  %v7613_v8 = vadd.f32 %v7605_v22, %v7565_v59  ;;  %3656 = vmatprep.mubr.f32.mxu0 %v17737_v28  ;;  %v17915_v62 = vrot.slane %v12981_v42, %v17811_v63  ;;  %4489 = vmatprep.mubr.f32.mxu1 %v17737_v28 }
 0x319   : > { %v7669_v27 = vrot.slane %v7653_v20, 4  ;;  %v7607_v39 = vmul.f32 %v17914_v26, %v7407_v55  ;;  %v7412_v18 = vadd.f32 %v7348_v52, %v13466_v36  ;;  %v7414_v12 = vadd.f32 %v7350_v29, %v13475_v10  ;;  %v3275_v10 = vpop.f32.mrb[248].mxu1  ;;  %v2444_v29 = vpop.f32.mrb[249].mxu0 }
 0x31a   : > { %v7655_v57 = vmul.f32 %v17915_v62, %v7407_v55  ;;  %v7686_v59 = vadd.f32 %v7670_v33, %v7614_v46  ;;  %v7349_v53 = vmul.f32 %v17889_v31, %v2432_v51  ;;  %v7351_v22 = vmul.f32 %v17892_v41, %v3265_v0  ;;  %v17917_v55 = vld [vmem:[#allocation30_spill] sm:$0xff]  ;;  %v9203_v46 = vld [vmem:[%s17584_s2 + $0x188] sm:$0xff] }
 0x31b   : > { %v7685_v1 = vadd.f32 %v7669_v27, %v7613_v8  ;;  %v7615_v20 = vadd.f32 %v7607_v39, %v7567_v49  ;;  %v17916_v26 = vrot.slane %v17897_v35, %v17819_v13  ;;  %v17918_v36 = vrot.slane %v17897_v35, %v17917_v55  ;;  %8847 = vmatmul.mubr.msk.f32.gmra.mrb[98].mxu0 %vm1247_vm6, %v9203_v46  ;;  %v17921_v8 = vld [vmem:[#allocation36_spill] sm:$0xff]  ;;  %v17922_v39 = vld [vmem:[#allocation39_spill] sm:$0xff] }
 0x31c   : > { %v7671_v19 = vrot.slane %v7655_v57, 4  ;;  %v17919_v51 = vrot.slane %v17900_v4, %v17819_v13  ;;  %v17920_v49 = vrot.slane %v17900_v4, %v17917_v55  ;;  %v7413_v27 = vadd.f32 %v7349_v53, %v17921_v8  ;;  %v13888_v57 = vpop.f32.mrb[249].mxu1  ;;  %8975 = vmatmul.mubr.msk.f32.gmra.mrb[98].mxu1 %vm1247_vm6, %v9203_v46  ;;  %3662 = vmatprep.mubr.f32.mxu0 %v17737_v28  ;;  %v13900_v46 = vpop.f32.mrb[250].mxu0  ;;  %v9204_v8 = vld [vmem:[%s17584_s2 + $0x190] sm:$0xff] }
 0x31d   : > { %v7724_v25 = vmul.f32 %v17916_v26, %v7412_v18  ;;  %v7772_v52 = vmul.f32 %v17918_v36, %v7412_v18  ;;  %v7415_v62 = vadd.f32 %v7351_v22, %v17922_v39  ;;  %v7356_v50 = vmul.f32 %v17886_v47, %v2436_v2  ;;  %4495 = vmatprep.mubr.f32.mxu1 %v17737_v28 }
 0x31e   : > { %v7726_v0 = vmul.f32 %v17919_v51, %v7414_v12  ;;  %v7774_v33 = vmul.f32 %v17920_v49, %v7414_v12  ;;  %v7687_v18 = vadd.f32 %v7671_v19, %v7615_v20  ;;  %v17923_v12 = vrot.slane %v17903_v6, %v17819_v13  ;;  %v17927_v19 = vld [vmem:[#allocation41_spill] sm:$0xff] }
 0x31f   : > { %v7732_v26 = vadd.f32 %v7724_v25, %v7684_v9  ;;  %v7788_v36 = vrot.slane %v7772_v52, 4  ;;  %v17924_v22 = vrot.slane %v17903_v6, %v17917_v55  ;;  %v17925_v2 = vrot.slane %v12981_v42, %v17819_v13  ;;  %8848 = vmatmul.mubr.msk.f32.gmra.mrb[100].mxu0 %vm1247_vm6, %v9204_v8 }
 0x320   : > { %v7734_v51 = vadd.f32 %v7726_v0, %v7686_v59  ;;  %v7790_v58 = vrot.slane %v7774_v33, 4  ;;  %v7725_v53 = vmul.f32 %v17923_v12, %v7413_v27  ;;  %v17926_v20 = vrot.slane %v12981_v42, %v17917_v55  ;;  %v13909_v0 = vpop.f32.mrb[250].mxu1  ;;  %v13911_v33 = vpop.f32.mrb[251].mxu0  ;;  %8976 = vmatmul.mubr.msk.f32.gmra.mrb[100].mxu1 %vm1247_vm6, %v9204_v8  ;;  %3668 = vmatprep.mubr.f32.mxu0 %v17737_v28 }
 0x321   : > { %v7773_v49 = vmul.f32 %v17924_v22, %v7413_v27  ;;  %v7804_v25 = vadd.f32 %v7788_v36, %v7732_v26  ;;  %v7727_v9 = vmul.f32 %v17925_v2, %v7415_v62  ;;  %v7420_v52 = vadd.f32 %v7356_v50, %v17927_v19  ;;  %v13918_v12 = vpop.f32.mrb[251].mxu1  ;;  %4501 = vmatprep.mubr.f32.mxu1 %v17737_v28 }
 0x322   : > { %v7775_v59 = vmul.f32 %v17926_v20, %v7415_v62  ;;  %v7806_v27 = vadd.f32 %v7790_v58, %v7734_v51  ;;  %v7733_v39 = vadd.f32 %v7725_v53, %v7685_v1  ;;  %v7358_v36 = vmul.f32 %v17888_v56, %v3269_v14  ;;  %v13936_v8 = vpop.f32.mrb[252].mxu1 }
 0x323   : > { %v7789_v26 = vrot.slane %v7773_v49, 4  ;;  %v7735_v50 = vadd.f32 %v7727_v9, %v7687_v18  ;;  %v17928_v22 = vrot.slane %v17897_v35, %v17786_v34  ;;  %v17929_v20 = vrot.slane %v17897_v35, %v17794_v3  ;;  %v13933_v18 = vpop.f32.mrb[252].mxu0 }
 0x324   : > { %v7791_v62 = vrot.slane %v7775_v59, 4  ;;  %v7422_v14 = vadd.f32 %v7358_v36, %v13530_v44  ;;  %v7357_v51 = vmul.f32 %v17889_v31, %v13851_v43  ;;  %v7359_v53 = vmul.f32 %v17892_v41, %v3271_v38  ;;  %v13938_v35 = vpop.f32.mrb[253].mxu0  ;;  %v9205_v44 = vld [vmem:[%s17584_s2 + $0x198] sm:$0xff] }
 0x325   : > { %v7844_v2 = vmul.f32 %v17928_v22, %v7420_v52  ;;  %v7892_v58 = vmul.f32 %v17929_v20, %v7420_v52  ;;  %v7805_v1 = vadd.f32 %v7789_v26, %v7733_v39  ;;  %v7364_v19 = vmul.f32 %v17886_v47, %v2442_v17  ;;  %8849 = vmatmul.mubr.msk.f32.gmra.mrb[102].mxu0 %vm1247_vm6, %v9205_v44  ;;  %v13952_v26 = vpop.f32.mrb[253].mxu1 }
 0x326   : > { %v7807_v49 = vadd.f32 %v7791_v62, %v7735_v50  ;;  %v17930_v43 = vrot.slane %v17900_v4, %v17786_v34  ;;  %v7421_v17 = vadd.f32 %v7357_v51, %v13533_v54  ;;  %v7423_v39 = vadd.f32 %v7359_v53, %v13539_v61  ;;  %8977 = vmatmul.mubr.msk.f32.gmra.mrb[102].mxu1 %vm1247_vm6, %v9205_v44  ;;  %v17936_v51 = vld [vmem:[#allocation14_spill] sm:$0xff] }
 0x327   : > { %v7852_v9 = vadd.f32 %v7844_v2, %v7804_v25  ;;  %v7908_v59 = vrot.slane %v7892_v58, 4  ;;  %v17931_v25 = vrot.slane %v17900_v4, %v17794_v3  ;;  %v7428_v50 = vadd.f32 %v7364_v19, %v13555_v32  ;;  %3674 = vmatprep.mubr.f32.mxu0 %v17737_v28  ;;  %4507 = vmatprep.mubr.f32.mxu1 %v17737_v28  ;;  %v13980_v19 = vpop.f32.mrb[254].mxu1 }
 0x328   : > { %v7846_v38 = vmul.f32 %v17930_v43, %v7422_v14  ;;  %v7366_v62 = vmul.f32 %v17888_v56, %v3275_v10  ;;  %v7365_v22 = vmul.f32 %v17889_v31, %v2444_v29  ;;  %v17932_v54 = vrot.slane %v17903_v6, %v17786_v34  ;;  %v9206_v43 = vld [vmem:[%s17584_s2 + $0x1a0] sm:$0xff] }
 0x329   : > { %v7894_v52 = vmul.f32 %v17931_v25, %v7422_v14  ;;  %v7924_v36 = vadd.f32 %v7908_v59, %v7852_v9  ;;  %v17933_v61 = vrot.slane %v17903_v6, %v17794_v3  ;;  %v13965_v14 = vpop.f32.mrb[254].mxu0  ;;  %v17934_v32 = vrot.slane %v12981_v42, %v17786_v34  ;;  %8850 = vmatmul.mubr.msk.f32.gmra.mrb[104].mxu0 %vm1247_vm6, %v9206_v43 }
 0x32a   : > { %v7854_v2 = vadd.f32 %v7846_v38, %v7806_v27  ;;  %v7845_v20 = vmul.f32 %v17932_v54, %v7421_v17  ;;  %v17935_v29 = vrot.slane %v12981_v42, %v17794_v3  ;;  %v17937_v53 = vrot.slane %v17936_v51, %v17760_v48  ;;  %v13982_v44 = vpop.f32.mrb[255].mxu0  ;;  %8978 = vmatmul.mubr.msk.f32.gmra.mrb[104].mxu1 %vm1247_vm6, %v9206_v43 }
 0x32b   : > { %v7910_v4 = vrot.slane %v7894_v52, 4  ;;  %v7893_v58 = vmul.f32 %v17933_v61, %v7421_v17  ;;  %v7847_v10 = vmul.f32 %v17934_v32, %v7423_v39  ;;  %v17938_v6 = vrot.slane %v17936_v51, %v17761_v30  ;;  %v17939_v52 = vld [vmem:[#allocation23_spill] sm:$0xff]  ;;  %3680 = vmatprep.mubr.f32.mxu0 %v17737_v28  ;;  %4513 = vmatprep.mubr.f32.mxu1 %v17737_v28 }
 0x32c   : > { %v7895_v27 = vmul.f32 %v17935_v29, %v7423_v39  ;;  %v7964_v9 = vmul.f32 %v17937_v53, %v7428_v50  ;;  %v7853_v38 = vadd.f32 %v7845_v20, %v7805_v1  ;;  %v7430_v17 = vadd.f32 %v7366_v62, %v17939_v52  ;;  %v13989_v39 = vpop.f32.mrb[255].mxu1  ;;  %v17940_v53 = vld [vmem:[#allocation16_spill] sm:$0xff]  ;;  %v17943_v20 = vld [vmem:[#allocation25_spill] sm:$0xff] }
 0x32d   : > { %v8012_v59 = vmul.f32 %v17938_v6, %v7428_v50  ;;  %v7926_v42 = vadd.f32 %v7910_v4, %v7854_v2  ;;  %v7909_v25 = vrot.slane %v7893_v58, 4  ;;  %v7855_v50 = vadd.f32 %v7847_v10, %v7807_v49  ;;  %v14001_v6 = vpop.f32.mrb[0].mxu0 }
 0x32e   : > { %v7911_v54 = vrot.slane %v7895_v27, 4  ;;  %v7972_v61 = vadd.f32 %v7964_v9, %v7924_v36  ;;  %v17941_v2 = vrot.slane %v17940_v53, %v17760_v48  ;;  %v17942_v62 = vrot.slane %v17940_v53, %v17761_v30  ;;  %v14007_v27 = vpop.f32.mrb[0].mxu1  ;;  %v9207_v9 = vld [vmem:[%s17584_s2 + $0x1a8] sm:$0xff] }
 0x32f   : > { %v8028_v32 = vrot.slane %v8012_v59, 4  ;;  %v7925_v29 = vadd.f32 %v7909_v25, %v7853_v38  ;;  %v7429_v58 = vadd.f32 %v7365_v22, %v17943_v20  ;;  %v7367_v36 = vmul.f32 %v17892_v41, %v13888_v57  ;;  %8851 = vmatmul.mubr.msk.f32.gmra.mrb[106].mxu0 %vm1247_vm6, %v9207_v9  ;;  %v14013_v59 = vpop.f32.mrb[1].mxu0  ;;  %v17944_v25 = vld [vmem:[#allocation18_spill] sm:$0xff]  ;;  %8979 = vmatmul.mubr.msk.f32.gmra.mrb[106].mxu1 %vm1247_vm6, %v9207_v9 }
 0x330   : > { %v7966_v1 = vmul.f32 %v17941_v2, %v7430_v17  ;;  %v8014_v4 = vmul.f32 %v17942_v62, %v7430_v17  ;;  %v7927_v43 = vadd.f32 %v7911_v54, %v7855_v50  ;;  %v7372_v10 = vmul.f32 %v17886_v47, %v13900_v46  ;;  %v14021_v50 = vpop.f32.mrb[1].mxu1  ;;  %3686 = vmatprep.mubr.f32.mxu0 %v17737_v28  ;;  %v17947_v54 = vld [vmem:[#allocation26_spill] sm:$0xff]  ;;  %v14034_v9 = vpop.f32.mrb[2].mxu0 }
 0x331   : > { %v8044_v49 = vadd.f32 %v8028_v32, %v7972_v61  ;;  %v17945_v52 = vrot.slane %v17944_v25, %v17760_v48  ;;  %v17946_v57 = vrot.slane %v17944_v25, %v17761_v30  ;;  %v7431_v61 = vadd.f32 %v7367_v36, %v17947_v54  ;;  %v17948_v32 = vld [vmem:[#allocation17_spill] sm:$0xff]  ;;  %4519 = vmatprep.mubr.f32.mxu1 %v17737_v28 }
 0x332   : > { %v7974_v22 = vadd.f32 %v7966_v1, %v7926_v42  ;;  %v8030_v38 = vrot.slane %v8014_v4, 4  ;;  %v7436_v2 = vadd.f32 %v7372_v10, %v17948_v32  ;;  %v7374_v42 = vmul.f32 %v17888_v56, %v13909_v0  ;;  %17949 = vst [vmem:[#allocation34_spill] sm:$0xff] %v14034_v9 }
 0x333   : > { %v7965_v17 = vmul.f32 %v17945_v52, %v7429_v58  ;;  %v8013_v46 = vmul.f32 %v17946_v57, %v7429_v58  ;;  %v7373_v1 = vmul.f32 %v17889_v31, %v13911_v33  ;;  %v7375_v58 = vmul.f32 %v17892_v41, %v13918_v12  ;;  %v17950_v52 = vld [vmem:[#allocation35_spill] sm:$0xff]  ;;  %v9208_v12 = vld [vmem:[%s17584_s2 + $0x1b0] sm:$0xff] }
 0x334   : > { %v8046_v62 = vadd.f32 %v8030_v38, %v7974_v22  ;;  %v17951_v36 = vrot.slane %v17950_v52, %v17760_v48  ;;  %v17952_v0 = vrot.slane %v17950_v52, %v17761_v30  ;;  %v17953_v33 = vrot.slane %v17936_v51, %v17810_v37  ;;  %v14048_v38 = vpop.f32.mrb[2].mxu1  ;;  %8852 = vmatmul.mubr.msk.f32.gmra.mrb[108].mxu0 %vm1247_vm6, %v9208_v12 }
 0x335   : > { %v7973_v4 = vadd.f32 %v7965_v17, %v7925_v29  ;;  %v8029_v20 = vrot.slane %v8013_v46, 4  ;;  %v17954_v29 = vrot.slane %v17936_v51, %v17811_v63  ;;  %v14054_v17 = vpop.f32.mrb[3].mxu0  ;;  %v7437_v32 = vadd.f32 %v7373_v1, %v13624_v5  ;;  %8980 = vmatmul.mubr.msk.f32.gmra.mrb[108].mxu1 %vm1247_vm6, %v9208_v12  ;;  %3692 = vmatprep.mubr.f32.mxu0 %v17737_v28 }
 0x336   : > { %v7967_v10 = vmul.f32 %v17951_v36, %v7431_v61  ;;  %v8015_v57 = vmul.f32 %v17952_v0, %v7431_v61  ;;  %v8084_v54 = vmul.f32 %v17953_v33, %v7436_v2  ;;  %v7438_v61 = vadd.f32 %v7374_v42, %v13621_v16  ;;  %v14059_v0 = vpop.f32.mrb[3].mxu1  ;;  %4525 = vmatprep.mubr.f32.mxu1 %v17737_v28 }
 0x337   : > { %v8132_v22 = vmul.f32 %v17954_v29, %v7436_v2  ;;  %v8045_v46 = vadd.f32 %v8029_v20, %v7973_v4  ;;  %v7439_v36 = vadd.f32 %v7375_v58, %v13633_v23  ;;  %v17955_v4 = vrot.slane %v17940_v53, %v17810_v37  ;;  %v14076_v20 = vpop.f32.mrb[4].mxu0 }
 0x338   : > { %v7975_v2 = vadd.f32 %v7967_v10, %v7927_v43  ;;  %v8031_v33 = vrot.slane %v8015_v57, 4  ;;  %v8092_v29 = vadd.f32 %v8084_v54, %v8044_v49  ;;  %v17956_v5 = vrot.slane %v17940_v53, %v17811_v63 }
 0x339   : > { %v8148_v9 = vrot.slane %v8132_v22, 4  ;;  %v8086_v16 = vmul.f32 %v17955_v4, %v7438_v61  ;;  %v17957_v42 = vrot.slane %v17944_v25, %v17810_v37  ;;  %v17958_v43 = vrot.slane %v17944_v25, %v17811_v63  ;;  %v9209_v4 = vld [vmem:[%s17584_s2 + $0x1b8] sm:$0xff] }
 0x33a   : > { %v8134_v23 = vmul.f32 %v17956_v5, %v7438_v61  ;;  %v8047_v58 = vadd.f32 %v8031_v33, %v7975_v2  ;;  %v17959_v57 = vrot.slane %v17950_v52, %v17810_v37  ;;  %v17960_v22 = vrot.slane %v17950_v52, %v17811_v63  ;;  %v14084_v61 = vpop.f32.mrb[4].mxu1  ;;  %8853 = vmatmul.mubr.msk.f32.gmra.mrb[110].mxu0 %vm1247_vm6, %v9209_v4 }
 0x33b   : > { %v8085_v1 = vmul.f32 %v17957_v42, %v7437_v32  ;;  %v8133_v49 = vmul.f32 %v17958_v43, %v7437_v32  ;;  %v8164_v10 = vadd.f32 %v8148_v9, %v8092_v29  ;;  %v14090_v32 = vpop.f32.mrb[5].mxu0  ;;  %v8094_v2 = vadd.f32 %v8086_v16, %v8046_v62  ;;  %v14092_v5 = vpop.f32.mrb[5].mxu1  ;;  %8981 = vmatmul.mubr.msk.f32.gmra.mrb[110].mxu1 %vm1247_vm6, %v9209_v4 }
 0x33c   : > { %v8087_v54 = vmul.f32 %v17959_v57, %v7439_v36  ;;  %v8135_v12 = vmul.f32 %v17960_v22, %v7439_v36  ;;  %v8150_v9 = vrot.slane %v8134_v23, 4  ;;  %3698 = vmatprep.mubr.f32.mxu0 %v17737_v28  ;;  %v7380_v43 = vmul.f32 %v17886_v47, %v13933_v18  ;;  %4531 = vmatprep.mubr.f32.mxu1 %v17737_v28  ;;  %v9210_v22 = vld [vmem:[%s17584_s2 + $0x1c0] sm:$0xff] }
 0x33d   : > { %v8093_v33 = vadd.f32 %v8085_v1, %v8045_v46  ;;  %v8149_v29 = vrot.slane %v8133_v49, 4  ;;  %v7382_v57 = vmul.f32 %v17888_v56, %v13936_v8  ;;  %vm785_vm11 = vcmp.eq.s32.totalorder %v17864_v60, %v13771_v40  ;;  %v14107_v1 = vpop.f32.mrb[6].mxu0 }
 0x33e   : > { %v8095_v36 = vadd.f32 %v8087_v54, %v8047_v58  ;;  %v8151_v42 = vrot.slane %v8135_v12, 4  ;;  %v8166_v62 = vadd.f32 %v8150_v9, %v8094_v2  ;;  %v7381_v16 = vmul.f32 %v17889_v31, %v13938_v35  ;;  %v14113_v54 = vpop.f32.mrb[6].mxu1  ;;  %8854 = vmatmul.mubr.msk.f32.gmra.mrb[112].mxu0 %vm1247_vm6, %v9210_v22  ;;  %v14119_v35 = vpop.f32.mrb[7].mxu0 }
 0x33f   : > { %v8165_v46 = vadd.f32 %v8149_v29, %v8093_v33  ;;  %v7383_v23 = vmul.f32 %v17892_v41, %v13952_v26  ;;  %v7444_v18 = vadd.f32 %v7380_v43, %v13658_v21  ;;  %v7446_v8 = vadd.f32 %v7382_v57, %v13668_v15  ;;  %8982 = vmatmul.mubr.msk.f32.gmra.mrb[112].mxu1 %vm1247_vm6, %v9210_v22 }
 0x340   : > { %v8167_v49 = vadd.f32 %v8151_v42, %v8095_v36  ;;  %v7388_v58 = vmul.f32 %v17886_v47, %v13965_v14  ;;  %v7445_v26 = vadd.f32 %v7381_v16, %v13671_v7  ;;  %v7390_v21 = vmul.f32 %v17888_v56, %v13980_v19  ;;  %v14127_v47 = vpop.f32.mrb[7].mxu1  ;;  %3704 = vmatprep.mubr.f32.mxu0 %v17737_v28  ;;  %v14156_v16 = vpop.f32.mrb[8].mxu0 }
 0x341   : > { %v7447_v12 = vadd.f32 %v7383_v23, %v13681_v45  ;;  %v7389_v15 = vmul.f32 %v17889_v31, %v13982_v44  ;;  %v17961_v14 = vrot.slane %v17936_v51, %v17819_v13  ;;  %v17962_v2 = vrot.slane %v17936_v51, %v17917_v55  ;;  %4537 = vmatprep.mubr.f32.mxu1 %v17737_v28 }
 0x342   : > { %v17963_v45 = vrot.slane %v17940_v53, %v17819_v13  ;;  %v17964_v56 = vrot.slane %v17940_v53, %v17917_v55  ;;  %v17965_v19 = vrot.slane %v17944_v25, %v17819_v13  ;;  %v17966_v33 = vrot.slane %v17944_v25, %v17917_v55 }
 0x343   : > { %v8204_v4 = vmul.f32 %v17961_v14, %v7444_v18  ;;  %v8252_v7 = vmul.f32 %v17962_v2, %v7444_v18  ;;  %v17967_v36 = vrot.slane %v17950_v52, %v17819_v13  ;;  %v17968_v43 = vrot.slane %v17950_v52, %v17917_v55  ;;  %v14158_v14 = vpop.f32.mrb[8].mxu1  ;;  %v14164_v2 = vpop.f32.mrb[9].mxu0 }
 0x344   : > { %v8206_v9 = vmul.f32 %v17963_v45, %v7446_v8  ;;  %v8254_v31 = vmul.f32 %v17964_v56, %v7446_v8  ;;  %v8205_v44 = vmul.f32 %v17965_v19, %v7445_v26  ;;  %v8253_v29 = vmul.f32 %v17966_v33, %v7445_v26  ;;  %v9211_v26 = vld [vmem:[%s17584_s2 + $0x1c8] sm:$0xff] }
 0x345   : > { %v8207_v42 = vmul.f32 %v17967_v36, %v7447_v12  ;;  %v8255_v57 = vmul.f32 %v17968_v43, %v7447_v12  ;;  %v8212_v23 = vadd.f32 %v8204_v4, %v8164_v10  ;;  %v8268_v18 = vrot.slane %v8252_v7, 4  ;;  %8855 = vmatmul.mubr.msk.f32.gmra.mrb[114].mxu0 %vm1247_vm6, %v9211_v26  ;;  %v14166_v10 = vpop.f32.mrb[9].mxu1  ;;  %8983 = vmatmul.mubr.msk.f32.gmra.mrb[114].mxu1 %vm1247_vm6, %v9211_v26  ;;  %v17977_v26 = vld [vmem:[#allocation56_spill] sm:$0xff] }
 0x346   : > { %v8214_v8 = vadd.f32 %v8206_v9, %v8166_v62  ;;  %v8270_v22 = vrot.slane %v8254_v31, 4  ;;  %v8213_v45 = vadd.f32 %v8205_v44, %v8165_v46  ;;  %v8269_v12 = vrot.slane %v8253_v29, 4  ;;  %3710 = vmatprep.mubr.f32.mxu0 %v17737_v28  ;;  %4543 = vmatprep.mubr.f32.mxu1 %v17737_v28  ;;  %v14176_v29 = vpop.f32.mrb[10].mxu0 }
 0x347   : > { %v8215_v56 = vadd.f32 %v8207_v42, %v8167_v49  ;;  %v8271_v19 = vrot.slane %v8255_v57, 4  ;;  %v8284_v62 = vadd.f32 %v8268_v18, %v8212_v23  ;;  %v7452_v7 = vadd.f32 %v7388_v58, %v13708_v24  ;;  %v17969_v49 = vld [vmem:[#allocation51_spill] sm:$0xff] }
 0x348   : > { %v8286_v4 = vadd.f32 %v8270_v22, %v8214_v8  ;;  %v7454_v9 = vadd.f32 %v7390_v21, %v13718_v11  ;;  %v8285_v46 = vadd.f32 %v8269_v12, %v8213_v45  ;;  %v7453_v44 = vadd.f32 %v7389_v15, %v17969_v49  ;;  %v17976_v8 = vld [vmem:[#allocation53_spill] sm:$0xff] }
 0x349   : > { %v8287_v31 = vadd.f32 %v8271_v19, %v8215_v56  ;;  %v7391_v33 = vmul.f32 %v17892_v41, %v13989_v39  ;;  %v17970_v36 = vrot.slane %v17936_v51, %v17786_v34  ;;  %v17971_v24 = vrot.slane %v17936_v51, %v17794_v3  ;;  %v14191_v41 = vpop.f32.mrb[10].mxu1  ;;  %v9212_v39 = vld [vmem:[%s17584_s2 + $0x1d0] sm:$0xff]  ;;  %v14197_v51 = vpop.f32.mrb[11].mxu0 }
 0x34a   : > { %v17972_v11 = vrot.slane %v17940_v53, %v17786_v34  ;;  %v17973_v15 = vrot.slane %v17940_v53, %v17794_v3  ;;  %8856 = vmatmul.mubr.msk.f32.gmra.mrb[116].mxu0 %vm1247_vm6, %v9212_v39  ;;  %v17974_v57 = vrot.slane %v17944_v25, %v17786_v34  ;;  %v17975_v18 = vrot.slane %v17944_v25, %v17794_v3  ;;  %v14210_v12 = vpop.f32.mrb[11].mxu1 }
 0x34b   : > { %v8324_v42 = vmul.f32 %v17970_v36, %v7452_v7  ;;  %v8372_v58 = vmul.f32 %v17971_v24, %v7452_v7  ;;  %v7455_v22 = vadd.f32 %v7391_v33, %v17976_v8  ;;  %v800_v45 = vsel %vm785_vm11, %v17977_v26, 0.0  ;;  %8984 = vmatmul.mubr.msk.f32.gmra.mrb[116].mxu1 %vm1247_vm6, %v9212_v39  ;;  %3716 = vmatprep.mubr.f32.mxu0 %v17737_v28  ;;  %v14235_v39 = vpop.f32.mrb[12].mxu1  ;;  %v17984_v8 = vld [vmem:[#allocation43_spill] sm:$0xff] }
 0x34c   : > { %v8326_v21 = vmul.f32 %v17972_v11, %v7454_v9  ;;  %v8374_v43 = vmul.f32 %v17973_v15, %v7454_v9  ;;  %v8325_v23 = vmul.f32 %v17974_v57, %v7453_v44  ;;  %v8373_v53 = vmul.f32 %v17975_v18, %v7453_v44  ;;  %4549 = vmatprep.mubr.f32.mxu1 %v17737_v28  ;;  %v17981_v11 = vld [vmem:[#allocation38_spill] sm:$0xff]  ;;  %v17982_v15 = vld [vmem:[#allocation48_spill] sm:$0xff]  ;;  %v9213_v57 = vld [vmem:[%s17584_s2 + $0x1d8] sm:$0xff] }
 0x34d   : > { %v8332_v56 = vadd.f32 %v8324_v42, %v8284_v62  ;;  %v8388_v19 = vrot.slane %v8372_v58, 4  ;;  %v17978_v44 = vrot.slane %v17950_v52, %v17786_v34  ;;  %v17979_v36 = vrot.slane %v17950_v52, %v17794_v3  ;;  %v14225_v42 = vpop.f32.mrb[12].mxu0  ;;  %v17980_v58 = vld [vmem:[#allocation24_spill] sm:$0xff] }
 0x34e   : > { %v8334_v7 = vadd.f32 %v8326_v21, %v8286_v4  ;;  %v8390_v9 = vrot.slane %v8374_v43, 4  ;;  %v8333_v25 = vadd.f32 %v8325_v23, %v8285_v46  ;;  %v8389_v49 = vrot.slane %v8373_v53, 4  ;;  %v17983_v43 = vld [vmem:[#allocation15_spill] sm:$0xff]  ;;  %8857 = vmatmul.mubr.msk.f32.gmra.mrb[118].mxu0 %vm1247_vm6, %v9213_v57  ;;  %v14241_v52 = vpop.f32.mrb[13].mxu0 }
 0x34f   : > { %v8327_v33 = vmul.f32 %v17978_v44, %v7455_v22  ;;  %v8375_v62 = vmul.f32 %v17979_v36, %v7455_v22  ;;  %v8404_v4 = vadd.f32 %v8388_v19, %v8332_v56  ;;  %v14229_v21 = vadd.f32 %v17981_v11, %v17980_v58  ;;  %v17985_v22 = vld [vmem:[#allocation44_spill] sm:$0xff]  ;;  %v14247_v19 = vpop.f32.mrb[13].mxu1  ;;  %8985 = vmatmul.mubr.msk.f32.gmra.mrb[118].mxu1 %vm1247_vm6, %v9213_v57 }
 0x350   : > { %v8406_v24 = vadd.f32 %v8390_v9, %v8334_v7  ;;  %v14233_v46 = vadd.f32 %v17983_v43, %v17982_v15  ;;  %v8405_v23 = vadd.f32 %v8389_v49, %v8333_v25  ;;  %v14245_v56 = vadd.f32 %v17985_v22, %v17984_v8  ;;  %3722 = vmatprep.mubr.f32.mxu0 %v17737_v28  ;;  %v17986_v9 = vld [vmem:[#allocation55_spill] sm:$0xff]  ;;  %v9214_v36 = vld [vmem:[%s17584_s2 + $0x1e0] sm:$0xff] }
 0x351   : > { %v8335_v18 = vadd.f32 %v8327_v33, %v8287_v31  ;;  %v8391_v53 = vrot.slane %v8375_v62, 4  ;;  %v14252_v44 = vadd.f32 %v800_v45, %v17986_v9  ;;  %4555 = vmatprep.mubr.f32.mxu1 %v17737_v28  ;;  %v14255_v31 = vpop.f32.mrb[14].mxu0  ;;  %v14258_v33 = vpop.f32.mrb[14].mxu1  ;;  %v14296_v57 = vrot.slane %v14229_v21, %v17761_v30 }
 0x352   : > { %v8414_v7 = vrot.slane %v8406_v24, 4  ;;  %8858 = vmatmul.mubr.msk.f32.gmra.mrb[120].mxu0 %vm1247_vm6, %v9214_v36  ;;  %v14264_v62 = vpop.f32.mrb[15].mxu0  ;;  %v14272_v24 = vrot.slane %v14229_v21, %v17760_v48  ;;  %v14280_v58 = vrot.slane %v14245_v56, %v17760_v48  ;;  %v14282_v11 = vpop.f32.mrb[15].mxu1  ;;  %v14292_v43 = vrot.slane %v14245_v56, %v17761_v30 }
 0x353   : > { %v8407_v25 = vadd.f32 %v8391_v53, %v8335_v18  ;;  %8986 = vmatmul.mubr.msk.f32.gmra.mrb[120].mxu1 %vm1247_vm6, %v9214_v36  ;;  %3728 = vmatprep.mubr.f32.mxu0 %v17737_v28  ;;  %v14288_v15 = vrot.slane %v14252_v44, %v17760_v48  ;;  %v14301_v18 = vrot.slane %v14252_v44, %v17761_v30  ;;  %v3412_v8 = vpop.f32.mrb[16].mxu0 }
 0x354   : > { %v8425_v49 = vsel %vm8424_vm12, %v8404_v4, %v8414_v7  ;;  %v14276_v4 = vrot.slane %v14233_v46, %v17760_v48  ;;  %4561 = vmatprep.mubr.f32.mxu1 %v17737_v28  ;;  %v14306_v22 = vrot.slane %v14233_v46, %v17761_v30  ;;  %v4245_v7 = vpop.f32.mrb[16].mxu1  ;;  %v3414_v9 = vpop.f32.mrb[17].mxu0  ;;  %v5000_v36 = vmul.f32 %v14280_v58, %v14001_v6 }
 0x355   : > { %8429 = vst [vmem:[%s14267_s29] sm:$0xff] %v8425_v49  ;;  %v8415_v45 = vrot.slane %v8407_v25, 4  ;;  %v9215_v25 = vld [vmem:[%s17584_s2 + $0x1e8] sm:$0xff]  ;;  %v5002_v49 = vmul.f32 %v14272_v24, %v14007_v27  ;;  %v5096_v60 = vmul.f32 %v14292_v43, %v3412_v8  ;;  %v5098_v30 = vmul.f32 %v14296_v57, %v4245_v7 }
 0x356   : > { %8859 = vmatmul.mubr.msk.f32.gmra.mrb[122].mxu0 %vm1247_vm6, %v9215_v25  ;;  %v5097_v48 = vmul.f32 %v14301_v18, %v3414_v9  ;;  %v5010_v27 = vmul.f32 %v14272_v24, %v14048_v38 }
 0x357   : > { %v8426_v53 = vsel %vm8424_vm12, %v8405_v23, %v8415_v45  ;;  %v5003_v23 = vmul.f32 %v14276_v4, %v14021_v50  ;;  %v4247_v45 = vpop.f32.mrb[17].mxu1  ;;  %8987 = vmatmul.mubr.msk.f32.gmra.mrb[122].mxu1 %vm1247_vm6, %v9215_v25  ;;  %3734 = vmatprep.mubr.f32.mxu0 %v17737_v28  ;;  %v17987_v50 = vld [vmem:[#allocation34_spill] sm:$0xff]  ;;  %v5009_v25 = vmul.f32 %v14288_v15, %v14054_v17 }
 0x358   : > { %8430 = vst [vmem:[%s14267_s29 + $0x8] sm:$0xff] %v8426_v53  ;;  %v5001_v53 = vmul.f32 %v14288_v15, %v14013_v59  ;;  %v5008_v6 = vmul.f32 %v14280_v58, %v17987_v50  ;;  %v5099_v26 = vmul.f32 %v14306_v22, %v4247_v45  ;;  %v3418_v59 = vpop.f32.mrb[18].mxu0  ;;  %4567 = vmatprep.mubr.f32.mxu1 %v17737_v28  ;;  %v4251_v38 = vpop.f32.mrb[18].mxu1  ;;  %v9216_v50 = vld [vmem:[%s17584_s2 + $0x1f0] sm:$0xff] }
 0x359   : > { %v14334_v8 = vadd.f32 %v5096_v60, %v5000_v36  ;;  %v14336_v7 = vadd.f32 %v5098_v30, %v5002_v49  ;;  %v5104_v40 = vmul.f32 %v14292_v43, %v3418_v59  ;;  %v3420_v3 = vpop.f32.mrb[19].mxu0  ;;  %v5106_v45 = vmul.f32 %v14296_v57, %v4251_v38  ;;  %v4253_v30 = vpop.f32.mrb[19].mxu1 }
 0x35a   : > { %v14338_v9 = vadd.f32 %v5097_v48, %v5001_v53  ;;  %8860 = vmatmul.mubr.msk.f32.gmra.mrb[124].mxu0 %vm1247_vm6, %v9216_v50  ;;  %v14345_v17 = vadd.f32 %v5099_v26, %v5003_v23  ;;  %v5105_v60 = vmul.f32 %v14301_v18, %v3420_v3  ;;  %v5011_v48 = vmul.f32 %v14276_v4, %v14059_v0  ;;  %v3424_v53 = vpop.f32.mrb[20].mxu0  ;;  %v4257_v0 = vpop.f32.mrb[20].mxu1 }
 0x35b   : > { %8988 = vmatmul.mubr.msk.f32.gmra.mrb[124].mxu1 %vm1247_vm6, %v9216_v50  ;;  %3740 = vmatprep.mubr.f32.mxu0 %v17737_v28  ;;  %v14353_v49 = vadd.f32 %v5104_v40, %v5008_v6  ;;  %v5107_v36 = vmul.f32 %v14306_v22, %v4253_v30  ;;  %v14357_v26 = vadd.f32 %v5106_v45, %v5010_v27  ;;  %v3426_v6 = vpop.f32.mrb[21].mxu0  ;;  %v9217_v27 = vld [vmem:[%s17584_s2 + $0x1f8] sm:$0xff] }
 0x35c   : > { %4573 = vmatprep.mubr.f32.mxu1 %v17737_v28  ;;  %v14359_v23 = vadd.f32 %v5105_v60, %v5009_v25  ;;  %v5018_v3 = vmul.f32 %v14272_v24, %v14084_v61  ;;  %v5016_v59 = vmul.f32 %v14280_v58, %v14076_v20  ;;  %v5112_v40 = vmul.f32 %v14292_v43, %v3424_v53  ;;  %v4259_v20 = vpop.f32.mrb[21].mxu1 }
 0x35d   : > { %v14365_v38 = vadd.f32 %v5107_v36, %v5011_v48  ;;  %v5017_v25 = vmul.f32 %v14288_v15, %v14090_v32  ;;  %v5114_v61 = vmul.f32 %v14296_v57, %v4257_v0  ;;  %v5113_v50 = vmul.f32 %v14301_v18, %v3426_v6  ;;  %v3430_v36 = vpop.f32.mrb[22].mxu0 }
 0x35e   : > { %8861 = vmatmul.mubr.msk.f32.gmra.mrb[126].mxu0 %vm1247_vm6, %v9217_v27  ;;  %v5019_v45 = vmul.f32 %v14276_v4, %v14092_v5  ;;  %v14380_v60 = vadd.f32 %v5112_v40, %v5016_v59  ;;  %v5115_v30 = vmul.f32 %v14306_v22, %v4259_v20  ;;  %v5026_v53 = vmul.f32 %v14272_v24, %v14113_v54  ;;  %v4263_v59 = vpop.f32.mrb[22].mxu1  ;;  %v3432_v40 = vpop.f32.mrb[23].mxu0 }
 0x35f   : > { %8989 = vmatmul.mubr.msk.f32.gmra.mrb[126].mxu1 %vm1247_vm6, %v9217_v27  ;;  %3746 = vmatprep.mubr.f32.mxu0 %v17737_v28  ;;  %v14384_v48 = vadd.f32 %v5114_v61, %v5018_v3  ;;  %v14386_v32 = vadd.f32 %v5113_v50, %v5017_v25  ;;  %v5024_v0 = vmul.f32 %v14280_v58, %v14107_v1  ;;  %v9218_v3 = vld [vmem:[%s17584_s2 + $0x200] sm:$0xff]  ;;  %v4265_v1 = vpop.f32.mrb[23].mxu1 }
 0x360   : > { %4579 = vmatprep.mubr.f32.mxu1 %v17737_v28  ;;  %v14392_v6 = vadd.f32 %v5115_v30, %v5019_v45  ;;  %v5120_v5 = vmul.f32 %v14292_v43, %v3430_v36  ;;  %v5025_v27 = vmul.f32 %v14288_v15, %v14119_v35  ;;  %v5122_v54 = vmul.f32 %v14296_v57, %v4263_v59  ;;  %v3436_v30 = vpop.f32.mrb[24].mxu0 }
 0x361   : > { %v5121_v25 = vmul.f32 %v14301_v18, %v3432_v40  ;;  %v5027_v61 = vmul.f32 %v14276_v4, %v14127_v47  ;;  %v5123_v20 = vmul.f32 %v14306_v22, %v4265_v1  ;;  %v5034_v36 = vmul.f32 %v14272_v24, %v14158_v14 }
 0x362   : > { %8862 = vmatmul.mubr.msk.f32.gmra.mrb[128].mxu0 %vm1247_vm6, %v9218_v3  ;;  %v14407_v50 = vadd.f32 %v5120_v5, %v5024_v0  ;;  %v14411_v45 = vadd.f32 %v5122_v54, %v5026_v53  ;;  %v5032_v59 = vmul.f32 %v14280_v58, %v14156_v16  ;;  %v5128_v47 = vmul.f32 %v14292_v43, %v3436_v30  ;;  %v4269_v0 = vpop.f32.mrb[24].mxu1  ;;  %v3438_v5 = vpop.f32.mrb[25].mxu0  ;;  %v9219_v53 = vld [vmem:[%s17584_s2 + $0x208] sm:$0xff] }
 0x363   : > { %8990 = vmatmul.mubr.msk.f32.gmra.mrb[128].mxu1 %vm1247_vm6, %v9218_v3  ;;  %3752 = vmatprep.mubr.f32.mxu0 %v17737_v28  ;;  %v14413_v35 = vadd.f32 %v5121_v25, %v5025_v27  ;;  %v14419_v40 = vadd.f32 %v5123_v20, %v5027_v61  ;;  %v5033_v3 = vmul.f32 %v14288_v15, %v14164_v2  ;;  %v4271_v16 = vpop.f32.mrb[25].mxu1  ;;  %v3442_v20 = vpop.f32.mrb[26].mxu0 }
 0x364   : > { %4585 = vmatprep.mubr.f32.mxu1 %v17737_v28  ;;  %v5130_v14 = vmul.f32 %v14296_v57, %v4269_v0  ;;  %v5129_v27 = vmul.f32 %v14301_v18, %v3438_v5  ;;  %v5035_v54 = vmul.f32 %v14276_v4, %v14166_v10  ;;  %v14434_v25 = vadd.f32 %v5128_v47, %v5032_v59  ;;  %v4275_v59 = vpop.f32.mrb[26].mxu1  ;;  %v3444_v47 = vpop.f32.mrb[27].mxu0 }
 0x365   : > { %v5131_v1 = vmul.f32 %v14306_v22, %v4271_v16  ;;  %v5042_v30 = vmul.f32 %v14272_v24, %v14191_v41  ;;  %v5040_v0 = vmul.f32 %v14280_v58, %v14176_v29  ;;  %v5136_v10 = vmul.f32 %v14292_v43, %v3442_v20  ;;  %v4277_v29 = vpop.f32.mrb[27].mxu1 }
 0x366   : > { %8863 = vmatmul.mubr.msk.f32.gmra.mrb[130].mxu0 %vm1247_vm6, %v9219_v53  ;;  %v14438_v61 = vadd.f32 %v5130_v14, %v5034_v36  ;;  %v14440_v2 = vadd.f32 %v5129_v27, %v5033_v3  ;;  %v9220_v36 = vld [vmem:[%s17584_s2 + $0x210] sm:$0xff]  ;;  %v5138_v41 = vmul.f32 %v14296_v57, %v4275_v59  ;;  %v5137_v3 = vmul.f32 %v14301_v18, %v3444_v47 }
 0x367   : > { %8991 = vmatmul.mubr.msk.f32.gmra.mrb[130].mxu1 %vm1247_vm6, %v9219_v53  ;;  %3758 = vmatprep.mubr.f32.mxu0 %v17737_v28  ;;  %v14446_v5 = vadd.f32 %v5131_v1, %v5035_v54  ;;  %v5041_v53 = vmul.f32 %v14288_v15, %v14197_v51  ;;  %v5043_v14 = vmul.f32 %v14276_v4, %v14210_v12  ;;  %v3448_v1 = vpop.f32.mrb[28].mxu0 }
 0x368   : > { %4591 = vmatprep.mubr.f32.mxu1 %v17737_v28  ;;  %v14461_v27 = vadd.f32 %v5136_v10, %v5040_v0  ;;  %v5139_v16 = vmul.f32 %v14306_v22, %v4277_v29  ;;  %v14465_v54 = vadd.f32 %v5138_v41, %v5042_v30  ;;  %v5050_v20 = vmul.f32 %v14272_v24, %v14235_v39  ;;  %v4281_v0 = vpop.f32.mrb[28].mxu1  ;;  %v3450_v10 = vpop.f32.mrb[29].mxu0  ;;  %v9221_v30 = vld [vmem:[%s17584_s2 + $0x218] sm:$0xff] }
 0x369   : > { %v14467_v51 = vadd.f32 %v5137_v3, %v5041_v53  ;;  %v5048_v59 = vmul.f32 %v14280_v58, %v14225_v42  ;;  %v5144_v12 = vmul.f32 %v14292_v43, %v3448_v1  ;;  %v5146_v39 = vmul.f32 %v14296_v57, %v4281_v0  ;;  %v4283_v42 = vpop.f32.mrb[29].mxu1  ;;  %v3454_v1 = vpop.f32.mrb[30].mxu0 }
 0x36a   : > { %8864 = vmatmul.mubr.msk.f32.gmra.mrb[132].mxu0 %vm1247_vm6, %v9220_v36  ;;  %v14473_v47 = vadd.f32 %v5139_v16, %v5043_v14  ;;  %v5145_v53 = vmul.f32 %v14301_v18, %v3450_v10  ;;  %v5051_v41 = vmul.f32 %v14276_v4, %v14247_v19  ;;  %v5147_v29 = vmul.f32 %v14306_v22, %v4283_v42 }
 0x36b   : > { %8992 = vmatmul.mubr.msk.f32.gmra.mrb[132].mxu1 %vm1247_vm6, %v9220_v36  ;;  %3764 = vmatprep.mubr.f32.mxu0 %v17737_v28  ;;  %v5049_v36 = vmul.f32 %v14288_v15, %v14241_v52  ;;  %v14488_v3 = vadd.f32 %v5144_v12, %v5048_v59  ;;  %v14494_v52 = vrot.slane %v14245_v56, %v17810_v37 }
 0x36c   : > { %4597 = vmatprep.mubr.f32.mxu1 %v17737_v28  ;;  %v14496_v14 = vadd.f32 %v5146_v39, %v5050_v20  ;;  %v14502_v0 = vrot.slane %v14229_v21, %v17810_v37  ;;  %v14506_v19 = vrot.slane %v14252_v44, %v17810_v37  ;;  %v5058_v59 = vmul.f32 %v14272_v24, %v14258_v33  ;;  %v9222_v39 = vld [vmem:[%s17584_s2 + $0x220] sm:$0xff] }
 0x36d   : > { %v14498_v16 = vadd.f32 %v5145_v53, %v5049_v36  ;;  %v5056_v12 = vmul.f32 %v14280_v58, %v14255_v31  ;;  %v14512_v10 = vadd.f32 %v5147_v29, %v5051_v41  ;;  %v5152_v20 = vmul.f32 %v14292_v43, %v3454_v1  ;;  %v3456_v36 = vpop.f32.mrb[31].mxu0 }
 0x36e   : > { %8865 = vmatmul.mubr.msk.f32.gmra.mrb[134].mxu0 %vm1247_vm6, %v9221_v30  ;;  %v5057_v53 = vmul.f32 %v14288_v15, %v14264_v62  ;;  %v5153_v24 = vmul.f32 %v14301_v18, %v3456_v36  ;;  %v5059_v58 = vmul.f32 %v14276_v4, %v14282_v11  ;;  %v14533_v62 = vrot.slane %v14233_v46, %v17810_v37  ;;  %v3460_v18 = vpop.f32.mrb[32].mxu0 }
 0x36f   : > { %8993 = vmatmul.mubr.msk.f32.gmra.mrb[134].mxu1 %vm1247_vm6, %v9221_v30  ;;  %3770 = vmatprep.mubr.f32.mxu0 %v17737_v28  ;;  %v4287_v30 = vpop.f32.mrb[30].mxu1  ;;  %v14527_v43 = vadd.f32 %v5152_v20, %v5056_v12  ;;  %v5256_v29 = vmul.f32 %v14494_v52, %v3460_v18  ;;  %v3462_v11 = vpop.f32.mrb[33].mxu0 }
 0x370   : > { %4603 = vmatprep.mubr.f32.mxu1 %v17737_v28  ;;  %v5154_v33 = vmul.f32 %v14296_v57, %v4287_v30  ;;  %v4289_v31 = vpop.f32.mrb[31].mxu1  ;;  %v14537_v57 = vadd.f32 %v5153_v24, %v5057_v53  ;;  %v3466_v53 = vpop.f32.mrb[34].mxu0 }
 0x371   : > { %v5155_v42 = vmul.f32 %v14306_v22, %v4289_v31  ;;  %v4293_v4 = vpop.f32.mrb[32].mxu1  ;;  %v9223_v22 = vld [vmem:[%s17584_s2 + $0x228] sm:$0xff]  ;;  %v14551_v20 = vadd.f32 %v5256_v29, %v14334_v8  ;;  %v5264_v24 = vmul.f32 %v14494_v52, %v3466_v53  ;;  %v9224_v8 = vld [vmem:[%s17584_s2 + $0x230] sm:$0xff] }
 0x372   : > { %8866 = vmatmul.mubr.msk.f32.gmra.mrb[136].mxu0 %vm1247_vm6, %v9222_v39  ;;  %v14535_v15 = vadd.f32 %v5154_v33, %v5058_v59  ;;  %v5258_v1 = vmul.f32 %v14502_v0, %v4293_v4  ;;  %v5257_v59 = vmul.f32 %v14506_v19, %v3462_v11  ;;  %v4295_v12 = vpop.f32.mrb[33].mxu1 }
 0x373   : > { %8994 = vmatmul.mubr.msk.f32.gmra.mrb[136].mxu1 %vm1247_vm6, %v9222_v39  ;;  %3776 = vmatprep.mubr.f32.mxu0 %v17737_v28  ;;  %v14539_v41 = vadd.f32 %v5155_v42, %v5059_v58  ;;  %v5259_v30 = vmul.f32 %v14533_v62, %v4295_v12  ;;  %v4299_v31 = vpop.f32.mrb[34].mxu1  ;;  %v3468_v58 = vpop.f32.mrb[35].mxu0 }
 0x374   : > { %4609 = vmatprep.mubr.f32.mxu1 %v17737_v28  ;;  %v14556_v36 = vadd.f32 %v5258_v1, %v14336_v7  ;;  %v14559_v39 = vadd.f32 %v5257_v59, %v14338_v9  ;;  %v5266_v7 = vmul.f32 %v14502_v0, %v4299_v31  ;;  %v5265_v42 = vmul.f32 %v14506_v19, %v3468_v58  ;;  %v4301_v9 = vpop.f32.mrb[35].mxu1  ;;  %v3472_v11 = vpop.f32.mrb[36].mxu0 }
 0x375   : > { %v14562_v33 = vadd.f32 %v5259_v30, %v14345_v17  ;;  %v14574_v17 = vadd.f32 %v5264_v24, %v14353_v49  ;;  %v5267_v18 = vmul.f32 %v14533_v62, %v4301_v9  ;;  %v5272_v1 = vmul.f32 %v14494_v52, %v3472_v11  ;;  %v4305_v59 = vpop.f32.mrb[36].mxu1  ;;  %v3474_v12 = vpop.f32.mrb[37].mxu0  ;;  %v9225_v49 = vld [vmem:[%s17584_s2 + $0x238] sm:$0xff] }
 0x376   : > { %8867 = vmatmul.mubr.msk.f32.gmra.mrb[138].mxu0 %vm1247_vm6, %v9223_v22  ;;  %v14579_v29 = vadd.f32 %v5266_v7, %v14357_v26  ;;  %v14582_v4 = vadd.f32 %v5265_v42, %v14359_v23  ;;  %v5274_v26 = vmul.f32 %v14502_v0, %v4305_v59  ;;  %v5273_v30 = vmul.f32 %v14506_v19, %v3474_v12  ;;  %v4307_v23 = vpop.f32.mrb[37].mxu1  ;;  %v3478_v58 = vpop.f32.mrb[38].mxu0 }
 0x377   : > { %8995 = vmatmul.mubr.msk.f32.gmra.mrb[138].mxu1 %vm1247_vm6, %v9223_v22  ;;  %3782 = vmatprep.mubr.f32.mxu0 %v17737_v28  ;;  %v14585_v22 = vadd.f32 %v5267_v18, %v14365_v38  ;;  %v14597_v38 = vadd.f32 %v5272_v1, %v14380_v60  ;;  %v5275_v53 = vmul.f32 %v14533_v62, %v4307_v23  ;;  %v4311_v42 = vpop.f32.mrb[38].mxu1  ;;  %v3480_v9 = vpop.f32.mrb[39].mxu0  ;;  %v9226_v60 = vld [vmem:[%s17584_s2 + $0x240] sm:$0xff] }
 0x378   : > { %4615 = vmatprep.mubr.f32.mxu1 %v17737_v28  ;;  %v14602_v24 = vadd.f32 %v5274_v26, %v14384_v48  ;;  %v14605_v31 = vadd.f32 %v5273_v30, %v14386_v32  ;;  %v5280_v7 = vmul.f32 %v14494_v52, %v3478_v58  ;;  %v5282_v48 = vmul.f32 %v14502_v0, %v4311_v42  ;;  %v4313_v32 = vpop.f32.mrb[39].mxu1  ;;  %v3484_v12 = vpop.f32.mrb[40].mxu0 }
 0x379   : > { %v5281_v18 = vmul.f32 %v14506_v19, %v3480_v9  ;;  %v5283_v11 = vmul.f32 %v14533_v62, %v4313_v32  ;;  %v5288_v26 = vmul.f32 %v14494_v52, %v3484_v12  ;;  %v4317_v30 = vpop.f32.mrb[40].mxu1  ;;  %v3486_v23 = vpop.f32.mrb[41].mxu0 }
 0x37a   : > { %8868 = vmatmul.mubr.msk.f32.gmra.mrb[140].mxu0 %vm1247_vm6, %v9224_v8  ;;  %v14625_v1 = vadd.f32 %v5282_v48, %v14411_v45  ;;  %v5290_v45 = vmul.f32 %v14502_v0, %v4317_v30  ;;  %v3490_v9 = vpop.f32.mrb[42].mxu0 }
 0x37b   : > { %8996 = vmatmul.mubr.msk.f32.gmra.mrb[140].mxu1 %vm1247_vm6, %v9224_v8  ;;  %3788 = vmatprep.mubr.f32.mxu0 %v17737_v28  ;;  %v14608_v8 = vadd.f32 %v5275_v53, %v14392_v6  ;;  %v14620_v6 = vadd.f32 %v5280_v7, %v14407_v50  ;;  %v14628_v59 = vadd.f32 %v5281_v18, %v14413_v35  ;;  %v9227_v50 = vld [vmem:[%s17584_s2 + $0x248] sm:$0xff]  ;;  %v4319_v35 = vpop.f32.mrb[41].mxu1  ;;  %v3492_v32 = vpop.f32.mrb[43].mxu0 }
 0x37c   : > { %4621 = vmatprep.mubr.f32.mxu1 %v17737_v28  ;;  %v5289_v53 = vmul.f32 %v14506_v19, %v3486_v23  ;;  %v5291_v58 = vmul.f32 %v14533_v62, %v4319_v35  ;;  %v14648_v7 = vadd.f32 %v5290_v45, %v14438_v61  ;;  %v5296_v48 = vmul.f32 %v14494_v52, %v3490_v9  ;;  %v4323_v18 = vpop.f32.mrb[42].mxu1  ;;  %v3496_v23 = vpop.f32.mrb[44].mxu0 }
 0x37d   : > { %v5298_v61 = vmul.f32 %v14502_v0, %v4323_v18  ;;  %v5304_v45 = vmul.f32 %v14494_v52, %v3496_v23  ;;  %v3498_v35 = vpop.f32.mrb[45].mxu0  ;;  %v14721_v23 = vrot.slane %v14252_v44, %v17811_v63 }
 0x37e   : > { %8869 = vmatmul.mubr.msk.f32.gmra.mrb[142].mxu0 %vm1247_vm6, %v9225_v49  ;;  %v14651_v42 = vadd.f32 %v5289_v53, %v14440_v2  ;;  %v4325_v2 = vpop.f32.mrb[43].mxu1 }
 0x37f   : > { %8997 = vmatmul.mubr.msk.f32.gmra.mrb[142].mxu1 %vm1247_vm6, %v9225_v49  ;;  %3794 = vmatprep.mubr.f32.mxu0 %v17737_v28  ;;  %v14631_v49 = vadd.f32 %v5283_v11, %v14419_v40  ;;  %v14643_v40 = vadd.f32 %v5288_v26, %v14434_v25  ;;  %v9228_v25 = vld [vmem:[%s17584_s2 + $0x250] sm:$0xff]  ;;  %v5297_v11 = vmul.f32 %v14506_v19, %v3492_v32  ;;  %v4329_v53 = vpop.f32.mrb[44].mxu1 }
 0x380   : > { %4627 = vmatprep.mubr.f32.mxu1 %v17737_v28  ;;  %v5299_v12 = vmul.f32 %v14533_v62, %v4325_v2  ;;  %v14671_v26 = vadd.f32 %v5298_v61, %v14465_v54  ;;  %v5306_v54 = vmul.f32 %v14502_v0, %v4329_v53  ;;  %v3502_v32 = vpop.f32.mrb[46].mxu0 }
 0x381   : > { %v14674_v30 = vadd.f32 %v5297_v11, %v14467_v51  ;;  %v4331_v51 = vpop.f32.mrb[45].mxu1  ;;  %v5312_v61 = vmul.f32 %v14494_v52, %v3502_v32  ;;  %v3504_v2 = vpop.f32.mrb[47].mxu0 }
 0x382   : > { %8870 = vmatmul.mubr.msk.f32.gmra.mrb[144].mxu0 %vm1247_vm6, %v9226_v60  ;;  %v5307_v9 = vmul.f32 %v14533_v62, %v4331_v51  ;;  %v4335_v11 = vpop.f32.mrb[46].mxu1  ;;  %v5313_v52 = vmul.f32 %v14506_v19, %v3504_v2  ;;  %v9231_v51 = vld [vmem:[%s17584_s2 + $0x268] sm:$0xff] }
 0x383   : > { %8998 = vmatmul.mubr.msk.f32.gmra.mrb[144].mxu1 %vm1247_vm6, %v9226_v60  ;;  %3800 = vmatprep.mubr.f32.mxu0 %v17737_v28  ;;  %v14654_v60 = vadd.f32 %v5291_v58, %v14446_v5  ;;  %v14666_v5 = vadd.f32 %v5296_v48, %v14461_v27  ;;  %v9229_v27 = vld [vmem:[%s17584_s2 + $0x258] sm:$0xff]  ;;  %v5305_v58 = vmul.f32 %v14506_v19, %v3498_v35 }
 0x384   : > { %4633 = vmatprep.mubr.f32.mxu1 %v17737_v28  ;;  %v14694_v48 = vadd.f32 %v5306_v54, %v14496_v14  ;;  %v14709_v14 = vrot.slane %v14245_v56, %v17811_v63  ;;  %v14736_v35 = vadd.f32 %v5313_v52, %v14537_v57 }
 0x385   : > { %v14697_v18 = vadd.f32 %v5305_v58, %v14498_v16  ;;  %v14713_v16 = vrot.slane %v14229_v21, %v17811_v63 }
 0x386   : > { %8871 = vmatmul.mubr.msk.f32.gmra.mrb[146].mxu0 %vm1247_vm6, %v9227_v50 }
 0x387   : > { %8999 = vmatmul.mubr.msk.f32.gmra.mrb[146].mxu1 %vm1247_vm6, %v9227_v50  ;;  %3806 = vmatprep.mubr.f32.mxu0 %v17737_v28  ;;  %v14677_v50 = vadd.f32 %v5299_v12, %v14473_v47  ;;  %v14689_v47 = vadd.f32 %v5304_v45, %v14488_v3  ;;  %v9230_v3 = vld [vmem:[%s17584_s2 + $0x260] sm:$0xff]  ;;  %v4337_v12 = vpop.f32.mrb[47].mxu1  ;;  %v14724_v45 = vadd.f32 %v5312_v61, %v14527_v43 }
 0x388   : > { %4639 = vmatprep.mubr.f32.mxu1 %v17737_v28  ;;  %v5315_v53 = vmul.f32 %v14533_v62, %v4337_v12  ;;  %v4341_v58 = vpop.f32.mrb[48].mxu1 }
 0x389   : > { %v4343_v57 = vpop.f32.mrb[49].mxu1 }
 0x38a   : > { %8872 = vmatmul.mubr.msk.f32.gmra.mrb[148].mxu0 %vm1247_vm6, %v9228_v25  ;;  %v14739_v54 = vadd.f32 %v5315_v53, %v14539_v41  ;;  %v4347_v52 = vpop.f32.mrb[50].mxu1 }
 0x38b   : > { %9000 = vmatmul.mubr.msk.f32.gmra.mrb[148].mxu1 %vm1247_vm6, %v9228_v25  ;;  %3812 = vmatprep.mubr.f32.mxu0 %v17737_v28  ;;  %v14700_v25 = vadd.f32 %v5307_v9, %v14512_v10  ;;  %v5314_v10 = vmul.f32 %v14502_v0, %v4335_v11  ;;  %v14730_v0 = vrot.slane %v14233_v46, %v17811_v63 }
 0x38c   : > { %4645 = vmatprep.mubr.f32.mxu1 %v17737_v28 }
 0x38d   : > { %v14733_v19 = vadd.f32 %v5314_v10, %v14535_v15  ;;  %v5418_v15 = vmul.f32 %v14713_v16, %v4341_v58  ;;  %v5419_v32 = vmul.f32 %v14730_v0, %v4343_v57 }
 0x38e   : > { %8873 = vmatmul.mubr.msk.f32.gmra.mrb[150].mxu0 %vm1247_vm6, %v9229_v27 }
 0x38f   : > { %9001 = vmatmul.mubr.msk.f32.gmra.mrb[150].mxu1 %vm1247_vm6, %v9229_v27  ;;  %3818 = vmatprep.mubr.f32.mxu0 %v17737_v28  ;;  %v3508_v27 = vpop.f32.mrb[48].mxu0  ;;  %v14756_v61 = vadd.f32 %v5418_v15, %v14556_v36  ;;  %v5426_v36 = vmul.f32 %v14713_v16, %v4347_v52 }
 0x390   : > { %4651 = vmatprep.mubr.f32.mxu1 %v17737_v28  ;;  %v5416_v43 = vmul.f32 %v14709_v14, %v3508_v27  ;;  %v3510_v62 = vpop.f32.mrb[49].mxu0 }
 0x391   : > { %v5417_v9 = vmul.f32 %v14721_v23, %v3510_v62  ;;  %v3514_v2 = vpop.f32.mrb[50].mxu0 }
 0x392   : > { %8874 = vmatmul.mubr.msk.f32.gmra.mrb[152].mxu0 %vm1247_vm6, %v9230_v3  ;;  %v14751_v41 = vadd.f32 %v5416_v43, %v14551_v20  ;;  %v5424_v10 = vmul.f32 %v14709_v14, %v3514_v2  ;;  %v3516_v12 = vpop.f32.mrb[51].mxu0  ;;  %v9232_v20 = vld [vmem:[%s17584_s2 + $0x270] sm:$0xff]  ;;  %v14779_v43 = vadd.f32 %v5426_v36, %v14579_v29 }
 0x393   : > { %9002 = vmatmul.mubr.msk.f32.gmra.mrb[152].mxu1 %vm1247_vm6, %v9230_v3  ;;  %3824 = vmatprep.mubr.f32.mxu0 %v17737_v28  ;;  %v14759_v11 = vadd.f32 %v5417_v9, %v14559_v39  ;;  %v14762_v3 = vadd.f32 %v5419_v32, %v14562_v33  ;;  %v5425_v53 = vmul.f32 %v14721_v23, %v3516_v12  ;;  %v4349_v39 = vpop.f32.mrb[51].mxu1  ;;  %v3520_v62 = vpop.f32.mrb[52].mxu0 }
 0x394   : > { %4657 = vmatprep.mubr.f32.mxu1 %v17737_v28  ;;  %v14774_v33 = vadd.f32 %v5424_v10, %v14574_v17  ;;  %v5427_v27 = vmul.f32 %v14730_v0, %v4349_v39  ;;  %v5432_v15 = vmul.f32 %v14709_v14, %v3520_v62  ;;  %v4353_v9 = vpop.f32.mrb[52].mxu1  ;;  %v3522_v57 = vpop.f32.mrb[53].mxu0  ;;  %v9233_v17 = vld [vmem:[%s17584_s2 + $0x278] sm:$0xff] }
 0x395   : > { %v14782_v58 = vadd.f32 %v5425_v53, %v14582_v4  ;;  %v5434_v29 = vmul.f32 %v14713_v16, %v4353_v9  ;;  %v5433_v32 = vmul.f32 %v14721_v23, %v3522_v57  ;;  %v4355_v4 = vpop.f32.mrb[53].mxu1  ;;  %v3526_v12 = vpop.f32.mrb[54].mxu0 }
 0x396   : > { %8875 = vmatmul.mubr.msk.f32.gmra.mrb[154].mxu0 %vm1247_vm6, %v9231_v51  ;;  %v5435_v2 = vmul.f32 %v14730_v0, %v4355_v4  ;;  %v5440_v36 = vmul.f32 %v14709_v14, %v3526_v12  ;;  %v4359_v53 = vpop.f32.mrb[54].mxu1  ;;  %v3528_v39 = vpop.f32.mrb[55].mxu0 }
 0x397   : > { %9003 = vmatmul.mubr.msk.f32.gmra.mrb[154].mxu1 %vm1247_vm6, %v9231_v51  ;;  %3830 = vmatprep.mubr.f32.mxu0 %v17737_v28  ;;  %v14785_v51 = vadd.f32 %v5427_v27, %v14585_v22  ;;  %v14797_v22 = vadd.f32 %v5432_v15, %v14597_v38  ;;  %v14802_v10 = vadd.f32 %v5434_v29, %v14602_v24  ;;  %v9234_v38 = vld [vmem:[%s17584_s2 + $0x280] sm:$0xff]  ;;  %v3532_v57 = vpop.f32.mrb[56].mxu0 }
 0x398   : > { %4663 = vmatprep.mubr.f32.mxu1 %v17737_v28  ;;  %v14805_v52 = vadd.f32 %v5433_v32, %v14605_v31  ;;  %v5442_v24 = vmul.f32 %v14713_v16, %v4359_v53  ;;  %v5441_v27 = vmul.f32 %v14721_v23, %v3528_v39  ;;  %v4361_v31 = vpop.f32.mrb[55].mxu1  ;;  %v5448_v29 = vmul.f32 %v14709_v14, %v3532_v57  ;;  %v3534_v4 = vpop.f32.mrb[57].mxu0 }
 0x399   : > { %v5443_v62 = vmul.f32 %v14730_v0, %v4361_v31  ;;  %v4365_v32 = vpop.f32.mrb[56].mxu1  ;;  %v3538_v39 = vpop.f32.mrb[58].mxu0 }
 0x39a   : > { %8876 = vmatmul.mubr.msk.f32.gmra.mrb[156].mxu0 %vm1247_vm6, %v9232_v20  ;;  %v14825_v15 = vadd.f32 %v5442_v24, %v14625_v1  ;;  %v14828_v9 = vadd.f32 %v5441_v27, %v14628_v59  ;;  %v5450_v1 = vmul.f32 %v14713_v16, %v4365_v32  ;;  %v4367_v59 = vpop.f32.mrb[57].mxu1  ;;  %v5456_v24 = vmul.f32 %v14709_v14, %v3538_v39  ;;  %v3540_v31 = vpop.f32.mrb[59].mxu0 }
 0x39b   : > { %9004 = vmatmul.mubr.msk.f32.gmra.mrb[156].mxu1 %vm1247_vm6, %v9232_v20  ;;  %3836 = vmatprep.mubr.f32.mxu0 %v17737_v28  ;;  %v14808_v20 = vadd.f32 %v5435_v2, %v14608_v8  ;;  %v14820_v8 = vadd.f32 %v5440_v36, %v14620_v6  ;;  %v9235_v6 = vld [vmem:[%s17584_s2 + $0x288] sm:$0xff]  ;;  %v5449_v2 = vmul.f32 %v14721_v23, %v3534_v4  ;;  %v4371_v27 = vpop.f32.mrb[58].mxu1 }
 0x39c   : > { %4669 = vmatprep.mubr.f32.mxu1 %v17737_v28  ;;  %v5451_v12 = vmul.f32 %v14730_v0, %v4367_v59  ;;  %v14848_v36 = vadd.f32 %v5450_v1, %v14648_v7  ;;  %v5458_v7 = vmul.f32 %v14713_v16, %v4371_v27 }
 0x39d   : > { %v14851_v53 = vadd.f32 %v5449_v2, %v14651_v42  ;;  %v4373_v42 = vpop.f32.mrb[59].mxu1  ;;  %v3544_v4 = vpop.f32.mrb[60].mxu0 }
 0x39e   : > { %8877 = vmatmul.mubr.msk.f32.gmra.mrb[158].mxu0 %vm1247_vm6, %v9233_v17  ;;  %v5459_v57 = vmul.f32 %v14730_v0, %v4373_v42  ;;  %v5464_v1 = vmul.f32 %v14709_v14, %v3544_v4  ;;  %v4377_v2 = vpop.f32.mrb[60].mxu1  ;;  %v3546_v59 = vpop.f32.mrb[61].mxu0  ;;  %v14921_v4 = vrot.slane %v14252_v44, %v17819_v13 }
 0x39f   : > { %9005 = vmatmul.mubr.msk.f32.gmra.mrb[158].mxu1 %vm1247_vm6, %v9233_v17  ;;  %3842 = vmatprep.mubr.f32.mxu0 %v17737_v28  ;;  %v14831_v17 = vadd.f32 %v5443_v62, %v14631_v49  ;;  %v14843_v49 = vadd.f32 %v5448_v29, %v14643_v40  ;;  %v9236_v40 = vld [vmem:[%s17584_s2 + $0x290] sm:$0xff]  ;;  %v5457_v62 = vmul.f32 %v14721_v23, %v3540_v31 }
 0x3a0   : > { %4675 = vmatprep.mubr.f32.mxu1 %v17737_v28  ;;  %v14871_v29 = vadd.f32 %v5458_v7, %v14671_v26  ;;  %v5466_v26 = vmul.f32 %v14713_v16, %v4377_v2 }
 0x3a1   : > { %v14874_v32 = vadd.f32 %v5457_v62, %v14674_v30  ;;  %v4379_v30 = vpop.f32.mrb[61].mxu1  ;;  %v3550_v31 = vpop.f32.mrb[62].mxu0 }
 0x3a2   : > { %8878 = vmatmul.mubr.msk.f32.gmra.mrb[160].mxu0 %vm1247_vm6, %v9234_v38  ;;  %v5467_v39 = vmul.f32 %v14730_v0, %v4379_v30  ;;  %v5472_v7 = vmul.f32 %v14709_v14, %v3550_v31  ;;  %v4383_v62 = vpop.f32.mrb[62].mxu1  ;;  %v3552_v42 = vpop.f32.mrb[63].mxu0  ;;  %v9239_v30 = vld [vmem:[%s17584_s2 + $0x2a8] sm:$0xff] }
 0x3a3   : > { %9006 = vmatmul.mubr.msk.f32.gmra.mrb[160].mxu1 %vm1247_vm6, %v9234_v38  ;;  %3848 = vmatprep.mubr.f32.mxu0 %v17737_v28  ;;  %v14854_v38 = vadd.f32 %v5451_v12, %v14654_v60  ;;  %v14866_v60 = vadd.f32 %v5456_v24, %v14666_v5  ;;  %v9237_v5 = vld [vmem:[%s17584_s2 + $0x298] sm:$0xff]  ;;  %v5465_v12 = vmul.f32 %v14721_v23, %v3546_v59 }
 0x3a4   : > { %4681 = vmatprep.mubr.f32.mxu1 %v17737_v28  ;;  %v14894_v24 = vadd.f32 %v5466_v26, %v14694_v48  ;;  %v14909_v48 = vrot.slane %v14245_v56, %v17819_v13  ;;  %v5473_v14 = vmul.f32 %v14721_v23, %v3552_v42 }
 0x3a5   : > { %v14897_v27 = vadd.f32 %v5465_v12, %v14697_v18  ;;  %v14913_v18 = vrot.slane %v14229_v21, %v17819_v13 }
 0x3a6   : > { %8879 = vmatmul.mubr.msk.f32.gmra.mrb[162].mxu0 %vm1247_vm6, %v9235_v6  ;;  %v14936_v59 = vadd.f32 %v5473_v14, %v14736_v35 }
 0x3a7   : > { %9007 = vmatmul.mubr.msk.f32.gmra.mrb[162].mxu1 %vm1247_vm6, %v9235_v6  ;;  %3854 = vmatprep.mubr.f32.mxu0 %v17737_v28  ;;  %v14877_v6 = vadd.f32 %v5459_v57, %v14677_v50  ;;  %v14889_v50 = vadd.f32 %v5464_v1, %v14689_v47  ;;  %v9238_v47 = vld [vmem:[%s17584_s2 + $0x2a0] sm:$0xff]  ;;  %v4385_v57 = vpop.f32.mrb[63].mxu1  ;;  %v14924_v1 = vadd.f32 %v5472_v7, %v14724_v45 }
 0x3a8   : > { %4687 = vmatprep.mubr.f32.mxu1 %v17737_v28  ;;  %v5475_v2 = vmul.f32 %v14730_v0, %v4385_v57  ;;  %v4389_v12 = vpop.f32.mrb[64].mxu1 }
 0x3a9   : > { %v4391_v35 = vpop.f32.mrb[65].mxu1 }
 0x3aa   : > { %8880 = vmatmul.mubr.msk.f32.gmra.mrb[164].mxu0 %vm1247_vm6, %v9236_v40  ;;  %v14939_v26 = vadd.f32 %v5475_v2, %v14739_v54  ;;  %v4395_v14 = vpop.f32.mrb[66].mxu1 }
 0x3ab   : > { %9008 = vmatmul.mubr.msk.f32.gmra.mrb[164].mxu1 %vm1247_vm6, %v9236_v40  ;;  %3860 = vmatprep.mubr.f32.mxu0 %v17737_v28  ;;  %v14900_v40 = vadd.f32 %v5467_v39, %v14700_v25  ;;  %v5474_v25 = vmul.f32 %v14713_v16, %v4383_v62  ;;  %v14930_v16 = vrot.slane %v14233_v46, %v17819_v13 }
 0x3ac   : > { %4693 = vmatprep.mubr.f32.mxu1 %v17737_v28 }
 0x3ad   : > { %v14933_v23 = vadd.f32 %v5474_v25, %v14733_v19  ;;  %v5578_v19 = vmul.f32 %v14913_v18, %v4389_v12  ;;  %v5579_v31 = vmul.f32 %v14930_v16, %v4391_v35 }
 0x3ae   : > { %8881 = vmatmul.mubr.msk.f32.gmra.mrb[166].mxu0 %vm1247_vm6, %v9237_v5 }
 0x3af   : > { %9009 = vmatmul.mubr.msk.f32.gmra.mrb[166].mxu1 %vm1247_vm6, %v9237_v5  ;;  %3866 = vmatprep.mubr.f32.mxu0 %v17737_v28  ;;  %v3556_v5 = vpop.f32.mrb[64].mxu0  ;;  %v14956_v7 = vadd.f32 %v5578_v19, %v14756_v61  ;;  %v5586_v61 = vmul.f32 %v14913_v18, %v4395_v14 }
 0x3b0   : > { %4699 = vmatprep.mubr.f32.mxu1 %v17737_v28  ;;  %v5576_v45 = vmul.f32 %v14909_v48, %v3556_v5  ;;  %v3558_v0 = vpop.f32.mrb[65].mxu0 }
 0x3b1   : > { %v5577_v39 = vmul.f32 %v14921_v4, %v3558_v0  ;;  %v3562_v42 = vpop.f32.mrb[66].mxu0 }
 0x3b2   : > { %8882 = vmatmul.mubr.msk.f32.gmra.mrb[168].mxu0 %vm1247_vm6, %v9238_v47  ;;  %v14951_v54 = vadd.f32 %v5576_v45, %v14751_v41  ;;  %v5584_v25 = vmul.f32 %v14909_v48, %v3562_v42  ;;  %v3564_v57 = vpop.f32.mrb[67].mxu0  ;;  %v9240_v41 = vld [vmem:[%s17584_s2 + $0x2b0] sm:$0xff]  ;;  %v14979_v45 = vadd.f32 %v5586_v61, %v14779_v43 }
 0x3b3   : > { %9010 = vmatmul.mubr.msk.f32.gmra.mrb[168].mxu1 %vm1247_vm6, %v9238_v47  ;;  %3872 = vmatprep.mubr.f32.mxu0 %v17737_v28  ;;  %v14959_v62 = vadd.f32 %v5577_v39, %v14759_v11  ;;  %v14962_v47 = vadd.f32 %v5579_v31, %v14762_v3  ;;  %v5585_v2 = vmul.f32 %v14921_v4, %v3564_v57  ;;  %v4397_v11 = vpop.f32.mrb[67].mxu1  ;;  %v3568_v0 = vpop.f32.mrb[68].mxu0 }
 0x3b4   : > { %4705 = vmatprep.mubr.f32.mxu1 %v17737_v28  ;;  %v14974_v3 = vadd.f32 %v5584_v25, %v14774_v33  ;;  %v5587_v5 = vmul.f32 %v14930_v16, %v4397_v11  ;;  %v5592_v19 = vmul.f32 %v14909_v48, %v3568_v0  ;;  %v4401_v39 = vpop.f32.mrb[68].mxu1  ;;  %v3570_v35 = vpop.f32.mrb[69].mxu0  ;;  %v9241_v33 = vld [vmem:[%s17584_s2 + $0x2b8] sm:$0xff] }
 0x3b5   : > { %v14982_v12 = vadd.f32 %v5585_v2, %v14782_v58  ;;  %v5594_v43 = vmul.f32 %v14913_v18, %v4401_v39  ;;  %v5593_v31 = vmul.f32 %v14921_v4, %v3570_v35  ;;  %v4403_v58 = vpop.f32.mrb[69].mxu1  ;;  %v3574_v57 = vpop.f32.mrb[70].mxu0 }
 0x3b6   : > { %8883 = vmatmul.mubr.msk.f32.gmra.mrb[170].mxu0 %vm1247_vm6, %v9239_v30  ;;  %v5595_v42 = vmul.f32 %v14930_v16, %v4403_v58  ;;  %v5600_v61 = vmul.f32 %v14909_v48, %v3574_v57  ;;  %v4407_v2 = vpop.f32.mrb[70].mxu1  ;;  %v3576_v11 = vpop.f32.mrb[71].mxu0 }
 0x3b7   : > { %9011 = vmatmul.mubr.msk.f32.gmra.mrb[170].mxu1 %vm1247_vm6, %v9239_v30  ;;  %3878 = vmatprep.mubr.f32.mxu0 %v17737_v28  ;;  %v14985_v30 = vadd.f32 %v5587_v5, %v14785_v51  ;;  %v14997_v51 = vadd.f32 %v5592_v19, %v14797_v22  ;;  %v15002_v25 = vadd.f32 %v5594_v43, %v14802_v10  ;;  %v9242_v22 = vld [vmem:[%s17584_s2 + $0x2c0] sm:$0xff]  ;;  %v3580_v35 = vpop.f32.mrb[72].mxu0 }
 0x3b8   : > { %4711 = vmatprep.mubr.f32.mxu1 %v17737_v28  ;;  %v15005_v14 = vadd.f32 %v5593_v31, %v14805_v52  ;;  %v5602_v10 = vmul.f32 %v14913_v18, %v4407_v2  ;;  %v5601_v5 = vmul.f32 %v14921_v4, %v3576_v11  ;;  %v4409_v52 = vpop.f32.mrb[71].mxu1  ;;  %v5608_v43 = vmul.f32 %v14909_v48, %v3580_v35  ;;  %v3582_v58 = vpop.f32.mrb[73].mxu0 }
 0x3b9   : > { %v5603_v0 = vmul.f32 %v14930_v16, %v4409_v52  ;;  %v4413_v31 = vpop.f32.mrb[72].mxu1  ;;  %v3586_v11 = vpop.f32.mrb[74].mxu0 }
 0x3ba   : > { %8884 = vmatmul.mubr.msk.f32.gmra.mrb[172].mxu0 %vm1247_vm6, %v9240_v41  ;;  %v15025_v19 = vadd.f32 %v5602_v10, %v14825_v15  ;;  %v15028_v39 = vadd.f32 %v5601_v5, %v14828_v9  ;;  %v5610_v15 = vmul.f32 %v14913_v18, %v4413_v31  ;;  %v4415_v9 = vpop.f32.mrb[73].mxu1  ;;  %v5616_v10 = vmul.f32 %v14909_v48, %v3586_v11  ;;  %v3588_v52 = vpop.f32.mrb[75].mxu0 }
 0x3bb   : > { %9012 = vmatmul.mubr.msk.f32.gmra.mrb[172].mxu1 %vm1247_vm6, %v9240_v41  ;;  %3884 = vmatprep.mubr.f32.mxu0 %v17737_v28  ;;  %v15008_v41 = vadd.f32 %v5595_v42, %v14808_v20  ;;  %v15020_v20 = vadd.f32 %v5600_v61, %v14820_v8  ;;  %v9243_v8 = vld [vmem:[%s17584_s2 + $0x2c8] sm:$0xff]  ;;  %v5609_v42 = vmul.f32 %v14921_v4, %v3582_v58  ;;  %v4419_v5 = vpop.f32.mrb[74].mxu1 }
 0x3bc   : > { %4717 = vmatprep.mubr.f32.mxu1 %v17737_v28  ;;  %v5611_v57 = vmul.f32 %v14930_v16, %v4415_v9  ;;  %v15048_v61 = vadd.f32 %v5610_v15, %v14848_v36  ;;  %v5618_v36 = vmul.f32 %v14913_v18, %v4419_v5 }
 0x3bd   : > { %v15051_v2 = vadd.f32 %v5609_v42, %v14851_v53  ;;  %v4421_v53 = vpop.f32.mrb[75].mxu1  ;;  %v3592_v58 = vpop.f32.mrb[76].mxu0 }
 0x3be   : > { %8885 = vmatmul.mubr.msk.f32.gmra.mrb[174].mxu0 %vm1247_vm6, %v9241_v33  ;;  %v5619_v35 = vmul.f32 %v14930_v16, %v4421_v53  ;;  %v5624_v15 = vmul.f32 %v14909_v48, %v3592_v58  ;;  %v4425_v42 = vpop.f32.mrb[76].mxu1  ;;  %v3594_v9 = vpop.f32.mrb[77].mxu0  ;;  %v15121_v58 = vrot.slane %v14252_v44, %v17917_v55 }
 0x3bf   : > { %9013 = vmatmul.mubr.msk.f32.gmra.mrb[174].mxu1 %vm1247_vm6, %v9241_v33  ;;  %3890 = vmatprep.mubr.f32.mxu0 %v17737_v28  ;;  %v15031_v33 = vadd.f32 %v5603_v0, %v14831_v17  ;;  %v15043_v17 = vadd.f32 %v5608_v43, %v14843_v49  ;;  %v9244_v49 = vld [vmem:[%s17584_s2 + $0x2d0] sm:$0xff]  ;;  %v5617_v0 = vmul.f32 %v14921_v4, %v3588_v52 }
 0x3c0   : > { %4723 = vmatprep.mubr.f32.mxu1 %v17737_v28  ;;  %v15071_v43 = vadd.f32 %v5618_v36, %v14871_v29  ;;  %v5626_v29 = vmul.f32 %v14913_v18, %v4425_v42 }
 0x3c1   : > { %v15074_v31 = vadd.f32 %v5617_v0, %v14874_v32  ;;  %v4427_v32 = vpop.f32.mrb[77].mxu1  ;;  %v3598_v52 = vpop.f32.mrb[78].mxu0 }
 0x3c2   : > { %8886 = vmatmul.mubr.msk.f32.gmra.mrb[176].mxu0 %vm1247_vm6, %v9242_v22  ;;  %v5627_v11 = vmul.f32 %v14930_v16, %v4427_v32  ;;  %v5632_v36 = vmul.f32 %v14909_v48, %v3598_v52  ;;  %v4431_v0 = vpop.f32.mrb[78].mxu1  ;;  %v3600_v53 = vpop.f32.mrb[79].mxu0  ;;  %v9247_v32 = vld [vmem:[%s17584_s2 + $0x2e8] sm:$0xff] }
 0x3c3   : > { %9014 = vmatmul.mubr.msk.f32.gmra.mrb[176].mxu1 %vm1247_vm6, %v9242_v22  ;;  %3896 = vmatprep.mubr.f32.mxu0 %v17737_v28  ;;  %v15054_v22 = vadd.f32 %v5611_v57, %v14854_v38  ;;  %v15066_v38 = vadd.f32 %v5616_v10, %v14866_v60  ;;  %v9245_v60 = vld [vmem:[%s17584_s2 + $0x2d8] sm:$0xff]  ;;  %v5625_v57 = vmul.f32 %v14921_v4, %v3594_v9 }
 0x3c4   : > { %4729 = vmatprep.mubr.f32.mxu1 %v17737_v28  ;;  %v15094_v10 = vadd.f32 %v5626_v29, %v14894_v24  ;;  %v15109_v24 = vrot.slane %v14245_v56, %v17917_v55  ;;  %v5633_v48 = vmul.f32 %v14921_v4, %v3600_v53 }
 0x3c5   : > { %v15097_v5 = vadd.f32 %v5625_v57, %v14897_v27  ;;  %v15113_v27 = vrot.slane %v14229_v21, %v17917_v55 }
 0x3c6   : > { %8887 = vmatmul.mubr.msk.f32.gmra.mrb[178].mxu0 %vm1247_vm6, %v9243_v8  ;;  %v15136_v9 = vadd.f32 %v5633_v48, %v14936_v59 }
 0x3c7   : > { %9015 = vmatmul.mubr.msk.f32.gmra.mrb[178].mxu1 %vm1247_vm6, %v9243_v8  ;;  %3902 = vmatprep.mubr.f32.mxu0 %v17737_v28  ;;  %v15077_v8 = vadd.f32 %v5619_v35, %v14877_v6  ;;  %v15089_v6 = vadd.f32 %v5624_v15, %v14889_v50  ;;  %v9246_v50 = vld [vmem:[%s17584_s2 + $0x2e0] sm:$0xff]  ;;  %v4433_v35 = vpop.f32.mrb[79].mxu1  ;;  %v15124_v15 = vadd.f32 %v5632_v36, %v14924_v1 }
 0x3c8   : > { %4735 = vmatprep.mubr.f32.mxu1 %v17737_v28  ;;  %v5635_v42 = vmul.f32 %v14930_v16, %v4433_v35  ;;  %v4437_v57 = vpop.f32.mrb[80].mxu1 }
 0x3c9   : > { %v4439_v59 = vpop.f32.mrb[81].mxu1 }
 0x3ca   : > { %8888 = vmatmul.mubr.msk.f32.gmra.mrb[180].mxu0 %vm1247_vm6, %v9244_v49  ;;  %v15139_v29 = vadd.f32 %v5635_v42, %v14939_v26  ;;  %v4443_v48 = vpop.f32.mrb[82].mxu1 }
 0x3cb   : > { %9016 = vmatmul.mubr.msk.f32.gmra.mrb[180].mxu1 %vm1247_vm6, %v9244_v49  ;;  %3908 = vmatprep.mubr.f32.mxu0 %v17737_v28  ;;  %v15100_v49 = vadd.f32 %v5627_v11, %v14900_v40  ;;  %v5634_v40 = vmul.f32 %v14913_v18, %v4431_v0  ;;  %v15130_v18 = vrot.slane %v14233_v46, %v17917_v55 }
 0x3cc   : > { %4741 = vmatprep.mubr.f32.mxu1 %v17737_v28 }
 0x3cd   : > { %v15133_v4 = vadd.f32 %v5634_v40, %v14933_v23  ;;  %v5738_v23 = vmul.f32 %v15113_v27, %v4437_v57  ;;  %v5739_v52 = vmul.f32 %v15130_v18, %v4439_v59 }
 0x3ce   : > { %8889 = vmatmul.mubr.msk.f32.gmra.mrb[182].mxu0 %vm1247_vm6, %v9245_v60 }
 0x3cf   : > { %9017 = vmatmul.mubr.msk.f32.gmra.mrb[182].mxu1 %vm1247_vm6, %v9245_v60  ;;  %3914 = vmatprep.mubr.f32.mxu0 %v17737_v28  ;;  %v3604_v60 = vpop.f32.mrb[80].mxu0  ;;  %v15156_v36 = vadd.f32 %v5738_v23, %v14956_v7  ;;  %v5746_v7 = vmul.f32 %v15113_v27, %v4443_v48 }
 0x3d0   : > { %4747 = vmatprep.mubr.f32.mxu1 %v17737_v28  ;;  %v5736_v1 = vmul.f32 %v15109_v24, %v3604_v60  ;;  %v3606_v16 = vpop.f32.mrb[81].mxu0 }
 0x3d1   : > { %v5737_v11 = vmul.f32 %v15121_v58, %v3606_v16  ;;  %v3610_v53 = vpop.f32.mrb[82].mxu0 }
 0x3d2   : > { %8890 = vmatmul.mubr.msk.f32.gmra.mrb[184].mxu0 %vm1247_vm6, %v9246_v50  ;;  %v15151_v26 = vadd.f32 %v5736_v1, %v14951_v54  ;;  %v5744_v40 = vmul.f32 %v15109_v24, %v3610_v53  ;;  %v3612_v35 = vpop.f32.mrb[83].mxu0  ;;  %v9248_v54 = vld [vmem:[%s17584_s2 + $0x2f0] sm:$0xff]  ;;  %v15179_v1 = vadd.f32 %v5746_v7, %v14979_v45 }
 0x3d3   : > { %9018 = vmatmul.mubr.msk.f32.gmra.mrb[184].mxu1 %vm1247_vm6, %v9246_v50  ;;  %3920 = vmatprep.mubr.f32.mxu0 %v17737_v28  ;;  %v15159_v0 = vadd.f32 %v5737_v11, %v14959_v62  ;;  %v15162_v50 = vadd.f32 %v5739_v52, %v14962_v47  ;;  %v5745_v42 = vmul.f32 %v15121_v58, %v3612_v35  ;;  %v4445_v62 = vpop.f32.mrb[83].mxu1  ;;  %v3616_v16 = vpop.f32.mrb[84].mxu0 }
 0x3d4   : > { %4753 = vmatprep.mubr.f32.mxu1 %v17737_v28  ;;  %v15174_v47 = vadd.f32 %v5744_v40, %v14974_v3  ;;  %v5747_v60 = vmul.f32 %v15130_v18, %v4445_v62  ;;  %v5752_v23 = vmul.f32 %v15109_v24, %v3616_v16  ;;  %v4449_v11 = vpop.f32.mrb[84].mxu1  ;;  %v3618_v59 = vpop.f32.mrb[85].mxu0  ;;  %v9249_v3 = vld [vmem:[%s17584_s2 + $0x2f8] sm:$0xff] }
 0x3d5   : > { %v15182_v57 = vadd.f32 %v5745_v42, %v14982_v12  ;;  %v5754_v45 = vmul.f32 %v15113_v27, %v4449_v11  ;;  %v5753_v52 = vmul.f32 %v15121_v58, %v3618_v59  ;;  %v4451_v12 = vpop.f32.mrb[85].mxu1  ;;  %v3622_v35 = vpop.f32.mrb[86].mxu0 }
 0x3d6   : > { %8891 = vmatmul.mubr.msk.f32.gmra.mrb[186].mxu0 %vm1247_vm6, %v9247_v32  ;;  %v5755_v53 = vmul.f32 %v15130_v18, %v4451_v12  ;;  %v5760_v7 = vmul.f32 %v15109_v24, %v3622_v35  ;;  %v4455_v42 = vpop.f32.mrb[86].mxu1  ;;  %v3624_v62 = vpop.f32.mrb[87].mxu0 }
 0x3d7   : > { %9019 = vmatmul.mubr.msk.f32.gmra.mrb[186].mxu1 %vm1247_vm6, %v9247_v32  ;;  %3926 = vmatprep.mubr.f32.mxu0 %v17737_v28  ;;  %v15185_v32 = vadd.f32 %v5747_v60, %v14985_v30  ;;  %v15197_v30 = vadd.f32 %v5752_v23, %v14997_v51  ;;  %v15202_v40 = vadd.f32 %v5754_v45, %v15002_v25  ;;  %v9250_v51 = vld [vmem:[%s17584_s2 + $0x300] sm:$0xff]  ;;  %v3628_v59 = vpop.f32.mrb[88].mxu0 }
 0x3d8   : > { %4759 = vmatprep.mubr.f32.mxu1 %v17737_v28  ;;  %v15205_v48 = vadd.f32 %v5753_v52, %v15005_v14  ;;  %v5762_v25 = vmul.f32 %v15113_v27, %v4455_v42  ;;  %v5761_v60 = vmul.f32 %v15121_v58, %v3624_v62  ;;  %v4457_v14 = vpop.f32.mrb[87].mxu1  ;;  %v5768_v45 = vmul.f32 %v15109_v24, %v3628_v59  ;;  %v3630_v12 = vpop.f32.mrb[89].mxu0 }
 0x3d9   : > { %v5763_v16 = vmul.f32 %v15130_v18, %v4457_v14  ;;  %v4461_v52 = vpop.f32.mrb[88].mxu1  ;;  %v3634_v62 = vpop.f32.mrb[90].mxu0 }
 0x3da   : > { %8892 = vmatmul.mubr.msk.f32.gmra.mrb[188].mxu0 %vm1247_vm6, %v9248_v54  ;;  %v15225_v23 = vadd.f32 %v5762_v25, %v15025_v19  ;;  %v15228_v11 = vadd.f32 %v5761_v60, %v15028_v39  ;;  %v5770_v19 = vmul.f32 %v15113_v27, %v4461_v52  ;;  %v4463_v39 = vpop.f32.mrb[89].mxu1  ;;  %v5776_v25 = vmul.f32 %v15109_v24, %v3634_v62  ;;  %v3636_v14 = vpop.f32.mrb[91].mxu0 }
 0x3db   : > { %9020 = vmatmul.mubr.msk.f32.gmra.mrb[188].mxu1 %vm1247_vm6, %v9248_v54  ;;  %3932 = vmatprep.mubr.f32.mxu0 %v17737_v28  ;;  %v15208_v54 = vadd.f32 %v5755_v53, %v15008_v41  ;;  %v15220_v41 = vadd.f32 %v5760_v7, %v15020_v20  ;;  %v9251_v20 = vld [vmem:[%s17584_s2 + $0x308] sm:$0xff]  ;;  %v5769_v53 = vmul.f32 %v15121_v58, %v3630_v12  ;;  %v4467_v60 = vpop.f32.mrb[90].mxu1 }
 0x3dc   : > { %4765 = vmatprep.mubr.f32.mxu1 %v17737_v28  ;;  %v5771_v35 = vmul.f32 %v15130_v18, %v4463_v39  ;;  %v15248_v7 = vadd.f32 %v5770_v19, %v15048_v61  ;;  %v5778_v61 = vmul.f32 %v15113_v27, %v4467_v60 }
 0x3dd   : > { %v15251_v42 = vadd.f32 %v5769_v53, %v15051_v2  ;;  %v4469_v2 = vpop.f32.mrb[91].mxu1  ;;  %v3640_v12 = vpop.f32.mrb[92].mxu0 }
 0x3de   : > { %8893 = vmatmul.mubr.msk.f32.gmra.mrb[190].mxu0 %vm1247_vm6, %v9249_v3  ;;  %v5779_v59 = vmul.f32 %v15130_v18, %v4469_v2  ;;  %v5784_v19 = vmul.f32 %v15109_v24, %v3640_v12  ;;  %v4473_v53 = vpop.f32.mrb[92].mxu1  ;;  %v3642_v39 = vpop.f32.mrb[93].mxu0  ;;  %v15321_v12 = vrot.slane %v14252_v44, %v17786_v34 }
 0x3df   : > { %9021 = vmatmul.mubr.msk.f32.gmra.mrb[190].mxu1 %vm1247_vm6, %v9249_v3  ;;  %3938 = vmatprep.mubr.f32.mxu0 %v17737_v28  ;;  %v15231_v3 = vadd.f32 %v5763_v16, %v15031_v33  ;;  %v15243_v33 = vadd.f32 %v5768_v45, %v15043_v17  ;;  %v9252_v17 = vld [vmem:[%s17584_s2 + $0x310] sm:$0xff]  ;;  %v5777_v16 = vmul.f32 %v15121_v58, %v3636_v14 }
 0x3e0   : > { %4771 = vmatprep.mubr.f32.mxu1 %v17737_v28  ;;  %v15271_v45 = vadd.f32 %v5778_v61, %v15071_v43  ;;  %v5786_v43 = vmul.f32 %v15113_v27, %v4473_v53 }
 0x3e1   : > { %v15274_v52 = vadd.f32 %v5777_v16, %v15074_v31  ;;  %v4475_v31 = vpop.f32.mrb[93].mxu1 }
 0x3e2   : > { %8894 = vmatmul.mubr.msk.f32.gmra.mrb[192].mxu0 %vm1247_vm6, %v9250_v51  ;;  %v5787_v62 = vmul.f32 %v15130_v18, %v4475_v31  ;;  %v9255_v31 = vld [vmem:[%s17584_s2 + $0x328] sm:$0xff] }
 0x3e3   : > { %9022 = vmatmul.mubr.msk.f32.gmra.mrb[192].mxu1 %vm1247_vm6, %v9250_v51  ;;  %3944 = vmatprep.mubr.f32.mxu0 %v17737_v28  ;;  %v15254_v51 = vadd.f32 %v5771_v35, %v15054_v22  ;;  %v15266_v22 = vadd.f32 %v5776_v25, %v15066_v38  ;;  %v9253_v38 = vld [vmem:[%s17584_s2 + $0x318] sm:$0xff]  ;;  %v5785_v35 = vmul.f32 %v15121_v58, %v3642_v39 }
 0x3e4   : > { %4777 = vmatprep.mubr.f32.mxu1 %v17737_v28  ;;  %v15294_v25 = vadd.f32 %v5786_v43, %v15094_v10  ;;  %v15309_v10 = vrot.slane %v14245_v56, %v17786_v34 }
 0x3e5   : > { %v15297_v60 = vadd.f32 %v5785_v35, %v15097_v5  ;;  %v3646_v14 = vpop.f32.mrb[94].mxu0  ;;  %v4479_v16 = vpop.f32.mrb[94].mxu1  ;;  %v15313_v5 = vrot.slane %v14229_v21, %v17786_v34 }
 0x3e6   : > { %8895 = vmatmul.mubr.msk.f32.gmra.mrb[194].mxu0 %vm1247_vm6, %v9251_v20  ;;  %v5792_v61 = vmul.f32 %v15109_v24, %v3646_v14  ;;  %v3648_v2 = vpop.f32.mrb[95].mxu0 }
 0x3e7   : > { %9023 = vmatmul.mubr.msk.f32.gmra.mrb[194].mxu1 %vm1247_vm6, %v9251_v20  ;;  %3950 = vmatprep.mubr.f32.mxu0 %v17737_v28  ;;  %v15277_v20 = vadd.f32 %v5779_v59, %v15077_v8  ;;  %v15289_v8 = vadd.f32 %v5784_v19, %v15089_v6  ;;  %v9254_v6 = vld [vmem:[%s17584_s2 + $0x320] sm:$0xff]  ;;  %v5793_v24 = vmul.f32 %v15121_v58, %v3648_v2  ;;  %v4481_v59 = vpop.f32.mrb[95].mxu1 }
 0x3e8   : > { %4783 = vmatprep.mubr.f32.mxu1 %v17737_v28  ;;  %v15324_v19 = vadd.f32 %v5792_v61, %v15124_v15  ;;  %v5795_v53 = vmul.f32 %v15130_v18, %v4481_v59 }
 0x3e9   : > { %v15336_v39 = vadd.f32 %v5793_v24, %v15136_v9 }
 0x3ea   : > { %8896 = vmatmul.mubr.msk.f32.gmra.mrb[196].mxu0 %vm1247_vm6, %v9252_v17  ;;  %v15339_v43 = vadd.f32 %v5795_v53, %v15139_v29  ;;  %v4485_v35 = vpop.f32.mrb[96].mxu1 }
 0x3eb   : > { %9024 = vmatmul.mubr.msk.f32.gmra.mrb[196].mxu1 %vm1247_vm6, %v9252_v17  ;;  %3956 = vmatprep.mubr.f32.mxu0 %v17737_v28  ;;  %v15300_v17 = vadd.f32 %v5787_v62, %v15100_v49  ;;  %v5794_v49 = vmul.f32 %v15113_v27, %v4479_v16  ;;  %v15330_v27 = vrot.slane %v14233_v46, %v17786_v34  ;;  %v4487_v9 = vpop.f32.mrb[97].mxu1 }
 0x3ec   : > { %4789 = vmatprep.mubr.f32.mxu1 %v17737_v28 }
 0x3ed   : > { %v15333_v58 = vadd.f32 %v5794_v49, %v15133_v4  ;;  %v5898_v4 = vmul.f32 %v15313_v5, %v4485_v35  ;;  %v5899_v14 = vmul.f32 %v15330_v27, %v4487_v9 }
 0x3ee   : > { %8897 = vmatmul.mubr.msk.f32.gmra.mrb[198].mxu0 %vm1247_vm6, %v9253_v38 }
 0x3ef   : > { %9025 = vmatmul.mubr.msk.f32.gmra.mrb[198].mxu1 %vm1247_vm6, %v9253_v38  ;;  %3962 = vmatprep.mubr.f32.mxu0 %v17737_v28  ;;  %v3652_v38 = vpop.f32.mrb[96].mxu0  ;;  %v15356_v61 = vadd.f32 %v5898_v4, %v15156_v36  ;;  %v4491_v24 = vpop.f32.mrb[98].mxu1 }
 0x3f0   : > { %4795 = vmatprep.mubr.f32.mxu1 %v17737_v28  ;;  %v5896_v15 = vmul.f32 %v15309_v10, %v3652_v38  ;;  %v3654_v18 = vpop.f32.mrb[97].mxu0  ;;  %v5906_v36 = vmul.f32 %v15313_v5, %v4491_v24 }
 0x3f1   : > { %v5897_v62 = vmul.f32 %v15321_v12, %v3654_v18  ;;  %v3658_v2 = vpop.f32.mrb[98].mxu0 }
 0x3f2   : > { %8898 = vmatmul.mubr.msk.f32.gmra.mrb[200].mxu0 %vm1247_vm6, %v9254_v6  ;;  %v15351_v29 = vadd.f32 %v5896_v15, %v15151_v26  ;;  %v5904_v49 = vmul.f32 %v15309_v10, %v3658_v2  ;;  %v3660_v59 = vpop.f32.mrb[99].mxu0  ;;  %v9256_v26 = vld [vmem:[%s17584_s2 + $0x330] sm:$0xff]  ;;  %v15379_v15 = vadd.f32 %v5906_v36, %v15179_v1 }
 0x3f3   : > { %9026 = vmatmul.mubr.msk.f32.gmra.mrb[200].mxu1 %vm1247_vm6, %v9254_v6  ;;  %3968 = vmatprep.mubr.f32.mxu0 %v17737_v28  ;;  %v15359_v16 = vadd.f32 %v5897_v62, %v15159_v0  ;;  %v15362_v6 = vadd.f32 %v5899_v14, %v15162_v50  ;;  %v5905_v53 = vmul.f32 %v15321_v12, %v3660_v59  ;;  %v4493_v0 = vpop.f32.mrb[99].mxu1  ;;  %v3664_v18 = vpop.f32.mrb[100].mxu0 }
 0x3f4   : > { %4801 = vmatprep.mubr.f32.mxu1 %v17737_v28  ;;  %v15374_v50 = vadd.f32 %v5904_v49, %v15174_v47  ;;  %v5907_v38 = vmul.f32 %v15330_v27, %v4493_v0  ;;  %v5912_v4 = vmul.f32 %v15309_v10, %v3664_v18  ;;  %v4497_v62 = vpop.f32.mrb[100].mxu1  ;;  %v3666_v9 = vpop.f32.mrb[101].mxu0  ;;  %v9257_v47 = vld [vmem:[%s17584_s2 + $0x338] sm:$0xff] }
 0x3f5   : > { %v15382_v35 = vadd.f32 %v5905_v53, %v15182_v57  ;;  %v5914_v1 = vmul.f32 %v15313_v5, %v4497_v62  ;;  %v5913_v14 = vmul.f32 %v15321_v12, %v3666_v9  ;;  %v4499_v57 = vpop.f32.mrb[101].mxu1 }
 0x3f6   : > { %8899 = vmatmul.mubr.msk.f32.gmra.mrb[202].mxu0 %vm1247_vm6, %v9255_v31  ;;  %v5915_v2 = vmul.f32 %v15330_v27, %v4499_v57 }
 0x3f7   : > { %9027 = vmatmul.mubr.msk.f32.gmra.mrb[202].mxu1 %vm1247_vm6, %v9255_v31  ;;  %3974 = vmatprep.mubr.f32.mxu0 %v17737_v28  ;;  %v15385_v31 = vadd.f32 %v5907_v38, %v15185_v32  ;;  %v15397_v32 = vadd.f32 %v5912_v4, %v15197_v30  ;;  %v15402_v49 = vadd.f32 %v5914_v1, %v15202_v40  ;;  %v9258_v30 = vld [vmem:[%s17584_s2 + $0x340] sm:$0xff] }
 0x3f8   : > { %4807 = vmatprep.mubr.f32.mxu1 %v17737_v28  ;;  %v15405_v24 = vadd.f32 %v5913_v14, %v15205_v48  ;;  %v3670_v59 = vpop.f32.mrb[102].mxu0 }
 0x3f9   : > { %v5920_v36 = vmul.f32 %v15309_v10, %v3670_v59  ;;  %v4503_v53 = vpop.f32.mrb[102].mxu1  ;;  %v3672_v0 = vpop.f32.mrb[103].mxu0 }
 0x3fa   : > { %8900 = vmatmul.mubr.msk.f32.gmra.mrb[204].mxu0 %vm1247_vm6, %v9256_v26  ;;  %v5922_v40 = vmul.f32 %v15313_v5, %v4503_v53  ;;  %v5921_v38 = vmul.f32 %v15321_v12, %v3672_v0  ;;  %v4505_v48 = vpop.f32.mrb[103].mxu1 }
 0x3fb   : > { %9028 = vmatmul.mubr.msk.f32.gmra.mrb[204].mxu1 %vm1247_vm6, %v9256_v26  ;;  %3980 = vmatprep.mubr.f32.mxu0 %v17737_v28  ;;  %v15408_v26 = vadd.f32 %v5915_v2, %v15208_v54  ;;  %v15420_v54 = vadd.f32 %v5920_v36, %v15220_v41  ;;  %v5923_v18 = vmul.f32 %v15330_v27, %v4505_v48  ;;  %v9259_v41 = vld [vmem:[%s17584_s2 + $0x348] sm:$0xff] }
 0x3fc   : > { %4813 = vmatprep.mubr.f32.mxu1 %v17737_v28  ;;  %v15425_v4 = vadd.f32 %v5922_v40, %v15225_v23  ;;  %v15428_v62 = vadd.f32 %v5921_v38, %v15228_v11  ;;  %v3676_v9 = vpop.f32.mrb[104].mxu0 }
 0x3fd   : > { %v5928_v1 = vmul.f32 %v15309_v10, %v3676_v9  ;;  %v4509_v14 = vpop.f32.mrb[104].mxu1  ;;  %v3678_v57 = vpop.f32.mrb[105].mxu0 }
 0x3fe   : > { %8901 = vmatmul.mubr.msk.f32.gmra.mrb[206].mxu0 %vm1247_vm6, %v9257_v47  ;;  %v5930_v23 = vmul.f32 %v15313_v5, %v4509_v14  ;;  %v5929_v2 = vmul.f32 %v15321_v12, %v3678_v57  ;;  %v4511_v11 = vpop.f32.mrb[105].mxu1 }
 0x3ff   : > { %9029 = vmatmul.mubr.msk.f32.gmra.mrb[206].mxu1 %vm1247_vm6, %v9257_v47  ;;  %3986 = vmatprep.mubr.f32.mxu0 %v17737_v28  ;;  %v15431_v47 = vadd.f32 %v5923_v18, %v15231_v3  ;;  %v15443_v3 = vadd.f32 %v5928_v1, %v15243_v33  ;;  %v5931_v59 = vmul.f32 %v15330_v27, %v4511_v11  ;;  %v9260_v33 = vld [vmem:[%s17584_s2 + $0x350] sm:$0xff] }
 0x400   : > { %4819 = vmatprep.mubr.f32.mxu1 %v17737_v28  ;;  %v15448_v36 = vadd.f32 %v5930_v23, %v15248_v7  ;;  %v15451_v53 = vadd.f32 %v5929_v2, %v15251_v42 }
 0x402   : > { %8902 = vmatmul.mubr.msk.f32.gmra.mrb[208].mxu0 %vm1247_vm6, %v9258_v30  ;;  %v3682_v0 = vpop.f32.mrb[106].mxu0  ;;  %v4515_v38 = vpop.f32.mrb[106].mxu1 }
 0x403   : > { %9030 = vmatmul.mubr.msk.f32.gmra.mrb[208].mxu1 %vm1247_vm6, %v9258_v30  ;;  %3992 = vmatprep.mubr.f32.mxu0 %v17737_v28  ;;  %v15454_v30 = vadd.f32 %v5931_v59, %v15254_v51  ;;  %v5936_v40 = vmul.f32 %v15309_v10, %v3682_v0  ;;  %v3684_v48 = vpop.f32.mrb[107].mxu0  ;;  %v5938_v7 = vmul.f32 %v15313_v5, %v4515_v38  ;;  %v4517_v42 = vpop.f32.mrb[107].mxu1 }
 0x404   : > { %4825 = vmatprep.mubr.f32.mxu1 %v17737_v28  ;;  %v5937_v18 = vmul.f32 %v15321_v12, %v3684_v48  ;;  %v5939_v9 = vmul.f32 %v15330_v27, %v4517_v42 }
 0x405   : > { %v15466_v51 = vadd.f32 %v5936_v40, %v15266_v22  ;;  %v15471_v1 = vadd.f32 %v5938_v7, %v15271_v45  ;;  %v9261_v22 = vld [vmem:[%s17584_s2 + $0x358] sm:$0xff] }
 0x406   : > { %8903 = vmatmul.mubr.msk.f32.gmra.mrb[210].mxu0 %vm1247_vm6, %v9259_v41  ;;  %v15474_v14 = vadd.f32 %v5937_v18, %v15274_v52 }
 0x407   : > { %9031 = vmatmul.mubr.msk.f32.gmra.mrb[210].mxu1 %vm1247_vm6, %v9259_v41  ;;  %3998 = vmatprep.mubr.f32.mxu0 %v17737_v28  ;;  %v3688_v57 = vpop.f32.mrb[108].mxu0  ;;  %v15477_v41 = vadd.f32 %v5939_v9, %v15277_v20  ;;  %v17988_v9 = vld [vmem:[#allocation32_spill] sm:$0xff] }
 0x408   : > { %4831 = vmatprep.mubr.f32.mxu1 %v17737_v28  ;;  %v5944_v23 = vmul.f32 %v15309_v10, %v3688_v57  ;;  %v4521_v2 = vpop.f32.mrb[108].mxu1  ;;  %v3690_v11 = vpop.f32.mrb[109].mxu0 }
 0x409   : > { %v5946_v45 = vmul.f32 %v15313_v5, %v4521_v2  ;;  %v5945_v59 = vmul.f32 %v15321_v12, %v3690_v11  ;;  %v4523_v52 = vpop.f32.mrb[109].mxu1 }
 0x40a   : > { %8904 = vmatmul.mubr.msk.f32.gmra.mrb[212].mxu0 %vm1247_vm6, %v9260_v33  ;;  %v15489_v20 = vadd.f32 %v5944_v23, %v15289_v8  ;;  %v5947_v0 = vmul.f32 %v15330_v27, %v4523_v52  ;;  %v9262_v8 = vld [vmem:[%s17584_s2 + $0x360] sm:$0xff]  ;;  %v15521_v23 = vrot.slane %v14252_v44, %v17988_v9 }
 0x40b   : > { %9032 = vmatmul.mubr.msk.f32.gmra.mrb[212].mxu1 %vm1247_vm6, %v9260_v33  ;;  %4004 = vmatprep.mubr.f32.mxu0 %v17737_v28  ;;  %v15494_v40 = vadd.f32 %v5946_v45, %v15294_v25  ;;  %v15497_v38 = vadd.f32 %v5945_v59, %v15297_v60  ;;  %v15509_v25 = vrot.slane %v14245_v56, %v17988_v9  ;;  %v9263_v45 = vld [vmem:[%s17584_s2 + $0x368] sm:$0xff] }
 0x40c   : > { %4837 = vmatprep.mubr.f32.mxu1 %v17737_v28  ;;  %v15500_v33 = vadd.f32 %v5947_v0, %v15300_v17  ;;  %v15513_v60 = vrot.slane %v14229_v21, %v17988_v9  ;;  %v15530_v21 = vrot.slane %v14233_v46, %v17988_v9  ;;  %v18003_v9 = vld [vmem:[#allocation56_spill] sm:$0xff] }
 0x40d   : > { %v3694_v48 = vpop.f32.mrb[110].mxu0 }
 0x40e   : > { %8905 = vmatmul.mubr.msk.f32.gmra.mrb[214].mxu0 %vm1247_vm6, %v9261_v22  ;;  %v5952_v7 = vmul.f32 %v15309_v10, %v3694_v48  ;;  %v4527_v18 = vpop.f32.mrb[110].mxu1  ;;  %v3696_v42 = vpop.f32.mrb[111].mxu0 }
 0x40f   : > { %9033 = vmatmul.mubr.msk.f32.gmra.mrb[214].mxu1 %vm1247_vm6, %v9261_v22  ;;  %4010 = vmatprep.mubr.f32.mxu0 %v17737_v28  ;;  %v5954_v17 = vmul.f32 %v15313_v5, %v4527_v18  ;;  %v5953_v10 = vmul.f32 %v15321_v12, %v3696_v42  ;;  %v4529_v57 = vpop.f32.mrb[111].mxu1 }
 0x410   : > { %4843 = vmatprep.mubr.f32.mxu1 %v17737_v28  ;;  %v15524_v56 = vadd.f32 %v5952_v7, %v15324_v19  ;;  %v5955_v2 = vmul.f32 %v15330_v27, %v4529_v57 }
 0x411   : > { %v15533_v5 = vadd.f32 %v5954_v17, %v15333_v58  ;;  %v15536_v12 = vadd.f32 %v5953_v10, %v15336_v39  ;;  %v3700_v11 = vpop.f32.mrb[112].mxu0 }
 0x412   : > { %8906 = vmatmul.mubr.msk.f32.gmra.mrb[216].mxu0 %vm1247_vm6, %v9262_v8  ;;  %v15539_v44 = vadd.f32 %v5955_v2, %v15339_v43  ;;  %v6056_v19 = vmul.f32 %v15509_v25, %v3700_v11  ;;  %v4533_v22 = vpop.f32.mrb[112].mxu1  ;;  %v3702_v27 = vpop.f32.mrb[113].mxu0 }
 0x413   : > { %9034 = vmatmul.mubr.msk.f32.gmra.mrb[216].mxu1 %vm1247_vm6, %v9262_v8  ;;  %4016 = vmatprep.mubr.f32.mxu0 %v17737_v28  ;;  %v6058_v46 = vmul.f32 %v15513_v60, %v4533_v22  ;;  %v6057_v58 = vmul.f32 %v15521_v23, %v3702_v27  ;;  %v4535_v39 = vpop.f32.mrb[113].mxu1 }
 0x414   : > { %4849 = vmatprep.mubr.f32.mxu1 %v17737_v28  ;;  %v15551_v43 = vadd.f32 %v6056_v19, %v15351_v29  ;;  %v6059_v59 = vmul.f32 %v15530_v21, %v4535_v39  ;;  %v9264_v29 = vld [vmem:[%s17584_s2 + $0x370] sm:$0xff] }
 0x415   : > { %v15556_v52 = vadd.f32 %v6058_v46, %v15356_v61  ;;  %v15559_v0 = vadd.f32 %v6057_v58, %v15359_v16 }
 0x416   : > { %8907 = vmatmul.mubr.msk.f32.gmra.mrb[218].mxu0 %vm1247_vm6, %v9263_v45  ;;  %v15562_v7 = vadd.f32 %v6059_v59, %v15362_v6 }
 0x417   : > { %9035 = vmatmul.mubr.msk.f32.gmra.mrb[218].mxu1 %vm1247_vm6, %v9263_v45  ;;  %4022 = vmatprep.mubr.f32.mxu0 %v17737_v28 }
 0x418   : > { %4855 = vmatprep.mubr.f32.mxu1 %v17737_v28  ;;  %v3706_v48 = vpop.f32.mrb[114].mxu0  ;;  %v4539_v42 = vpop.f32.mrb[114].mxu1 }
 0x419   : > { %v6064_v18 = vmul.f32 %v15509_v25, %v3706_v48  ;;  %v3708_v8 = vpop.f32.mrb[115].mxu0  ;;  %v6066_v61 = vmul.f32 %v15513_v60, %v4539_v42  ;;  %v4541_v16 = vpop.f32.mrb[115].mxu1 }
 0x41a   : > { %8908 = vmatmul.mubr.msk.f32.gmra.mrb[220].mxu0 %vm1247_vm6, %v9264_v29  ;;  %v6065_v17 = vmul.f32 %v15521_v23, %v3708_v8  ;;  %v6067_v10 = vmul.f32 %v15530_v21, %v4541_v16  ;;  %v17989_v16 = vld [vmem:[#allocation13_spill] sm:$0xff] }
 0x41b   : > { %9036 = vmatmul.mubr.msk.f32.gmra.mrb[220].mxu1 %vm1247_vm6, %v9264_v29  ;;  %4028 = vmatprep.mubr.f32.mxu0 %v17737_v28  ;;  %v15574_v6 = vadd.f32 %v6064_v18, %v15374_v50  ;;  %v15579_v57 = vadd.f32 %v6066_v61, %v15379_v15  ;;  %v9265_v50 = vld [vmem:[%s17584_s2 + $0x378] sm:$0xff] }
 0x41c   : > { %4861 = vmatprep.mubr.f32.mxu1 %v17737_v28  ;;  %v15582_v2 = vadd.f32 %v6065_v17, %v15382_v35  ;;  %v15585_v19 = vadd.f32 %v6067_v10, %v15385_v31  ;;  %v17990_v10 = vld [vmem:[#allocation10_spill] sm:$0xff] }
 0x41d   : > { %v3712_v11 = vpop.f32.mrb[116].mxu0  ;;  %vm759_vm13 = vcmp.eq.s32.totalorder %v17990_v10, %v17989_v16 }
 0x41e   : > { %v6072_v22 = vmul.f32 %v15509_v25, %v3712_v11  ;;  %v4545_v27 = vpop.f32.mrb[116].mxu1  ;;  %v3714_v45 = vpop.f32.mrb[117].mxu0  ;;  %8909 = vmatmul.mubr.msk.f32.gmra.mrb[222].mxu0 %vm1247_vm6, %v9265_v50  ;;  %v17991_v11 = vld [vmem:[#allocation46_spill] sm:$0xff] }
 0x41f   : > { %v6074_v15 = vmul.f32 %v15513_v60, %v4545_v27  ;;  %v6073_v46 = vmul.f32 %v15521_v23, %v3714_v45  ;;  %v4547_v35 = vpop.f32.mrb[117].mxu1  ;;  %9037 = vmatmul.mubr.msk.f32.gmra.mrb[222].mxu1 %vm1247_vm6, %v9265_v50  ;;  %4034 = vmatprep.mubr.f32.mxu0 %v17737_v28  ;;  %vm786_vm14 = vcmp.eq.s32.totalorder %v17990_v10, %v17991_v11  ;;  %v17996_v11 = vld [vmem:[#allocation47_spill] sm:$0xff] }
 0x420   : > { %v15597_v31 = vadd.f32 %v6072_v22, %v15397_v32  ;;  %v6075_v58 = vmul.f32 %v15530_v21, %v4547_v35  ;;  %4867 = vmatprep.mubr.f32.mxu1 %v17737_v28  ;;  %v9266_v32 = vld [vmem:[%s17584_s2 + $0x380] sm:$0xff]  ;;  %v9267_v35 = vld [vmem:[%s17584_s2 + $0x388] sm:$0xff]  ;;  %vm760_vm1 = vcmp.eq.s32.totalorder %v17990_v10, %v17996_v11 }
 0x421   : > { %v15602_v39 = vadd.f32 %v6074_v15, %v15402_v49  ;;  %v15605_v59 = vadd.f32 %v6073_v46, %v15405_v24  ;;  %v3718_v48 = vpop.f32.mrb[118].mxu0 }
 0x422   : > { %v15608_v18 = vadd.f32 %v6075_v58, %v15408_v26  ;;  %v6080_v42 = vmul.f32 %v15509_v25, %v3718_v48  ;;  %v4551_v8 = vpop.f32.mrb[118].mxu1  ;;  %v3720_v29 = vpop.f32.mrb[119].mxu0  ;;  %8910 = vmatmul.mubr.msk.f32.gmra.mrb[224].mxu0 %vm1247_vm6, %v9266_v32 }
 0x423   : > { %v6082_v49 = vmul.f32 %v15513_v60, %v4551_v8  ;;  %v6081_v61 = vmul.f32 %v15521_v23, %v3720_v29  ;;  %v4553_v24 = vpop.f32.mrb[119].mxu1  ;;  %9038 = vmatmul.mubr.msk.f32.gmra.mrb[224].mxu1 %vm1247_vm6, %v9266_v32  ;;  %4040 = vmatprep.mubr.f32.mxu0 %v17737_v28 }
 0x424   : > { %v15620_v26 = vadd.f32 %v6080_v42, %v15420_v54  ;;  %v6083_v17 = vmul.f32 %v15530_v21, %v4553_v24  ;;  %4873 = vmatprep.mubr.f32.mxu1 %v17737_v28  ;;  %v17993_v42 = vld [vmem:[#allocation50_spill] sm:$0xff] }
 0x425   : > { %v15629_v22 = vadd.f32 %v6082_v49, %v15425_v4  ;;  %v15632_v27 = vadd.f32 %v6081_v61, %v15428_v62  ;;  %v3724_v45 = vpop.f32.mrb[120].mxu0  ;;  %v801_v8 = vsel %vm786_vm14, %v17993_v42, 0.0  ;;  %v17994_v49 = vld [vmem:[#allocation12_spill] sm:$0xff]  ;;  %v17995_v61 = vld [vmem:[#allocation22_spill] sm:$0xff]  ;;  %v18001_v42 = vld [vmem:[#allocation19_spill] sm:$0xff] }
 0x426   : > { %v15635_v54 = vadd.f32 %v6083_v17, %v15431_v47  ;;  %v6088_v50 = vmul.f32 %v15509_v25, %v3724_v45  ;;  %v4557_v15 = vpop.f32.mrb[120].mxu1  ;;  %v3726_v46 = vpop.f32.mrb[121].mxu0  ;;  %8911 = vmatmul.mubr.msk.f32.gmra.mrb[226].mxu0 %vm1247_vm6, %v9267_v35  ;;  %v17992_v47 = vld [vmem:[#allocation49_spill] sm:$0xff]  ;;  %vm996_vm15 = vcmp.eq.s32.totalorder %v17990_v10, %v17994_v49  ;;  %vm1023_vm0 = vcmp.eq.s32.totalorder %v17990_v10, %v17995_v61 }
 0x427   : > { %v6090_v4 = vmul.f32 %v15513_v60, %v4557_v15  ;;  %v6089_v58 = vmul.f32 %v15521_v23, %v3726_v46  ;;  %v4559_v62 = vpop.f32.mrb[121].mxu1  ;;  %9039 = vmatmul.mubr.msk.f32.gmra.mrb[226].mxu1 %vm1247_vm6, %v9267_v35  ;;  %4046 = vmatprep.mubr.f32.mxu0 %v17737_v28  ;;  %v774_v48 = vsel %vm759_vm13, %v17992_v47, 0.0  ;;  %v17999_v35 = vld [vmem:[#allocation20_spill] sm:$0xff] }
 0x428   : > { %v15655_v29 = vadd.f32 %v6088_v50, %v15443_v3  ;;  %v6091_v32 = vmul.f32 %v15530_v21, %v4559_v62  ;;  %4879 = vmatprep.mubr.f32.mxu1 %v17737_v28  ;;  %v17997_v3 = vld [vmem:[#allocation54_spill] sm:$0xff]  ;;  %vm1024_vm4 = vcmp.eq.s32.totalorder %v17990_v10, %v17999_v35  ;;  %v18000_v62 = vld [vmem:[#allocation33_spill] sm:$0xff] }
 0x429   : > { %v15664_v24 = vadd.f32 %v6090_v4, %v15448_v36  ;;  %v15667_v17 = vadd.f32 %v6089_v58, %v15451_v53  ;;  %v3730_v16 = vpop.f32.mrb[122].mxu0  ;;  %vm787_vm2 = vcmp.eq.s32.totalorder %v17990_v10, %v17997_v3  ;;  %v9268_v36 = vld [vmem:[%s17584_s2 + $0x390] sm:$0xff]  ;;  %v17998_v53 = vld [vmem:[#allocation21_spill] sm:$0xff]  ;;  %v1011_v47 = vsel %vm996_vm15, %v18000_v62, 0.0 }
 0x42a   : > { %v15674_v45 = vadd.f32 %v6091_v32, %v15454_v30  ;;  %v6096_v50 = vmul.f32 %v15509_v25, %v3730_v16  ;;  %v4563_v15 = vpop.f32.mrb[122].mxu1  ;;  %v3732_v46 = vpop.f32.mrb[123].mxu0  ;;  %8912 = vmatmul.mubr.msk.f32.gmra.mrb[228].mxu0 %vm1247_vm6, %v9268_v36  ;;  %vm997_vm3 = vcmp.eq.s32.totalorder %v17990_v10, %v17998_v53  ;;  %v1038_v32 = vsel %vm1023_vm0, %v18001_v42, 0.0  ;;  %v18005_v42 = vld [vmem:[#allocation45_spill] sm:$0xff] }
 0x42b   : > { %v6098_v4 = vmul.f32 %v15513_v60, %v4563_v15  ;;  %v6097_v30 = vmul.f32 %v15521_v23, %v3732_v46  ;;  %v4565_v58 = vpop.f32.mrb[123].mxu1  ;;  %9040 = vmatmul.mubr.msk.f32.gmra.mrb[228].mxu1 %vm1247_vm6, %v9268_v36  ;;  %4052 = vmatprep.mubr.f32.mxu0 %v17737_v28  ;;  %v18002_v46 = vld [vmem:[#allocation52_spill] sm:$0xff]  ;;  %v802_v49 = vsel %vm787_vm2, %v18003_v9, 0.0  ;;  %v1039_v11 = vsel %vm1024_vm4, %v18005_v42, 0.0 }
 0x42c   : > { %v15698_v16 = vadd.f32 %v6096_v50, %v15466_v51  ;;  %v6099_v15 = vmul.f32 %v15530_v21, %v4565_v58  ;;  %4885 = vmatprep.mubr.f32.mxu1 %v17737_v28  ;;  %v775_v36 = vsel %vm760_vm1, %v18002_v46, 0.0  ;;  %v18004_v58 = vld [vmem:[#allocation37_spill] sm:$0xff]  ;;  %v15732_v53 = vadd.f32 %v801_v8, %v774_v48 }
 0x42d   : > { %v15711_v61 = vadd.f32 %v6098_v4, %v15471_v1  ;;  %v15714_v51 = vadd.f32 %v6097_v30, %v15474_v14  ;;  %v3736_v50 = vpop.f32.mrb[124].mxu0  ;;  %v1012_v62 = vsel %vm997_vm3, %v18004_v58, 0.0  ;;  %v9269_v14 = vld [vmem:[%s17584_s2 + $0x398] sm:$0xff]  ;;  %v15734_v30 = vadd.f32 %v1038_v32, %v1011_v47 }
 0x42e   : > { %v15725_v3 = vadd.f32 %v6099_v15, %v15477_v41  ;;  %v6104_v1 = vmul.f32 %v15509_v25, %v3736_v50  ;;  %v4569_v9 = vpop.f32.mrb[124].mxu1  ;;  %v3738_v4 = vpop.f32.mrb[125].mxu0  ;;  %8913 = vmatmul.mubr.msk.f32.gmra.mrb[230].mxu0 %vm1247_vm6, %v9269_v14  ;;  %v15740_v15 = vadd.f32 %v802_v49, %v775_v36  ;;  %v15747_v48 = vadd.f32 %v1039_v11, %v1012_v62  ;;  %v18006_v62 = vld [vmem:[#allocation11_spill] sm:$0xff] }
 0x42f   : > { %v6106_v35 = vmul.f32 %v15513_v60, %v4569_v9  ;;  %v6105_v46 = vmul.f32 %v15521_v23, %v3738_v4  ;;  %v4571_v41 = vpop.f32.mrb[125].mxu1  ;;  %9041 = vmatmul.mubr.msk.f32.gmra.mrb[230].mxu1 %vm1247_vm6, %v9269_v14  ;;  %4058 = vmatprep.mubr.f32.mxu0 %v17737_v28 }
 0x430   : > { %v15743_v50 = vadd.f32 %v6104_v1, %v15489_v20  ;;  %v6107_v58 = vmul.f32 %v15530_v21, %v4571_v41  ;;  %4891 = vmatprep.mubr.f32.mxu1 %v17737_v28  ;;  %v9270_v1 = vld [vmem:[%s17584_s2 + $0x3a0] sm:$0xff]  ;;  %v15777_v9 = vrot.slane %v15740_v15, %v18006_v62 }
 0x431   : > { %v15750_v8 = vadd.f32 %v6106_v35, %v15494_v40  ;;  %v15753_v47 = vadd.f32 %v6105_v46, %v15497_v38  ;;  %v3742_v32 = vpop.f32.mrb[126].mxu0  ;;  %v15765_v40 = vrot.slane %v15732_v53, %v18006_v62  ;;  %v15769_v38 = vrot.slane %v15734_v30, %v18006_v62 }
 0x432   : > { %v15756_v42 = vadd.f32 %v6107_v58, %v15500_v33  ;;  %v6112_v36 = vmul.f32 %v15509_v25, %v3742_v32  ;;  %v4575_v20 = vpop.f32.mrb[126].mxu1  ;;  %v3744_v49 = vpop.f32.mrb[127].mxu0  ;;  %8914 = vmatmul.mubr.msk.f32.gmra.mrb[232].mxu0 %vm1247_vm6, %v9270_v1  ;;  %v9271_v32 = vld [vmem:[%s17584_s2 + $0x3a8] sm:$0xff] }
 0x433   : > { %v6114_v33 = vmul.f32 %v15513_v60, %v4575_v20  ;;  %v6113_v25 = vmul.f32 %v15521_v23, %v3744_v49  ;;  %v4577_v11 = vpop.f32.mrb[127].mxu1  ;;  %9042 = vmatmul.mubr.msk.f32.gmra.mrb[232].mxu1 %vm1247_vm6, %v9270_v1  ;;  %4064 = vmatprep.mubr.f32.mxu0 %v17737_v28  ;;  %v15786_v60 = vrot.slane %v15747_v48, %v18006_v62 }
 0x434   : > { %v15780_v4 = vadd.f32 %v6112_v36, %v15524_v56  ;;  %v6115_v14 = vmul.f32 %v15530_v21, %v4577_v11  ;;  %4897 = vmatprep.mubr.f32.mxu1 %v17737_v28 }
 0x435   : > { %v15789_v23 = vadd.f32 %v6114_v33, %v15533_v5  ;;  %v15792_v35 = vadd.f32 %v6113_v25, %v15536_v12  ;;  %v3748_v46 = vpop.f32.mrb[128].mxu0 }
 0x436   : > { %v15795_v41 = vadd.f32 %v6115_v14, %v15539_v44  ;;  %v6216_v56 = vmul.f32 %v15765_v40, %v3748_v46  ;;  %v4581_v58 = vpop.f32.mrb[128].mxu1  ;;  %v3750_v21 = vpop.f32.mrb[129].mxu0  ;;  %8915 = vmatmul.mubr.msk.f32.gmra.mrb[234].mxu0 %vm1247_vm6, %v9271_v32 }
 0x437   : > { %v6218_v5 = vmul.f32 %v15769_v38, %v4581_v58  ;;  %v6217_v36 = vmul.f32 %v15777_v9, %v3750_v21  ;;  %v4583_v12 = vpop.f32.mrb[129].mxu1  ;;  %9043 = vmatmul.mubr.msk.f32.gmra.mrb[234].mxu1 %vm1247_vm6, %v9271_v32  ;;  %4070 = vmatprep.mubr.f32.mxu0 %v17737_v28 }
 0x438   : > { %v15807_v44 = vadd.f32 %v6216_v56, %v15551_v43  ;;  %v6219_v20 = vmul.f32 %v15786_v60, %v4583_v12  ;;  %4903 = vmatprep.mubr.f32.mxu1 %v17737_v28  ;;  %v9272_v43 = vld [vmem:[%s17584_s2 + $0x3b0] sm:$0xff] }
 0x439   : > { %v15812_v49 = vadd.f32 %v6218_v5, %v15556_v52  ;;  %v15815_v1 = vadd.f32 %v6217_v36, %v15559_v0  ;;  %v3754_v33 = vpop.f32.mrb[130].mxu0 }
 0x43a   : > { %v15818_v25 = vadd.f32 %v6219_v20, %v15562_v7  ;;  %v6224_v11 = vmul.f32 %v15765_v40, %v3754_v33  ;;  %v4587_v14 = vpop.f32.mrb[130].mxu1  ;;  %v3756_v46 = vpop.f32.mrb[131].mxu0  ;;  %8916 = vmatmul.mubr.msk.f32.gmra.mrb[236].mxu0 %vm1247_vm6, %v9272_v43 }
 0x43b   : > { %v6226_v52 = vmul.f32 %v15769_v38, %v4587_v14  ;;  %v6225_v56 = vmul.f32 %v15777_v9, %v3756_v46  ;;  %v4589_v0 = vpop.f32.mrb[131].mxu1  ;;  %9044 = vmatmul.mubr.msk.f32.gmra.mrb[236].mxu1 %vm1247_vm6, %v9272_v43  ;;  %4076 = vmatprep.mubr.f32.mxu0 %v17737_v28 }
 0x43c   : > { %v15830_v7 = vadd.f32 %v6224_v11, %v15574_v6  ;;  %v6227_v58 = vmul.f32 %v15786_v60, %v4589_v0  ;;  %4909 = vmatprep.mubr.f32.mxu1 %v17737_v28  ;;  %v9273_v6 = vld [vmem:[%s17584_s2 + $0x3b8] sm:$0xff] }
 0x43d   : > { %v15835_v21 = vadd.f32 %v6226_v52, %v15579_v57  ;;  %v15838_v32 = vadd.f32 %v6225_v56, %v15582_v2  ;;  %v3760_v5 = vpop.f32.mrb[132].mxu0 }
 0x43e   : > { %v15841_v36 = vadd.f32 %v6227_v58, %v15585_v19  ;;  %v6232_v12 = vmul.f32 %v15765_v40, %v3760_v5  ;;  %v4593_v20 = vpop.f32.mrb[132].mxu1  ;;  %v3762_v33 = vpop.f32.mrb[133].mxu0  ;;  %8917 = vmatmul.mubr.msk.f32.gmra.mrb[238].mxu0 %vm1247_vm6, %v9273_v6 }
 0x43f   : > { %v6234_v57 = vmul.f32 %v15769_v38, %v4593_v20  ;;  %v6233_v11 = vmul.f32 %v15777_v9, %v3762_v33  ;;  %v4595_v2 = vpop.f32.mrb[133].mxu1  ;;  %9045 = vmatmul.mubr.msk.f32.gmra.mrb[238].mxu1 %vm1247_vm6, %v9273_v6  ;;  %4082 = vmatprep.mubr.f32.mxu0 %v17737_v28 }
 0x440   : > { %v15853_v19 = vadd.f32 %v6232_v12, %v15597_v31  ;;  %v6235_v14 = vmul.f32 %v15786_v60, %v4595_v2  ;;  %4915 = vmatprep.mubr.f32.mxu1 %v17737_v28  ;;  %v9274_v31 = vld [vmem:[%s17584_s2 + $0x3c0] sm:$0xff] }
 0x441   : > { %v15858_v46 = vadd.f32 %v6234_v57, %v15602_v39  ;;  %v15861_v43 = vadd.f32 %v6233_v11, %v15605_v59  ;;  %v3766_v52 = vpop.f32.mrb[134].mxu0 }
 0x442   : > { %v15864_v56 = vadd.f32 %v6235_v14, %v15608_v18  ;;  %v6240_v0 = vmul.f32 %v15765_v40, %v3766_v52  ;;  %v4599_v58 = vpop.f32.mrb[134].mxu1  ;;  %v3768_v5 = vpop.f32.mrb[135].mxu0  ;;  %8918 = vmatmul.mubr.msk.f32.gmra.mrb[240].mxu0 %vm1247_vm6, %v9274_v31 }
 0x443   : > { %v6242_v39 = vmul.f32 %v15769_v38, %v4599_v58  ;;  %v6241_v12 = vmul.f32 %v15777_v9, %v3768_v5  ;;  %v4601_v59 = vpop.f32.mrb[135].mxu1  ;;  %9046 = vmatmul.mubr.msk.f32.gmra.mrb[240].mxu1 %vm1247_vm6, %v9274_v31  ;;  %4088 = vmatprep.mubr.f32.mxu0 %v17737_v28 }
 0x444   : > { %v15876_v18 = vadd.f32 %v6240_v0, %v15620_v26  ;;  %v6243_v20 = vmul.f32 %v15786_v60, %v4601_v59  ;;  %4921 = vmatprep.mubr.f32.mxu1 %v17737_v28  ;;  %v9275_v26 = vld [vmem:[%s17584_s2 + $0x3c8] sm:$0xff] }
 0x445   : > { %v15881_v33 = vadd.f32 %v6242_v39, %v15629_v22  ;;  %v15884_v6 = vadd.f32 %v6241_v12, %v15632_v27  ;;  %v3772_v57 = vpop.f32.mrb[136].mxu0 }
 0x446   : > { %v15887_v11 = vadd.f32 %v6243_v20, %v15635_v54  ;;  %v6248_v2 = vmul.f32 %v15765_v40, %v3772_v57  ;;  %v4605_v14 = vpop.f32.mrb[136].mxu1  ;;  %v3774_v52 = vpop.f32.mrb[137].mxu0  ;;  %8919 = vmatmul.mubr.msk.f32.gmra.mrb[242].mxu0 %vm1247_vm6, %v9275_v26 }
 0x447   : > { %v6250_v22 = vmul.f32 %v15769_v38, %v4605_v14  ;;  %v6249_v0 = vmul.f32 %v15777_v9, %v3774_v52  ;;  %v4607_v27 = vpop.f32.mrb[137].mxu1  ;;  %9047 = vmatmul.mubr.msk.f32.gmra.mrb[242].mxu1 %vm1247_vm6, %v9275_v26  ;;  %4094 = vmatprep.mubr.f32.mxu0 %v17737_v28 }
 0x448   : > { %v15899_v54 = vadd.f32 %v6248_v2, %v15655_v29  ;;  %v6251_v58 = vmul.f32 %v15786_v60, %v4607_v27  ;;  %4927 = vmatprep.mubr.f32.mxu1 %v17737_v28  ;;  %v9276_v29 = vld [vmem:[%s17584_s2 + $0x3d0] sm:$0xff] }
 0x449   : > { %v15904_v5 = vadd.f32 %v6250_v22, %v15664_v24  ;;  %v15907_v31 = vadd.f32 %v6249_v0, %v15667_v17  ;;  %v3778_v39 = vpop.f32.mrb[138].mxu0 }
 0x44a   : > { %v15910_v12 = vadd.f32 %v6251_v58, %v15674_v45  ;;  %v6256_v59 = vmul.f32 %v15765_v40, %v3778_v39  ;;  %v4611_v20 = vpop.f32.mrb[138].mxu1  ;;  %v3780_v57 = vpop.f32.mrb[139].mxu0  ;;  %8920 = vmatmul.mubr.msk.f32.gmra.mrb[244].mxu0 %vm1247_vm6, %v9276_v29 }
 0x44b   : > { %v6258_v24 = vmul.f32 %v15769_v38, %v4611_v20  ;;  %v6257_v2 = vmul.f32 %v15777_v9, %v3780_v57  ;;  %v4613_v17 = vpop.f32.mrb[139].mxu1  ;;  %9048 = vmatmul.mubr.msk.f32.gmra.mrb[244].mxu1 %vm1247_vm6, %v9276_v29  ;;  %4100 = vmatprep.mubr.f32.mxu0 %v17737_v28 }
 0x44c   : > { %v15922_v45 = vadd.f32 %v6256_v59, %v15698_v16  ;;  %v6259_v14 = vmul.f32 %v15786_v60, %v4613_v17  ;;  %4933 = vmatprep.mubr.f32.mxu1 %v17737_v28  ;;  %v9277_v16 = vld [vmem:[%s17584_s2 + $0x3d8] sm:$0xff] }
 0x44d   : > { %v15927_v52 = vadd.f32 %v6258_v24, %v15711_v61  ;;  %v15930_v26 = vadd.f32 %v6257_v2, %v15714_v51  ;;  %v3784_v22 = vpop.f32.mrb[140].mxu0 }
 0x44e   : > { %v15933_v0 = vadd.f32 %v6259_v14, %v15725_v3  ;;  %v6264_v27 = vmul.f32 %v15765_v40, %v3784_v22  ;;  %v4617_v58 = vpop.f32.mrb[140].mxu1  ;;  %v3786_v39 = vpop.f32.mrb[141].mxu0  ;;  %8921 = vmatmul.mubr.msk.f32.gmra.mrb[246].mxu0 %vm1247_vm6, %v9277_v16 }
 0x44f   : > { %v6266_v61 = vmul.f32 %v15769_v38, %v4617_v58  ;;  %v6265_v59 = vmul.f32 %v15777_v9, %v3786_v39  ;;  %v4619_v51 = vpop.f32.mrb[141].mxu1  ;;  %9049 = vmatmul.mubr.msk.f32.gmra.mrb[246].mxu1 %vm1247_vm6, %v9277_v16  ;;  %4106 = vmatprep.mubr.f32.mxu0 %v17737_v28 }
 0x450   : > { %v15945_v3 = vadd.f32 %v6264_v27, %v15743_v50  ;;  %v6267_v20 = vmul.f32 %v15786_v60, %v4619_v51  ;;  %4939 = vmatprep.mubr.f32.mxu1 %v17737_v28  ;;  %v9278_v50 = vld [vmem:[%s17584_s2 + $0x3e0] sm:$0xff]  ;;  %v18007_v27 = vld [vmem:[#allocation9_spill] sm:$0xff] }
 0x451   : > { %v15950_v57 = vadd.f32 %v6266_v61, %v15750_v8  ;;  %v15953_v29 = vadd.f32 %v6265_v59, %v15753_v47  ;;  %v3790_v24 = vpop.f32.mrb[142].mxu0  ;;  %v15965_v8 = vrot.slane %v15732_v53, %v18007_v27  ;;  %v15969_v47 = vrot.slane %v15734_v30, %v18007_v27 }
 0x452   : > { %v15956_v2 = vadd.f32 %v6267_v20, %v15756_v42  ;;  %v6272_v17 = vmul.f32 %v15765_v40, %v3790_v24  ;;  %v4623_v14 = vpop.f32.mrb[142].mxu1  ;;  %v3792_v22 = vpop.f32.mrb[143].mxu0  ;;  %8922 = vmatmul.mubr.msk.f32.gmra.mrb[248].mxu0 %vm1247_vm6, %v9278_v50  ;;  %v15977_v39 = vrot.slane %v15740_v15, %v18007_v27 }
 0x453   : > { %v6274_v42 = vmul.f32 %v15769_v38, %v4623_v14  ;;  %v6273_v40 = vmul.f32 %v15777_v9, %v3792_v22  ;;  %v4625_v58 = vpop.f32.mrb[143].mxu1  ;;  %9050 = vmatmul.mubr.msk.f32.gmra.mrb[248].mxu1 %vm1247_vm6, %v9278_v50  ;;  %4112 = vmatprep.mubr.f32.mxu0 %v17737_v28  ;;  %v15986_v38 = vrot.slane %v15747_v48, %v18007_v27 }
 0x454   : > { %v15980_v16 = vadd.f32 %v6272_v17, %v15780_v4  ;;  %v6275_v61 = vmul.f32 %v15786_v60, %v4625_v58  ;;  %4945 = vmatprep.mubr.f32.mxu1 %v17737_v28  ;;  %v9279_v17 = vld [vmem:[%s17584_s2 + $0x3e8] sm:$0xff] }
 0x455   : > { %v15989_v9 = vadd.f32 %v6274_v42, %v15789_v23  ;;  %v15992_v59 = vadd.f32 %v6273_v40, %v15792_v35  ;;  %v3796_v51 = vpop.f32.mrb[144].mxu0 }
 0x456   : > { %v15995_v20 = vadd.f32 %v6275_v61, %v15795_v41  ;;  %v6376_v4 = vmul.f32 %v15965_v8, %v3796_v51  ;;  %v4629_v24 = vpop.f32.mrb[144].mxu1  ;;  %v3798_v60 = vpop.f32.mrb[145].mxu0  ;;  %8923 = vmatmul.mubr.msk.f32.gmra.mrb[250].mxu0 %vm1247_vm6, %v9279_v17 }
 0x457   : > { %v6378_v23 = vmul.f32 %v15969_v47, %v4629_v24  ;;  %v6377_v14 = vmul.f32 %v15977_v39, %v3798_v60  ;;  %v4631_v35 = vpop.f32.mrb[145].mxu1  ;;  %9051 = vmatmul.mubr.msk.f32.gmra.mrb[250].mxu1 %vm1247_vm6, %v9279_v17  ;;  %4118 = vmatprep.mubr.f32.mxu0 %v17737_v28 }
 0x458   : > { %v16007_v41 = vadd.f32 %v6376_v4, %v15807_v44  ;;  %v6379_v22 = vmul.f32 %v15986_v38, %v4631_v35  ;;  %4951 = vmatprep.mubr.f32.mxu1 %v17737_v28  ;;  %v9280_v44 = vld [vmem:[%s17584_s2 + $0x3f0] sm:$0xff] }
 0x459   : > { %v16012_v50 = vadd.f32 %v6378_v23, %v15812_v49  ;;  %v16015_v42 = vadd.f32 %v6377_v14, %v15815_v1  ;;  %v3802_v40 = vpop.f32.mrb[146].mxu0 }
 0x45a   : > { %v16018_v58 = vadd.f32 %v6379_v22, %v15818_v25  ;;  %v6384_v61 = vmul.f32 %v15965_v8, %v3802_v40  ;;  %v4635_v51 = vpop.f32.mrb[146].mxu1  ;;  %v3804_v24 = vpop.f32.mrb[147].mxu0  ;;  %8924 = vmatmul.mubr.msk.f32.gmra.mrb[252].mxu0 %vm1247_vm6, %v9280_v44 }
 0x45b   : > { %v6386_v49 = vmul.f32 %v15969_v47, %v4635_v51  ;;  %v6385_v4 = vmul.f32 %v15977_v39, %v3804_v24  ;;  %v4637_v1 = vpop.f32.mrb[147].mxu1  ;;  %9052 = vmatmul.mubr.msk.f32.gmra.mrb[252].mxu1 %vm1247_vm6, %v9280_v44  ;;  %4124 = vmatprep.mubr.f32.mxu0 %v17737_v28 }
 0x45c   : > { %v16030_v25 = vadd.f32 %v6384_v61, %v15830_v7  ;;  %v6387_v60 = vmul.f32 %v15986_v38, %v4637_v1  ;;  %4957 = vmatprep.mubr.f32.mxu1 %v17737_v28  ;;  %v9281_v7 = vld [vmem:[%s17584_s2 + $0x3f8] sm:$0xff] }
 0x45d   : > { %v16035_v17 = vadd.f32 %v6386_v49, %v15835_v21  ;;  %v16038_v23 = vadd.f32 %v6385_v4, %v15838_v32  ;;  %v3808_v14 = vpop.f32.mrb[148].mxu0 }
 0x45e   : > { %v16041_v35 = vadd.f32 %v6387_v60, %v15841_v36  ;;  %v6392_v22 = vmul.f32 %v15965_v8, %v3808_v14  ;;  %v4641_v40 = vpop.f32.mrb[148].mxu1  ;;  %v3810_v51 = vpop.f32.mrb[149].mxu0  ;;  %8925 = vmatmul.mubr.msk.f32.gmra.mrb[254].mxu0 %vm1247_vm6, %v9281_v7 }
 0x45f   : > { %v6394_v21 = vmul.f32 %v15969_v47, %v4641_v40  ;;  %v6393_v61 = vmul.f32 %v15977_v39, %v3810_v51  ;;  %v4643_v32 = vpop.f32.mrb[149].mxu1  ;;  %9053 = vmatmul.mubr.msk.f32.gmra.mrb[254].mxu1 %vm1247_vm6, %v9281_v7 }
 0x460   : > { %v16052_v36 = vadd.f32 %v6392_v22, %v15853_v19  ;;  %v6395_v24 = vmul.f32 %v15986_v38, %v4643_v32 }
 0x461   : > { %v16056_v44 = vadd.f32 %v6394_v21, %v15858_v46  ;;  %v16059_v49 = vadd.f32 %v6393_v61, %v15861_v43  ;;  %v3814_v4 = vpop.f32.mrb[150].mxu0 }
 0x462   : > { %v16062_v1 = vadd.f32 %v6395_v24, %v15864_v56  ;;  %v6400_v60 = vmul.f32 %v15965_v8, %v3814_v4  ;;  %v4647_v14 = vpop.f32.mrb[150].mxu1  ;;  %v3816_v40 = vpop.f32.mrb[151].mxu0 }
 0x463   : > { %v6402_v51 = vmul.f32 %v15969_v47, %v4647_v14  ;;  %v6401_v19 = vmul.f32 %v15977_v39, %v3816_v40  ;;  %v4649_v22 = vpop.f32.mrb[151].mxu1 }
 0x464   : > { %v16068_v7 = vadd.f32 %v6400_v60, %v15876_v18  ;;  %v6403_v46 = vmul.f32 %v15986_v38, %v4649_v22 }
 0x465   : > { %v16072_v43 = vadd.f32 %v6402_v51, %v15881_v33  ;;  %v16075_v56 = vadd.f32 %v6401_v19, %v15884_v6  ;;  %v3820_v21 = vpop.f32.mrb[152].mxu0 }
 0x466   : > { %v16078_v61 = vadd.f32 %v6403_v46, %v15887_v11  ;;  %v6408_v32 = vmul.f32 %v15965_v8, %v3820_v21  ;;  %v4653_v24 = vpop.f32.mrb[152].mxu1  ;;  %v3822_v4 = vpop.f32.mrb[153].mxu0 }
 0x467   : > { %v6410_v14 = vmul.f32 %v15969_v47, %v4653_v24  ;;  %v6409_v18 = vmul.f32 %v15977_v39, %v3822_v4  ;;  %v4655_v60 = vpop.f32.mrb[153].mxu1 }
 0x468   : > { %v16084_v40 = vadd.f32 %v6408_v32, %v15899_v54  ;;  %v6411_v33 = vmul.f32 %v15986_v38, %v4655_v60 }
 0x469   : > { %v16088_v6 = vadd.f32 %v6410_v14, %v15904_v5  ;;  %v16091_v11 = vadd.f32 %v6409_v18, %v15907_v31  ;;  %v3826_v51 = vpop.f32.mrb[154].mxu0 }
 0x46a   : > { %v16094_v19 = vadd.f32 %v6411_v33, %v15910_v12  ;;  %v6416_v22 = vmul.f32 %v15965_v8, %v3826_v51  ;;  %v4659_v46 = vpop.f32.mrb[154].mxu1  ;;  %v3828_v21 = vpop.f32.mrb[155].mxu0 }
 0x46b   : > { %v6418_v24 = vmul.f32 %v15969_v47, %v4659_v46  ;;  %v6417_v54 = vmul.f32 %v15977_v39, %v3828_v21  ;;  %v4661_v32 = vpop.f32.mrb[155].mxu1 }
 0x46c   : > { %v16100_v4 = vadd.f32 %v6416_v22, %v15922_v45  ;;  %v6419_v5 = vmul.f32 %v15986_v38, %v4661_v32 }
 0x46d   : > { %v16104_v31 = vadd.f32 %v6418_v24, %v15927_v52  ;;  %v16107_v12 = vadd.f32 %v6417_v54, %v15930_v26  ;;  %v3832_v14 = vpop.f32.mrb[156].mxu0 }
 0x46e   : > { %v16110_v18 = vadd.f32 %v6419_v5, %v15933_v0  ;;  %v6424_v60 = vmul.f32 %v15965_v8, %v3832_v14  ;;  %v4665_v33 = vpop.f32.mrb[156].mxu1  ;;  %v3834_v51 = vpop.f32.mrb[157].mxu0 }
 0x46f   : > { %v6426_v46 = vmul.f32 %v15969_v47, %v4665_v33  ;;  %v6425_v45 = vmul.f32 %v15977_v39, %v3834_v51  ;;  %v4667_v22 = vpop.f32.mrb[157].mxu1 }
 0x470   : > { %v16116_v21 = vadd.f32 %v6424_v60, %v15945_v3  ;;  %v6427_v52 = vmul.f32 %v15986_v38, %v4667_v22  ;;  %v16131_v3 = vrot.slane %v15732_v53, %v17810_v37 }
 0x471   : > { %v16120_v26 = vadd.f32 %v6426_v46, %v15950_v57  ;;  %v16123_v0 = vadd.f32 %v6425_v45, %v15953_v29  ;;  %v3838_v24 = vpop.f32.mrb[158].mxu0  ;;  %v16137_v29 = vrot.slane %v15734_v30, %v17810_v37  ;;  %v16149_v46 = vrot.slane %v15747_v48, %v17810_v37 }
 0x472   : > { %v16126_v54 = vadd.f32 %v6427_v52, %v15956_v2  ;;  %v6432_v32 = vmul.f32 %v15965_v8, %v3838_v24  ;;  %v4671_v5 = vpop.f32.mrb[158].mxu1  ;;  %v3840_v14 = vpop.f32.mrb[159].mxu0  ;;  %v16141_v2 = vrot.slane %v15740_v15, %v17810_v37 }
 0x473   : > { %v6434_v60 = vmul.f32 %v15969_v47, %v4671_v5  ;;  %v6433_v57 = vmul.f32 %v15977_v39, %v3840_v14  ;;  %v4673_v33 = vpop.f32.mrb[159].mxu1 }
 0x474   : > { %v16144_v8 = vadd.f32 %v6432_v32, %v15980_v16  ;;  %v6435_v51 = vmul.f32 %v15986_v38, %v4673_v33 }
 0x475   : > { %v16152_v47 = vadd.f32 %v6434_v60, %v15989_v9  ;;  %v16155_v39 = vadd.f32 %v6433_v57, %v15992_v59  ;;  %v3844_v45 = vpop.f32.mrb[160].mxu0 }
 0x476   : > { %v16158_v22 = vadd.f32 %v6435_v51, %v15995_v20  ;;  %v6536_v52 = vmul.f32 %v16131_v3, %v3844_v45  ;;  %v4677_v16 = vpop.f32.mrb[160].mxu1  ;;  %v3846_v24 = vpop.f32.mrb[161].mxu0 }
 0x477   : > { %v6538_v38 = vmul.f32 %v16137_v29, %v4677_v16  ;;  %v6537_v32 = vmul.f32 %v16141_v2, %v3846_v24  ;;  %v4679_v5 = vpop.f32.mrb[161].mxu1 }
 0x478   : > { %v16164_v14 = vadd.f32 %v6536_v52, %v16007_v41  ;;  %v6539_v9 = vmul.f32 %v16149_v46, %v4679_v5 }
 0x479   : > { %v16168_v59 = vadd.f32 %v6538_v38, %v16012_v50  ;;  %v16171_v20 = vadd.f32 %v6537_v32, %v16015_v42  ;;  %v3850_v60 = vpop.f32.mrb[162].mxu0 }
 0x47a   : > { %v16174_v57 = vadd.f32 %v6539_v9, %v16018_v58  ;;  %v6544_v33 = vmul.f32 %v16131_v3, %v3850_v60  ;;  %v4683_v51 = vpop.f32.mrb[162].mxu1  ;;  %v3852_v45 = vpop.f32.mrb[163].mxu0 }
 0x47b   : > { %v6546_v16 = vmul.f32 %v16137_v29, %v4683_v51  ;;  %v6545_v41 = vmul.f32 %v16141_v2, %v3852_v45  ;;  %v4685_v52 = vpop.f32.mrb[163].mxu1 }
 0x47c   : > { %v16180_v24 = vadd.f32 %v6544_v33, %v16030_v25  ;;  %v6547_v50 = vmul.f32 %v16149_v46, %v4685_v52 }
 0x47d   : > { %v16184_v42 = vadd.f32 %v6546_v16, %v16035_v17  ;;  %v16187_v58 = vadd.f32 %v6545_v41, %v16038_v23  ;;  %v3856_v38 = vpop.f32.mrb[164].mxu0 }
 0x47e   : > { %v16190_v32 = vadd.f32 %v6547_v50, %v16041_v35  ;;  %v6552_v5 = vmul.f32 %v16131_v3, %v3856_v38  ;;  %v4689_v9 = vpop.f32.mrb[164].mxu1  ;;  %v3858_v60 = vpop.f32.mrb[165].mxu0 }
 0x47f   : > { %v6554_v51 = vmul.f32 %v16137_v29, %v4689_v9  ;;  %v6553_v25 = vmul.f32 %v16141_v2, %v3858_v60  ;;  %v4691_v33 = vpop.f32.mrb[165].mxu1 }
 0x480   : > { %v16196_v45 = vadd.f32 %v6552_v5, %v16052_v36  ;;  %v6555_v17 = vmul.f32 %v16149_v46, %v4691_v33 }
 0x481   : > { %v16200_v23 = vadd.f32 %v6554_v51, %v16056_v44  ;;  %v16203_v35 = vadd.f32 %v6553_v25, %v16059_v49  ;;  %v3862_v16 = vpop.f32.mrb[166].mxu0 }
 0x482   : > { %v16206_v41 = vadd.f32 %v6555_v17, %v16062_v1  ;;  %v6560_v52 = vmul.f32 %v16131_v3, %v3862_v16  ;;  %v4695_v50 = vpop.f32.mrb[166].mxu1  ;;  %v3864_v38 = vpop.f32.mrb[167].mxu0 }
 0x483   : > { %v6562_v9 = vmul.f32 %v16137_v29, %v4695_v50  ;;  %v6561_v36 = vmul.f32 %v16141_v2, %v3864_v38  ;;  %v4697_v5 = vpop.f32.mrb[167].mxu1 }
 0x484   : > { %v16212_v60 = vadd.f32 %v6560_v52, %v16068_v7  ;;  %v6563_v44 = vmul.f32 %v16149_v46, %v4697_v5 }
 0x485   : > { %v16216_v49 = vadd.f32 %v6562_v9, %v16072_v43  ;;  %v16219_v1 = vadd.f32 %v6561_v36, %v16075_v56  ;;  %v3868_v51 = vpop.f32.mrb[168].mxu0 }
 0x486   : > { %v16222_v25 = vadd.f32 %v6563_v44, %v16078_v61  ;;  %v6568_v33 = vmul.f32 %v16131_v3, %v3868_v51  ;;  %v4701_v17 = vpop.f32.mrb[168].mxu1  ;;  %v3870_v16 = vpop.f32.mrb[169].mxu0 }
 0x487   : > { %v6570_v50 = vmul.f32 %v16137_v29, %v4701_v17  ;;  %v6569_v7 = vmul.f32 %v16141_v2, %v3870_v16  ;;  %v4703_v52 = vpop.f32.mrb[169].mxu1 }
 0x488   : > { %v16228_v38 = vadd.f32 %v6568_v33, %v16084_v40  ;;  %v6571_v43 = vmul.f32 %v16149_v46, %v4703_v52 }
 0x489   : > { %v16232_v56 = vadd.f32 %v6570_v50, %v16088_v6  ;;  %v16235_v61 = vadd.f32 %v6569_v7, %v16091_v11  ;;  %v3874_v9 = vpop.f32.mrb[170].mxu0 }
 0x48a   : > { %v16238_v36 = vadd.f32 %v6571_v43, %v16094_v19  ;;  %v6576_v5 = vmul.f32 %v16131_v3, %v3874_v9  ;;  %v4707_v44 = vpop.f32.mrb[170].mxu1  ;;  %v3876_v51 = vpop.f32.mrb[171].mxu0 }
 0x48b   : > { %v6578_v17 = vmul.f32 %v16137_v29, %v4707_v44  ;;  %v6577_v40 = vmul.f32 %v16141_v2, %v3876_v51  ;;  %v4709_v33 = vpop.f32.mrb[171].mxu1 }
 0x48c   : > { %v16244_v16 = vadd.f32 %v6576_v5, %v16100_v4  ;;  %v6579_v6 = vmul.f32 %v16149_v46, %v4709_v33 }
 0x48d   : > { %v16248_v11 = vadd.f32 %v6578_v17, %v16104_v31  ;;  %v16251_v19 = vadd.f32 %v6577_v40, %v16107_v12  ;;  %v3880_v50 = vpop.f32.mrb[172].mxu0 }
 0x48e   : > { %v16254_v7 = vadd.f32 %v6579_v6, %v16110_v18  ;;  %v6584_v52 = vmul.f32 %v16131_v3, %v3880_v50  ;;  %v4713_v43 = vpop.f32.mrb[172].mxu1  ;;  %v3882_v9 = vpop.f32.mrb[173].mxu0 }
 0x48f   : > { %v6586_v44 = vmul.f32 %v16137_v29, %v4713_v43  ;;  %v6585_v4 = vmul.f32 %v16141_v2, %v3882_v9  ;;  %v4715_v5 = vpop.f32.mrb[173].mxu1 }
 0x490   : > { %v16260_v51 = vadd.f32 %v6584_v52, %v16116_v21  ;;  %v6587_v31 = vmul.f32 %v16149_v46, %v4715_v5  ;;  %v16275_v21 = vrot.slane %v15732_v53, %v17811_v63 }
 0x491   : > { %v16264_v12 = vadd.f32 %v6586_v44, %v16120_v26  ;;  %v16267_v18 = vadd.f32 %v6585_v4, %v16123_v0  ;;  %v3886_v17 = vpop.f32.mrb[174].mxu0  ;;  %v16281_v0 = vrot.slane %v15734_v30, %v17811_v63  ;;  %v16293_v44 = vrot.slane %v15747_v48, %v17811_v63 }
 0x492   : > { %v16270_v40 = vadd.f32 %v6587_v31, %v16126_v54  ;;  %v6592_v33 = vmul.f32 %v16131_v3, %v3886_v17  ;;  %v4719_v6 = vpop.f32.mrb[174].mxu1  ;;  %v3888_v50 = vpop.f32.mrb[175].mxu0  ;;  %v16285_v54 = vrot.slane %v15740_v15, %v17811_v63 }
 0x493   : > { %v6594_v52 = vmul.f32 %v16137_v29, %v4719_v6  ;;  %v6593_v26 = vmul.f32 %v16141_v2, %v3888_v50  ;;  %v4721_v43 = vpop.f32.mrb[175].mxu1 }
 0x494   : > { %v16288_v3 = vadd.f32 %v6592_v33, %v16144_v8  ;;  %v6595_v9 = vmul.f32 %v16149_v46, %v4721_v43 }
 0x495   : > { %v16296_v29 = vadd.f32 %v6594_v52, %v16152_v47  ;;  %v16299_v2 = vadd.f32 %v6593_v26, %v16155_v39  ;;  %v3892_v4 = vpop.f32.mrb[176].mxu0 }
 0x496   : > { %v16302_v5 = vadd.f32 %v6595_v9, %v16158_v22  ;;  %v6696_v31 = vmul.f32 %v16275_v21, %v3892_v4  ;;  %v4725_v8 = vpop.f32.mrb[176].mxu1  ;;  %v3894_v17 = vpop.f32.mrb[177].mxu0 }
 0x497   : > { %v6698_v46 = vmul.f32 %v16281_v0, %v4725_v8  ;;  %v6697_v33 = vmul.f32 %v16285_v54, %v3894_v17  ;;  %v4727_v6 = vpop.f32.mrb[177].mxu1 }
 0x498   : > { %v16308_v50 = vadd.f32 %v6696_v31, %v16164_v14  ;;  %v6699_v47 = vmul.f32 %v16293_v44, %v4727_v6 }
 0x499   : > { %v16312_v39 = vadd.f32 %v6698_v46, %v16168_v59  ;;  %v16315_v22 = vadd.f32 %v6697_v33, %v16171_v20  ;;  %v3898_v52 = vpop.f32.mrb[178].mxu0 }
 0x49a   : > { %v16318_v26 = vadd.f32 %v6699_v47, %v16174_v57  ;;  %v6704_v43 = vmul.f32 %v16275_v21, %v3898_v52  ;;  %v4731_v9 = vpop.f32.mrb[178].mxu1  ;;  %v3900_v4 = vpop.f32.mrb[179].mxu0 }
 0x49b   : > { %v6706_v8 = vmul.f32 %v16281_v0, %v4731_v9  ;;  %v6705_v14 = vmul.f32 %v16285_v54, %v3900_v4  ;;  %v4733_v31 = vpop.f32.mrb[179].mxu1 }
 0x49c   : > { %v16324_v17 = vadd.f32 %v6704_v43, %v16180_v24  ;;  %v6707_v59 = vmul.f32 %v16293_v44, %v4733_v31 }
 0x49d   : > { %v16328_v20 = vadd.f32 %v6706_v8, %v16184_v42  ;;  %v16331_v57 = vadd.f32 %v6705_v14, %v16187_v58  ;;  %v3904_v46 = vpop.f32.mrb[180].mxu0 }
 0x49e   : > { %v16334_v33 = vadd.f32 %v6707_v59, %v16190_v32  ;;  %v6712_v6 = vmul.f32 %v16275_v21, %v3904_v46  ;;  %v4737_v47 = vpop.f32.mrb[180].mxu1  ;;  %v3906_v52 = vpop.f32.mrb[181].mxu0 }
 0x49f   : > { %v6714_v9 = vmul.f32 %v16281_v0, %v4737_v47  ;;  %v6713_v24 = vmul.f32 %v16285_v54, %v3906_v52  ;;  %v4739_v43 = vpop.f32.mrb[181].mxu1 }
 0x4a0   : > { %v16340_v4 = vadd.f32 %v6712_v6, %v16196_v45  ;;  %v6715_v42 = vmul.f32 %v16293_v44, %v4739_v43 }
 0x4a1   : > { %v16344_v58 = vadd.f32 %v6714_v9, %v16200_v23  ;;  %v16347_v32 = vadd.f32 %v6713_v24, %v16203_v35  ;;  %v3910_v8 = vpop.f32.mrb[182].mxu0 }
 0x4a2   : > { %v16350_v14 = vadd.f32 %v6715_v42, %v16206_v41  ;;  %v6720_v31 = vmul.f32 %v16275_v21, %v3910_v8  ;;  %v4743_v59 = vpop.f32.mrb[182].mxu1  ;;  %v3912_v46 = vpop.f32.mrb[183].mxu0 }
 0x4a3   : > { %v6722_v47 = vmul.f32 %v16281_v0, %v4743_v59  ;;  %v6721_v45 = vmul.f32 %v16285_v54, %v3912_v46  ;;  %v4745_v6 = vpop.f32.mrb[183].mxu1 }
 0x4a4   : > { %v16356_v52 = vadd.f32 %v6720_v31, %v16212_v60  ;;  %v6723_v23 = vmul.f32 %v16293_v44, %v4745_v6 }
 0x4a5   : > { %v16360_v35 = vadd.f32 %v6722_v47, %v16216_v49  ;;  %v16363_v41 = vadd.f32 %v6721_v45, %v16219_v1  ;;  %v3916_v9 = vpop.f32.mrb[184].mxu0 }
 0x4a6   : > { %v16366_v24 = vadd.f32 %v6723_v23, %v16222_v25  ;;  %v6728_v43 = vmul.f32 %v16275_v21, %v3916_v9  ;;  %v4749_v42 = vpop.f32.mrb[184].mxu1  ;;  %v3918_v8 = vpop.f32.mrb[185].mxu0 }
 0x4a7   : > { %v6730_v59 = vmul.f32 %v16281_v0, %v4749_v42  ;;  %v6729_v60 = vmul.f32 %v16285_v54, %v3918_v8  ;;  %v4751_v31 = vpop.f32.mrb[185].mxu1 }
 0x4a8   : > { %v16372_v46 = vadd.f32 %v6728_v43, %v16228_v38  ;;  %v6731_v49 = vmul.f32 %v16293_v44, %v4751_v31 }
 0x4a9   : > { %v16376_v1 = vadd.f32 %v6730_v59, %v16232_v56  ;;  %v16379_v25 = vadd.f32 %v6729_v60, %v16235_v61  ;;  %v3922_v47 = vpop.f32.mrb[186].mxu0 }
 0x4aa   : > { %v16382_v45 = vadd.f32 %v6731_v49, %v16238_v36  ;;  %v6736_v6 = vmul.f32 %v16275_v21, %v3922_v47  ;;  %v4755_v23 = vpop.f32.mrb[186].mxu1  ;;  %v3924_v9 = vpop.f32.mrb[187].mxu0 }
 0x4ab   : > { %v6738_v42 = vmul.f32 %v16281_v0, %v4755_v23  ;;  %v6737_v38 = vmul.f32 %v16285_v54, %v3924_v9  ;;  %v4757_v43 = vpop.f32.mrb[187].mxu1 }
 0x4ac   : > { %v16388_v56 = vadd.f32 %v6736_v6, %v16244_v16  ;;  %v6739_v61 = vmul.f32 %v16293_v44, %v4757_v43 }
 0x4ad   : > { %v16392_v8 = vadd.f32 %v6738_v42, %v16248_v11  ;;  %v16395_v36 = vadd.f32 %v6737_v38, %v16251_v19  ;;  %v3928_v59 = vpop.f32.mrb[188].mxu0 }
 0x4ae   : > { %v16398_v60 = vadd.f32 %v6739_v61, %v16254_v7  ;;  %v6744_v31 = vmul.f32 %v16275_v21, %v3928_v59  ;;  %v4761_v49 = vpop.f32.mrb[188].mxu1  ;;  %v3930_v47 = vpop.f32.mrb[189].mxu0 }
 0x4af   : > { %v6746_v23 = vmul.f32 %v16281_v0, %v4761_v49  ;;  %v6745_v16 = vmul.f32 %v16285_v54, %v3930_v47  ;;  %v4763_v6 = vpop.f32.mrb[189].mxu1 }
 0x4b0   : > { %v16404_v9 = vadd.f32 %v6744_v31, %v16260_v51  ;;  %v6747_v11 = vmul.f32 %v16293_v44, %v4763_v6  ;;  %v16420_v51 = vrot.slane %v15732_v53, %v17819_v13 }
 0x4b1   : > { %v16409_v19 = vadd.f32 %v6746_v23, %v16264_v12  ;;  %v16412_v7 = vadd.f32 %v6745_v16, %v16267_v18  ;;  %v3934_v42 = vpop.f32.mrb[190].mxu0  ;;  %v16426_v18 = vrot.slane %v15734_v30, %v17819_v13 }
 0x4b2   : > { %v16415_v38 = vadd.f32 %v6747_v11, %v16270_v40  ;;  %v6752_v43 = vmul.f32 %v16275_v21, %v3934_v42  ;;  %v4767_v61 = vpop.f32.mrb[190].mxu1  ;;  %v3936_v59 = vpop.f32.mrb[191].mxu0  ;;  %v16430_v40 = vrot.slane %v15740_v15, %v17819_v13 }
 0x4b3   : > { %v6754_v31 = vmul.f32 %v16281_v0, %v4767_v61  ;;  %v6753_v12 = vmul.f32 %v16285_v54, %v3936_v59  ;;  %v4769_v49 = vpop.f32.mrb[191].mxu1  ;;  %v16440_v0 = vrot.slane %v15747_v48, %v17819_v13 }
 0x4b4   : > { %v16435_v21 = vadd.f32 %v6752_v43, %v16288_v3  ;;  %v6755_v47 = vmul.f32 %v16293_v44, %v4769_v49 }
 0x4b5   : > { %v16444_v54 = vadd.f32 %v6754_v31, %v16296_v29  ;;  %v16447_v23 = vadd.f32 %v6753_v12, %v16299_v2  ;;  %v3940_v16 = vpop.f32.mrb[192].mxu0 }
 0x4b6   : > { %v16450_v6 = vadd.f32 %v6755_v47, %v16302_v5  ;;  %v6856_v3 = vmul.f32 %v16420_v51, %v3940_v16  ;;  %v4773_v11 = vpop.f32.mrb[192].mxu1  ;;  %v3942_v42 = vpop.f32.mrb[193].mxu0 }
 0x4b7   : > { %v6858_v44 = vmul.f32 %v16426_v18, %v4773_v11  ;;  %v6857_v43 = vmul.f32 %v16430_v40, %v3942_v42  ;;  %v4775_v61 = vpop.f32.mrb[193].mxu1  ;;  %v647_v42 = vstv %s16432_s4 }
 0x4b8   : > { %v16458_v29 = vadd.f32 %v6856_v3, %v16308_v50  ;;  %v6859_v2 = vmul.f32 %v16440_v0, %v4775_v61 }
 0x4b9   : > { %v16462_v5 = vadd.f32 %v6858_v44, %v16312_v39  ;;  %v16465_v59 = vadd.f32 %v6857_v43, %v16315_v22  ;;  %v3946_v31 = vpop.f32.mrb[194].mxu0 }
 0x4ba   : > { %v16468_v12 = vadd.f32 %v6859_v2, %v16318_v26  ;;  %v6864_v49 = vmul.f32 %v16420_v51, %v3946_v31  ;;  %v4779_v47 = vpop.f32.mrb[194].mxu1  ;;  %v3948_v16 = vpop.f32.mrb[195].mxu0 }
 0x4bb   : > { %v6866_v11 = vmul.f32 %v16426_v18, %v4779_v47  ;;  %v6865_v50 = vmul.f32 %v16430_v40, %v3948_v16  ;;  %v4781_v3 = vpop.f32.mrb[195].mxu1 }
 0x4bc   : > { %v16475_v39 = vadd.f32 %v6864_v49, %v16324_v17  ;;  %v6867_v22 = vmul.f32 %v16440_v0, %v4781_v3  ;;  %v9282_v17 = vld [vmem:[%s17583_s1] ss:$4 sm:$0x3] }
 0x4bd   : > { %v16479_v44 = vadd.f32 %v6866_v11, %v16328_v20  ;;  %v16482_v26 = vadd.f32 %v6865_v50, %v16331_v57  ;;  %v3952_v43 = vpop.f32.mrb[196].mxu0  ;;  %v648_v49 = vadd.f32 %v9282_v17, %v647_v42  ;;  %v884_v57 = vstv %s16455_s30 }
 0x4be   : > { %v16485_v61 = vadd.f32 %v6867_v22, %v16334_v33  ;;  %v6872_v2 = vmul.f32 %v16420_v51, %v3952_v43  ;;  %v4785_v31 = vpop.f32.mrb[196].mxu1  ;;  %v3954_v47 = vpop.f32.mrb[197].mxu0  ;;  %v16508_v63 = vadd.f32 %v9282_v17, %v884_v57 }
 0x4bf   : > { %v6874_v16 = vmul.f32 %v16426_v18, %v4785_v31  ;;  %v6873_v20 = vmul.f32 %v16430_v40, %v3954_v47  ;;  %v4787_v11 = vpop.f32.mrb[197].mxu1  ;;  %v657_v13 = vfloor.f32 %v648_v49 }
 0x4c0   : > { %v16495_v50 = vadd.f32 %v6872_v2, %v16340_v4  ;;  %v6875_v33 = vmul.f32 %v16440_v0, %v4787_v11 }
 0x4c1   : > { %v16499_v3 = vadd.f32 %v6874_v16, %v16344_v58  ;;  %v16502_v22 = vadd.f32 %v6873_v20, %v16347_v32  ;;  %v3958_v43 = vpop.f32.mrb[198].mxu0 }
 0x4c2   : > { %v16505_v42 = vadd.f32 %v6875_v33, %v16350_v14  ;;  %v6880_v31 = vmul.f32 %v16420_v51, %v3958_v43  ;;  %v4791_v47 = vpop.f32.mrb[198].mxu1  ;;  %v3960_v10 = vpop.f32.mrb[199].mxu0  ;;  %v9088_v43 = vtrunc.f32 %v657_v13 }
 0x4c3   : > { %v6882_v4 = vmul.f32 %v16426_v18, %v4791_v47  ;;  %v6881_v2 = vmul.f32 %v16430_v40, %v3960_v10  ;;  %v4793_v58 = vpop.f32.mrb[199].mxu1 }
 0x4c4   : > { %v16513_v16 = vadd.f32 %v6880_v31, %v16356_v52  ;;  %v6883_v32 = vmul.f32 %v16440_v0, %v4793_v58  ;;  %v16543_v52 = vcvt.f32.s32 %v9088_v43 }
 0x4c5   : > { %v16517_v14 = vadd.f32 %v6882_v4, %v16360_v35  ;;  %v16520_v20 = vadd.f32 %v6881_v2, %v16363_v41  ;;  %v3964_v11 = vpop.f32.mrb[200].mxu0 }
 0x4c6   : > { %v16523_v17 = vadd.f32 %v6883_v32, %v16366_v24  ;;  %v6888_v57 = vmul.f32 %v16420_v51, %v3964_v11  ;;  %v4797_v33 = vpop.f32.mrb[200].mxu1  ;;  %v3966_v10 = vpop.f32.mrb[201].mxu0  ;;  %vm661_vm6 = vcmp.ge.s32.totalorder %v16543_v52, 0  ;;  %vm662_vm5 = vcmp.lt.s32.totalorder %v16543_v52, 16 }
 0x4c7   : > { %v6890_v31 = vmul.f32 %v16426_v18, %v4797_v33  ;;  %v6889_v47 = vmul.f32 %v16430_v40, %v3966_v10  ;;  %v4799_v35 = vpop.f32.mrb[201].mxu1  ;;  %vm663_vm7 = vmand %vm661_vm6, %vm662_vm5 }
 0x4c8   : > { %v16530_v4 = vadd.f32 %v6888_v57, %v16372_v46  ;;  %v6891_v41 = vmul.f32 %v16440_v0, %v4799_v35  ;;  %v18008_v46 = vfloor.f32 %v16508_v63 }
 0x4c9   : > { %v16534_v24 = vadd.f32 %v6890_v31, %v16376_v1  ;;  %v16537_v2 = vadd.f32 %v6889_v47, %v16379_v25  ;;  %v3970_v58 = vpop.f32.mrb[202].mxu0 }
 0x4ca   : > { %v16540_v32 = vadd.f32 %v6891_v41, %v16382_v45  ;;  %v6896_v11 = vmul.f32 %v16420_v51, %v3970_v58  ;;  %v4803_v33 = vpop.f32.mrb[202].mxu1  ;;  %v3972_v10 = vpop.f32.mrb[203].mxu0  ;;  %v9094_v57 = vtrunc.f32 %v18008_v46  ;;  %v16561_v58 = vsub.f32 %v648_v49, %v657_v13 }
 0x4cb   : > { %v6898_v35 = vmul.f32 %v16426_v18, %v4803_v33  ;;  %v6897_v1 = vmul.f32 %v16430_v40, %v3972_v10  ;;  %v4805_v31 = vpop.f32.mrb[203].mxu1  ;;  %v16569_v46 = vrot.slane %v15732_v53, %v17917_v55  ;;  %v16577_v13 = vrot.slane %v15734_v30, %v17917_v55 }
 0x4cc   : > { %v16550_v25 = vadd.f32 %v6896_v11, %v16388_v56  ;;  %v6899_v45 = vmul.f32 %v16440_v0, %v4805_v31  ;;  %v16571_v31 = vcvt.f32.s32 %v9094_v57 }
 0x4cd   : > { %v16556_v43 = vadd.f32 %v6898_v35, %v16392_v8  ;;  %v16559_v47 = vadd.f32 %v6897_v1, %v16395_v36  ;;  %v3976_v41 = vpop.f32.mrb[204].mxu0  ;;  %v16592_v1 = vrot.slane %v15740_v15, %v17917_v55 }
 0x4ce   : > { %v16564_v33 = vadd.f32 %v6899_v45, %v16398_v60  ;;  %v6904_v56 = vmul.f32 %v16420_v51, %v3976_v41  ;;  %v4809_v11 = vpop.f32.mrb[204].mxu1  ;;  %v3978_v10 = vpop.f32.mrb[205].mxu0  ;;  %v16584_v60 = vadd.s32 1, %v16543_v52  ;;  %v16596_v45 = vrot.slane %v15747_v48, %v17917_v55 }
 0x4cf   : > { %v6906_v8 = vmul.f32 %v16426_v18, %v4809_v11  ;;  %v6905_v36 = vmul.f32 %v16430_v40, %v3978_v10  ;;  %v4811_v35 = vpop.f32.mrb[205].mxu1  ;;  %vm898_vm10 = vcmp.ge.s32.totalorder %v16571_v31, 0  ;;  %vm899_vm11 = vcmp.lt.s32.totalorder %v16571_v31, 16 }
 0x4d0   : > { %v16587_v49 = vadd.f32 %v6904_v56, %v16404_v9  ;;  %v6907_v57 = vmul.f32 %v16440_v0, %v4811_v35  ;;  %v16606_v9 = vrot.slane %v15732_v53, %v17786_v34  ;;  %v660_v56 = vsub.f32 1.0, %v16561_v58  ;;  %vm16664_vm0 = vmand %vm898_vm10, %vm899_vm11 }
 0x4d1   : > { %v16599_v41 = vadd.f32 %v6906_v8, %v16409_v19  ;;  %v16602_v11 = vadd.f32 %v6905_v36, %v16412_v7  ;;  %v3982_v10 = vpop.f32.mrb[206].mxu0  ;;  %v8530_v19 = vsel %vm663_vm7, 1.0, %v17737_v28  ;;  %v16615_v8 = vadd.s32 1, %v16571_v31 }
 0x4d2   : > { %18009 = vst [vmem:[#allocation40_spill] sm:$0xff] %v16587_v49  ;;  %v16610_v35 = vadd.f32 %v6907_v57, %v16415_v38  ;;  %v6912_v37 = vmul.f32 %v16420_v51, %v3982_v10  ;;  %v4815_v55 = vpop.f32.mrb[206].mxu1  ;;  %v3984_v49 = vpop.f32.mrb[207].mxu0  ;;  %vm668_vm8 = vcmp.ge.s32.totalorder %v16584_v60, 0  ;;  %vm669_vm9 = vcmp.lt.s32.totalorder %v16584_v60, 16 }
 0x4d3   : > { %18010 = vst [vmem:[#allocation42_spill] sm:$0xff] %v16602_v11  ;;  %v6914_v7 = vmul.f32 %v16426_v18, %v4815_v55  ;;  %v6913_v36 = vmul.f32 %v16430_v40, %v3984_v49  ;;  %v4817_v11 = vpop.f32.mrb[207].mxu1  ;;  %v16635_v40 = vrot.slane %v15734_v30, %v17786_v34  ;;  %vm16646_vm13 = vmand %vm668_vm8, %vm669_vm9  ;;  %vm905_vm14 = vcmp.ge.s32.totalorder %v16615_v8, 0 }
 0x4d4   : > { %v16622_v38 = vadd.f32 %v6912_v37, %v16435_v21  ;;  %v6915_v51 = vmul.f32 %v16440_v0, %v4817_v11  ;;  %v18012_v37 = vfloor.f32 %v16508_v63  ;;  %vm906_vm15 = vcmp.lt.s32.totalorder %v16615_v8, 16 }
 0x4d5   : > { %v16628_v57 = vadd.f32 %v6914_v7, %v16444_v54  ;;  %v16631_v55 = vadd.f32 %v6913_v36, %v16447_v23  ;;  %v3988_v18 = vpop.f32.mrb[208].mxu0  ;;  %18011 = vst [vmem:[#allocation36_spill] sm:$0xff] %v16635_v40  ;;  %v16654_v7 = vmul.f32 %v8530_v19, %v660_v56  ;;  %v16658_v36 = vrot.slane %v16543_v52, %v18006_v62  ;;  %vm907_vm1 = vmand %vm905_vm14, %vm906_vm15 }
 0x4d6   : > { %v895_v21 = vsub.f32 %v16508_v63, %v18012_v37  ;;  %v16641_v0 = vadd.f32 %v6915_v51, %v16450_v6  ;;  %v7016_v49 = vmul.f32 %v16569_v46, %v3988_v18  ;;  %v4821_v11 = vpop.f32.mrb[208].mxu1  ;;  %v3990_v54 = vpop.f32.mrb[209].mxu0  ;;  %v16674_v56 = vrot.slane %v15740_v15, %v17786_v34 }
 0x4d7   : > { %v7018_v10 = vmul.f32 %v16577_v13, %v4821_v11  ;;  %v7017_v63 = vmul.f32 %v16592_v1, %v3990_v54  ;;  %v4823_v6 = vpop.f32.mrb[209].mxu1  ;;  %v16678_v19 = vrot.slane %v15747_v48, %v17786_v34  ;;  %v8536_v23 = vsel %vm16664_vm0, 1.0, %v17737_v28 }
 0x4d8   : > { %v16669_v18 = vadd.f32 %v7016_v49, %v16458_v29  ;;  %v7019_v37 = vmul.f32 %v16596_v45, %v4823_v6  ;;  %18018 = vst [vmem:[#allocation41_spill] sm:$0xff] %v16674_v56  ;;  %v8531_v29 = vsel %vm16646_vm13, 1.0, %v17737_v28  ;;  %v897_v49 = vsub.f32 1.0, %v895_v21 }
 0x4d9   : > { %18019 = vst [vmem:[#allocation14_spill] sm:$0xff] %v16678_v19  ;;  %v16681_v11 = vadd.f32 %v7018_v10, %v16462_v5  ;;  %v16684_v54 = vadd.f32 %v7017_v63, %v16465_v59  ;;  %v3994_v40 = vpop.f32.mrb[210].mxu0  ;;  %v18023_v59 = vld [vmem:[#allocation32_spill] sm:$0xff]  ;;  %v673_v51 = vmul.f32 %v8531_v29, %v16561_v58 }
 0x4da   : > { %18017 = vst [vmem:[#allocation39_spill] sm:$0xff] %v16669_v18  ;;  %v16694_v6 = vadd.f32 %v7019_v37, %v16468_v12  ;;  %v7024_v5 = vmul.f32 %v16569_v46, %v3994_v40  ;;  %v4827_v10 = vpop.f32.mrb[210].mxu1  ;;  %v3996_v34 = vpop.f32.mrb[211].mxu0  ;;  %v16699_v63 = vrot.slane %v15732_v53, %v18023_v59  ;;  %v18025_v12 = vld [vmem:[#allocation8_spill] sm:$0xff]  ;;  %v16710_v40 = vrot.slane %v16654_v7, %v18006_v62 }
 0x4db   : > { %18020 = vst [vmem:[#allocation23_spill] sm:$0xff] %v16681_v11  ;;  %18021 = vst [vmem:[#allocation16_spill] sm:$0xff] %v16684_v54  ;;  %v7026_v54 = vmul.f32 %v16577_v13, %v4827_v10  ;;  %v7025_v11 = vmul.f32 %v16592_v1, %v3996_v34  ;;  %v4829_v19 = vpop.f32.mrb[211].mxu1  ;;  %vm682_vm2 = vcmp.eq.s32.totalorder %v18025_v12, %v16658_v36 }
 0x4dc   : > { %18022 = vst [vmem:[#allocation25_spill] sm:$0xff] %v16694_v6  ;;  %18024 = vst [vmem:[#allocation18_spill] sm:$0xff] %v16699_v63  ;;  %v16713_v37 = vadd.f32 %v7024_v5, %v16475_v39  ;;  %v7027_v53 = vmul.f32 %v16596_v45, %v4829_v19  ;;  %v8537_v63 = vsel %vm907_vm1, 1.0, %v17737_v28  ;;  %v16726_v18 = vrot.slane %v16584_v60, %v18006_v62 }
 0x4dd   : > { %v16719_v10 = vadd.f32 %v7026_v54, %v16479_v44  ;;  %v16722_v34 = vadd.f32 %v7025_v11, %v16482_v26  ;;  %v4000_v6 = vpop.f32.mrb[212].mxu0  ;;  %v16728_v56 = vmul.f32 %v8536_v23, %v897_v49  ;;  %v16736_v44 = vrot.slane %v16571_v31, %v18006_v62 }
 0x4de   : > { %v16731_v39 = vadd.f32 %v7027_v53, %v16485_v61  ;;  %v7032_v58 = vmul.f32 %v16569_v46, %v4000_v6  ;;  %v4833_v19 = vpop.f32.mrb[212].mxu1  ;;  %v4002_v28 = vpop.f32.mrb[213].mxu0  ;;  %v16740_v26 = vrot.slane %v15734_v30, %v18023_v59  ;;  %v697_v61 = vsel %vm682_vm2, %v16710_v40, 0.0 }
 0x4df   : > { %v7034_v11 = vmul.f32 %v16577_v13, %v4833_v19  ;;  %v7033_v54 = vmul.f32 %v16592_v1, %v4002_v28  ;;  %v4835_v29 = vpop.f32.mrb[213].mxu1  ;;  %v910_v49 = vmul.f32 %v8537_v63, %v895_v21  ;;  %v16753_v23 = vrot.slane %v673_v51, %v18006_v62 }
 0x4e0   : > { %18026 = vst [vmem:[#allocation26_spill] sm:$0xff] %v16740_v26  ;;  %v16749_v6 = vadd.f32 %v7032_v58, %v16495_v50  ;;  %v7035_v5 = vmul.f32 %v16596_v45, %v4835_v29  ;;  %v16757_v30 = vrot.slane %v16615_v8, %v18006_v62  ;;  %vm709_vm3 = vcmp.eq.s32.totalorder %v18025_v12, %v16726_v18 }
 0x4e1   : > { %v16760_v53 = vadd.f32 %v7034_v11, %v16499_v3  ;;  %v16763_v19 = vadd.f32 %v7033_v54, %v16502_v22  ;;  %v4006_v28 = vpop.f32.mrb[214].mxu0  ;;  %v16769_v50 = vrot.slane %v16728_v56, %v18006_v62  ;;  %vm919_vm4 = vcmp.eq.s32.totalorder %v18025_v12, %v16736_v44 }
 0x4e2   : > { %v16772_v21 = vadd.f32 %v7035_v5, %v16505_v42  ;;  %v7040_v63 = vmul.f32 %v16569_v46, %v4006_v28  ;;  %v4839_v58 = vpop.f32.mrb[214].mxu1  ;;  %v4008_v29 = vpop.f32.mrb[215].mxu0  ;;  %v16779_v3 = vrot.slane %v16543_v52, %v18007_v27  ;;  %v16784_v26 = vrot.slane %v910_v49, %v18006_v62 }
 0x4e3   : > { %18027 = vst [vmem:[#allocation17_spill] sm:$0xff] %v16763_v19  ;;  %v7042_v22 = vmul.f32 %v16577_v13, %v4839_v58  ;;  %v7041_v11 = vmul.f32 %v16592_v1, %v4008_v29  ;;  %v4841_v54 = vpop.f32.mrb[215].mxu1  ;;  %v16788_v42 = vrot.slane %v16584_v60, %v18007_v27  ;;  %v724_v52 = vsel %vm709_vm3, %v16753_v23, 0.0 }
 0x4e4   : > { %18028 = vst [vmem:[#allocation35_spill] sm:$0xff] %v16772_v21  ;;  %v16791_v5 = vadd.f32 %v7040_v63, %v16513_v16  ;;  %v7043_v28 = vmul.f32 %v16596_v45, %v4841_v54  ;;  %vm946_vm6 = vcmp.eq.s32.totalorder %v18025_v12, %v16757_v30  ;;  %v934_v60 = vsel %vm919_vm4, %v16769_v50, 0.0 }
 0x4e5   : > { %v16798_v58 = vadd.f32 %v7042_v22, %v16517_v14  ;;  %v16801_v29 = vadd.f32 %v7041_v11, %v16520_v20  ;;  %v4012_v21 = vpop.f32.mrb[216].mxu0  ;;  %v16806_v16 = vrot.slane %v16654_v7, %v18007_v27  ;;  %vm683_vm5 = vcmp.eq.s32.totalorder %v18025_v12, %v16779_v3 }
 0x4e6   : > { %18029 = vst [vmem:[#allocation51_spill] sm:$0xff] %v16791_v5  ;;  %v16809_v63 = vadd.f32 %v7043_v28, %v16523_v17  ;;  %v7048_v54 = vmul.f32 %v16569_v46, %v4012_v21  ;;  %v4845_v5 = vpop.f32.mrb[216].mxu1  ;;  %v4014_v19 = vpop.f32.mrb[217].mxu0  ;;  %v16815_v14 = vrot.slane %v673_v51, %v18007_v27  ;;  %v961_v7 = vsel %vm946_vm6, %v16784_v26, 0.0 }
 0x4e7   : > { %18030 = vst [vmem:[#allocation53_spill] sm:$0xff] %v16801_v29  ;;  %v7050_v20 = vmul.f32 %v16577_v13, %v4845_v5  ;;  %v7049_v22 = vmul.f32 %v16592_v1, %v4014_v19  ;;  %v4847_v11 = vpop.f32.mrb[217].mxu1  ;;  %vm710_vm7 = vcmp.eq.s32.totalorder %v18025_v12, %v16788_v42  ;;  %v16828_v28 = vrot.slane %v16571_v31, %v18007_v27 }
 0x4e8   : > { %18031 = vst [vmem:[#allocation24_spill] sm:$0xff] %v16809_v63  ;;  %v16823_v17 = vadd.f32 %v7048_v54, %v16530_v4  ;;  %v7051_v21 = vmul.f32 %v16596_v45, %v4847_v11  ;;  %v16832_v51 = vrot.slane %v16615_v8, %v18007_v27  ;;  %v16840_v29 = vadd.f32 %v724_v52, %v697_v61 }
 0x4e9   : > { %v16835_v19 = vadd.f32 %v7050_v20, %v16534_v24  ;;  %v16838_v5 = vadd.f32 %v7049_v22, %v16537_v2  ;;  %v4018_v63 = vpop.f32.mrb[218].mxu0  ;;  %v698_v4 = vsel %vm683_vm5, %v16806_v16, 0.0  ;;  %v16847_v8 = vadd.f32 %v961_v7, %v934_v60 }
 0x4ea   : > { %18032 = vst [vmem:[#allocation38_spill] sm:$0xff] %v16823_v17  ;;  %v16844_v54 = vadd.f32 %v7051_v21, %v16540_v32  ;;  %v7056_v31 = vmul.f32 %v16569_v46, %v4018_v63  ;;  %v4851_v11 = vpop.f32.mrb[218].mxu1  ;;  %v4020_v17 = vpop.f32.mrb[219].mxu0  ;;  %v725_v24 = vsel %vm710_vm7, %v16815_v14, 0.0  ;;  %v16854_v61 = vrot.slane %v16728_v56, %v18007_v27 }
 0x4eb   : > { %v7058_v20 = vmul.f32 %v16577_v13, %v4851_v11  ;;  %v7057_v2 = vmul.f32 %v16592_v1, %v4020_v17  ;;  %v4853_v22 = vpop.f32.mrb[219].mxu1  ;;  %v16857_v32 = vrot.slane %v910_v49, %v18007_v27  ;;  %vm920_vm8 = vcmp.eq.s32.totalorder %v18025_v12, %v16828_v28 }
 0x4ec   : > { %v16860_v52 = vadd.f32 %v7056_v31, %v16550_v25  ;;  %v7059_v60 = vmul.f32 %v16596_v45, %v4853_v22  ;;  %vm947_vm9 = vcmp.eq.s32.totalorder %v18025_v12, %v16832_v51  ;;  %v16875_v25 = vadd.f32 %v725_v24, %v698_v4  ;;  %v18034_v22 = vld [vmem:[#allocation40_spill] sm:$0xff]  ;;  %v18038_v12 = vld [vmem:[#allocation27_spill] sm:$0xff] }
 0x4ed   : > { %v16868_v63 = vadd.f32 %v7058_v20, %v16556_v43  ;;  %v16871_v56 = vadd.f32 %v7057_v2, %v16559_v47  ;;  %v4024_v7 = vpop.f32.mrb[220].mxu0  ;;  %v16885_v47 = vrot.slane %v15740_v15, %v18023_v59  ;;  %v962_v24 = vsel %vm947_vm9, %v16857_v32, 0.0  ;;  %v18036_v43 = vld [vmem:[#allocation42_spill] sm:$0xff] }
 0x4ee   : > { %v16878_v17 = vadd.f32 %v7059_v60, %v16564_v33  ;;  %v7064_v21 = vmul.f32 %v16569_v46, %v4024_v7  ;;  %v4857_v31 = vpop.f32.mrb[220].mxu1  ;;  %v4026_v11 = vpop.f32.mrb[221].mxu0  ;;  %v935_v33 = vsel %vm920_vm8, %v16854_v61, 0.0 }
 0x4ef   : > { %18033 = vst [vmem:[#allocation48_spill] sm:$0xff] %v16885_v47  ;;  %v7066_v20 = vmul.f32 %v16577_v13, %v4857_v31  ;;  %v7065_v2 = vmul.f32 %v16592_v1, %v4026_v11  ;;  %v4859_v4 = vpop.f32.mrb[221].mxu1 }
 0x4f0   : > { %v16898_v60 = vadd.f32 %v7064_v21, %v18034_v22  ;;  %v7067_v15 = vmul.f32 %v16596_v45, %v4859_v4 }
 0x4f1   : > { %v16906_v11 = vadd.f32 %v7066_v20, %v16599_v41  ;;  %v16909_v49 = vadd.f32 %v7065_v2, %v18036_v43  ;;  %v4030_v47 = vpop.f32.mrb[222].mxu0  ;;  %v16923_v41 = vrot.slane %v15747_v48, %v18023_v59 }
 0x4f2   : > { %18035 = vst [vmem:[#allocation15_spill] sm:$0xff] %v16898_v60  ;;  %v16916_v4 = vadd.f32 %v7067_v15, %v16610_v35  ;;  %v7072_v22 = vmul.f32 %v16569_v46, %v4030_v47  ;;  %v4863_v7 = vpop.f32.mrb[222].mxu1  ;;  %v4032_v31 = vpop.f32.mrb[223].mxu0  ;;  %v16919_v60 = vadd.f32 %v962_v24, %v935_v33  ;;  %v18039_v35 = vld [vmem:[#allocation28_spill] sm:$0xff]  ;;  %v18047_v15 = vld [vmem:[#allocation14_spill] sm:$0xff] }
 0x4f3   : > { %18037 = vst [vmem:[#allocation43_spill] sm:$0xff] %v16923_v41  ;;  %v7074_v43 = vmul.f32 %v16577_v13, %v4863_v7  ;;  %v7073_v20 = vmul.f32 %v16592_v1, %v4032_v31  ;;  %v4865_v2 = vpop.f32.mrb[223].mxu1  ;;  %v18044_v13 = vld [vmem:[#allocation41_spill] sm:$0xff] }
 0x4f4   : > { %v16932_v46 = vadd.f32 %v7072_v22, %v16622_v38  ;;  %v7075_v47 = vmul.f32 %v16596_v45, %v4865_v2 }
 0x4f5   : > { %v16940_v1 = vadd.f32 %v7074_v43, %v16628_v57  ;;  %v16943_v33 = vadd.f32 %v7073_v20, %v16631_v55  ;;  %v4036_v24 = vpop.f32.mrb[224].mxu0  ;;  %v18043_v43 = vld [vmem:[#allocation36_spill] sm:$0xff]  ;;  %v18048_v57 = vld [vmem:[#allocation29_spill] sm:$0xff]  ;;  %v18049_v55 = vld [vmem:[#allocation30_spill] sm:$0xff] }
 0x4f6   : > { %v16950_v45 = vadd.f32 %v7075_v47, %v16641_v0  ;;  %v7176_v31 = vmul.f32 %v16606_v9, %v4036_v24  ;;  %v4869_v22 = vpop.f32.mrb[224].mxu1  ;;  %v4038_v2 = vpop.f32.mrb[225].mxu0  ;;  %v18045_v47 = vld [vmem:[#allocation39_spill] sm:$0xff] }
 0x4f7   : > { %18040 = vst [vmem:[#allocation44_spill] sm:$0xff] %v16940_v1  ;;  %18041 = vst [vmem:[#allocation55_spill] sm:$0xff] %v16943_v33  ;;  %v7178_v20 = vmul.f32 %v18043_v43, %v4869_v22  ;;  %v7177_v7 = vmul.f32 %v18044_v13, %v4038_v2  ;;  %v4871_v48 = vpop.f32.mrb[225].mxu1  ;;  %v18051_v33 = vld [vmem:[#allocation16_spill] sm:$0xff] }
 0x4f8   : > { %18042 = vst [vmem:[#allocation34_spill] sm:$0xff] %v16950_v45  ;;  %v16964_v24 = vadd.f32 %v7176_v31, %v18045_v47  ;;  %v7179_v21 = vmul.f32 %v18047_v15, %v4871_v48  ;;  %v18050_v45 = vld [vmem:[#allocation23_spill] sm:$0xff]  ;;  %v18052_v48 = vld [vmem:[#allocation25_spill] sm:$0xff] }
 0x4f9   : > { %v16972_v2 = vadd.f32 %v7178_v20, %v18050_v45  ;;  %v16975_v1 = vadd.f32 %v7177_v7, %v18051_v33  ;;  %v4042_v38 = vpop.f32.mrb[226].mxu0  ;;  %v18055_v45 = vld [vmem:[#allocation10_spill] sm:$0xff]  ;;  %v18056_v33 = vld [vmem:[#allocation31_spill] sm:$0xff] }
 0x4fa   : > { %18046 = vst [vmem:[#allocation13_spill] sm:$0xff] %v16964_v24  ;;  %v16982_v47 = vadd.f32 %v7179_v21, %v18052_v48  ;;  %v7184_v41 = vmul.f32 %v16606_v9, %v4042_v38  ;;  %v4875_v24 = vpop.f32.mrb[226].mxu1  ;;  %v4044_v22 = vpop.f32.mrb[227].mxu0  ;;  %vm684_vm10 = vcmp.eq.s32.totalorder %v18055_v45, %v16658_v36  ;;  %vm711_vm11 = vcmp.eq.s32.totalorder %v18055_v45, %v16726_v18  ;;  %v18057_v36 = vld [vmem:[#allocation17_spill] sm:$0xff] }
 0x4fb   : > { %v7186_v7 = vmul.f32 %v18043_v43, %v4875_v24  ;;  %v7185_v20 = vmul.f32 %v18044_v13, %v4044_v22  ;;  %v4877_v0 = vpop.f32.mrb[227].mxu1  ;;  %vm921_vm13 = vcmp.eq.s32.totalorder %v18055_v45, %v16736_v44  ;;  %vm948_vm14 = vcmp.eq.s32.totalorder %v18055_v45, %v16757_v30  ;;  %v18060_v44 = vld [vmem:[#allocation53_spill] sm:$0xff] }
 0x4fc   : > { %18053 = vst [vmem:[#allocation46_spill] sm:$0xff] %v16982_v47  ;;  %v16996_v38 = vadd.f32 %v7184_v41, %v16713_v37  ;;  %v7187_v48 = vmul.f32 %v18047_v15, %v4877_v0  ;;  %vm685_vm15 = vcmp.eq.s32.totalorder %v18055_v45, %v16779_v3  ;;  %vm712_vm0 = vcmp.eq.s32.totalorder %v18055_v45, %v16788_v42 }
 0x4fd   : > { %v17004_v24 = vadd.f32 %v7186_v7, %v16719_v10  ;;  %v17007_v22 = vadd.f32 %v7185_v20, %v16722_v34  ;;  %v4048_v31 = vpop.f32.mrb[228].mxu0  ;;  %v936_v3 = vsel %vm921_vm13, %v16769_v50, 0.0  ;;  %vm922_vm1 = vcmp.eq.s32.totalorder %v18055_v45, %v16828_v28  ;;  %v18082_v28 = vld [vmem:[#allocation43_spill] sm:$0xff] }
 0x4fe   : > { %18054 = vst [vmem:[#allocation49_spill] sm:$0xff] %v16996_v38  ;;  %v17014_v41 = vadd.f32 %v7187_v48, %v16731_v39  ;;  %v7192_v0 = vmul.f32 %v16606_v9, %v4048_v31  ;;  %v4881_v38 = vpop.f32.mrb[228].mxu1  ;;  %v4050_v47 = vpop.f32.mrb[229].mxu0  ;;  %v699_v39 = vsel %vm684_vm10, %v16710_v40, 0.0  ;;  %v726_v31 = vsel %vm711_vm11, %v16753_v23, 0.0 }
 0x4ff   : > { %v7194_v7 = vmul.f32 %v18043_v43, %v4881_v38  ;;  %v7193_v20 = vmul.f32 %v18044_v13, %v4050_v47  ;;  %v4883_v21 = vpop.f32.mrb[229].mxu1  ;;  %v17053_v37 = vadd.f32 %v726_v31, %v699_v39  ;;  %v18059_v39 = vld [vmem:[#allocation51_spill] sm:$0xff]  ;;  %v727_v30 = vsel %vm712_vm0, %v16815_v14, 0.0 }
 0x500   : > { %v17032_v48 = vadd.f32 %v7192_v0, %v16749_v6  ;;  %v7195_v34 = vmul.f32 %v18047_v15, %v4883_v21  ;;  %v18058_v6 = vld [vmem:[#allocation35_spill] sm:$0xff]  ;;  %vm949_vm2 = vcmp.eq.s32.totalorder %v18055_v45, %v16832_v51 }
 0x501   : > { %v17040_v47 = vadd.f32 %v7194_v7, %v16760_v53  ;;  %v17043_v40 = vadd.f32 %v7193_v20, %v18057_v36  ;;  %v4054_v38 = vpop.f32.mrb[230].mxu0  ;;  %v700_v36 = vsel %vm685_vm15, %v16806_v16, 0.0 }
 0x502   : > { %v17050_v23 = vadd.f32 %v7195_v34, %v18058_v6  ;;  %v7200_v21 = vmul.f32 %v16606_v9, %v4054_v38  ;;  %v4887_v0 = vpop.f32.mrb[230].mxu1  ;;  %v4056_v10 = vpop.f32.mrb[231].mxu0  ;;  %v963_v34 = vsel %vm948_vm14, %v16784_v26, 0.0  ;;  %v18061_v26 = vld [vmem:[#allocation24_spill] sm:$0xff] }
 0x503   : > { %v7202_v53 = vmul.f32 %v18043_v43, %v4887_v0  ;;  %v7201_v7 = vmul.f32 %v18044_v13, %v4056_v10  ;;  %v4889_v20 = vpop.f32.mrb[231].mxu1 }
 0x504   : > { %v17068_v31 = vadd.f32 %v7200_v21, %v18059_v39  ;;  %v7203_v42 = vmul.f32 %v18047_v15, %v4889_v20  ;;  %v937_v39 = vsel %vm922_vm1, %v16854_v61, 0.0 }
 0x505   : > { %v17075_v10 = vadd.f32 %v7202_v53, %v16798_v58  ;;  %v17078_v50 = vadd.f32 %v7201_v7, %v18060_v44  ;;  %v4060_v38 = vpop.f32.mrb[232].mxu0  ;;  %v17089_v53 = vadd.f32 %v963_v34, %v936_v3  ;;  %v17103_v3 = vadd.f32 %v727_v30, %v700_v36 }
 0x506   : > { %v17084_v6 = vadd.f32 %v7203_v42, %v18061_v26  ;;  %v7208_v16 = vmul.f32 %v16606_v9, %v4060_v38  ;;  %v4893_v21 = vpop.f32.mrb[232].mxu1  ;;  %v4062_v0 = vpop.f32.mrb[233].mxu0  ;;  %v18062_v42 = vld [vmem:[#allocation38_spill] sm:$0xff]  ;;  %v964_v34 = vsel %vm949_vm2, %v16857_v32, 0.0 }
 0x507   : > { %v7210_v7 = vmul.f32 %v18043_v43, %v4893_v21  ;;  %v7209_v20 = vmul.f32 %v18044_v13, %v4062_v0  ;;  %v4895_v14 = vpop.f32.mrb[233].mxu1 }
 0x508   : > { %v17100_v44 = vadd.f32 %v7208_v16, %v18062_v42  ;;  %v7211_v38 = vmul.f32 %v18047_v15, %v4895_v14 }
 0x509   : > { %v17107_v26 = vadd.f32 %v7210_v7, %v16835_v19  ;;  %v17110_v21 = vadd.f32 %v7209_v20, %v16838_v5  ;;  %v4066_v0 = vpop.f32.mrb[234].mxu0  ;;  %v18080_v19 = vld [vmem:[#allocation48_spill] sm:$0xff] }
 0x50a   : > { %v17117_v45 = vadd.f32 %v7211_v38, %v16844_v54  ;;  %v7216_v36 = vmul.f32 %v16606_v9, %v4066_v0  ;;  %v4899_v30 = vpop.f32.mrb[234].mxu1  ;;  %v4068_v32 = vpop.f32.mrb[235].mxu0  ;;  %v17128_v54 = vadd.f32 %v964_v34, %v937_v39 }
 0x50b   : > { %v7218_v16 = vmul.f32 %v18043_v43, %v4899_v30  ;;  %v7217_v7 = vmul.f32 %v18044_v13, %v4068_v32  ;;  %v4901_v20 = vpop.f32.mrb[235].mxu1 }
 0x50c   : > { %v17131_v42 = vadd.f32 %v7216_v36, %v16860_v52  ;;  %v7219_v38 = vmul.f32 %v18047_v15, %v4901_v20 }
 0x50d   : > { %v17139_v30 = vadd.f32 %v7218_v16, %v16868_v63  ;;  %v17142_v32 = vadd.f32 %v7217_v7, %v16871_v56  ;;  %v4072_v14 = vpop.f32.mrb[236].mxu0 }
 0x50e   : > { %v17149_v34 = vadd.f32 %v7219_v38, %v16878_v17  ;;  %v7224_v36 = vmul.f32 %v16606_v9, %v4072_v14  ;;  %v4905_v20 = vpop.f32.mrb[236].mxu1  ;;  %v4074_v5 = vpop.f32.mrb[237].mxu0  ;;  %v18066_v14 = vld [vmem:[#allocation15_spill] sm:$0xff] }
 0x50f   : > { %18063 = vst [vmem:[#allocation50_spill] sm:$0xff] %v17139_v30  ;;  %18064 = vst [vmem:[#allocation12_spill] sm:$0xff] %v17142_v32  ;;  %v7226_v16 = vmul.f32 %v18043_v43, %v4905_v20  ;;  %v7225_v7 = vmul.f32 %v18044_v13, %v4074_v5  ;;  %v4907_v39 = vpop.f32.mrb[237].mxu1 }
 0x510   : > { %18065 = vst [vmem:[#allocation22_spill] sm:$0xff] %v17149_v34  ;;  %v17163_v38 = vadd.f32 %v7224_v36, %v18066_v14  ;;  %v7227_v0 = vmul.f32 %v18047_v15, %v4907_v39 }
 0x511   : > { %v17171_v5 = vadd.f32 %v7226_v16, %v16906_v11  ;;  %v17174_v56 = vadd.f32 %v7225_v7, %v16909_v49  ;;  %v4078_v52 = vpop.f32.mrb[238].mxu0 }
 0x512   : > { %18067 = vst [vmem:[#allocation47_spill] sm:$0xff] %v17163_v38  ;;  %v17181_v39 = vadd.f32 %v7227_v0, %v16916_v4  ;;  %v7232_v14 = vmul.f32 %v16606_v9, %v4078_v52  ;;  %v4911_v63 = vpop.f32.mrb[238].mxu1  ;;  %v4080_v20 = vpop.f32.mrb[239].mxu0 }
 0x513   : > { %18068 = vst [vmem:[#allocation54_spill] sm:$0xff] %v17171_v5  ;;  %18069 = vst [vmem:[#allocation21_spill] sm:$0xff] %v17174_v56  ;;  %v7234_v16 = vmul.f32 %v18043_v43, %v4911_v63  ;;  %v7233_v7 = vmul.f32 %v18044_v13, %v4080_v20  ;;  %v4913_v17 = vpop.f32.mrb[239].mxu1  ;;  %v18072_v63 = vld [vmem:[#allocation44_spill] sm:$0xff]  ;;  %v18074_v20 = vld [vmem:[#allocation55_spill] sm:$0xff] }
 0x514   : > { %18070 = vst [vmem:[#allocation20_spill] sm:$0xff] %v17181_v39  ;;  %v17195_v9 = vadd.f32 %v7232_v14, %v16932_v46  ;;  %v7235_v0 = vmul.f32 %v18047_v15, %v4913_v17  ;;  %v18076_v15 = vld [vmem:[#allocation34_spill] sm:$0xff]  ;;  %v18092_v39 = vld [vmem:[#allocation49_spill] sm:$0xff] }
 0x515   : > { %v17203_v13 = vadd.f32 %v7234_v16, %v18072_v63  ;;  %v17206_v49 = vadd.f32 %v7233_v7, %v18074_v20  ;;  %v4084_v36 = vpop.f32.mrb[240].mxu0  ;;  %v18078_v14 = vld [vmem:[#allocation18_spill] sm:$0xff] }
 0x516   : > { %18071 = vst [vmem:[#allocation33_spill] sm:$0xff] %v17195_v9  ;;  %v17213_v17 = vadd.f32 %v7235_v0, %v18076_v15  ;;  %v7336_v52 = vmul.f32 %v18078_v14, %v4084_v36  ;;  %v4917_v11 = vpop.f32.mrb[240].mxu1  ;;  %v4086_v43 = vpop.f32.mrb[241].mxu0  ;;  %v18079_v63 = vld [vmem:[#allocation26_spill] sm:$0xff]  ;;  %v18081_v36 = vld [vmem:[#allocation13_spill] sm:$0xff]  ;;  %v18087_v0 = vrot.slane %v16847_v8, %v18007_v27 }
 0x517   : > { %18073 = vst [vmem:[#allocation19_spill] sm:$0xff] %v17203_v13  ;;  %18075 = vst [vmem:[#allocation52_spill] sm:$0xff] %v17206_v49  ;;  %v7338_v20 = vmul.f32 %v18079_v63, %v4917_v11  ;;  %v7337_v4 = vmul.f32 %v18080_v19, %v4086_v43  ;;  %v4919_v61 = vpop.f32.mrb[241].mxu1  ;;  %v18085_v7 = vld [vmem:[#allocation46_spill] sm:$0xff] }
 0x518   : > { %18077 = vst [vmem:[#allocation56_spill] sm:$0xff] %v17213_v17  ;;  %v7400_v15 = vadd.f32 %v7336_v52, %v18081_v36  ;;  %v7339_v51 = vmul.f32 %v18082_v28, %v4919_v61  ;;  %v18083_v61 = vrot.slane %v16840_v29, %v18006_v62  ;;  %v18084_v36 = vrot.slane %v16840_v29, %v18007_v27 }
 0x519   : > { %v7402_v11 = vadd.f32 %v7338_v20, %v16972_v2  ;;  %v7401_v43 = vadd.f32 %v7337_v4, %v16975_v1  ;;  %v4090_v58 = vpop.f32.mrb[242].mxu0  ;;  %v18086_v20 = vrot.slane %v16847_v8, %v18006_v62 }
 0x51a   : > { %v7496_v52 = vmul.f32 %v18083_v61, %v7400_v15  ;;  %v7536_v16 = vmul.f32 %v18084_v36, %v7400_v15  ;;  %v7403_v18 = vadd.f32 %v7339_v51, %v18085_v7  ;;  %v7344_v2 = vmul.f32 %v18078_v14, %v4090_v58  ;;  %v4923_v1 = vpop.f32.mrb[242].mxu1  ;;  %v4092_v4 = vpop.f32.mrb[243].mxu0 }
 0x51b   : > { %v7498_v46 = vmul.f32 %v18086_v20, %v7402_v11  ;;  %v7538_v17 = vmul.f32 %v18087_v0, %v7402_v11  ;;  %v18088_v61 = vrot.slane %v16875_v25, %v18006_v62  ;;  %v18089_v15 = vrot.slane %v16875_v25, %v18007_v27  ;;  %v4925_v7 = vpop.f32.mrb[243].mxu1 }
 0x51c   : > { %v7552_v58 = vrot.slane %v7536_v16, 4  ;;  %v18090_v36 = vrot.slane %v16919_v60, %v18006_v62  ;;  %v18091_v20 = vrot.slane %v16919_v60, %v18007_v27  ;;  %v7408_v0 = vadd.f32 %v7344_v2, %v18092_v39 }
 0x51d   : > { %v7497_v49 = vmul.f32 %v18088_v61, %v7401_v43  ;;  %v7537_v51 = vmul.f32 %v18089_v15, %v7401_v43  ;;  %v7554_v11 = vrot.slane %v7538_v17, 4  ;;  %v7346_v61 = vmul.f32 %v18079_v63, %v4923_v1  ;;  %v4096_v38 = vpop.f32.mrb[244].mxu0 }
 0x51e   : > { %v7499_v13 = vmul.f32 %v18090_v36, %v7403_v18  ;;  %v7539_v9 = vmul.f32 %v18091_v20, %v7403_v18  ;;  %v7345_v5 = vmul.f32 %v18080_v19, %v4092_v4  ;;  %v7568_v43 = vadd.f32 %v7552_v58, %v7496_v52  ;;  %v4929_v18 = vpop.f32.mrb[244].mxu1  ;;  %v4098_v20 = vpop.f32.mrb[245].mxu0 }
 0x51f   : > { %v7553_v56 = vrot.slane %v7537_v51, 4  ;;  %v18093_v16 = vrot.slane %v16840_v29, %v18038_v12  ;;  %v18094_v36 = vrot.slane %v16840_v29, %v18039_v35  ;;  %v7570_v39 = vadd.f32 %v7554_v11, %v7498_v46  ;;  %v4931_v4 = vpop.f32.mrb[245].mxu1 }
 0x520   : > { %v7555_v15 = vrot.slane %v7539_v9, 4  ;;  %v7410_v2 = vadd.f32 %v7346_v61, %v17004_v24  ;;  %v7409_v1 = vadd.f32 %v7345_v5, %v17007_v22  ;;  %v7347_v58 = vmul.f32 %v18082_v28, %v4925_v7 }
 0x521   : > { %v7608_v34 = vmul.f32 %v18093_v16, %v7408_v0  ;;  %v7656_v32 = vmul.f32 %v18094_v36, %v7408_v0  ;;  %v7569_v17 = vadd.f32 %v7553_v56, %v7497_v49  ;;  %v18095_v16 = vrot.slane %v16847_v8, %v18038_v12 }
 0x522   : > { %v7571_v51 = vadd.f32 %v7555_v15, %v7499_v13  ;;  %v18096_v0 = vrot.slane %v16847_v8, %v18039_v35  ;;  %v18097_v56 = vrot.slane %v16875_v25, %v18038_v12  ;;  %v18098_v22 = vrot.slane %v16875_v25, %v18039_v35  ;;  %v4935_v7 = vpop.f32.mrb[246].mxu1 }
 0x523   : > { %v7616_v52 = vadd.f32 %v7608_v34, %v7568_v43  ;;  %v7672_v9 = vrot.slane %v7656_v32, 4  ;;  %v7610_v30 = vmul.f32 %v18095_v16, %v7410_v2  ;;  %v4102_v34 = vpop.f32.mrb[246].mxu0  ;;  %v7411_v49 = vadd.f32 %v7347_v58, %v17014_v41  ;;  %v4937_v16 = vpop.f32.mrb[247].mxu1 }
 0x524   : > { %v7658_v36 = vmul.f32 %v18096_v0, %v7410_v2  ;;  %v7609_v24 = vmul.f32 %v18097_v56, %v7409_v1  ;;  %v7657_v5 = vmul.f32 %v18098_v22, %v7409_v1  ;;  %v7352_v13 = vmul.f32 %v18078_v14, %v4096_v38  ;;  %v4104_v11 = vpop.f32.mrb[247].mxu0 }
 0x525   : > { %v7688_v32 = vadd.f32 %v7672_v9, %v7616_v52  ;;  %v7354_v46 = vmul.f32 %v18079_v63, %v4929_v18  ;;  %v7618_v61 = vadd.f32 %v7610_v30, %v7570_v39  ;;  %v18099_v0 = vrot.slane %v16919_v60, %v18038_v12 }
 0x526   : > { %v7674_v43 = vrot.slane %v7658_v36, 4  ;;  %v7617_v15 = vadd.f32 %v7609_v24, %v7569_v17  ;;  %v7673_v2 = vrot.slane %v7657_v5, 4  ;;  %v18100_v1 = vrot.slane %v16919_v60, %v18039_v35  ;;  %v4108_v17 = vpop.f32.mrb[248].mxu0 }
 0x527   : > { %v7611_v56 = vmul.f32 %v18099_v0, %v7411_v49  ;;  %v7416_v41 = vadd.f32 %v7352_v13, %v17032_v48  ;;  %v7418_v38 = vadd.f32 %v7354_v46, %v17040_v47  ;;  %v7353_v30 = vmul.f32 %v18080_v19, %v4098_v20  ;;  %v4941_v48 = vpop.f32.mrb[248].mxu1  ;;  %v4110_v13 = vpop.f32.mrb[249].mxu0 }
 0x528   : > { %v7659_v52 = vmul.f32 %v18100_v1, %v7411_v49  ;;  %v7690_v18 = vadd.f32 %v7674_v43, %v7618_v61  ;;  %v7689_v9 = vadd.f32 %v7673_v2, %v7617_v15  ;;  %v7355_v39 = vmul.f32 %v18082_v28, %v4931_v4  ;;  %v17315_v43 = vpop.f32.mrb[249].mxu1 }
 0x529   : > { %v7619_v58 = vadd.f32 %v7611_v56, %v7571_v51  ;;  %v18101_v24 = vrot.slane %v16840_v29, %v18048_v57  ;;  %v18102_v5 = vrot.slane %v16840_v29, %v18049_v55  ;;  %v18103_v47 = vrot.slane %v16847_v8, %v18048_v57 }
 0x52a   : > { %v7675_v36 = vrot.slane %v7659_v52, 4  ;;  %v18104_v20 = vrot.slane %v16847_v8, %v18049_v55  ;;  %v7417_v51 = vadd.f32 %v7353_v30, %v17043_v40  ;;  %v7419_v61 = vadd.f32 %v7355_v39, %v17050_v23  ;;  %v17324_v40 = vpop.f32.mrb[250].mxu0 }
 0x52b   : > { %v7728_v22 = vmul.f32 %v18101_v24, %v7416_v41  ;;  %v7776_v49 = vmul.f32 %v18102_v5, %v7416_v41  ;;  %v7730_v46 = vmul.f32 %v18103_v47, %v7418_v38  ;;  %v7360_v56 = vmul.f32 %v18078_v14, %v4102_v34 }
 0x52c   : > { %v7778_v4 = vmul.f32 %v18104_v20, %v7418_v38  ;;  %v7691_v15 = vadd.f32 %v7675_v36, %v7619_v58  ;;  %v18105_v41 = vrot.slane %v16875_v25, %v18048_v57  ;;  %v18106_v38 = vrot.slane %v16875_v25, %v18049_v55  ;;  %v17333_v58 = vpop.f32.mrb[250].mxu1  ;;  %v17335_v36 = vpop.f32.mrb[251].mxu0 }
 0x52d   : > { %v7736_v2 = vadd.f32 %v7728_v22, %v7688_v32  ;;  %v7792_v0 = vrot.slane %v7776_v49, 4  ;;  %v7738_v1 = vadd.f32 %v7730_v46, %v7690_v18  ;;  %v18107_v30 = vrot.slane %v16919_v60, %v18048_v57  ;;  %v17338_v20 = vpop.f32.mrb[251].mxu1 }
 0x52e   : > { %v7794_v52 = vrot.slane %v7778_v4, 4  ;;  %v7729_v24 = vmul.f32 %v18105_v41, %v7417_v51  ;;  %v7777_v5 = vmul.f32 %v18106_v38, %v7417_v51  ;;  %v18108_v34 = vrot.slane %v16919_v60, %v18049_v55 }
 0x52f   : > { %v7808_v23 = vadd.f32 %v7792_v0, %v7736_v2  ;;  %v7731_v32 = vmul.f32 %v18107_v30, %v7419_v61  ;;  %v7424_v39 = vadd.f32 %v7360_v56, %v17068_v31  ;;  %v7362_v46 = vmul.f32 %v18079_v63, %v4935_v7  ;;  %v17349_v7 = vpop.f32.mrb[252].mxu0 }
 0x530   : > { %v7779_v18 = vmul.f32 %v18108_v34, %v7419_v61  ;;  %v7810_v22 = vadd.f32 %v7794_v52, %v7738_v1  ;;  %v7737_v49 = vadd.f32 %v7729_v24, %v7689_v9  ;;  %v7793_v47 = vrot.slane %v7777_v5, 4  ;;  %v17352_v5 = vpop.f32.mrb[252].mxu1  ;;  %v17354_v30 = vpop.f32.mrb[253].mxu0 }
 0x531   : > { %v7739_v4 = vadd.f32 %v7731_v32, %v7691_v15  ;;  %v18109_v2 = vrot.slane %v16840_v29, %v18056_v33  ;;  %v18110_v31 = vrot.slane %v16840_v29, %v18023_v59  ;;  %v7426_v41 = vadd.f32 %v7362_v46, %v17075_v10 }
 0x532   : > { %v7795_v51 = vrot.slane %v7779_v18, 4  ;;  %v7809_v56 = vadd.f32 %v7793_v47, %v7737_v49  ;;  %v7361_v9 = vmul.f32 %v18080_v19, %v4104_v11  ;;  %v7363_v1 = vmul.f32 %v18082_v28, %v4937_v16 }
 0x533   : > { %v7848_v0 = vmul.f32 %v18109_v2, %v7424_v39  ;;  %v7896_v61 = vmul.f32 %v18110_v31, %v7424_v39  ;;  %v7368_v38 = vmul.f32 %v18078_v14, %v4108_v17  ;;  %v18111_v29 = vrot.slane %v16847_v8, %v18056_v33 }
 0x534   : > { %v7811_v52 = vadd.f32 %v7795_v51, %v7739_v4  ;;  %v18112_v10 = vrot.slane %v16847_v8, %v18023_v59  ;;  %v7425_v16 = vadd.f32 %v7361_v9, %v17078_v50  ;;  %v7427_v34 = vadd.f32 %v7363_v1, %v17084_v6  ;;  %v17375_v6 = vpop.f32.mrb[254].mxu0 }
 0x535   : > { %v7856_v15 = vadd.f32 %v7848_v0, %v7808_v23  ;;  %v7912_v24 = vrot.slane %v7896_v61, 4  ;;  %v7850_v32 = vmul.f32 %v18111_v29, %v7426_v41  ;;  %v17364_v23 = vpop.f32.mrb[253].mxu1  ;;  %v7432_v17 = vadd.f32 %v7368_v38, %v17100_v44 }
 0x536   : > { %v7898_v11 = vmul.f32 %v18112_v10, %v7426_v41  ;;  %v7370_v39 = vmul.f32 %v18079_v63, %v4941_v48  ;;  %v7369_v49 = vmul.f32 %v18080_v19, %v4110_v13  ;;  %v18113_v4 = vrot.slane %v16875_v25, %v18056_v33  ;;  %v17391_v41 = vpop.f32.mrb[255].mxu0 }
 0x537   : > { %v7928_v18 = vadd.f32 %v7912_v24, %v7856_v15  ;;  %v7858_v47 = vadd.f32 %v7850_v32, %v7810_v22  ;;  %v18114_v50 = vrot.slane %v16875_v25, %v18023_v59  ;;  %v18115_v2 = vrot.slane %v16919_v60, %v18056_v33  ;;  %v17389_v25 = vpop.f32.mrb[254].mxu1 }
 0x538   : > { %v7914_v46 = vrot.slane %v7898_v11, 4  ;;  %v7849_v8 = vmul.f32 %v18113_v4, %v7425_v16  ;;  %v18116_v48 = vrot.slane %v16919_v60, %v18023_v59  ;;  %v18117_v22 = vrot.slane %v17053_v37, %v18006_v62  ;;  %v17394_v38 = vpop.f32.mrb[255].mxu1 }
 0x539   : > { %v7897_v51 = vmul.f32 %v18114_v50, %v7425_v16  ;;  %v7851_v44 = vmul.f32 %v18115_v2, %v7427_v34  ;;  %v18118_v31 = vrot.slane %v17053_v37, %v18007_v27  ;;  %v7434_v24 = vadd.f32 %v7370_v39, %v17107_v26 }
 0x53a   : > { %v7899_v13 = vmul.f32 %v18116_v48, %v7427_v34  ;;  %v7968_v0 = vmul.f32 %v18117_v22, %v7432_v17  ;;  %v7930_v9 = vadd.f32 %v7914_v46, %v7858_v47  ;;  %v7857_v1 = vadd.f32 %v7849_v8, %v7809_v56 }
 0x53b   : > { %v8016_v61 = vmul.f32 %v18118_v31, %v7432_v17  ;;  %v7913_v15 = vrot.slane %v7897_v51, 4  ;;  %v7859_v60 = vadd.f32 %v7851_v44, %v7811_v52  ;;  %v18119_v16 = vrot.slane %v17089_v53, %v18006_v62 }
 0x53c   : > { %v7915_v29 = vrot.slane %v7899_v13, 4  ;;  %v7976_v32 = vadd.f32 %v7968_v0, %v7928_v18  ;;  %v18120_v17 = vrot.slane %v17089_v53, %v18007_v27  ;;  %v7433_v56 = vadd.f32 %v7369_v49, %v17110_v21 }
 0x53d   : > { %v8032_v10 = vrot.slane %v8016_v61, 4  ;;  %v7929_v11 = vadd.f32 %v7913_v15, %v7857_v1  ;;  %v7970_v34 = vmul.f32 %v18119_v16, %v7434_v24  ;;  %v7371_v26 = vmul.f32 %v18082_v28, %v17315_v43  ;;  %v18127_v15 = vld [vmem:[#allocation50_spill] sm:$0xff] }
 0x53e   : > { %v8018_v4 = vmul.f32 %v18120_v17, %v7434_v24  ;;  %v7931_v47 = vadd.f32 %v7915_v29, %v7859_v60  ;;  %v7376_v52 = vmul.f32 %v18078_v14, %v17324_v40  ;;  %v18121_v8 = vrot.slane %v17103_v3, %v18006_v62  ;;  %v18129_v29 = vld [vmem:[#allocation22_spill] sm:$0xff] }
 0x53f   : > { %v8048_v46 = vadd.f32 %v8032_v10, %v7976_v32  ;;  %v7978_v18 = vadd.f32 %v7970_v34, %v7930_v9  ;;  %v18122_v51 = vrot.slane %v17103_v3, %v18007_v27  ;;  %v7435_v21 = vadd.f32 %v7371_v26, %v17117_v45 }
 0x540   : > { %v8034_v39 = vrot.slane %v8018_v4, 4  ;;  %v7969_v50 = vmul.f32 %v18121_v8, %v7433_v56  ;;  %v7440_v49 = vadd.f32 %v7376_v52, %v17131_v42  ;;  %v7378_v43 = vmul.f32 %v18079_v63, %v17333_v58 }
 0x541   : > { %v8017_v2 = vmul.f32 %v18122_v51, %v7433_v56  ;;  %v7377_v40 = vmul.f32 %v18080_v19, %v17335_v36  ;;  %v7379_v22 = vmul.f32 %v18082_v28, %v17338_v20  ;;  %v18123_v0 = vrot.slane %v17128_v54, %v18006_v62  ;;  %v18128_v20 = vld [vmem:[#allocation12_spill] sm:$0xff] }
 0x542   : > { %v8050_v44 = vadd.f32 %v8034_v39, %v7978_v18  ;;  %v7977_v48 = vadd.f32 %v7969_v50, %v7929_v11  ;;  %v18124_v45 = vrot.slane %v17128_v54, %v18007_v27  ;;  %v18125_v58 = vrot.slane %v17053_v37, %v18038_v12 }
 0x543   : > { %v8033_v13 = vrot.slane %v8017_v2, 4  ;;  %v7971_v31 = vmul.f32 %v18123_v0, %v7435_v21  ;;  %v18126_v36 = vrot.slane %v17053_v37, %v18039_v35  ;;  %v7442_v24 = vadd.f32 %v7378_v43, %v18127_v15 }
 0x544   : > { %v8019_v42 = vmul.f32 %v18124_v45, %v7435_v21  ;;  %v8088_v61 = vmul.f32 %v18125_v58, %v7440_v49  ;;  %v7441_v60 = vadd.f32 %v7377_v40, %v18128_v20  ;;  %v7443_v62 = vadd.f32 %v7379_v22, %v18129_v29  ;;  %v18136_v45 = vld [vmem:[#allocation47_spill] sm:$0xff]  ;;  %v18137_v58 = vld [vmem:[#allocation54_spill] sm:$0xff] }
 0x545   : > { %v8136_v9 = vmul.f32 %v18126_v36, %v7440_v49  ;;  %v8049_v1 = vadd.f32 %v8033_v13, %v7977_v48  ;;  %v7979_v32 = vadd.f32 %v7971_v31, %v7931_v47  ;;  %v18130_v16 = vrot.slane %v17089_v53, %v18038_v12 }
 0x546   : > { %v8035_v10 = vrot.slane %v8019_v42, 4  ;;  %v8096_v11 = vadd.f32 %v8088_v61, %v8048_v46  ;;  %v18131_v17 = vrot.slane %v17089_v53, %v18039_v35  ;;  %v18132_v56 = vrot.slane %v17103_v3, %v18038_v12 }
 0x547   : > { %v8152_v27 = vrot.slane %v8136_v9, 4  ;;  %v8090_v34 = vmul.f32 %v18130_v16, %v7442_v24  ;;  %v18133_v52 = vrot.slane %v17103_v3, %v18039_v35  ;;  %v18134_v46 = vrot.slane %v17128_v54, %v18038_v12 }
 0x548   : > { %v8138_v4 = vmul.f32 %v18131_v17, %v7442_v24  ;;  %v8089_v26 = vmul.f32 %v18132_v56, %v7441_v60  ;;  %v8051_v47 = vadd.f32 %v8035_v10, %v7979_v32  ;;  %v18135_v50 = vrot.slane %v17128_v54, %v18039_v35 }
 0x549   : > { %v8137_v18 = vmul.f32 %v18133_v52, %v7441_v60  ;;  %v8168_v39 = vadd.f32 %v8152_v27, %v8096_v11  ;;  %v8091_v8 = vmul.f32 %v18134_v46, %v7443_v62  ;;  %v8098_v2 = vadd.f32 %v8090_v34, %v8050_v44 }
 0x54a   : > { %v8139_v51 = vmul.f32 %v18135_v50, %v7443_v62  ;;  %v8154_v21 = vrot.slane %v8138_v4, 4  ;;  %v8097_v49 = vadd.f32 %v8089_v26, %v8049_v1  ;;  %v7384_v13 = vmul.f32 %v18078_v14, %v17349_v7  ;;  %v18138_v7 = vld [vmem:[#allocation21_spill] sm:$0xff]  ;;  %v18139_v1 = vld [vmem:[#allocation20_spill] sm:$0xff] }
 0x54b   : > { %v8153_v43 = vrot.slane %v8137_v18, 4  ;;  %v8099_v40 = vadd.f32 %v8091_v8, %v8051_v47  ;;  %v7386_v22 = vmul.f32 %v18079_v63, %v17352_v5  ;;  %v7385_v12 = vmul.f32 %v18080_v19, %v17354_v30  ;;  %v18148_v8 = vld [vmem:[#allocation33_spill] sm:$0xff] }
 0x54c   : > { %v8155_v48 = vrot.slane %v8139_v51, 4  ;;  %v8170_v0 = vadd.f32 %v8154_v21, %v8098_v2  ;;  %v7387_v35 = vmul.f32 %v18082_v28, %v17364_v23  ;;  %v7448_v42 = vadd.f32 %v7384_v13, %v18136_v45  ;;  %v18149_v51 = vld [vmem:[#allocation19_spill] sm:$0xff]  ;;  %v18157_v45 = vld [vmem:[#allocation56_spill] sm:$0xff] }
 0x54d   : > { %v8169_v31 = vadd.f32 %v8153_v43, %v8097_v49  ;;  %v7450_v61 = vadd.f32 %v7386_v22, %v18137_v58  ;;  %v7392_v36 = vmul.f32 %v18078_v14, %v17375_v6  ;;  %v7449_v9 = vadd.f32 %v7385_v12, %v18138_v7  ;;  %v18150_v49 = vld [vmem:[#allocation52_spill] sm:$0xff] }
 0x54e   : > { %v8171_v44 = vadd.f32 %v8155_v48, %v8099_v40  ;;  %v7451_v5 = vadd.f32 %v7387_v35, %v18139_v1  ;;  %v7394_v15 = vmul.f32 %v18079_v63, %v17389_v25  ;;  %v7393_v30 = vmul.f32 %v18080_v19, %v17391_v41 }
 0x54f   : > { %v18140_v23 = vrot.slane %v17053_v37, %v18048_v57  ;;  %v18141_v20 = vrot.slane %v17053_v37, %v18049_v55  ;;  %v18142_v14 = vrot.slane %v17089_v53, %v18048_v57  ;;  %v18143_v29 = vrot.slane %v17089_v53, %v18049_v55 }
 0x550   : > { %v18144_v63 = vrot.slane %v17103_v3, %v18048_v57  ;;  %v18145_v25 = vrot.slane %v17103_v3, %v18049_v55  ;;  %v18146_v32 = vrot.slane %v17128_v54, %v18048_v57  ;;  %v18147_v11 = vrot.slane %v17128_v54, %v18049_v55 }
 0x551   : > { %v8208_v24 = vmul.f32 %v18140_v23, %v7448_v42  ;;  %v8256_v60 = vmul.f32 %v18141_v20, %v7448_v42  ;;  %v8210_v6 = vmul.f32 %v18142_v14, %v7450_v61  ;;  %v8258_v62 = vmul.f32 %v18143_v29, %v7450_v61 }
 0x552   : > { %v8209_v19 = vmul.f32 %v18144_v63, %v7449_v9  ;;  %v8257_v41 = vmul.f32 %v18145_v25, %v7449_v9  ;;  %v8211_v10 = vmul.f32 %v18146_v32, %v7451_v5  ;;  %v8259_v27 = vmul.f32 %v18147_v11, %v7451_v5 }
 0x553   : > { %v8216_v16 = vadd.f32 %v8208_v24, %v8168_v39  ;;  %v8272_v34 = vrot.slane %v8256_v60, 4  ;;  %v8218_v17 = vadd.f32 %v8210_v6, %v8170_v0  ;;  %v8274_v4 = vrot.slane %v8258_v62, 4 }
 0x554   : > { %v8217_v56 = vadd.f32 %v8209_v19, %v8169_v31  ;;  %v8273_v26 = vrot.slane %v8257_v41, 4  ;;  %v8219_v52 = vadd.f32 %v8211_v10, %v8171_v44  ;;  %v8275_v18 = vrot.slane %v8259_v27, 4 }
 0x555   : > { %v8288_v47 = vadd.f32 %v8272_v34, %v8216_v16  ;;  %v8290_v46 = vadd.f32 %v8274_v4, %v8218_v17  ;;  %v7456_v50 = vadd.f32 %v7392_v36, %v18148_v8  ;;  %v7458_v2 = vadd.f32 %v7394_v15, %v18149_v51 }
 0x556   : > { %v8289_v57 = vadd.f32 %v8273_v26, %v8217_v56  ;;  %v8291_v21 = vadd.f32 %v8275_v18, %v8219_v52  ;;  %v7457_v43 = vadd.f32 %v7393_v30, %v18150_v49  ;;  %v7395_v55 = vmul.f32 %v18082_v28, %v17394_v38 }
 0x557   : > { %v18151_v39 = vrot.slane %v17053_v37, %v18056_v33  ;;  %v18152_v48 = vrot.slane %v17053_v37, %v18023_v59  ;;  %v18153_v22 = vrot.slane %v17089_v53, %v18056_v33  ;;  %v18154_v31 = vrot.slane %v17089_v53, %v18023_v59 }
 0x558   : > { %v18155_v35 = vrot.slane %v17103_v3, %v18056_v33  ;;  %v18156_v38 = vrot.slane %v17103_v3, %v18023_v59  ;;  %v7459_v37 = vadd.f32 %v7395_v55, %v18157_v45  ;;  %v18158_v9 = vrot.slane %v17128_v54, %v18056_v33 }
 0x559   : > { %v8328_v40 = vmul.f32 %v18151_v39, %v7456_v50  ;;  %v8376_v13 = vmul.f32 %v18152_v48, %v7456_v50  ;;  %v8330_v0 = vmul.f32 %v18153_v22, %v7458_v2  ;;  %v8378_v12 = vmul.f32 %v18154_v31, %v7458_v2 }
 0x55a   : > { %v8329_v28 = vmul.f32 %v18155_v35, %v7457_v43  ;;  %v8377_v44 = vmul.f32 %v18156_v38, %v7457_v43  ;;  %v8331_v1 = vmul.f32 %v18158_v9, %v7459_v37  ;;  %v18159_v5 = vrot.slane %v17128_v54, %v18023_v59 }
 0x55b   : > { %v8336_v42 = vadd.f32 %v8328_v40, %v8288_v47  ;;  %v8392_v58 = vrot.slane %v8376_v13, 4  ;;  %v8338_v61 = vadd.f32 %v8330_v0, %v8290_v46  ;;  %v8394_v36 = vrot.slane %v8378_v12, 4 }
 0x55c   : > { %v8337_v7 = vadd.f32 %v8329_v28, %v8289_v57  ;;  %v8393_v53 = vrot.slane %v8377_v44, 4  ;;  %v8379_v3 = vmul.f32 %v18159_v5, %v7459_v37  ;;  %v8339_v24 = vadd.f32 %v8331_v1, %v8291_v21 }
 0x55d   : > { %v8408_v15 = vadd.f32 %v8392_v58, %v8336_v42  ;;  %v8410_v30 = vadd.f32 %v8394_v36, %v8338_v61 }
 0x55e   : > { %v8409_v23 = vadd.f32 %v8393_v53, %v8337_v7  ;;  %v8395_v20 = vrot.slane %v8379_v3, 4 }
 0x55f   : > { %v8420_v60 = vrot.slane %v8410_v30, 4 }
 0x560   : > { %v8411_v14 = vadd.f32 %v8395_v20, %v8339_v24 }
 0x561   : > { %v8427_v6 = vsel %vm8424_vm12, %v8408_v15, %v8420_v60 }
 0x562   : > { %8431 = vst [vmem:[%s14267_s29 + $0x10] sm:$0xff] %v8427_v6  ;;  %v8421_v33 = vrot.slane %v8411_v14, 4 }
 0x564   : > { %v8428_v59 = vsel %vm8424_vm12, %v8409_v23, %v8421_v33 }
 0x565   : > { %8432 = vst [vmem:[%s14267_s29 + $0x18] sm:$0xff] %v8428_v59 }
 0x566   : > { %9311 = shalt.err (!%p9308_p1)
}
 0x567   : > { %s9312_s17 = scalar_lea.hbm %s17533_s19, 512  ;;  %s9316_s28 = scalar_lea.hbm %s17585_s3, 2048 }
 0x568   : > { %p9313_p2 = scmp.ne.s32.totalorder %s17533_s19, %s9312_s17  ;;  %p9317_p7 = scmp.lt.u32.totalorder %s17533_s19, %s17585_s3 }
 0x569   : > { %p9318_p8 = scmp.lt.u32.totalorder %s9316_s28, %s9312_s17  ;;  %p9320_p10 = scmp.lt.u32.totalorder %s9312_s17, %s17533_s19 }
 0x56a   : > { %p9314_p3 = pnand %p9313_p2, %p9429_p5 }
 0x56b   : > { %p9319_p9 = por %p9318_p8, %p9317_p7 }
 0x56c   : > { %p9315_p4 = pneg %p9314_p3 }
 0x56d   : > { %p9321_p11 = por %p9320_p10, %p9319_p9 }
 0x56f   : > { %p9322_p12 = pnand %p9321_p11, %p9315_p4 }
 0x571   : > { %9325 = shalt.err (!%p9322_p12)
}
 0x572   : > { %s9369_s30 = smov 256   ;;  %s9370_s6 = smov 16  }
 0x573   : > { %9104 = dma.vmem_to_hbm [thread:$0]  (%p9429_p5), %s17535_s9, 512, %s17533_s19, %s17541_s16, %s9369_s30, %s9369_s30, %s9370_s6  }
 0x574 PF: > { %p9116_p13 = scmp.ge.s32.totalorder %s9364_s15, 2  ;;  %s8462_s7 = sand.u32 1, %s9352_s12  }
 0x575   : > { %s8463_s8 = scalar_lea.sflag [#allocation3], %s8462_s7 }
 0x576   : > { %p9111_p0 = pnand %p9116_p13, %p9433_p6 }
 0x578   : > { %9347 = dma.done.wait (!%p9111_p0), %s8463_s8, 512  }
 0x579   : > { %9349 = vsyncadd (!%p9111_p0), %s8463_s8, 4294966784  ;;  %p14_p1 = scmp.ge.s32.totalorder %s9416_s18, 6   ;;  %s18160_s12 = smov %s9356_s13 }
 0x57a   : > { %s18161_s13 = smov %s9360_s14  ;;  %s18162_s14 = smov %s9427_s21 }
 0x57b   : > { %s18163_s15 = smov %s9416_s18  ;;  %16 = sbr.rel (!%p14_p1) target bundleno = 4 (0x4), region = 71 }
 0x582   :  { %8468 = vsyncpa [#allocation3], 1 }
 0x583   :  { %8470 = vsyncpa [#allocation3 + $0x1], 1 }
 0x584   :  { %8471 = vsyncpa [#allocation4], 1 }
 0x585   :  { %8473 = vsyncpa [#allocation4 + $0x1], 1 }

</bundles_post_ra>
